<compile_context>
chip_gen: v5e
topology: v5e:2x2
jax: 0.10.0
libtpu: 0.0.40
codegen_flags: <defaults>
</compile_context>

<pallas_src>
import functools

import jax
import jax.numpy as jnp
from jax.experimental import pallas as pl
from jax.experimental.pallas import tpu as pltpu

# -------------------- scaled-down architecture config --------------------
IN_CH = 3
STEM_W = 8
LAYER_WIDTHS = [8, 16, 32, 64]   # stand-ins for resnet18's [64, 128, 256, 512]
LAYER_STRIDES = [1, 2, 2, 2]
FPN_OUT = 16                     # stand-in for FPN out_channels=256
BN_EPS = 1e-5
CP = 128                         # lane width used end-to-end
NEG_INF = -1e30


def _round_up(x, m):
    return (x + m - 1) // m * m


# ----------------------------- Pallas kernels -----------------------------
def _conv_kernel(*refs, taps, R, Wq, OW, CH, M_chunk, CIN, relu, has_res,
                 x_is_block, multi_chunk):
    """Fused conv + frozen-BN affine + optional residual + optional ReLU.

    Two modes:
      x_is_block: x block already holds exactly this chunk's rows (1x1 s1 p0
        convs and the im2col'ed stem) -> one matmul over the full K (128/256).
      tap mode:   x block is the full phase buffer (P phases of R rows each);
        tap (phase, offset) -> one stride-1 pl.ds slice, accumulated in
        registers, written once.
    Accumulator row r = oh_local*Wq + ow; rows with ow >= OW are junk and are
    dropped in the epilogue (their out-of-range reads only hit row padding).
    """
    if has_res:
        x_ref, w_ref, s_ref, b_ref, res_ref, o_ref = refs
    else:
        x_ref, w_ref, s_ref, b_ref, o_ref = refs
        res_ref = None

    if x_is_block:
        acc = jnp.dot(x_ref[...], w_ref[...], preferred_element_type=jnp.float32)
    else:
        base = pl.program_id(1) * (CH * Wq) if multi_chunk else 0
        acc = None
        for kidx, (ph, off) in enumerate(taps):
            a = x_ref[pl.ds(ph * R + off + base, M_chunk), :]
            w = w_ref[pl.ds(kidx * CIN, CIN), :]
            part = jnp.dot(a, w, preferred_element_type=jnp.float32)
            acc = part if acc is None else acc + part

    acc = acc * s_ref[...] + b_ref[...]

    if Wq == OW:                         # accumulator rows already compact
        out = acc
        if has_res:
            out = out + res_ref[...].astype(jnp.float32)
        if relu:
            out = jnp.maximum(out, 0.0)
        o_ref[...] = out.astype(o_ref.dtype)
    else:                                # keep only the OW valid rows per output row
        for i in range(CH):
            row = acc[i * Wq:i * Wq + OW, :]
            if has_res:
                row = row + res_ref[pl.ds(i * OW, OW), :].astype(jnp.float32)
            if relu:
                row = jnp.maximum(row, 0.0)
            o_ref[pl.ds(i * OW, OW), :] = row.astype(o_ref.dtype)


def _maxpool_kernel(x_ref, o_ref, *, taps, R, Wq, OW, CH, M_chunk, multi_chunk):
    base = pl.program_id(1) * (CH * Wq) if multi_chunk else 0
    m = None
    for ph, off in taps:
        v = x_ref[pl.ds(ph * R + off + base, M_chunk), :]
        m = v if m is None else jnp.maximum(m, v)
    if Wq == OW:
        o_ref[...] = m
    else:
        for i in range(CH):
            o_ref[pl.ds(i * OW, OW), :] = m[i * Wq:i * Wq + OW, :]


# ----------------------------- host-side prep -----------------------------
def _prep_phases(x_flat, H, W, k, stride, padding, pad_val):
    """Spatial pad + de-interleave into stride^2 phases + flatten + row pad.

    Returns buffer (N, P*R, C) where phase p occupies rows [p*R, p*R+R) with
    row pitch Wq, plus the static tap list [(phase, row_offset), ...] so every
    in-kernel tap read is a stride-1 slice.
    """
    N, _, C = x_flat.shape
    Hp, Wp = H + 2 * padding, W + 2 * padding
    OH = (Hp - k) // stride + 1
    OW = (Wp - k) // stride + 1
    Hpr, Wpr = _round_up(Hp, stride), _round_up(Wp, stride)
    Hq, Wq = Hpr // stride, Wpr // stride
    P = stride * stride

    dmax = (k - 1) // stride
    need = (OH - 1 + dmax) * Wq + OW + dmax
    R = _round_up(max(Hq * Wq, need), 8)

    x4 = x_flat.reshape(N, H, W, C)
    x4 = jnp.pad(x4, ((0, 0),
                      (padding, padding + Hpr - Hp),
                      (padding, padding + Wpr - Wp),
                      (0, 0)), constant_values=pad_val)
    if stride == 1:
        phb = x4.reshape(N, 1, Hq * Wq, C)
    else:
        phb = x4.reshape(N, Hq, stride, Wq, stride, C)
        phb = jnp.transpose(phb, (0, 2, 4, 1, 3, 5)).reshape(N, P, Hq * Wq, C)
    if R > Hq * Wq:
        phb = jnp.pad(phb, ((0, 0), (0, 0), (0, R - Hq * Wq), (0, 0)),
                      constant_values=pad_val)
    phb = phb.reshape(N, P * R, C)

    taps = [((kh % stride) * stride + (kw % stride),
             (kh // stride) * Wq + (kw // stride))
            for kh in range(k) for kw in range(k)]
    return phb, taps, R, Wq, OH, OW


def _pick_chunk(OH, OW, Wq, cap=192):
    """Largest divisor of OH whose chunk accumulator stays in a few vregs and
    whose per-chunk output block / row stride stay sublane-aligned."""
    for ch in (16, 8, 4, 2, 1):
        if OH % ch:
            continue
        if OH // ch > 1 and ((ch * OW) % 8 or (ch * Wq) % 8):
            continue
        if (ch - 1) * Wq + OW <= cap:
            return ch
    return OH


def stem_im2col(x_nhwc, k, stride, padding, kp):
    """Host-side im2col for the 3-channel stem: (N,H,W,3) -> (N,OH*OW,kp) bf16."""
    N, H, W, C = x_nhwc.shape
    Hp, Wp = H + 2 * padding, W + 2 * padding
    OH = (Hp - k) // stride + 1
    OW = (Wp - k) // stride + 1
    xpad = jnp.pad(x_nhwc, ((0, 0), (padding, padding), (padding, padding), (0, 0)))
    cols = []
    for kh in range(k):
        for kw in range(k):
            cols.append(xpad[:, kh:kh + (OH - 1) * stride + 1:stride,
                             kw:kw + (OW - 1) * stride + 1:stride, :])
    col = jnp.concatenate(cols, axis=-1)                      # (N, OH, OW, k*k*C)
    col = jnp.pad(col, ((0, 0), (0, 0), (0, 0), (0, kp - k * k * C)))
    return col.reshape(N, OH * OW, kp).astype(jnp.bfloat16), OH, OW


# ----------------------------- kernel wrappers -----------------------------
def conv2d_fused(x_flat, H, W, p, stride, padding, relu, residual=None):
    """x_flat: (N, H*W, C_lanes) bf16.  Returns (y (N,OH*OW,128) bf16, OH, OW)."""
    N = x_flat.shape[0]
    k, CIN = p["k"], p["cin_p"]
    has_res = residual is not None
    compact = (k == 1 and stride == 1 and padding == 0)

    if compact:
        OH, OW, Wq = H, W, W
        taps = [(0, 0)]
        R = H * W
        xp = x_flat
        P = 1
    else:
        xp, taps, R, Wq, OH, OW = _prep_phases(x_flat, H, W, k, stride, padding, 0.0)
        P = stride * stride

    CH = _pick_chunk(OH, OW, Wq)
    nck = OH // CH
    M_chunk = (CH - 1) * Wq + OW

    if compact:
        x_spec = pl.BlockSpec((None, CH * OW, CIN), lambda n, t: (n, t, 0))
    else:
        x_spec = pl.BlockSpec((None, P * R, CIN), lambda n, t: (n, 0, 0))

    in_specs = [x_spec,
                pl.BlockSpec((len(taps) * CIN, CP), lambda n, t: (0, 0)),
                pl.BlockSpec((1, CP), lambda n, t: (0, 0)),
                pl.BlockSpec((1, CP), lambda n, t: (0, 0))]
    inputs = [xp, p["w"], p["scale"], p["bias"]]
    if has_res:
        in_specs.append(pl.BlockSpec((None, CH * OW, CP), lambda n, t: (n, t, 0)))
        inputs.append(residual)

    flops = int(2 * N * OH * OW * len(taps) * CIN * CP)
    bytes_acc = int(xp.size) * 2 + int(p["w"].size) * 2 + 2 * CP * 4 \
        + N * OH * OW * CP * 2 * (2 if has_res else 1)

    kernel = functools.partial(
        _conv_kernel, taps=taps, R=R, Wq=Wq, OW=OW, CH=CH, M_chunk=M_chunk,
        CIN=CIN, relu=relu, has_res=has_res, x_is_block=compact,
        multi_chunk=(nck > 1))

    out = pl.pallas_call(
        kernel,
        out_shape=jax.ShapeDtypeStruct((N, OH * OW, CP), jnp.bfloat16),
        grid=(N, nck),
        in_specs=in_specs,
        out_specs=pl.BlockSpec((None, CH * OW, CP), lambda n, t: (n, t, 0)),
        compiler_params=pltpu.CompilerParams(
            dimension_semantics=("parallel", "parallel"),
            vmem_limit_bytes=32 * 1024 * 1024),
        cost_estimate=pl.CostEstimate(flops=flops, transcendentals=0,
                                      bytes_accessed=bytes_acc),
    )(*inputs)
    return out, OH, OW


def maxpool2d_3x3_s2(x_flat, H, W):
    """MaxPool2d(kernel=3, stride=2, padding=1) on flattened lane-padded NHWC."""
    N = x_flat.shape[0]
    xp, taps, R, Wq, OH, OW = _prep_phases(x_flat, H, W, 3, 2, 1, NEG_INF)
    CH = _pick_chunk(OH, OW, Wq)
    nck = OH // CH
    M_chunk = (CH - 1) * Wq + OW
    P = 4

    out = pl.pallas_call(
        functools.partial(_maxpool_kernel, taps=taps, R=R, Wq=Wq, OW=OW,
                          CH=CH, M_chunk=M_chunk, multi_chunk=(nck > 1)),
        out_shape=jax.ShapeDtypeStruct((N, OH * OW, CP), jnp.bfloat16),
        grid=(N, nck),
        in_specs=[pl.BlockSpec((None, P * R, CP), lambda n, t: (n, 0, 0))],
        out_specs=pl.BlockSpec((None, CH * OW, CP), lambda n, t: (n, t, 0)),
        compiler_params=pltpu.CompilerParams(
            dimension_semantics=("parallel", "parallel"),
            vmem_limit_bytes=32 * 1024 * 1024),
        cost_estimate=pl.CostEstimate(
            flops=0, transcendentals=0,
            bytes_accessed=int(xp.size) * 2 + N * OH * OW * CP * 2),
    )(xp)
    return out, OH, OW


def upsample_nearest_flat(x_flat, h, w, oh, ow):
    N = x_flat.shape[0]
    x4 = x_flat.reshape(N, h, w, CP)
    x4 = jnp.repeat(jnp.repeat(x4, oh // h, axis=1), ow // w, axis=2)
    return x4.reshape(N, oh * ow, CP)


# ------------------------------ parameters ------------------------------
def _affine_pads(scale, bias, cout):
    return (jnp.zeros((1, CP), jnp.float32).at[0, :cout].set(scale),
            jnp.zeros((1, CP), jnp.float32).at[0, :cout].set(bias))


def _pack_taps(w_oihw, scale, bias):
    """(O,I,KH,KW) -> per-tap (KH*KW*128, 128) bf16 rows + padded affine."""
    Cout, Cin, KH, KW = w_oihw.shape
    wm = jnp.transpose(w_oihw, (2, 3, 1, 0)).reshape(KH * KW, Cin, Cout)
    wp = jnp.zeros((KH * KW, CP, CP), jnp.float32).at[:, :Cin, :Cout].set(wm)
    s, b = _affine_pads(scale, bias, Cout)
    return {"w": wp.reshape(KH * KW * CP, CP).astype(jnp.bfloat16),
            "scale": s, "bias": b, "k": KH, "cin_p": CP}


def _pack_im2col(w_oihw, scale, bias):
    """Stem packing: (O,I,KH,KW) -> single (KH*KW*I padded to 128k, 128) matrix."""
    Cout, Cin, KH, KW = w_oihw.shape
    K = KH * KW * Cin
    Kp = _round_up(K, CP)
    wm = jnp.transpose(w_oihw, (2, 3, 1, 0)).reshape(K, Cout)
    wp = jnp.zeros((Kp, CP), jnp.float32).at[:K, :Cout].set(wm)
    s, b = _affine_pads(scale, bias, Cout)
    return {"w": wp.astype(jnp.bfloat16), "scale": s, "bias": b,
            "k": 1, "cin_p": Kp}


def conv_bn_params(key, cin, cout, k, pack=_pack_taps):
    k1, k2, k3, k4, k5 = jax.random.split(key, 5)
    w = jax.random.normal(k1, (cout, cin, k, k), jnp.float32) * (0.2 / (k * k * cin) ** 0.5)
    gamma = jax.random.uniform(k2, (cout,), jnp.float32, 0.5, 1.5)
    beta = jax.random.normal(k3, (cout,), jnp.float32) * 0.1
    mean = jax.random.normal(k4, (cout,), jnp.float32) * 0.1
    var = jax.random.uniform(k5, (cout,), jnp.float32, 0.5, 1.5)
    scale = gamma / jnp.sqrt(var + BN_EPS)      # frozen BN folded to affine
    bias = beta - mean * scale
    return pack(w, scale, bias)


def conv_bias_params(key, cin, cout, k):
    k1, k2 = jax.random.split(key)
    w = jax.random.normal(k1, (cout, cin, k, k), jnp.float32) * (0.2 / (k * k * cin) ** 0.5)
    b = jax.random.normal(k2, (cout,), jnp.float32) * 0.1
    return _pack_taps(w, jnp.ones((cout,), jnp.float32), b)


def init_all_params(key):
    keys = iter(jax.random.split(key, 64))
    P = {"stem": conv_bn_params(next(keys), IN_CH, STEM_W, 7, pack=_pack_im2col)}
    layers = []
    in_ch = STEM_W
    for w, stride in zip(LAYER_WIDTHS, LAYER_STRIDES):
        blk = {"conv1": conv_bn_params(next(keys), in_ch, w, 3),
               "conv2": conv_bn_params(next(keys), w, w, 3)}
        if stride != 1 or in_ch != w:
            blk["downsample"] = conv_bn_params(next(keys), in_ch, w, 1)
        layers.append(blk)
        in_ch = w
    P["layers"] = layers
    P["fpn_inner"] = [conv_bias_params(next(keys), c, FPN_OUT, 1) for c in LAYER_WIDTHS]
    P["fpn_layer"] = [conv_bias_params(next(keys), FPN_OUT, FPN_OUT, 3) for _ in LAYER_WIDTHS]
    return P


# ------------------------------ forward pass ------------------------------
def basic_block(x_flat, H, W, p, stride):
    h1, oh, ow = conv2d_fused(x_flat, H, W, p["conv1"], stride, 1, relu=True)
    if "downsample" in p:
        identity, _, _ = conv2d_fused(x_flat, H, W, p["downsample"], stride, 0, relu=False)
    else:
        identity = x_flat
    # conv2 + BN + residual add + ReLU fused in one kernel
    out, oh, ow = conv2d_fused(h1, oh, ow, p["conv2"], 1, 1, relu=True, residual=identity)
    return out, oh, ow


def resnet_fpn_forward(x_nchw, P):
    N, C, H, W = x_nchw.shape
    x_nhwc = jnp.transpose(x_nchw, (0, 2, 3, 1)).astype(jnp.float32)   # NCHW -> NHWC

    # ResNet stem: 7x7/s2/p3 conv as a single 256-wide matmul on host im2col.
    col, H, W = stem_im2col(x_nhwc, 7, 2, 3, P["stem"]["cin_p"])
    x, H, W = conv2d_fused(col, H, W, P["stem"], stride=1, padding=0, relu=True)
    x, H, W = maxpool2d_3x3_s2(x, H, W)

    # ResNet body
    feats = []
    for blk, s in zip(P["layers"], LAYER_STRIDES):
        x, H, W = basic_block(x, H, W, blk, s)
        feats.append((x, H, W))
    (_, _, _), (c3, h3, w3), (c4, h4, w4), (c5, h5, w5) = feats

    # FPN top-down path (only what feeds output '1'); the top-down add is
    # fused into the lateral 1x1 conv's epilogue.
    last_inner, lh, lw = conv2d_fused(c5, h5, w5, P["fpn_inner"][3], 1, 0, relu=False)
    for idx, (c, ch, cw) in ((2, (c4, h4, w4)), (1, (c3, h3, w3))):
        td = upsample_nearest_flat(last_inner, lh, lw, ch, cw)
        last_inner, lh, lw = conv2d_fused(c, ch, cw, P["fpn_inner"][idx], 1, 0,
                                          relu=False, residual=td)
    p1, ph, pw = conv2d_fused(last_inner, lh, lw, P["fpn_layer"][1], 1, 1, relu=False)

    # torch:  conv = feat['1']                # (N, C, H, W)
    #         conv = conv.transpose(-1, -2)   # (N, C, W, H)
    #         conv = conv.flatten(2)          # (N, C, W*H)
    #         conv = conv.permute(-1, 0, 1)   # (W*H, N, C)
    p1 = p1[:, :, :FPN_OUT].astype(jnp.float32).reshape(N, ph, pw, FPN_OUT)
    out = jnp.transpose(p1, (0, 2, 1, 3)).reshape(N, pw * ph, FPN_OUT)
    return jnp.transpose(out, (1, 0, 2))                               # (W*H, N, C)


if __name__ == "__main__":
    key = jax.random.PRNGKey(0)
    kx, kp = jax.random.split(key)
    x = jax.random.normal(kx, (2, 3, 32, 32), jnp.float32)             # NCHW like PyTorch
    params = init_all_params(kp)

    fwd = jax.jit(lambda inp: resnet_fpn_forward(inp, params))
    out = jax.block_until_ready(fwd(x))
    assert out.shape == (16, 2, FPN_OUT), out.shape                    # (W*H, N, C)
    print("KERNEL_OK")
</pallas_src>

<mosaic_0001>
module attributes {stable_mosaic.version = 11 : i64} {
  func.func @_conv_kernel(%arg0: i32, %arg1: i32, %arg2: memref<1x128x256xbf16, #tpu.memory_space<vmem>>, %arg3: memref<256x128xbf16, #tpu.memory_space<vmem>>, %arg4: memref<1x128xf32, #tpu.memory_space<vmem>>, %arg5: memref<1x128xf32, #tpu.memory_space<vmem>>, %arg6: memref<1x128x128xbf16, #tpu.memory_space<vmem>>) attributes {dimension_semantics = [#tpu.dimension_semantics<parallel>, #tpu.dimension_semantics<parallel>], iteration_bounds = array<i64: 2, 2>, scalar_prefetch = 0 : i64, scratch_operands = 0 : i64, tpu.core_type = #tpu.core_type<tc>, window_params = [{transform_indices = @transform_0, window_bounds = array<i64: 1, 128, 256>}, {pipeline_mode = #tpu.pipeline_mode<synchronous>, transform_indices = @transform_1, window_bounds = array<i64: 256, 128>}, {pipeline_mode = #tpu.pipeline_mode<synchronous>, transform_indices = @transform_2, window_bounds = array<i64: 1, 128>}, {pipeline_mode = #tpu.pipeline_mode<synchronous>, transform_indices = @transform_3, window_bounds = array<i64: 1, 128>}, {transform_indices = @transform_4, window_bounds = array<i64: 1, 128, 128>}]} {
    %c0 = arith.constant 0 : index
    %c0_0 = arith.constant 0 : index
    %c0_1 = arith.constant 0 : index
    %0 = vector.load %arg2[%c0, %c0_0, %c0_1] : memref<1x128x256xbf16, #tpu.memory_space<vmem>>, vector<1x128x256xbf16>
    %1 = vector.shape_cast %0 : vector<1x128x256xbf16> to vector<128x256xbf16>
    %c0_2 = arith.constant 0 : index
    %c0_3 = arith.constant 0 : index
    %2 = vector.load %arg3[%c0_2, %c0_3] : memref<256x128xbf16, #tpu.memory_space<vmem>>, vector<256x128xbf16>
    %cst = arith.constant dense<0.000000e+00> : vector<128x128xf32>
    %3 = tpu.matmul %1, %2, %cst {dimension_numbers = #tpu.dot_dimension_numbers<[1], [0], [0], [1], [0, 0, 1, 1], [], []>} : vector<128x256xbf16>, vector<256x128xbf16>, vector<128x128xf32> -> vector<128x128xf32>
    %c0_4 = arith.constant 0 : index
    %c0_5 = arith.constant 0 : index
    %4 = vector.load %arg4[%c0_4, %c0_5] : memref<1x128xf32, #tpu.memory_space<vmem>>, vector<1x128xf32>
    %5 = vector.broadcast %4 : vector<1x128xf32> to vector<128x128xf32>
    %6 = arith.mulf %3, %5 : vector<128x128xf32>
    %c0_6 = arith.constant 0 : index
    %c0_7 = arith.constant 0 : index
    %7 = vector.load %arg5[%c0_6, %c0_7] : memref<1x128xf32, #tpu.memory_space<vmem>>, vector<1x128xf32>
    %8 = vector.broadcast %7 : vector<1x128xf32> to vector<128x128xf32>
    %9 = arith.addf %6, %8 : vector<128x128xf32>
    %cst_8 = arith.constant 0.000000e+00 : f32
    %10 = vector.broadcast %cst_8 : f32 to vector<128x128xf32>
    %11 = arith.maximumf %9, %10 : vector<128x128xf32>
    %12 = arith.truncf %11 : vector<128x128xf32> to vector<128x128xbf16>
    %c0_9 = arith.constant 0 : index
    %c0_10 = arith.constant 0 : index
    %c0_11 = arith.constant 0 : index
    %13 = vector.load %arg6[%c0_9, %c0_10, %c0_11] : memref<1x128x128xbf16, #tpu.memory_space<vmem>>, vector<1x128x128xbf16>
    %14 = vector.shape_cast %13 : vector<1x128x128xbf16> to vector<128x128xbf16>
    %15 = vector.shape_cast %12 : vector<128x128xbf16> to vector<1x128x128xbf16>
    tpu.vector_store %arg6[%c0_9, %c0_10, %c0_11], %15 {strides = array<i32>} : memref<1x128x128xbf16, #tpu.memory_space<vmem>>, vector<1x128x128xbf16>,
    return
  }
  func.func @transform_0(%arg0: i32, %arg1: i32) -> (i32, i32, i32) {
    %c0_i32 = arith.constant 0 : i32
    %c0_i32_0 = arith.constant 0 : i32
    return %arg0, %arg1, %c0_i32 : i32, i32, i32
  }
  func.func @transform_1(%arg0: i32, %arg1: i32) -> (i32, i32) {
    %c0_i32 = arith.constant 0 : i32
    %c0_i32_0 = arith.constant 0 : i32
    %c0_i32_1 = arith.constant 0 : i32
    return %c0_i32, %c0_i32_0 : i32, i32
  }
  func.func @transform_2(%arg0: i32, %arg1: i32) -> (i32, i32) {
    %c0_i32 = arith.constant 0 : i32
    %c0_i32_0 = arith.constant 0 : i32
    %c0_i32_1 = arith.constant 0 : i32
    return %c0_i32, %c0_i32_0 : i32, i32
  }
  func.func @transform_3(%arg0: i32, %arg1: i32) -> (i32, i32) {
    %c0_i32 = arith.constant 0 : i32
    %c0_i32_0 = arith.constant 0 : i32
    %c0_i32_1 = arith.constant 0 : i32
    return %c0_i32, %c0_i32_0 : i32, i32
  }
  func.func @transform_4(%arg0: i32, %arg1: i32) -> (i32, i32, i32) {
    %c0_i32 = arith.constant 0 : i32
    %c0_i32_0 = arith.constant 0 : i32
    return %arg0, %arg1, %c0_i32 : i32, i32, i32
  }
}

module attributes {stable_mosaic.version = 11 : i64} {
  func.func @_maxpool_kernel(%arg0: i32, %arg1: i32, %arg2: memref<1x352x128xbf16, #tpu.memory_space<vmem>>, %arg3: memref<1x64x128xbf16, #tpu.memory_space<vmem>>) attributes {dimension_semantics = [#tpu.dimension_semantics<parallel>, #tpu.dimension_semantics<parallel>], iteration_bounds = array<i64: 2, 1>, scalar_prefetch = 0 : i64, scratch_operands = 0 : i64, tpu.core_type = #tpu.core_type<tc>, window_params = [{transform_indices = @transform_0, window_bounds = array<i64: 1, 352, 128>}, {transform_indices = @transform_1, window_bounds = array<i64: 1, 64, 128>}]} {
    %c0 = arith.constant 0 : index
    %c0_0 = arith.constant 0 : index
    %c0_1 = arith.constant 0 : index
    %0 = vector.load %arg2[%c0, %c0_0, %c0_1] : memref<1x352x128xbf16, #tpu.memory_space<vmem>>, vector<1x71x128xbf16>
    %1 = vector.shape_cast %0 : vector<1x71x128xbf16> to vector<71x128xbf16>
    %c0_2 = arith.constant 0 : index
    %c88 = arith.constant 88 : index
    %c0_3 = arith.constant 0 : index
    %2 = vector.load %arg2[%c0_2, %c88, %c0_3] : memref<1x352x128xbf16, #tpu.memory_space<vmem>>, vector<1x71x128xbf16>
    %3 = vector.shape_cast %2 : vector<1x71x128xbf16> to vector<71x128xbf16>
    %4 = arith.maximumf %1, %3 : vector<71x128xbf16>
    %c0_4 = arith.constant 0 : index
    %c1 = arith.constant 1 : index
    %c0_5 = arith.constant 0 : index
    %5 = vector.load %arg2[%c0_4, %c1, %c0_5] : memref<1x352x128xbf16, #tpu.memory_space<vmem>>, vector<1x71x128xbf16>
    %6 = vector.shape_cast %5 : vector<1x71x128xbf16> to vector<71x128xbf16>
    %7 = arith.maximumf %4, %6 : vector<71x128xbf16>
    %c0_6 = arith.constant 0 : index
    %c176 = arith.constant 176 : index
    %c0_7 = arith.constant 0 : index
    %8 = vector.load %arg2[%c0_6, %c176, %c0_7] : memref<1x352x128xbf16, #tpu.memory_space<vmem>>, vector<1x71x128xbf16>
    %9 = vector.shape_cast %8 : vector<1x71x128xbf16> to vector<71x128xbf16>
    %10 = arith.maximumf %7, %9 : vector<71x128xbf16>
    %c0_8 = arith.constant 0 : index
    %c264 = arith.constant 264 : index
    %c0_9 = arith.constant 0 : index
    %11 = vector.load %arg2[%c0_8, %c264, %c0_9] : memref<1x352x128xbf16, #tpu.memory_space<vmem>>, vector<1x71x128xbf16>
    %12 = vector.shape_cast %11 : vector<1x71x128xbf16> to vector<71x128xbf16>
    %13 = arith.maximumf %10, %12 : vector<71x128xbf16>
    %c0_10 = arith.constant 0 : index
    %c177 = arith.constant 177 : index
    %c0_11 = arith.constant 0 : index
    %14 = vector.load %arg2[%c0_10, %c177, %c0_11] : memref<1x352x128xbf16, #tpu.memory_space<vmem>>, vector<1x71x128xbf16>
    %15 = vector.shape_cast %14 : vector<1x71x128xbf16> to vector<71x128xbf16>
    %16 = arith.maximumf %13, %15 : vector<71x128xbf16>
    %c0_12 = arith.constant 0 : index
    %c9 = arith.constant 9 : index
    %c0_13 = arith.constant 0 : index
    %17 = vector.load %arg2[%c0_12, %c9, %c0_13] : memref<1x352x128xbf16, #tpu.memory_space<vmem>>, vector<1x71x128xbf16>
    %18 = vector.shape_cast %17 : vector<1x71x128xbf16> to vector<71x128xbf16>
    %19 = arith.maximumf %16, %18 : vector<71x128xbf16>
    %c0_14 = arith.constant 0 : index
    %c97 = arith.constant 97 : index
    %c0_15 = arith.constant 0 : index
    %20 = vector.load %arg2[%c0_14, %c97, %c0_15] : memref<1x352x128xbf16, #tpu.memory_space<vmem>>, vector<1x71x128xbf16>
    %21 = vector.shape_cast %20 : vector<1x71x128xbf16> to vector<71x128xbf16>
    %22 = arith.maximumf %19, %21 : vector<71x128xbf16>
    %c0_16 = arith.constant 0 : index
    %c10 = arith.constant 10 : index
    %c0_17 = arith.constant 0 : index
    %23 = vector.load %arg2[%c0_16, %c10, %c0_17] : memref<1x352x128xbf16, #tpu.memory_space<vmem>>, vector<1x71x128xbf16>
    %24 = vector.shape_cast %23 : vector<1x71x128xbf16> to vector<71x128xbf16>
    %25 = arith.maximumf %22, %24 : vector<71x128xbf16>
    %26 = vector.extract_strided_slice %25 {offsets = [0, 0], sizes = [8, 128], strides = [1, 1]} : vector<71x128xbf16> to vector<8x128xbf16>
    %c0_18 = arith.constant 0 : index
    %c0_19 = arith.constant 0 : index
    %c0_20 = arith.constant 0 : index
    %27 = vector.load %arg3[%c0_18, %c0_19, %c0_20] : memref<1x64x128xbf16, #tpu.memory_space<vmem>>, vector<1x8x128xbf16>
    %28 = vector.shape_cast %27 : vector<1x8x128xbf16> to vector<8x128xbf16>
    %29 = vector.shape_cast %26 : vector<8x128xbf16> to vector<1x8x128xbf16>
    tpu.vector_store %arg3[%c0_18, %c0_19, %c0_20], %29 {strides = array<i32>} : memref<1x64x128xbf16, #tpu.memory_space<vmem>>, vector<1x8x128xbf16>,
    %30 = vector.extract_strided_slice %25 {offsets = [9, 0], sizes = [8, 128], strides = [1, 1]} : vector<71x128xbf16> to vector<8x128xbf16>
    %c0_21 = arith.constant 0 : index
    %c8 = arith.constant 8 : index
    %c0_22 = arith.constant 0 : index
    %31 = vector.load %arg3[%c0_21, %c8, %c0_22] : memref<1x64x128xbf16, #tpu.memory_space<vmem>>, vector<1x8x128xbf16>
    %32 = vector.shape_cast %31 : vector<1x8x128xbf16> to vector<8x128xbf16>
    %33 = vector.shape_cast %30 : vector<8x128xbf16> to vector<1x8x128xbf16>
    tpu.vector_store %arg3[%c0_21, %c8, %c0_22], %33 {strides = array<i32>} : memref<1x64x128xbf16, #tpu.memory_space<vmem>>, vector<1x8x128xbf16>,
    %34 = vector.extract_strided_slice %25 {offsets = [18, 0], sizes = [8, 128], strides = [1, 1]} : vector<71x128xbf16> to vector<8x128xbf16>
    %c0_23 = arith.constant 0 : index
    %c16 = arith.constant 16 : index
    %c0_24 = arith.constant 0 : index
    %35 = vector.load %arg3[%c0_23, %c16, %c0_24] : memref<1x64x128xbf16, #tpu.memory_space<vmem>>, vector<1x8x128xbf16>
    %36 = vector.shape_cast %35 : vector<1x8x128xbf16> to vector<8x128xbf16>
    %37 = vector.shape_cast %34 : vector<8x128xbf16> to vector<1x8x128xbf16>
    tpu.vector_store %arg3[%c0_23, %c16, %c0_24], %37 {strides = array<i32>} : memref<1x64x128xbf16, #tpu.memory_space<vmem>>, vector<1x8x128xbf16>,
    %38 = vector.extract_strided_slice %25 {offsets = [27, 0], sizes = [8, 128], strides = [1, 1]} : vector<71x128xbf16> to vector<8x128xbf16>
    %c0_25 = arith.constant 0 : index
    %c24 = arith.constant 24 : index
    %c0_26 = arith.constant 0 : index
    %39 = vector.load %arg3[%c0_25, %c24, %c0_26] : memref<1x64x128xbf16, #tpu.memory_space<vmem>>, vector<1x8x128xbf16>
    %40 = vector.shape_cast %39 : vector<1x8x128xbf16> to vector<8x128xbf16>
    %41 = vector.shape_cast %38 : vector<8x128xbf16> to vector<1x8x128xbf16>
    tpu.vector_store %arg3[%c0_25, %c24, %c0_26], %41 {strides = array<i32>} : memref<1x64x128xbf16, #tpu.memory_space<vmem>>, vector<1x8x128xbf16>,
    %42 = vector.extract_strided_slice %25 {offsets = [36, 0], sizes = [8, 128], strides = [1, 1]} : vector<71x128xbf16> to vector<8x128xbf16>
    %c0_27 = arith.constant 0 : index
    %c32 = arith.constant 32 : index
    %c0_28 = arith.constant 0 : index
    %43 = vector.load %arg3[%c0_27, %c32, %c0_28] : memref<1x64x128xbf16, #tpu.memory_space<vmem>>, vector<1x8x128xbf16>
    %44 = vector.shape_cast %43 : vector<1x8x128xbf16> to vector<8x128xbf16>
    %45 = vector.shape_cast %42 : vector<8x128xbf16> to vector<1x8x128xbf16>
    tpu.vector_store %arg3[%c0_27, %c32, %c0_28], %45 {strides = array<i32>} : memref<1x64x128xbf16, #tpu.memory_space<vmem>>, vector<1x8x128xbf16>,
    %46 = vector.extract_strided_slice %25 {offsets = [45, 0], sizes = [8, 128], strides = [1, 1]} : vector<71x128xbf16> to vector<8x128xbf16>
    %c0_29 = arith.constant 0 : index
    %c40 = arith.constant 40 : index
    %c0_30 = arith.constant 0 : index
    %47 = vector.load %arg3[%c0_29, %c40, %c0_30] : memref<1x64x128xbf16, #tpu.memory_space<vmem>>, vector<1x8x128xbf16>
    %48 = vector.shape_cast %47 : vector<1x8x128xbf16> to vector<8x128xbf16>
    %49 = vector.shape_cast %46 : vector<8x128xbf16> to vector<1x8x128xbf16>
    tpu.vector_store %arg3[%c0_29, %c40, %c0_30], %49 {strides = array<i32>} : memref<1x64x128xbf16, #tpu.memory_space<vmem>>, vector<1x8x128xbf16>,
    %50 = vector.extract_strided_slice %25 {offsets = [54, 0], sizes = [8, 128], strides = [1, 1]} : vector<71x128xbf16> to vector<8x128xbf16>
    %c0_31 = arith.constant 0 : index
    %c48 = arith.constant 48 : index
    %c0_32 = arith.constant 0 : index
    %51 = vector.load %arg3[%c0_31, %c48, %c0_32] : memref<1x64x128xbf16, #tpu.memory_space<vmem>>, vector<1x8x128xbf16>
    %52 = vector.shape_cast %51 : vector<1x8x128xbf16> to vector<8x128xbf16>
    %53 = vector.shape_cast %50 : vector<8x128xbf16> to vector<1x8x128xbf16>
    tpu.vector_store %arg3[%c0_31, %c48, %c0_32], %53 {strides = array<i32>} : memref<1x64x128xbf16, #tpu.memory_space<vmem>>, vector<1x8x128xbf16>,
    %54 = vector.extract_strided_slice %25 {offsets = [63, 0], sizes = [8, 128], strides = [1, 1]} : vector<71x128xbf16> to vector<8x128xbf16>
    %c0_33 = arith.constant 0 : index
    %c56 = arith.constant 56 : index
    %c0_34 = arith.constant 0 : index
    %55 = vector.load %arg3[%c0_33, %c56, %c0_34] : memref<1x64x128xbf16, #tpu.memory_space<vmem>>, vector<1x8x128xbf16>
    %56 = vector.shape_cast %55 : vector<1x8x128xbf16> to vector<8x128xbf16>
    %57 = vector.shape_cast %54 : vector<8x128xbf16> to vector<1x8x128xbf16>
    tpu.vector_store %arg3[%c0_33, %c56, %c0_34], %57 {strides = array<i32>} : memref<1x64x128xbf16, #tpu.memory_space<vmem>>, vector<1x8x128xbf16>,
    return
  }
  func.func @transform_0(%arg0: i32, %arg1: i32) -> (i32, i32, i32) {
    %c0_i32 = arith.constant 0 : i32
    %c0_i32_0 = arith.constant 0 : i32
    %c0_i32_1 = arith.constant 0 : i32
    return %arg0, %c0_i32, %c0_i32_0 : i32, i32, i32
  }
  func.func @transform_1(%arg0: i32, %arg1: i32) -> (i32, i32, i32) {
    %c0_i32 = arith.constant 0 : i32
    %c0_i32_0 = arith.constant 0 : i32
    return %arg0, %arg1, %c0_i32 : i32, i32, i32
  }
}

module attributes {stable_mosaic.version = 11 : i64} {
  func.func @_conv_kernel(%arg0: i32, %arg1: i32, %arg2: memref<1x104x128xbf16, #tpu.memory_space<vmem>>, %arg3: memref<1152x128xbf16, #tpu.memory_space<vmem>>, %arg4: memref<1x128xf32, #tpu.memory_space<vmem>>, %arg5: memref<1x128xf32, #tpu.memory_space<vmem>>, %arg6: memref<1x64x128xbf16, #tpu.memory_space<vmem>>) attributes {dimension_semantics = [#tpu.dimension_semantics<parallel>, #tpu.dimension_semantics<parallel>], iteration_bounds = array<i64: 2, 1>, scalar_prefetch = 0 : i64, scratch_operands = 0 : i64, tpu.core_type = #tpu.core_type<tc>, window_params = [{transform_indices = @transform_0, window_bounds = array<i64: 1, 104, 128>}, {pipeline_mode = #tpu.pipeline_mode<synchronous>, transform_indices = @transform_1, window_bounds = array<i64: 1152, 128>}, {pipeline_mode = #tpu.pipeline_mode<synchronous>, transform_indices = @transform_2, window_bounds = array<i64: 1, 128>}, {pipeline_mode = #tpu.pipeline_mode<synchronous>, transform_indices = @transform_3, window_bounds = array<i64: 1, 128>}, {transform_indices = @transform_4, window_bounds = array<i64: 1, 64, 128>}]} {
    %c0 = arith.constant 0 : index
    %c0_0 = arith.constant 0 : index
    %c0_1 = arith.constant 0 : index
    %0 = vector.load %arg2[%c0, %c0_0, %c0_1] : memref<1x104x128xbf16, #tpu.memory_space<vmem>>, vector<1x78x128xbf16>
    %1 = vector.shape_cast %0 : vector<1x78x128xbf16> to vector<78x128xbf16>
    %c0_2 = arith.constant 0 : index
    %c0_3 = arith.constant 0 : index
    %2 = vector.load %arg3[%c0_2, %c0_3] : memref<1152x128xbf16, #tpu.memory_space<vmem>>, vector<128x128xbf16>
    %cst = arith.constant dense<0.000000e+00> : vector<78x128xf32>
    %3 = tpu.matmul %1, %2, %cst {dimension_numbers = #tpu.dot_dimension_numbers<[1], [0], [0], [1], [0, 0, 1, 1], [], []>} : vector<78x128xbf16>, vector<128x128xbf16>, vector<78x128xf32> -> vector<78x128xf32>
    %c0_4 = arith.constant 0 : index
    %c1 = arith.constant 1 : index
    %c0_5 = arith.constant 0 : index
    %4 = vector.load %arg2[%c0_4, %c1, %c0_5] : memref<1x104x128xbf16, #tpu.memory_space<vmem>>, vector<1x78x128xbf16>
    %5 = vector.shape_cast %4 : vector<1x78x128xbf16> to vector<78x128xbf16>
    %c128 = arith.constant 128 : index
    %c0_6 = arith.constant 0 : index
    %6 = vector.load %arg3[%c128, %c0_6] : memref<1152x128xbf16, #tpu.memory_space<vmem>>, vector<128x128xbf16>
    %cst_7 = arith.constant dense<0.000000e+00> : vector<78x128xf32>
    %7 = tpu.matmul %5, %6, %cst_7 {dimension_numbers = #tpu.dot_dimension_numbers<[1], [0], [0], [1], [0, 0, 1, 1], [], []>} : vector<78x128xbf16>, vector<128x128xbf16>, vector<78x128xf32> -> vector<78x128xf32>
    %8 = arith.addf %3, %7 : vector<78x128xf32>
    %c0_8 = arith.constant 0 : index
    %c2 = arith.constant 2 : index
    %c0_9 = arith.constant 0 : index
    %9 = vector.load %arg2[%c0_8, %c2, %c0_9] : memref<1x104x128xbf16, #tpu.memory_space<vmem>>, vector<1x78x128xbf16>
    %10 = vector.shape_cast %9 : vector<1x78x128xbf16> to vector<78x128xbf16>
    %c256 = arith.constant 256 : index
    %c0_10 = arith.constant 0 : index
    %11 = vector.load %arg3[%c256, %c0_10] : memref<1152x128xbf16, #tpu.memory_space<vmem>>, vector<128x128xbf16>
    %cst_11 = arith.constant dense<0.000000e+00> : vector<78x128xf32>
    %12 = tpu.matmul %10, %11, %cst_11 {dimension_numbers = #tpu.dot_dimension_numbers<[1], [0], [0], [1], [0, 0, 1, 1], [], []>} : vector<78x128xbf16>, vector<128x128xbf16>, vector<78x128xf32> -> vector<78x128xf32>
    %13 = arith.addf %8, %12 : vector<78x128xf32>
    %c0_12 = arith.constant 0 : index
    %c10 = arith.constant 10 : index
    %c0_13 = arith.constant 0 : index
    %14 = vector.load %arg2[%c0_12, %c10, %c0_13] : memref<1x104x128xbf16, #tpu.memory_space<vmem>>, vector<1x78x128xbf16>
    %15 = vector.shape_cast %14 : vector<1x78x128xbf16> to vector<78x128xbf16>
    %c384 = arith.constant 384 : index
    %c0_14 = arith.constant 0 : index
    %16 = vector.load %arg3[%c384, %c0_14] : memref<1152x128xbf16, #tpu.memory_space<vmem>>, vector<128x128xbf16>
    %cst_15 = arith.constant dense<0.000000e+00> : vector<78x128xf32>
    %17 = tpu.matmul %15, %16, %cst_15 {dimension_numbers = #tpu.dot_dimension_numbers<[1], [0], [0], [1], [0, 0, 1, 1], [], []>} : vector<78x128xbf16>, vector<128x128xbf16>, vector<78x128xf32> -> vector<78x128xf32>
    %18 = arith.addf %13, %17 : vector<78x128xf32>
    %c0_16 = arith.constant 0 : index
    %c11 = arith.constant 11 : index
    %c0_17 = arith.constant 0 : index
    %19 = vector.load %arg2[%c0_16, %c11, %c0_17] : memref<1x104x128xbf16, #tpu.memory_space<vmem>>, vector<1x78x128xbf16>
    %20 = vector.shape_cast %19 : vector<1x78x128xbf16> to vector<78x128xbf16>
    %c512 = arith.constant 512 : index
    %c0_18 = arith.constant 0 : index
    %21 = vector.load %arg3[%c512, %c0_18] : memref<1152x128xbf16, #tpu.memory_space<vmem>>, vector<128x128xbf16>
    %cst_19 = arith.constant dense<0.000000e+00> : vector<78x128xf32>
    %22 = tpu.matmul %20, %21, %cst_19 {dimension_numbers = #tpu.dot_dimension_numbers<[1], [0], [0], [1], [0, 0, 1, 1], [], []>} : vector<78x128xbf16>, vector<128x128xbf16>, vector<78x128xf32> -> vector<78x128xf32>
    %23 = arith.addf %18, %22 : vector<78x128xf32>
    %c0_20 = arith.constant 0 : index
    %c12 = arith.constant 12 : index
    %c0_21 = arith.constant 0 : index
    %24 = vector.load %arg2[%c0_20, %c12, %c0_21] : memref<1x104x128xbf16, #tpu.memory_space<vmem>>, vector<1x78x128xbf16>
    %25 = vector.shape_cast %24 : vector<1x78x128xbf16> to vector<78x128xbf16>
    %c640 = arith.constant 640 : index
    %c0_22 = arith.constant 0 : index
    %26 = vector.load %arg3[%c640, %c0_22] : memref<1152x128xbf16, #tpu.memory_space<vmem>>, vector<128x128xbf16>
    %cst_23 = arith.constant dense<0.000000e+00> : vector<78x128xf32>
    %27 = tpu.matmul %25, %26, %cst_23 {dimension_numbers = #tpu.dot_dimension_numbers<[1], [0], [0], [1], [0, 0, 1, 1], [], []>} : vector<78x128xbf16>, vector<128x128xbf16>, vector<78x128xf32> -> vector<78x128xf32>
    %28 = arith.addf %23, %27 : vector<78x128xf32>
    %c0_24 = arith.constant 0 : index
    %c20 = arith.constant 20 : index
    %c0_25 = arith.constant 0 : index
    %29 = vector.load %arg2[%c0_24, %c20, %c0_25] : memref<1x104x128xbf16, #tpu.memory_space<vmem>>, vector<1x78x128xbf16>
    %30 = vector.shape_cast %29 : vector<1x78x128xbf16> to vector<78x128xbf16>
    %c768 = arith.constant 768 : index
    %c0_26 = arith.constant 0 : index
    %31 = vector.load %arg3[%c768, %c0_26] : memref<1152x128xbf16, #tpu.memory_space<vmem>>, vector<128x128xbf16>
    %cst_27 = arith.constant dense<0.000000e+00> : vector<78x128xf32>
    %32 = tpu.matmul %30, %31, %cst_27 {dimension_numbers = #tpu.dot_dimension_numbers<[1], [0], [0], [1], [0, 0, 1, 1], [], []>} : vector<78x128xbf16>, vector<128x128xbf16>, vector<78x128xf32> -> vector<78x128xf32>
    %33 = arith.addf %28, %32 : vector<78x128xf32>
    %c0_28 = arith.constant 0 : index
    %c21 = arith.constant 21 : index
    %c0_29 = arith.constant 0 : index
    %34 = vector.load %arg2[%c0_28, %c21, %c0_29] : memref<1x104x128xbf16, #tpu.memory_space<vmem>>, vector<1x78x128xbf16>
    %35 = vector.shape_cast %34 : vector<1x78x128xbf16> to vector<78x128xbf16>
    %c896 = arith.constant 896 : index
    %c0_30 = arith.constant 0 : index
    %36 = vector.load %arg3[%c896, %c0_30] : memref<1152x128xbf16, #tpu.memory_space<vmem>>, vector<128x128xbf16>
    %cst_31 = arith.constant dense<0.000000e+00> : vector<78x128xf32>
    %37 = tpu.matmul %35, %36, %cst_31 {dimension_numbers = #tpu.dot_dimension_numbers<[1], [0], [0], [1], [0, 0, 1, 1], [], []>} : vector<78x128xbf16>, vector<128x128xbf16>, vector<78x128xf32> -> vector<78x128xf32>
    %38 = arith.addf %33, %37 : vector<78x128xf32>
    %c0_32 = arith.constant 0 : index
    %c22 = arith.constant 22 : index
    %c0_33 = arith.constant 0 : index
    %39 = vector.load %arg2[%c0_32, %c22, %c0_33] : memref<1x104x128xbf16, #tpu.memory_space<vmem>>, vector<1x78x128xbf16>
    %40 = vector.shape_cast %39 : vector<1x78x128xbf16> to vector<78x128xbf16>
    %c1024 = arith.constant 1024 : index
    %c0_34 = arith.constant 0 : index
    %41 = vector.load %arg3[%c1024, %c0_34] : memref<1152x128xbf16, #tpu.memory_space<vmem>>, vector<128x128xbf16>
    %cst_35 = arith.constant dense<0.000000e+00> : vector<78x128xf32>
    %42 = tpu.matmul %40, %41, %cst_35 {dimension_numbers = #tpu.dot_dimension_numbers<[1], [0], [0], [1], [0, 0, 1, 1], [], []>} : vector<78x128xbf16>, vector<128x128xbf16>, vector<78x128xf32> -> vector<78x128xf32>
    %43 = arith.addf %38, %42 : vector<78x128xf32>
    %c0_36 = arith.constant 0 : index
    %c0_37 = arith.constant 0 : index
    %44 = vector.load %arg4[%c0_36, %c0_37] : memref<1x128xf32, #tpu.memory_space<vmem>>, vector<1x128xf32>
    %45 = vector.broadcast %44 : vector<1x128xf32> to vector<78x128xf32>
    %46 = arith.mulf %43, %45 : vector<78x128xf32>
    %c0_38 = arith.constant 0 : index
    %c0_39 = arith.constant 0 : index
    %47 = vector.load %arg5[%c0_38, %c0_39] : memref<1x128xf32, #tpu.memory_space<vmem>>, vector<1x128xf32>
    %48 = vector.broadcast %47 : vector<1x128xf32> to vector<78x128xf32>
    %49 = arith.addf %46, %48 : vector<78x128xf32>
    %50 = vector.extract_strided_slice %49 {offsets = [0, 0], sizes = [8, 128], strides = [1, 1]} : vector<78x128xf32> to vector<8x128xf32>
    %cst_40 = arith.constant 0.000000e+00 : f32
    %51 = vector.broadcast %cst_40 : f32 to vector<8x128xf32>
    %52 = arith.maximumf %50, %51 : vector<8x128xf32>
    %53 = arith.truncf %52 : vector<8x128xf32> to vector<8x128xbf16>
    %c0_41 = arith.constant 0 : index
    %c0_42 = arith.constant 0 : index
    %c0_43 = arith.constant 0 : index
    %54 = vector.load %arg6[%c0_41, %c0_42, %c0_43] : memref<1x64x128xbf16, #tpu.memory_space<vmem>>, vector<1x8x128xbf16>
    %55 = vector.shape_cast %54 : vector<1x8x128xbf16> to vector<8x128xbf16>
    %56 = vector.shape_cast %53 : vector<8x128xbf16> to vector<1x8x128xbf16>
    tpu.vector_store %arg6[%c0_41, %c0_42, %c0_43], %56 {strides = array<i32>} : memref<1x64x128xbf16, #tpu.memory_space<vmem>>, vector<1x8x128xbf16>,
    %57 = vector.extract_strided_slice %49 {offsets = [10, 0], sizes = [8, 128], strides = [1, 1]} : vector<78x128xf32> to vector<8x128xf32>
    %cst_44 = arith.constant 0.000000e+00 : f32
    %58 = vector.broadcast %cst_44 : f32 to vector<8x128xf32>
    %59 = arith.maximumf %57, %58 : vector<8x128xf32>
    %60 = arith.truncf %59 : vector<8x128xf32> to vector<8x128xbf16>
    %c0_45 = arith.constant 0 : index
    %c8 = arith.constant 8 : index
    %c0_46 = arith.constant 0 : index
    %61 = vector.load %arg6[%c0_45, %c8, %c0_46] : memref<1x64x128xbf16, #tpu.memory_space<vmem>>, vector<1x8x128xbf16>
    %62 = vector.shape_cast %61 : vector<1x8x128xbf16> to vector<8x128xbf16>
    %63 = vector.shape_cast %60 : vector<8x128xbf16> to vector<1x8x128xbf16>
    tpu.vector_store %arg6[%c0_45, %c8, %c0_46], %63 {strides = array<i32>} : memref<1x64x128xbf16, #tpu.memory_space<vmem>>, vector<1x8x128xbf16>,
    %64 = vector.extract_strided_slice %49 {offsets = [20, 0], sizes = [8, 128], strides = [1, 1]} : vector<78x128xf32> to vector<8x128xf32>
    %cst_47 = arith.constant 0.000000e+00 : f32
    %65 = vector.broadcast %cst_47 : f32 to vector<8x128xf32>
    %66 = arith.maximumf %64, %65 : vector<8x128xf32>
    %67 = arith.truncf %66 : vector<8x128xf32> to vector<8x128xbf16>
    %c0_48 = arith.constant 0 : index
    %c16 = arith.constant 16 : index
    %c0_49 = arith.constant 0 : index
    %68 = vector.load %arg6[%c0_48, %c16, %c0_49] : memref<1x64x128xbf16, #tpu.memory_space<vmem>>, vector<1x8x128xbf16>
    %69 = vector.shape_cast %68 : vector<1x8x128xbf16> to vector<8x128xbf16>
    %70 = vector.shape_cast %67 : vector<8x128xbf16> to vector<1x8x128xbf16>
    tpu.vector_store %arg6[%c0_48, %c16, %c0_49], %70 {strides = array<i32>} : memref<1x64x128xbf16, #tpu.memory_space<vmem>>, vector<1x8x128xbf16>,
    %71 = vector.extract_strided_slice %49 {offsets = [30, 0], sizes = [8, 128], strides = [1, 1]} : vector<78x128xf32> to vector<8x128xf32>
    %cst_50 = arith.constant 0.000000e+00 : f32
    %72 = vector.broadcast %cst_50 : f32 to vector<8x128xf32>
    %73 = arith.maximumf %71, %72 : vector<8x128xf32>
    %74 = arith.truncf %73 : vector<8x128xf32> to vector<8x128xbf16>
    %c0_51 = arith.constant 0 : index
    %c24 = arith.constant 24 : index
    %c0_52 = arith.constant 0 : index
    %75 = vector.load %arg6[%c0_51, %c24, %c0_52] : memref<1x64x128xbf16, #tpu.memory_space<vmem>>, vector<1x8x128xbf16>
    %76 = vector.shape_cast %75 : vector<1x8x128xbf16> to vector<8x128xbf16>
    %77 = vector.shape_cast %74 : vector<8x128xbf16> to vector<1x8x128xbf16>
    tpu.vector_store %arg6[%c0_51, %c24, %c0_52], %77 {strides = array<i32>} : memref<1x64x128xbf16, #tpu.memory_space<vmem>>, vector<1x8x128xbf16>,
    %78 = vector.extract_strided_slice %49 {offsets = [40, 0], sizes = [8, 128], strides = [1, 1]} : vector<78x128xf32> to vector<8x128xf32>
    %cst_53 = arith.constant 0.000000e+00 : f32
    %79 = vector.broadcast %cst_53 : f32 to vector<8x128xf32>
    %80 = arith.maximumf %78, %79 : vector<8x128xf32>
    %81 = arith.truncf %80 : vector<8x128xf32> to vector<8x128xbf16>
    %c0_54 = arith.constant 0 : index
    %c32 = arith.constant 32 : index
    %c0_55 = arith.constant 0 : index
    %82 = vector.load %arg6[%c0_54, %c32, %c0_55] : memref<1x64x128xbf16, #tpu.memory_space<vmem>>, vector<1x8x128xbf16>
    %83 = vector.shape_cast %82 : vector<1x8x128xbf16> to vector<8x128xbf16>
    %84 = vector.shape_cast %81 : vector<8x128xbf16> to vector<1x8x128xbf16>
    tpu.vector_store %arg6[%c0_54, %c32, %c0_55], %84 {strides = array<i32>} : memref<1x64x128xbf16, #tpu.memory_space<vmem>>, vector<1x8x128xbf16>,
    %85 = vector.extract_strided_slice %49 {offsets = [50, 0], sizes = [8, 128], strides = [1, 1]} : vector<78x128xf32> to vector<8x128xf32>
    %cst_56 = arith.constant 0.000000e+00 : f32
    %86 = vector.broadcast %cst_56 : f32 to vector<8x128xf32>
    %87 = arith.maximumf %85, %86 : vector<8x128xf32>
    %88 = arith.truncf %87 : vector<8x128xf32> to vector<8x128xbf16>
    %c0_57 = arith.constant 0 : index
    %c40 = arith.constant 40 : index
    %c0_58 = arith.constant 0 : index
    %89 = vector.load %arg6[%c0_57, %c40, %c0_58] : memref<1x64x128xbf16, #tpu.memory_space<vmem>>, vector<1x8x128xbf16>
    %90 = vector.shape_cast %89 : vector<1x8x128xbf16> to vector<8x128xbf16>
    %91 = vector.shape_cast %88 : vector<8x128xbf16> to vector<1x8x128xbf16>
    tpu.vector_store %arg6[%c0_57, %c40, %c0_58], %91 {strides = array<i32>} : memref<1x64x128xbf16, #tpu.memory_space<vmem>>, vector<1x8x128xbf16>,
    %92 = vector.extract_strided_slice %49 {offsets = [60, 0], sizes = [8, 128], strides = [1, 1]} : vector<78x128xf32> to vector<8x128xf32>
    %cst_59 = arith.constant 0.000000e+00 : f32
    %93 = vector.broadcast %cst_59 : f32 to vector<8x128xf32>
    %94 = arith.maximumf %92, %93 : vector<8x128xf32>
    %95 = arith.truncf %94 : vector<8x128xf32> to vector<8x128xbf16>
    %c0_60 = arith.constant 0 : index
    %c48 = arith.constant 48 : index
    %c0_61 = arith.constant 0 : index
    %96 = vector.load %arg6[%c0_60, %c48, %c0_61] : memref<1x64x128xbf16, #tpu.memory_space<vmem>>, vector<1x8x128xbf16>
    %97 = vector.shape_cast %96 : vector<1x8x128xbf16> to vector<8x128xbf16>
    %98 = vector.shape_cast %95 : vector<8x128xbf16> to vector<1x8x128xbf16>
    tpu.vector_store %arg6[%c0_60, %c48, %c0_61], %98 {strides = array<i32>} : memref<1x64x128xbf16, #tpu.memory_space<vmem>>, vector<1x8x128xbf16>,
    %99 = vector.extract_strided_slice %49 {offsets = [70, 0], sizes = [8, 128], strides = [1, 1]} : vector<78x128xf32> to vector<8x128xf32>
    %cst_62 = arith.constant 0.000000e+00 : f32
    %100 = vector.broadcast %cst_62 : f32 to vector<8x128xf32>
    %101 = arith.maximumf %99, %100 : vector<8x128xf32>
    %102 = arith.truncf %101 : vector<8x128xf32> to vector<8x128xbf16>
    %c0_63 = arith.constant 0 : index
    %c56 = arith.constant 56 : index
    %c0_64 = arith.constant 0 : index
    %103 = vector.load %arg6[%c0_63, %c56, %c0_64] : memref<1x64x128xbf16, #tpu.memory_space<vmem>>, vector<1x8x128xbf16>
    %104 = vector.shape_cast %103 : vector<1x8x128xbf16> to vector<8x128xbf16>
    %105 = vector.shape_cast %102 : vector<8x128xbf16> to vector<1x8x128xbf16>
    tpu.vector_store %arg6[%c0_63, %c56, %c0_64], %105 {strides = array<i32>} : memref<1x64x128xbf16, #tpu.memory_space<vmem>>, vector<1x8x128xbf16>,
    return
  }
  func.func @transform_0(%arg0: i32, %arg1: i32) -> (i32, i32, i32) {
    %c0_i32 = arith.constant 0 : i32
    %c0_i32_0 = arith.constant 0 : i32
    %c0_i32_1 = arith.constant 0 : i32
    return %arg0, %c0_i32, %c0_i32_0 : i32, i32, i32
  }
  func.func @transform_1(%arg0: i32, %arg1: i32) -> (i32, i32) {
    %c0_i32 = arith.constant 0 : i32
    %c0_i32_0 = arith.constant 0 : i32
    %c0_i32_1 = arith.constant 0 : i32
    return %c0_i32, %c0_i32_0 : i32, i32
  }
  func.func @transform_2(%arg0: i32, %arg1: i32) -> (i32, i32) {
    %c0_i32 = arith.constant 0 : i32
    %c0_i32_0 = arith.constant 0 : i32
    %c0_i32_1 = arith.constant 0 : i32
    return %c0_i32, %c0_i32_0 : i32, i32
  }
  func.func @transform_3(%arg0: i32, %arg1: i32) -> (i32, i32) {
    %c0_i32 = arith.constant 0 : i32
    %c0_i32_0 = arith.constant 0 : i32
    %c0_i32_1 = arith.constant 0 : i32
    return %c0_i32, %c0_i32_0 : i32, i32
  }
  func.func @transform_4(%arg0: i32, %arg1: i32) -> (i32, i32, i32) {
    %c0_i32 = arith.constant 0 : i32
    %c0_i32_0 = arith.constant 0 : i32
    return %arg0, %arg1, %c0_i32 : i32, i32, i32
  }
}

module attributes {stable_mosaic.version = 11 : i64} {
  func.func @_conv_kernel(%arg0: i32, %arg1: i32, %arg2: memref<1x104x128xbf16, #tpu.memory_space<vmem>>, %arg3: memref<1152x128xbf16, #tpu.memory_space<vmem>>, %arg4: memref<1x128xf32, #tpu.memory_space<vmem>>, %arg5: memref<1x128xf32, #tpu.memory_space<vmem>>, %arg6: memref<1x64x128xbf16, #tpu.memory_space<vmem>>, %arg7: memref<1x64x128xbf16, #tpu.memory_space<vmem>>) attributes {dimension_semantics = [#tpu.dimension_semantics<parallel>, #tpu.dimension_semantics<parallel>], iteration_bounds = array<i64: 2, 1>, scalar_prefetch = 0 : i64, scratch_operands = 0 : i64, tpu.core_type = #tpu.core_type<tc>, window_params = [{transform_indices = @transform_0, window_bounds = array<i64: 1, 104, 128>}, {pipeline_mode = #tpu.pipeline_mode<synchronous>, transform_indices = @transform_1, window_bounds = array<i64: 1152, 128>}, {pipeline_mode = #tpu.pipeline_mode<synchronous>, transform_indices = @transform_2, window_bounds = array<i64: 1, 128>}, {pipeline_mode = #tpu.pipeline_mode<synchronous>, transform_indices = @transform_3, window_bounds = array<i64: 1, 128>}, {transform_indices = @transform_4, window_bounds = array<i64: 1, 64, 128>}, {transform_indices = @transform_5, window_bounds = array<i64: 1, 64, 128>}]} {
    %c0 = arith.constant 0 : index
    %c0_0 = arith.constant 0 : index
    %c0_1 = arith.constant 0 : index
    %0 = vector.load %arg2[%c0, %c0_0, %c0_1] : memref<1x104x128xbf16, #tpu.memory_space<vmem>>, vector<1x78x128xbf16>
    %1 = vector.shape_cast %0 : vector<1x78x128xbf16> to vector<78x128xbf16>
    %c0_2 = arith.constant 0 : index
    %c0_3 = arith.constant 0 : index
    %2 = vector.load %arg3[%c0_2, %c0_3] : memref<1152x128xbf16, #tpu.memory_space<vmem>>, vector<128x128xbf16>
    %cst = arith.constant dense<0.000000e+00> : vector<78x128xf32>
    %3 = tpu.matmul %1, %2, %cst {dimension_numbers = #tpu.dot_dimension_numbers<[1], [0], [0], [1], [0, 0, 1, 1], [], []>} : vector<78x128xbf16>, vector<128x128xbf16>, vector<78x128xf32> -> vector<78x128xf32>
    %c0_4 = arith.constant 0 : index
    %c1 = arith.constant 1 : index
    %c0_5 = arith.constant 0 : index
    %4 = vector.load %arg2[%c0_4, %c1, %c0_5] : memref<1x104x128xbf16, #tpu.memory_space<vmem>>, vector<1x78x128xbf16>
    %5 = vector.shape_cast %4 : vector<1x78x128xbf16> to vector<78x128xbf16>
    %c128 = arith.constant 128 : index
    %c0_6 = arith.constant 0 : index
    %6 = vector.load %arg3[%c128, %c0_6] : memref<1152x128xbf16, #tpu.memory_space<vmem>>, vector<128x128xbf16>
    %cst_7 = arith.constant dense<0.000000e+00> : vector<78x128xf32>
    %7 = tpu.matmul %5, %6, %cst_7 {dimension_numbers = #tpu.dot_dimension_numbers<[1], [0], [0], [1], [0, 0, 1, 1], [], []>} : vector<78x128xbf16>, vector<128x128xbf16>, vector<78x128xf32> -> vector<78x128xf32>
    %8 = arith.addf %3, %7 : vector<78x128xf32>
    %c0_8 = arith.constant 0 : index
    %c2 = arith.constant 2 : index
    %c0_9 = arith.constant 0 : index
    %9 = vector.load %arg2[%c0_8, %c2, %c0_9] : memref<1x104x128xbf16, #tpu.memory_space<vmem>>, vector<1x78x128xbf16>
    %10 = vector.shape_cast %9 : vector<1x78x128xbf16> to vector<78x128xbf16>
    %c256 = arith.constant 256 : index
    %c0_10 = arith.constant 0 : index
    %11 = vector.load %arg3[%c256, %c0_10] : memref<1152x128xbf16, #tpu.memory_space<vmem>>, vector<128x128xbf16>
    %cst_11 = arith.constant dense<0.000000e+00> : vector<78x128xf32>
    %12 = tpu.matmul %10, %11, %cst_11 {dimension_numbers = #tpu.dot_dimension_numbers<[1], [0], [0], [1], [0, 0, 1, 1], [], []>} : vector<78x128xbf16>, vector<128x128xbf16>, vector<78x128xf32> -> vector<78x128xf32>
    %13 = arith.addf %8, %12 : vector<78x128xf32>
    %c0_12 = arith.constant 0 : index
    %c10 = arith.constant 10 : index
    %c0_13 = arith.constant 0 : index
    %14 = vector.load %arg2[%c0_12, %c10, %c0_13] : memref<1x104x128xbf16, #tpu.memory_space<vmem>>, vector<1x78x128xbf16>
    %15 = vector.shape_cast %14 : vector<1x78x128xbf16> to vector<78x128xbf16>
    %c384 = arith.constant 384 : index
    %c0_14 = arith.constant 0 : index
    %16 = vector.load %arg3[%c384, %c0_14] : memref<1152x128xbf16, #tpu.memory_space<vmem>>, vector<128x128xbf16>
    %cst_15 = arith.constant dense<0.000000e+00> : vector<78x128xf32>
    %17 = tpu.matmul %15, %16, %cst_15 {dimension_numbers = #tpu.dot_dimension_numbers<[1], [0], [0], [1], [0, 0, 1, 1], [], []>} : vector<78x128xbf16>, vector<128x128xbf16>, vector<78x128xf32> -> vector<78x128xf32>
    %18 = arith.addf %13, %17 : vector<78x128xf32>
    %c0_16 = arith.constant 0 : index
    %c11 = arith.constant 11 : index
    %c0_17 = arith.constant 0 : index
    %19 = vector.load %arg2[%c0_16, %c11, %c0_17] : memref<1x104x128xbf16, #tpu.memory_space<vmem>>, vector<1x78x128xbf16>
    %20 = vector.shape_cast %19 : vector<1x78x128xbf16> to vector<78x128xbf16>
    %c512 = arith.constant 512 : index
    %c0_18 = arith.constant 0 : index
    %21 = vector.load %arg3[%c512, %c0_18] : memref<1152x128xbf16, #tpu.memory_space<vmem>>, vector<128x128xbf16>
    %cst_19 = arith.constant dense<0.000000e+00> : vector<78x128xf32>
    %22 = tpu.matmul %20, %21, %cst_19 {dimension_numbers = #tpu.dot_dimension_numbers<[1], [0], [0], [1], [0, 0, 1, 1], [], []>} : vector<78x128xbf16>, vector<128x128xbf16>, vector<78x128xf32> -> vector<78x128xf32>
    %23 = arith.addf %18, %22 : vector<78x128xf32>
    %c0_20 = arith.constant 0 : index
    %c12 = arith.constant 12 : index
    %c0_21 = arith.constant 0 : index
    %24 = vector.load %arg2[%c0_20, %c12, %c0_21] : memref<1x104x128xbf16, #tpu.memory_space<vmem>>, vector<1x78x128xbf16>
    %25 = vector.shape_cast %24 : vector<1x78x128xbf16> to vector<78x128xbf16>
    %c640 = arith.constant 640 : index
    %c0_22 = arith.constant 0 : index
    %26 = vector.load %arg3[%c640, %c0_22] : memref<1152x128xbf16, #tpu.memory_space<vmem>>, vector<128x128xbf16>
    %cst_23 = arith.constant dense<0.000000e+00> : vector<78x128xf32>
    %27 = tpu.matmul %25, %26, %cst_23 {dimension_numbers = #tpu.dot_dimension_numbers<[1], [0], [0], [1], [0, 0, 1, 1], [], []>} : vector<78x128xbf16>, vector<128x128xbf16>, vector<78x128xf32> -> vector<78x128xf32>
    %28 = arith.addf %23, %27 : vector<78x128xf32>
    %c0_24 = arith.constant 0 : index
    %c20 = arith.constant 20 : index
    %c0_25 = arith.constant 0 : index
    %29 = vector.load %arg2[%c0_24, %c20, %c0_25] : memref<1x104x128xbf16, #tpu.memory_space<vmem>>, vector<1x78x128xbf16>
    %30 = vector.shape_cast %29 : vector<1x78x128xbf16> to vector<78x128xbf16>
    %c768 = arith.constant 768 : index
    %c0_26 = arith.constant 0 : index
    %31 = vector.load %arg3[%c768, %c0_26] : memref<1152x128xbf16, #tpu.memory_space<vmem>>, vector<128x128xbf16>
    %cst_27 = arith.constant dense<0.000000e+00> : vector<78x128xf32>
    %32 = tpu.matmul %30, %31, %cst_27 {dimension_numbers = #tpu.dot_dimension_numbers<[1], [0], [0], [1], [0, 0, 1, 1], [], []>} : vector<78x128xbf16>, vector<128x128xbf16>, vector<78x128xf32> -> vector<78x128xf32>
    %33 = arith.addf %28, %32 : vector<78x128xf32>
    %c0_28 = arith.constant 0 : index
    %c21 = arith.constant 21 : index
    %c0_29 = arith.constant 0 : index
    %34 = vector.load %arg2[%c0_28, %c21, %c0_29] : memref<1x104x128xbf16, #tpu.memory_space<vmem>>, vector<1x78x128xbf16>
    %35 = vector.shape_cast %34 : vector<1x78x128xbf16> to vector<78x128xbf16>
    %c896 = arith.constant 896 : index
    %c0_30 = arith.constant 0 : index
    %36 = vector.load %arg3[%c896, %c0_30] : memref<1152x128xbf16, #tpu.memory_space<vmem>>, vector<128x128xbf16>
    %cst_31 = arith.constant dense<0.000000e+00> : vector<78x128xf32>
    %37 = tpu.matmul %35, %36, %cst_31 {dimension_numbers = #tpu.dot_dimension_numbers<[1], [0], [0], [1], [0, 0, 1, 1], [], []>} : vector<78x128xbf16>, vector<128x128xbf16>, vector<78x128xf32> -> vector<78x128xf32>
    %38 = arith.addf %33, %37 : vector<78x128xf32>
    %c0_32 = arith.constant 0 : index
    %c22 = arith.constant 22 : index
    %c0_33 = arith.constant 0 : index
    %39 = vector.load %arg2[%c0_32, %c22, %c0_33] : memref<1x104x128xbf16, #tpu.memory_space<vmem>>, vector<1x78x128xbf16>
    %40 = vector.shape_cast %39 : vector<1x78x128xbf16> to vector<78x128xbf16>
    %c1024 = arith.constant 1024 : index
    %c0_34 = arith.constant 0 : index
    %41 = vector.load %arg3[%c1024, %c0_34] : memref<1152x128xbf16, #tpu.memory_space<vmem>>, vector<128x128xbf16>
    %cst_35 = arith.constant dense<0.000000e+00> : vector<78x128xf32>
    %42 = tpu.matmul %40, %41, %cst_35 {dimension_numbers = #tpu.dot_dimension_numbers<[1], [0], [0], [1], [0, 0, 1, 1], [], []>} : vector<78x128xbf16>, vector<128x128xbf16>, vector<78x128xf32> -> vector<78x128xf32>
    %43 = arith.addf %38, %42 : vector<78x128xf32>
    %c0_36 = arith.constant 0 : index
    %c0_37 = arith.constant 0 : index
    %44 = vector.load %arg4[%c0_36, %c0_37] : memref<1x128xf32, #tpu.memory_space<vmem>>, vector<1x128xf32>
    %45 = vector.broadcast %44 : vector<1x128xf32> to vector<78x128xf32>
    %46 = arith.mulf %43, %45 : vector<78x128xf32>
    %c0_38 = arith.constant 0 : index
    %c0_39 = arith.constant 0 : index
    %47 = vector.load %arg5[%c0_38, %c0_39] : memref<1x128xf32, #tpu.memory_space<vmem>>, vector<1x128xf32>
    %48 = vector.broadcast %47 : vector<1x128xf32> to vector<78x128xf32>
    %49 = arith.addf %46, %48 : vector<78x128xf32>
    %50 = vector.extract_strided_slice %49 {offsets = [0, 0], sizes = [8, 128], strides = [1, 1]} : vector<78x128xf32> to vector<8x128xf32>
    %c0_40 = arith.constant 0 : index
    %c0_41 = arith.constant 0 : index
    %c0_42 = arith.constant 0 : index
    %51 = vector.load %arg6[%c0_40, %c0_41, %c0_42] : memref<1x64x128xbf16, #tpu.memory_space<vmem>>, vector<1x8x128xbf16>
    %52 = vector.shape_cast %51 : vector<1x8x128xbf16> to vector<8x128xbf16>
    %53 = arith.extf %52 : vector<8x128xbf16> to vector<8x128xf32>
    %54 = arith.addf %50, %53 : vector<8x128xf32>
    %cst_43 = arith.constant 0.000000e+00 : f32
    %55 = vector.broadcast %cst_43 : f32 to vector<8x128xf32>
    %56 = arith.maximumf %54, %55 : vector<8x128xf32>
    %57 = arith.truncf %56 : vector<8x128xf32> to vector<8x128xbf16>
    %c0_44 = arith.constant 0 : index
    %c0_45 = arith.constant 0 : index
    %c0_46 = arith.constant 0 : index
    %58 = vector.load %arg7[%c0_44, %c0_45, %c0_46] : memref<1x64x128xbf16, #tpu.memory_space<vmem>>, vector<1x8x128xbf16>
    %59 = vector.shape_cast %58 : vector<1x8x128xbf16> to vector<8x128xbf16>
    %60 = vector.shape_cast %57 : vector<8x128xbf16> to vector<1x8x128xbf16>
    tpu.vector_store %arg7[%c0_44, %c0_45, %c0_46], %60 {strides = array<i32>} : memref<1x64x128xbf16, #tpu.memory_space<vmem>>, vector<1x8x128xbf16>,
    %61 = vector.extract_strided_slice %49 {offsets = [10, 0], sizes = [8, 128], strides = [1, 1]} : vector<78x128xf32> to vector<8x128xf32>
    %c0_47 = arith.constant 0 : index
    %c8 = arith.constant 8 : index
    %c0_48 = arith.constant 0 : index
    %62 = vector.load %arg6[%c0_47, %c8, %c0_48] : memref<1x64x128xbf16, #tpu.memory_space<vmem>>, vector<1x8x128xbf16>
    %63 = vector.shape_cast %62 : vector<1x8x128xbf16> to vector<8x128xbf16>
    %64 = arith.extf %63 : vector<8x128xbf16> to vector<8x128xf32>
    %65 = arith.addf %61, %64 : vector<8x128xf32>
    %cst_49 = arith.constant 0.000000e+00 : f32
    %66 = vector.broadcast %cst_49 : f32 to vector<8x128xf32>
    %67 = arith.maximumf %65, %66 : vector<8x128xf32>
    %68 = arith.truncf %67 : vector<8x128xf32> to vector<8x128xbf16>
    %c0_50 = arith.constant 0 : index
    %c8_51 = arith.constant 8 : index
    %c0_52 = arith.constant 0 : index
    %69 = vector.load %arg7[%c0_50, %c8_51, %c0_52] : memref<1x64x128xbf16, #tpu.memory_space<vmem>>, vector<1x8x128xbf16>
    %70 = vector.shape_cast %69 : vector<1x8x128xbf16> to vector<8x128xbf16>
    %71 = vector.shape_cast %68 : vector<8x128xbf16> to vector<1x8x128xbf16>
    tpu.vector_store %arg7[%c0_50, %c8_51, %c0_52], %71 {strides = array<i32>} : memref<1x64x128xbf16, #tpu.memory_space<vmem>>, vector<1x8x128xbf16>,
    %72 = vector.extract_strided_slice %49 {offsets = [20, 0], sizes = [8, 128], strides = [1, 1]} : vector<78x128xf32> to vector<8x128xf32>
    %c0_53 = arith.constant 0 : index
    %c16 = arith.constant 16 : index
    %c0_54 = arith.constant 0 : index
    %73 = vector.load %arg6[%c0_53, %c16, %c0_54] : memref<1x64x128xbf16, #tpu.memory_space<vmem>>, vector<1x8x128xbf16>
    %74 = vector.shape_cast %73 : vector<1x8x128xbf16> to vector<8x128xbf16>
    %75 = arith.extf %74 : vector<8x128xbf16> to vector<8x128xf32>
    %76 = arith.addf %72, %75 : vector<8x128xf32>
    %cst_55 = arith.constant 0.000000e+00 : f32
    %77 = vector.broadcast %cst_55 : f32 to vector<8x128xf32>
    %78 = arith.maximumf %76, %77 : vector<8x128xf32>
    %79 = arith.truncf %78 : vector<8x128xf32> to vector<8x128xbf16>
    %c0_56 = arith.constant 0 : index
    %c16_57 = arith.constant 16 : index
    %c0_58 = arith.constant 0 : index
    %80 = vector.load %arg7[%c0_56, %c16_57, %c0_58] : memref<1x64x128xbf16, #tpu.memory_space<vmem>>, vector<1x8x128xbf16>
    %81 = vector.shape_cast %80 : vector<1x8x128xbf16> to vector<8x128xbf16>
    %82 = vector.shape_cast %79 : vector<8x128xbf16> to vector<1x8x128xbf16>
    tpu.vector_store %arg7[%c0_56, %c16_57, %c0_58], %82 {strides = array<i32>} : memref<1x64x128xbf16, #tpu.memory_space<vmem>>, vector<1x8x128xbf16>,
    %83 = vector.extract_strided_slice %49 {offsets = [30, 0], sizes = [8, 128], strides = [1, 1]} : vector<78x128xf32> to vector<8x128xf32>
    %c0_59 = arith.constant 0 : index
    %c24 = arith.constant 24 : index
    %c0_60 = arith.constant 0 : index
    %84 = vector.load %arg6[%c0_59, %c24, %c0_60] : memref<1x64x128xbf16, #tpu.memory_space<vmem>>, vector<1x8x128xbf16>
    %85 = vector.shape_cast %84 : vector<1x8x128xbf16> to vector<8x128xbf16>
    %86 = arith.extf %85 : vector<8x128xbf16> to vector<8x128xf32>
    %87 = arith.addf %83, %86 : vector<8x128xf32>
    %cst_61 = arith.constant 0.000000e+00 : f32
    %88 = vector.broadcast %cst_61 : f32 to vector<8x128xf32>
    %89 = arith.maximumf %87, %88 : vector<8x128xf32>
    %90 = arith.truncf %89 : vector<8x128xf32> to vector<8x128xbf16>
    %c0_62 = arith.constant 0 : index
    %c24_63 = arith.constant 24 : index
    %c0_64 = arith.constant 0 : index
    %91 = vector.load %arg7[%c0_62, %c24_63, %c0_64] : memref<1x64x128xbf16, #tpu.memory_space<vmem>>, vector<1x8x128xbf16>
    %92 = vector.shape_cast %91 : vector<1x8x128xbf16> to vector<8x128xbf16>
    %93 = vector.shape_cast %90 : vector<8x128xbf16> to vector<1x8x128xbf16>
    tpu.vector_store %arg7[%c0_62, %c24_63, %c0_64], %93 {strides = array<i32>} : memref<1x64x128xbf16, #tpu.memory_space<vmem>>, vector<1x8x128xbf16>,
    %94 = vector.extract_strided_slice %49 {offsets = [40, 0], sizes = [8, 128], strides = [1, 1]} : vector<78x128xf32> to vector<8x128xf32>
    %c0_65 = arith.constant 0 : index
    %c32 = arith.constant 32 : index
    %c0_66 = arith.constant 0 : index
    %95 = vector.load %arg6[%c0_65, %c32, %c0_66] : memref<1x64x128xbf16, #tpu.memory_space<vmem>>, vector<1x8x128xbf16>
    %96 = vector.shape_cast %95 : vector<1x8x128xbf16> to vector<8x128xbf16>
    %97 = arith.extf %96 : vector<8x128xbf16> to vector<8x128xf32>
    %98 = arith.addf %94, %97 : vector<8x128xf32>
    %cst_67 = arith.constant 0.000000e+00 : f32
    %99 = vector.broadcast %cst_67 : f32 to vector<8x128xf32>
    %100 = arith.maximumf %98, %99 : vector<8x128xf32>
    %101 = arith.truncf %100 : vector<8x128xf32> to vector<8x128xbf16>
    %c0_68 = arith.constant 0 : index
    %c32_69 = arith.constant 32 : index
    %c0_70 = arith.constant 0 : index
    %102 = vector.load %arg7[%c0_68, %c32_69, %c0_70] : memref<1x64x128xbf16, #tpu.memory_space<vmem>>, vector<1x8x128xbf16>
    %103 = vector.shape_cast %102 : vector<1x8x128xbf16> to vector<8x128xbf16>
    %104 = vector.shape_cast %101 : vector<8x128xbf16> to vector<1x8x128xbf16>
    tpu.vector_store %arg7[%c0_68, %c32_69, %c0_70], %104 {strides = array<i32>} : memref<1x64x128xbf16, #tpu.memory_space<vmem>>, vector<1x8x128xbf16>,
    %105 = vector.extract_strided_slice %49 {offsets = [50, 0], sizes = [8, 128], strides = [1, 1]} : vector<78x128xf32> to vector<8x128xf32>
    %c0_71 = arith.constant 0 : index
    %c40 = arith.constant 40 : index
    %c0_72 = arith.constant 0 : index
    %106 = vector.load %arg6[%c0_71, %c40, %c0_72] : memref<1x64x128xbf16, #tpu.memory_space<vmem>>, vector<1x8x128xbf16>
    %107 = vector.shape_cast %106 : vector<1x8x128xbf16> to vector<8x128xbf16>
    %108 = arith.extf %107 : vector<8x128xbf16> to vector<8x128xf32>
    %109 = arith.addf %105, %108 : vector<8x128xf32>
    %cst_73 = arith.constant 0.000000e+00 : f32
    %110 = vector.broadcast %cst_73 : f32 to vector<8x128xf32>
    %111 = arith.maximumf %109, %110 : vector<8x128xf32>
    %112 = arith.truncf %111 : vector<8x128xf32> to vector<8x128xbf16>
    %c0_74 = arith.constant 0 : index
    %c40_75 = arith.constant 40 : index
    %c0_76 = arith.constant 0 : index
    %113 = vector.load %arg7[%c0_74, %c40_75, %c0_76] : memref<1x64x128xbf16, #tpu.memory_space<vmem>>, vector<1x8x128xbf16>
    %114 = vector.shape_cast %113 : vector<1x8x128xbf16> to vector<8x128xbf16>
    %115 = vector.shape_cast %112 : vector<8x128xbf16> to vector<1x8x128xbf16>
    tpu.vector_store %arg7[%c0_74, %c40_75, %c0_76], %115 {strides = array<i32>} : memref<1x64x128xbf16, #tpu.memory_space<vmem>>, vector<1x8x128xbf16>,
    %116 = vector.extract_strided_slice %49 {offsets = [60, 0], sizes = [8, 128], strides = [1, 1]} : vector<78x128xf32> to vector<8x128xf32>
    %c0_77 = arith.constant 0 : index
    %c48 = arith.constant 48 : index
    %c0_78 = arith.constant 0 : index
    %117 = vector.load %arg6[%c0_77, %c48, %c0_78] : memref<1x64x128xbf16, #tpu.memory_space<vmem>>, vector<1x8x128xbf16>
    %118 = vector.shape_cast %117 : vector<1x8x128xbf16> to vector<8x128xbf16>
    %119 = arith.extf %118 : vector<8x128xbf16> to vector<8x128xf32>
    %120 = arith.addf %116, %119 : vector<8x128xf32>
    %cst_79 = arith.constant 0.000000e+00 : f32
    %121 = vector.broadcast %cst_79 : f32 to vector<8x128xf32>
    %122 = arith.maximumf %120, %121 : vector<8x128xf32>
    %123 = arith.truncf %122 : vector<8x128xf32> to vector<8x128xbf16>
    %c0_80 = arith.constant 0 : index
    %c48_81 = arith.constant 48 : index
    %c0_82 = arith.constant 0 : index
    %124 = vector.load %arg7[%c0_80, %c48_81, %c0_82] : memref<1x64x128xbf16, #tpu.memory_space<vmem>>, vector<1x8x128xbf16>
    %125 = vector.shape_cast %124 : vector<1x8x128xbf16> to vector<8x128xbf16>
    %126 = vector.shape_cast %123 : vector<8x128xbf16> to vector<1x8x128xbf16>
    tpu.vector_store %arg7[%c0_80, %c48_81, %c0_82], %126 {strides = array<i32>} : memref<1x64x128xbf16, #tpu.memory_space<vmem>>, vector<1x8x128xbf16>,
    %127 = vector.extract_strided_slice %49 {offsets = [70, 0], sizes = [8, 128], strides = [1, 1]} : vector<78x128xf32> to vector<8x128xf32>
    %c0_83 = arith.constant 0 : index
    %c56 = arith.constant 56 : index
    %c0_84 = arith.constant 0 : index
    %128 = vector.load %arg6[%c0_83, %c56, %c0_84] : memref<1x64x128xbf16, #tpu.memory_space<vmem>>, vector<1x8x128xbf16>
    %129 = vector.shape_cast %128 : vector<1x8x128xbf16> to vector<8x128xbf16>
    %130 = arith.extf %129 : vector<8x128xbf16> to vector<8x128xf32>
    %131 = arith.addf %127, %130 : vector<8x128xf32>
    %cst_85 = arith.constant 0.000000e+00 : f32
    %132 = vector.broadcast %cst_85 : f32 to vector<8x128xf32>
    %133 = arith.maximumf %131, %132 : vector<8x128xf32>
    %134 = arith.truncf %133 : vector<8x128xf32> to vector<8x128xbf16>
    %c0_86 = arith.constant 0 : index
    %c56_87 = arith.constant 56 : index
    %c0_88 = arith.constant 0 : index
    %135 = vector.load %arg7[%c0_86, %c56_87, %c0_88] : memref<1x64x128xbf16, #tpu.memory_space<vmem>>, vector<1x8x128xbf16>
    %136 = vector.shape_cast %135 : vector<1x8x128xbf16> to vector<8x128xbf16>
    %137 = vector.shape_cast %134 : vector<8x128xbf16> to vector<1x8x128xbf16>
    tpu.vector_store %arg7[%c0_86, %c56_87, %c0_88], %137 {strides = array<i32>} : memref<1x64x128xbf16, #tpu.memory_space<vmem>>, vector<1x8x128xbf16>,
    return
  }
  func.func @transform_0(%arg0: i32, %arg1: i32) -> (i32, i32, i32) {
    %c0_i32 = arith.constant 0 : i32
    %c0_i32_0 = arith.constant 0 : i32
    %c0_i32_1 = arith.constant 0 : i32
    return %arg0, %c0_i32, %c0_i32_0 : i32, i32, i32
  }
  func.func @transform_1(%arg0: i32, %arg1: i32) -> (i32, i32) {
    %c0_i32 = arith.constant 0 : i32
    %c0_i32_0 = arith.constant 0 : i32
    %c0_i32_1 = arith.constant 0 : i32
    return %c0_i32, %c0_i32_0 : i32, i32
  }
  func.func @transform_2(%arg0: i32, %arg1: i32) -> (i32, i32) {
    %c0_i32 = arith.constant 0 : i32
    %c0_i32_0 = arith.constant 0 : i32
    %c0_i32_1 = arith.constant 0 : i32
    return %c0_i32, %c0_i32_0 : i32, i32
  }
  func.func @transform_3(%arg0: i32, %arg1: i32) -> (i32, i32) {
    %c0_i32 = arith.constant 0 : i32
    %c0_i32_0 = arith.constant 0 : i32
    %c0_i32_1 = arith.constant 0 : i32
    return %c0_i32, %c0_i32_0 : i32, i32
  }
  func.func @transform_4(%arg0: i32, %arg1: i32) -> (i32, i32, i32) {
    %c0_i32 = arith.constant 0 : i32
    %c0_i32_0 = arith.constant 0 : i32
    return %arg0, %arg1, %c0_i32 : i32, i32, i32
  }
  func.func @transform_5(%arg0: i32, %arg1: i32) -> (i32, i32, i32) {
    %c0_i32 = arith.constant 0 : i32
    %c0_i32_0 = arith.constant 0 : i32
    return %arg0, %arg1, %c0_i32 : i32, i32, i32
  }
}

module attributes {stable_mosaic.version = 11 : i64} {
  func.func @_conv_kernel(%arg0: i32, %arg1: i32, %arg2: memref<1x128x128xbf16, #tpu.memory_space<vmem>>, %arg3: memref<1152x128xbf16, #tpu.memory_space<vmem>>, %arg4: memref<1x128xf32, #tpu.memory_space<vmem>>, %arg5: memref<1x128xf32, #tpu.memory_space<vmem>>, %arg6: memref<1x16x128xbf16, #tpu.memory_space<vmem>>) attributes {dimension_semantics = [#tpu.dimension_semantics<parallel>, #tpu.dimension_semantics<parallel>], iteration_bounds = array<i64: 2, 1>, scalar_prefetch = 0 : i64, scratch_operands = 0 : i64, tpu.core_type = #tpu.core_type<tc>, window_params = [{transform_indices = @transform_0, window_bounds = array<i64: 1, 128, 128>}, {pipeline_mode = #tpu.pipeline_mode<synchronous>, transform_indices = @transform_1, window_bounds = array<i64: 1152, 128>}, {pipeline_mode = #tpu.pipeline_mode<synchronous>, transform_indices = @transform_2, window_bounds = array<i64: 1, 128>}, {pipeline_mode = #tpu.pipeline_mode<synchronous>, transform_indices = @transform_3, window_bounds = array<i64: 1, 128>}, {transform_indices = @transform_4, window_bounds = array<i64: 1, 16, 128>}]} {
    %c0 = arith.constant 0 : index
    %c0_0 = arith.constant 0 : index
    %c0_1 = arith.constant 0 : index
    %0 = vector.load %arg2[%c0, %c0_0, %c0_1] : memref<1x128x128xbf16, #tpu.memory_space<vmem>>, vector<1x19x128xbf16>
    %1 = vector.shape_cast %0 : vector<1x19x128xbf16> to vector<19x128xbf16>
    %c0_2 = arith.constant 0 : index
    %c0_3 = arith.constant 0 : index
    %2 = vector.load %arg3[%c0_2, %c0_3] : memref<1152x128xbf16, #tpu.memory_space<vmem>>, vector<128x128xbf16>
    %cst = arith.constant dense<0.000000e+00> : vector<19x128xf32>
    %3 = tpu.matmul %1, %2, %cst {dimension_numbers = #tpu.dot_dimension_numbers<[1], [0], [0], [1], [0, 0, 1, 1], [], []>} : vector<19x128xbf16>, vector<128x128xbf16>, vector<19x128xf32> -> vector<19x128xf32>
    %c0_4 = arith.constant 0 : index
    %c32 = arith.constant 32 : index
    %c0_5 = arith.constant 0 : index
    %4 = vector.load %arg2[%c0_4, %c32, %c0_5] : memref<1x128x128xbf16, #tpu.memory_space<vmem>>, vector<1x19x128xbf16>
    %5 = vector.shape_cast %4 : vector<1x19x128xbf16> to vector<19x128xbf16>
    %c128 = arith.constant 128 : index
    %c0_6 = arith.constant 0 : index
    %6 = vector.load %arg3[%c128, %c0_6] : memref<1152x128xbf16, #tpu.memory_space<vmem>>, vector<128x128xbf16>
    %cst_7 = arith.constant dense<0.000000e+00> : vector<19x128xf32>
    %7 = tpu.matmul %5, %6, %cst_7 {dimension_numbers = #tpu.dot_dimension_numbers<[1], [0], [0], [1], [0, 0, 1, 1], [], []>} : vector<19x128xbf16>, vector<128x128xbf16>, vector<19x128xf32> -> vector<19x128xf32>
    %8 = arith.addf %3, %7 : vector<19x128xf32>
    %c0_8 = arith.constant 0 : index
    %c1 = arith.constant 1 : index
    %c0_9 = arith.constant 0 : index
    %9 = vector.load %arg2[%c0_8, %c1, %c0_9] : memref<1x128x128xbf16, #tpu.memory_space<vmem>>, vector<1x19x128xbf16>
    %10 = vector.shape_cast %9 : vector<1x19x128xbf16> to vector<19x128xbf16>
    %c256 = arith.constant 256 : index
    %c0_10 = arith.constant 0 : index
    %11 = vector.load %arg3[%c256, %c0_10] : memref<1152x128xbf16, #tpu.memory_space<vmem>>, vector<128x128xbf16>
    %cst_11 = arith.constant dense<0.000000e+00> : vector<19x128xf32>
    %12 = tpu.matmul %10, %11, %cst_11 {dimension_numbers = #tpu.dot_dimension_numbers<[1], [0], [0], [1], [0, 0, 1, 1], [], []>} : vector<19x128xbf16>, vector<128x128xbf16>, vector<19x128xf32> -> vector<19x128xf32>
    %13 = arith.addf %8, %12 : vector<19x128xf32>
    %c0_12 = arith.constant 0 : index
    %c64 = arith.constant 64 : index
    %c0_13 = arith.constant 0 : index
    %14 = vector.load %arg2[%c0_12, %c64, %c0_13] : memref<1x128x128xbf16, #tpu.memory_space<vmem>>, vector<1x19x128xbf16>
    %15 = vector.shape_cast %14 : vector<1x19x128xbf16> to vector<19x128xbf16>
    %c384 = arith.constant 384 : index
    %c0_14 = arith.constant 0 : index
    %16 = vector.load %arg3[%c384, %c0_14] : memref<1152x128xbf16, #tpu.memory_space<vmem>>, vector<128x128xbf16>
    %cst_15 = arith.constant dense<0.000000e+00> : vector<19x128xf32>
    %17 = tpu.matmul %15, %16, %cst_15 {dimension_numbers = #tpu.dot_dimension_numbers<[1], [0], [0], [1], [0, 0, 1, 1], [], []>} : vector<19x128xbf16>, vector<128x128xbf16>, vector<19x128xf32> -> vector<19x128xf32>
    %18 = arith.addf %13, %17 : vector<19x128xf32>
    %c0_16 = arith.constant 0 : index
    %c96 = arith.constant 96 : index
    %c0_17 = arith.constant 0 : index
    %19 = vector.load %arg2[%c0_16, %c96, %c0_17] : memref<1x128x128xbf16, #tpu.memory_space<vmem>>, vector<1x19x128xbf16>
    %20 = vector.shape_cast %19 : vector<1x19x128xbf16> to vector<19x128xbf16>
    %c512 = arith.constant 512 : index
    %c0_18 = arith.constant 0 : index
    %21 = vector.load %arg3[%c512, %c0_18] : memref<1152x128xbf16, #tpu.memory_space<vmem>>, vector<128x128xbf16>
    %cst_19 = arith.constant dense<0.000000e+00> : vector<19x128xf32>
    %22 = tpu.matmul %20, %21, %cst_19 {dimension_numbers = #tpu.dot_dimension_numbers<[1], [0], [0], [1], [0, 0, 1, 1], [], []>} : vector<19x128xbf16>, vector<128x128xbf16>, vector<19x128xf32> -> vector<19x128xf32>
    %23 = arith.addf %18, %22 : vector<19x128xf32>
    %c0_20 = arith.constant 0 : index
    %c65 = arith.constant 65 : index
    %c0_21 = arith.constant 0 : index
    %24 = vector.load %arg2[%c0_20, %c65, %c0_21] : memref<1x128x128xbf16, #tpu.memory_space<vmem>>, vector<1x19x128xbf16>
    %25 = vector.shape_cast %24 : vector<1x19x128xbf16> to vector<19x128xbf16>
    %c640 = arith.constant 640 : index
    %c0_22 = arith.constant 0 : index
    %26 = vector.load %arg3[%c640, %c0_22] : memref<1152x128xbf16, #tpu.memory_space<vmem>>, vector<128x128xbf16>
    %cst_23 = arith.constant dense<0.000000e+00> : vector<19x128xf32>
    %27 = tpu.matmul %25, %26, %cst_23 {dimension_numbers = #tpu.dot_dimension_numbers<[1], [0], [0], [1], [0, 0, 1, 1], [], []>} : vector<19x128xbf16>, vector<128x128xbf16>, vector<19x128xf32> -> vector<19x128xf32>
    %28 = arith.addf %23, %27 : vector<19x128xf32>
    %c0_24 = arith.constant 0 : index
    %c5 = arith.constant 5 : index
    %c0_25 = arith.constant 0 : index
    %29 = vector.load %arg2[%c0_24, %c5, %c0_25] : memref<1x128x128xbf16, #tpu.memory_space<vmem>>, vector<1x19x128xbf16>
    %30 = vector.shape_cast %29 : vector<1x19x128xbf16> to vector<19x128xbf16>
    %c768 = arith.constant 768 : index
    %c0_26 = arith.constant 0 : index
    %31 = vector.load %arg3[%c768, %c0_26] : memref<1152x128xbf16, #tpu.memory_space<vmem>>, vector<128x128xbf16>
    %cst_27 = arith.constant dense<0.000000e+00> : vector<19x128xf32>
    %32 = tpu.matmul %30, %31, %cst_27 {dimension_numbers = #tpu.dot_dimension_numbers<[1], [0], [0], [1], [0, 0, 1, 1], [], []>} : vector<19x128xbf16>, vector<128x128xbf16>, vector<19x128xf32> -> vector<19x128xf32>
    %33 = arith.addf %28, %32 : vector<19x128xf32>
    %c0_28 = arith.constant 0 : index
    %c37 = arith.constant 37 : index
    %c0_29 = arith.constant 0 : index
    %34 = vector.load %arg2[%c0_28, %c37, %c0_29] : memref<1x128x128xbf16, #tpu.memory_space<vmem>>, vector<1x19x128xbf16>
    %35 = vector.shape_cast %34 : vector<1x19x128xbf16> to vector<19x128xbf16>
    %c896 = arith.constant 896 : index
    %c0_30 = arith.constant 0 : index
    %36 = vector.load %arg3[%c896, %c0_30] : memref<1152x128xbf16, #tpu.memory_space<vmem>>, vector<128x128xbf16>
    %cst_31 = arith.constant dense<0.000000e+00> : vector<19x128xf32>
    %37 = tpu.matmul %35, %36, %cst_31 {dimension_numbers = #tpu.dot_dimension_numbers<[1], [0], [0], [1], [0, 0, 1, 1], [], []>} : vector<19x128xbf16>, vector<128x128xbf16>, vector<19x128xf32> -> vector<19x128xf32>
    %38 = arith.addf %33, %37 : vector<19x128xf32>
    %c0_32 = arith.constant 0 : index
    %c6 = arith.constant 6 : index
    %c0_33 = arith.constant 0 : index
    %39 = vector.load %arg2[%c0_32, %c6, %c0_33] : memref<1x128x128xbf16, #tpu.memory_space<vmem>>, vector<1x19x128xbf16>
    %40 = vector.shape_cast %39 : vector<1x19x128xbf16> to vector<19x128xbf16>
    %c1024 = arith.constant 1024 : index
    %c0_34 = arith.constant 0 : index
    %41 = vector.load %arg3[%c1024, %c0_34] : memref<1152x128xbf16, #tpu.memory_space<vmem>>, vector<128x128xbf16>
    %cst_35 = arith.constant dense<0.000000e+00> : vector<19x128xf32>
    %42 = tpu.matmul %40, %41, %cst_35 {dimension_numbers = #tpu.dot_dimension_numbers<[1], [0], [0], [1], [0, 0, 1, 1], [], []>} : vector<19x128xbf16>, vector<128x128xbf16>, vector<19x128xf32> -> vector<19x128xf32>
    %43 = arith.addf %38, %42 : vector<19x128xf32>
    %c0_36 = arith.constant 0 : index
    %c0_37 = arith.constant 0 : index
    %44 = vector.load %arg4[%c0_36, %c0_37] : memref<1x128xf32, #tpu.memory_space<vmem>>, vector<1x128xf32>
    %45 = vector.broadcast %44 : vector<1x128xf32> to vector<19x128xf32>
    %46 = arith.mulf %43, %45 : vector<19x128xf32>
    %c0_38 = arith.constant 0 : index
    %c0_39 = arith.constant 0 : index
    %47 = vector.load %arg5[%c0_38, %c0_39] : memref<1x128xf32, #tpu.memory_space<vmem>>, vector<1x128xf32>
    %48 = vector.broadcast %47 : vector<1x128xf32> to vector<19x128xf32>
    %49 = arith.addf %46, %48 : vector<19x128xf32>
    %50 = vector.extract_strided_slice %49 {offsets = [0, 0], sizes = [4, 128], strides = [1, 1]} : vector<19x128xf32> to vector<4x128xf32>
    %cst_40 = arith.constant 0.000000e+00 : f32
    %51 = vector.broadcast %cst_40 : f32 to vector<4x128xf32>
    %52 = arith.maximumf %50, %51 : vector<4x128xf32>
    %53 = arith.truncf %52 : vector<4x128xf32> to vector<4x128xbf16>
    %c0_41 = arith.constant 0 : index
    %c0_42 = arith.constant 0 : index
    %c0_43 = arith.constant 0 : index
    %54 = vector.load %arg6[%c0_41, %c0_42, %c0_43] : memref<1x16x128xbf16, #tpu.memory_space<vmem>>, vector<1x4x128xbf16>
    %55 = vector.shape_cast %54 : vector<1x4x128xbf16> to vector<4x128xbf16>
    %56 = vector.shape_cast %53 : vector<4x128xbf16> to vector<1x4x128xbf16>
    tpu.vector_store %arg6[%c0_41, %c0_42, %c0_43], %56 {strides = array<i32>} : memref<1x16x128xbf16, #tpu.memory_space<vmem>>, vector<1x4x128xbf16>,
    %57 = vector.extract_strided_slice %49 {offsets = [5, 0], sizes = [4, 128], strides = [1, 1]} : vector<19x128xf32> to vector<4x128xf32>
    %cst_44 = arith.constant 0.000000e+00 : f32
    %58 = vector.broadcast %cst_44 : f32 to vector<4x128xf32>
    %59 = arith.maximumf %57, %58 : vector<4x128xf32>
    %60 = arith.truncf %59 : vector<4x128xf32> to vector<4x128xbf16>
    %c0_45 = arith.constant 0 : index
    %c4 = arith.constant 4 : index
    %c0_46 = arith.constant 0 : index
    %61 = vector.load %arg6[%c0_45, %c4, %c0_46] : memref<1x16x128xbf16, #tpu.memory_space<vmem>>, vector<1x4x128xbf16>
    %62 = vector.shape_cast %61 : vector<1x4x128xbf16> to vector<4x128xbf16>
    %63 = vector.shape_cast %60 : vector<4x128xbf16> to vector<1x4x128xbf16>
    tpu.vector_store %arg6[%c0_45, %c4, %c0_46], %63 {strides = array<i32>} : memref<1x16x128xbf16, #tpu.memory_space<vmem>>, vector<1x4x128xbf16>,
    %64 = vector.extract_strided_slice %49 {offsets = [10, 0], sizes = [4, 128], strides = [1, 1]} : vector<19x128xf32> to vector<4x128xf32>
    %cst_47 = arith.constant 0.000000e+00 : f32
    %65 = vector.broadcast %cst_47 : f32 to vector<4x128xf32>
    %66 = arith.maximumf %64, %65 : vector<4x128xf32>
    %67 = arith.truncf %66 : vector<4x128xf32> to vector<4x128xbf16>
    %c0_48 = arith.constant 0 : index
    %c8 = arith.constant 8 : index
    %c0_49 = arith.constant 0 : index
    %68 = vector.load %arg6[%c0_48, %c8, %c0_49] : memref<1x16x128xbf16, #tpu.memory_space<vmem>>, vector<1x4x128xbf16>
    %69 = vector.shape_cast %68 : vector<1x4x128xbf16> to vector<4x128xbf16>
    %70 = vector.shape_cast %67 : vector<4x128xbf16> to vector<1x4x128xbf16>
    tpu.vector_store %arg6[%c0_48, %c8, %c0_49], %70 {strides = array<i32>} : memref<1x16x128xbf16, #tpu.memory_space<vmem>>, vector<1x4x128xbf16>,
    %71 = vector.extract_strided_slice %49 {offsets = [15, 0], sizes = [4, 128], strides = [1, 1]} : vector<19x128xf32> to vector<4x128xf32>
    %cst_50 = arith.constant 0.000000e+00 : f32
    %72 = vector.broadcast %cst_50 : f32 to vector<4x128xf32>
    %73 = arith.maximumf %71, %72 : vector<4x128xf32>
    %74 = arith.truncf %73 : vector<4x128xf32> to vector<4x128xbf16>
    %c0_51 = arith.constant 0 : index
    %c12 = arith.constant 12 : index
    %c0_52 = arith.constant 0 : index
    %75 = vector.load %arg6[%c0_51, %c12, %c0_52] : memref<1x16x128xbf16, #tpu.memory_space<vmem>>, vector<1x4x128xbf16>
    %76 = vector.shape_cast %75 : vector<1x4x128xbf16> to vector<4x128xbf16>
    %77 = vector.shape_cast %74 : vector<4x128xbf16> to vector<1x4x128xbf16>
    tpu.vector_store %arg6[%c0_51, %c12, %c0_52], %77 {strides = array<i32>} : memref<1x16x128xbf16, #tpu.memory_space<vmem>>, vector<1x4x128xbf16>,
    return
  }
  func.func @transform_0(%arg0: i32, %arg1: i32) -> (i32, i32, i32) {
    %c0_i32 = arith.constant 0 : i32
    %c0_i32_0 = arith.constant 0 : i32
    %c0_i32_1 = arith.constant 0 : i32
    return %arg0, %c0_i32, %c0_i32_0 : i32, i32, i32
  }
  func.func @transform_1(%arg0: i32, %arg1: i32) -> (i32, i32) {
    %c0_i32 = arith.constant 0 : i32
    %c0_i32_0 = arith.constant 0 : i32
    %c0_i32_1 = arith.constant 0 : i32
    return %c0_i32, %c0_i32_0 : i32, i32
  }
  func.func @transform_2(%arg0: i32, %arg1: i32) -> (i32, i32) {
    %c0_i32 = arith.constant 0 : i32
    %c0_i32_0 = arith.constant 0 : i32
    %c0_i32_1 = arith.constant 0 : i32
    return %c0_i32, %c0_i32_0 : i32, i32
  }
  func.func @transform_3(%arg0: i32, %arg1: i32) -> (i32, i32) {
    %c0_i32 = arith.constant 0 : i32
    %c0_i32_0 = arith.constant 0 : i32
    %c0_i32_1 = arith.constant 0 : i32
    return %c0_i32, %c0_i32_0 : i32, i32
  }
  func.func @transform_4(%arg0: i32, %arg1: i32) -> (i32, i32, i32) {
    %c0_i32 = arith.constant 0 : i32
    %c0_i32_0 = arith.constant 0 : i32
    return %arg0, %arg1, %c0_i32 : i32, i32, i32
  }
}

module attributes {stable_mosaic.version = 11 : i64} {
  func.func @_conv_kernel(%arg0: i32, %arg1: i32, %arg2: memref<1x64x128xbf16, #tpu.memory_space<vmem>>, %arg3: memref<128x128xbf16, #tpu.memory_space<vmem>>, %arg4: memref<1x128xf32, #tpu.memory_space<vmem>>, %arg5: memref<1x128xf32, #tpu.memory_space<vmem>>, %arg6: memref<1x16x128xbf16, #tpu.memory_space<vmem>>) attributes {dimension_semantics = [#tpu.dimension_semantics<parallel>, #tpu.dimension_semantics<parallel>], iteration_bounds = array<i64: 2, 1>, scalar_prefetch = 0 : i64, scratch_operands = 0 : i64, tpu.core_type = #tpu.core_type<tc>, window_params = [{transform_indices = @transform_0, window_bounds = array<i64: 1, 64, 128>}, {pipeline_mode = #tpu.pipeline_mode<synchronous>, transform_indices = @transform_1, window_bounds = array<i64: 128, 128>}, {pipeline_mode = #tpu.pipeline_mode<synchronous>, transform_indices = @transform_2, window_bounds = array<i64: 1, 128>}, {pipeline_mode = #tpu.pipeline_mode<synchronous>, transform_indices = @transform_3, window_bounds = array<i64: 1, 128>}, {transform_indices = @transform_4, window_bounds = array<i64: 1, 16, 128>}]} {
    %c0 = arith.constant 0 : index
    %c0_0 = arith.constant 0 : index
    %c0_1 = arith.constant 0 : index
    %0 = vector.load %arg2[%c0, %c0_0, %c0_1] : memref<1x64x128xbf16, #tpu.memory_space<vmem>>, vector<1x16x128xbf16>
    %1 = vector.shape_cast %0 : vector<1x16x128xbf16> to vector<16x128xbf16>
    %c0_2 = arith.constant 0 : index
    %c0_3 = arith.constant 0 : index
    %2 = vector.load %arg3[%c0_2, %c0_3] : memref<128x128xbf16, #tpu.memory_space<vmem>>, vector<128x128xbf16>
    %cst = arith.constant dense<0.000000e+00> : vector<16x128xf32>
    %3 = tpu.matmul %1, %2, %cst {dimension_numbers = #tpu.dot_dimension_numbers<[1], [0], [0], [1], [0, 0, 1, 1], [], []>} : vector<16x128xbf16>, vector<128x128xbf16>, vector<16x128xf32> -> vector<16x128xf32>
    %c0_4 = arith.constant 0 : index
    %c0_5 = arith.constant 0 : index
    %4 = vector.load %arg4[%c0_4, %c0_5] : memref<1x128xf32, #tpu.memory_space<vmem>>, vector<1x128xf32>
    %5 = vector.broadcast %4 : vector<1x128xf32> to vector<16x128xf32>
    %6 = arith.mulf %3, %5 : vector<16x128xf32>
    %c0_6 = arith.constant 0 : index
    %c0_7 = arith.constant 0 : index
    %7 = vector.load %arg5[%c0_6, %c0_7] : memref<1x128xf32, #tpu.memory_space<vmem>>, vector<1x128xf32>
    %8 = vector.broadcast %7 : vector<1x128xf32> to vector<16x128xf32>
    %9 = arith.addf %6, %8 : vector<16x128xf32>
    %10 = arith.truncf %9 : vector<16x128xf32> to vector<16x128xbf16>
    %c0_8 = arith.constant 0 : index
    %c0_9 = arith.constant 0 : index
    %c0_10 = arith.constant 0 : index
    %11 = vector.load %arg6[%c0_8, %c0_9, %c0_10] : memref<1x16x128xbf16, #tpu.memory_space<vmem>>, vector<1x16x128xbf16>
    %12 = vector.shape_cast %11 : vector<1x16x128xbf16> to vector<16x128xbf16>
    %13 = vector.shape_cast %10 : vector<16x128xbf16> to vector<1x16x128xbf16>
    tpu.vector_store %arg6[%c0_8, %c0_9, %c0_10], %13 {strides = array<i32>} : memref<1x16x128xbf16, #tpu.memory_space<vmem>>, vector<1x16x128xbf16>,
    return
  }
  func.func @transform_0(%arg0: i32, %arg1: i32) -> (i32, i32, i32) {
    %c0_i32 = arith.constant 0 : i32
    %c0_i32_0 = arith.constant 0 : i32
    %c0_i32_1 = arith.constant 0 : i32
    return %arg0, %c0_i32, %c0_i32_0 : i32, i32, i32
  }
  func.func @transform_1(%arg0: i32, %arg1: i32) -> (i32, i32) {
    %c0_i32 = arith.constant 0 : i32
    %c0_i32_0 = arith.constant 0 : i32
    %c0_i32_1 = arith.constant 0 : i32
    return %c0_i32, %c0_i32_0 : i32, i32
  }
  func.func @transform_2(%arg0: i32, %arg1: i32) -> (i32, i32) {
    %c0_i32 = arith.constant 0 : i32
    %c0_i32_0 = arith.constant 0 : i32
    %c0_i32_1 = arith.constant 0 : i32
    return %c0_i32, %c0_i32_0 : i32, i32
  }
  func.func @transform_3(%arg0: i32, %arg1: i32) -> (i32, i32) {
    %c0_i32 = arith.constant 0 : i32
    %c0_i32_0 = arith.constant 0 : i32
    %c0_i32_1 = arith.constant 0 : i32
    return %c0_i32, %c0_i32_0 : i32, i32
  }
  func.func @transform_4(%arg0: i32, %arg1: i32) -> (i32, i32, i32) {
    %c0_i32 = arith.constant 0 : i32
    %c0_i32_0 = arith.constant 0 : i32
    return %arg0, %arg1, %c0_i32 : i32, i32, i32
  }
}

module attributes {stable_mosaic.version = 11 : i64} {
  func.func @_conv_kernel(%arg0: i32, %arg1: i32, %arg2: memref<1x40x128xbf16, #tpu.memory_space<vmem>>, %arg3: memref<1152x128xbf16, #tpu.memory_space<vmem>>, %arg4: memref<1x128xf32, #tpu.memory_space<vmem>>, %arg5: memref<1x128xf32, #tpu.memory_space<vmem>>, %arg6: memref<1x16x128xbf16, #tpu.memory_space<vmem>>, %arg7: memref<1x16x128xbf16, #tpu.memory_space<vmem>>) attributes {dimension_semantics = [#tpu.dimension_semantics<parallel>, #tpu.dimension_semantics<parallel>], iteration_bounds = array<i64: 2, 1>, scalar_prefetch = 0 : i64, scratch_operands = 0 : i64, tpu.core_type = #tpu.core_type<tc>, window_params = [{transform_indices = @transform_0, window_bounds = array<i64: 1, 40, 128>}, {pipeline_mode = #tpu.pipeline_mode<synchronous>, transform_indices = @transform_1, window_bounds = array<i64: 1152, 128>}, {pipeline_mode = #tpu.pipeline_mode<synchronous>, transform_indices = @transform_2, window_bounds = array<i64: 1, 128>}, {pipeline_mode = #tpu.pipeline_mode<synchronous>, transform_indices = @transform_3, window_bounds = array<i64: 1, 128>}, {transform_indices = @transform_4, window_bounds = array<i64: 1, 16, 128>}, {transform_indices = @transform_5, window_bounds = array<i64: 1, 16, 128>}]} {
    %c0 = arith.constant 0 : index
    %c0_0 = arith.constant 0 : index
    %c0_1 = arith.constant 0 : index
    %0 = vector.load %arg2[%c0, %c0_0, %c0_1] : memref<1x40x128xbf16, #tpu.memory_space<vmem>>, vector<1x22x128xbf16>
    %1 = vector.shape_cast %0 : vector<1x22x128xbf16> to vector<22x128xbf16>
    %c0_2 = arith.constant 0 : index
    %c0_3 = arith.constant 0 : index
    %2 = vector.load %arg3[%c0_2, %c0_3] : memref<1152x128xbf16, #tpu.memory_space<vmem>>, vector<128x128xbf16>
    %cst = arith.constant dense<0.000000e+00> : vector<22x128xf32>
    %3 = tpu.matmul %1, %2, %cst {dimension_numbers = #tpu.dot_dimension_numbers<[1], [0], [0], [1], [0, 0, 1, 1], [], []>} : vector<22x128xbf16>, vector<128x128xbf16>, vector<22x128xf32> -> vector<22x128xf32>
    %c0_4 = arith.constant 0 : index
    %c1 = arith.constant 1 : index
    %c0_5 = arith.constant 0 : index
    %4 = vector.load %arg2[%c0_4, %c1, %c0_5] : memref<1x40x128xbf16, #tpu.memory_space<vmem>>, vector<1x22x128xbf16>
    %5 = vector.shape_cast %4 : vector<1x22x128xbf16> to vector<22x128xbf16>
    %c128 = arith.constant 128 : index
    %c0_6 = arith.constant 0 : index
    %6 = vector.load %arg3[%c128, %c0_6] : memref<1152x128xbf16, #tpu.memory_space<vmem>>, vector<128x128xbf16>
    %cst_7 = arith.constant dense<0.000000e+00> : vector<22x128xf32>
    %7 = tpu.matmul %5, %6, %cst_7 {dimension_numbers = #tpu.dot_dimension_numbers<[1], [0], [0], [1], [0, 0, 1, 1], [], []>} : vector<22x128xbf16>, vector<128x128xbf16>, vector<22x128xf32> -> vector<22x128xf32>
    %8 = arith.addf %3, %7 : vector<22x128xf32>
    %c0_8 = arith.constant 0 : index
    %c2 = arith.constant 2 : index
    %c0_9 = arith.constant 0 : index
    %9 = vector.load %arg2[%c0_8, %c2, %c0_9] : memref<1x40x128xbf16, #tpu.memory_space<vmem>>, vector<1x22x128xbf16>
    %10 = vector.shape_cast %9 : vector<1x22x128xbf16> to vector<22x128xbf16>
    %c256 = arith.constant 256 : index
    %c0_10 = arith.constant 0 : index
    %11 = vector.load %arg3[%c256, %c0_10] : memref<1152x128xbf16, #tpu.memory_space<vmem>>, vector<128x128xbf16>
    %cst_11 = arith.constant dense<0.000000e+00> : vector<22x128xf32>
    %12 = tpu.matmul %10, %11, %cst_11 {dimension_numbers = #tpu.dot_dimension_numbers<[1], [0], [0], [1], [0, 0, 1, 1], [], []>} : vector<22x128xbf16>, vector<128x128xbf16>, vector<22x128xf32> -> vector<22x128xf32>
    %13 = arith.addf %8, %12 : vector<22x128xf32>
    %c0_12 = arith.constant 0 : index
    %c6 = arith.constant 6 : index
    %c0_13 = arith.constant 0 : index
    %14 = vector.load %arg2[%c0_12, %c6, %c0_13] : memref<1x40x128xbf16, #tpu.memory_space<vmem>>, vector<1x22x128xbf16>
    %15 = vector.shape_cast %14 : vector<1x22x128xbf16> to vector<22x128xbf16>
    %c384 = arith.constant 384 : index
    %c0_14 = arith.constant 0 : index
    %16 = vector.load %arg3[%c384, %c0_14] : memref<1152x128xbf16, #tpu.memory_space<vmem>>, vector<128x128xbf16>
    %cst_15 = arith.constant dense<0.000000e+00> : vector<22x128xf32>
    %17 = tpu.matmul %15, %16, %cst_15 {dimension_numbers = #tpu.dot_dimension_numbers<[1], [0], [0], [1], [0, 0, 1, 1], [], []>} : vector<22x128xbf16>, vector<128x128xbf16>, vector<22x128xf32> -> vector<22x128xf32>
    %18 = arith.addf %13, %17 : vector<22x128xf32>
    %c0_16 = arith.constant 0 : index
    %c7 = arith.constant 7 : index
    %c0_17 = arith.constant 0 : index
    %19 = vector.load %arg2[%c0_16, %c7, %c0_17] : memref<1x40x128xbf16, #tpu.memory_space<vmem>>, vector<1x22x128xbf16>
    %20 = vector.shape_cast %19 : vector<1x22x128xbf16> to vector<22x128xbf16>
    %c512 = arith.constant 512 : index
    %c0_18 = arith.constant 0 : index
    %21 = vector.load %arg3[%c512, %c0_18] : memref<1152x128xbf16, #tpu.memory_space<vmem>>, vector<128x128xbf16>
    %cst_19 = arith.constant dense<0.000000e+00> : vector<22x128xf32>
    %22 = tpu.matmul %20, %21, %cst_19 {dimension_numbers = #tpu.dot_dimension_numbers<[1], [0], [0], [1], [0, 0, 1, 1], [], []>} : vector<22x128xbf16>, vector<128x128xbf16>, vector<22x128xf32> -> vector<22x128xf32>
    %23 = arith.addf %18, %22 : vector<22x128xf32>
    %c0_20 = arith.constant 0 : index
    %c8 = arith.constant 8 : index
    %c0_21 = arith.constant 0 : index
    %24 = vector.load %arg2[%c0_20, %c8, %c0_21] : memref<1x40x128xbf16, #tpu.memory_space<vmem>>, vector<1x22x128xbf16>
    %25 = vector.shape_cast %24 : vector<1x22x128xbf16> to vector<22x128xbf16>
    %c640 = arith.constant 640 : index
    %c0_22 = arith.constant 0 : index
    %26 = vector.load %arg3[%c640, %c0_22] : memref<1152x128xbf16, #tpu.memory_space<vmem>>, vector<128x128xbf16>
    %cst_23 = arith.constant dense<0.000000e+00> : vector<22x128xf32>
    %27 = tpu.matmul %25, %26, %cst_23 {dimension_numbers = #tpu.dot_dimension_numbers<[1], [0], [0], [1], [0, 0, 1, 1], [], []>} : vector<22x128xbf16>, vector<128x128xbf16>, vector<22x128xf32> -> vector<22x128xf32>
    %28 = arith.addf %23, %27 : vector<22x128xf32>
    %c0_24 = arith.constant 0 : index
    %c12 = arith.constant 12 : index
    %c0_25 = arith.constant 0 : index
    %29 = vector.load %arg2[%c0_24, %c12, %c0_25] : memref<1x40x128xbf16, #tpu.memory_space<vmem>>, vector<1x22x128xbf16>
    %30 = vector.shape_cast %29 : vector<1x22x128xbf16> to vector<22x128xbf16>
    %c768 = arith.constant 768 : index
    %c0_26 = arith.constant 0 : index
    %31 = vector.load %arg3[%c768, %c0_26] : memref<1152x128xbf16, #tpu.memory_space<vmem>>, vector<128x128xbf16>
    %cst_27 = arith.constant dense<0.000000e+00> : vector<22x128xf32>
    %32 = tpu.matmul %30, %31, %cst_27 {dimension_numbers = #tpu.dot_dimension_numbers<[1], [0], [0], [1], [0, 0, 1, 1], [], []>} : vector<22x128xbf16>, vector<128x128xbf16>, vector<22x128xf32> -> vector<22x128xf32>
    %33 = arith.addf %28, %32 : vector<22x128xf32>
    %c0_28 = arith.constant 0 : index
    %c13 = arith.constant 13 : index
    %c0_29 = arith.constant 0 : index
    %34 = vector.load %arg2[%c0_28, %c13, %c0_29] : memref<1x40x128xbf16, #tpu.memory_space<vmem>>, vector<1x22x128xbf16>
    %35 = vector.shape_cast %34 : vector<1x22x128xbf16> to vector<22x128xbf16>
    %c896 = arith.constant 896 : index
    %c0_30 = arith.constant 0 : index
    %36 = vector.load %arg3[%c896, %c0_30] : memref<1152x128xbf16, #tpu.memory_space<vmem>>, vector<128x128xbf16>
    %cst_31 = arith.constant dense<0.000000e+00> : vector<22x128xf32>
    %37 = tpu.matmul %35, %36, %cst_31 {dimension_numbers = #tpu.dot_dimension_numbers<[1], [0], [0], [1], [0, 0, 1, 1], [], []>} : vector<22x128xbf16>, vector<128x128xbf16>, vector<22x128xf32> -> vector<22x128xf32>
    %38 = arith.addf %33, %37 : vector<22x128xf32>
    %c0_32 = arith.constant 0 : index
    %c14 = arith.constant 14 : index
    %c0_33 = arith.constant 0 : index
    %39 = vector.load %arg2[%c0_32, %c14, %c0_33] : memref<1x40x128xbf16, #tpu.memory_space<vmem>>, vector<1x22x128xbf16>
    %40 = vector.shape_cast %39 : vector<1x22x128xbf16> to vector<22x128xbf16>
    %c1024 = arith.constant 1024 : index
    %c0_34 = arith.constant 0 : index
    %41 = vector.load %arg3[%c1024, %c0_34] : memref<1152x128xbf16, #tpu.memory_space<vmem>>, vector<128x128xbf16>
    %cst_35 = arith.constant dense<0.000000e+00> : vector<22x128xf32>
    %42 = tpu.matmul %40, %41, %cst_35 {dimension_numbers = #tpu.dot_dimension_numbers<[1], [0], [0], [1], [0, 0, 1, 1], [], []>} : vector<22x128xbf16>, vector<128x128xbf16>, vector<22x128xf32> -> vector<22x128xf32>
    %43 = arith.addf %38, %42 : vector<22x128xf32>
    %c0_36 = arith.constant 0 : index
    %c0_37 = arith.constant 0 : index
    %44 = vector.load %arg4[%c0_36, %c0_37] : memref<1x128xf32, #tpu.memory_space<vmem>>, vector<1x128xf32>
    %45 = vector.broadcast %44 : vector<1x128xf32> to vector<22x128xf32>
    %46 = arith.mulf %43, %45 : vector<22x128xf32>
    %c0_38 = arith.constant 0 : index
    %c0_39 = arith.constant 0 : index
    %47 = vector.load %arg5[%c0_38, %c0_39] : memref<1x128xf32, #tpu.memory_space<vmem>>, vector<1x128xf32>
    %48 = vector.broadcast %47 : vector<1x128xf32> to vector<22x128xf32>
    %49 = arith.addf %46, %48 : vector<22x128xf32>
    %50 = vector.extract_strided_slice %49 {offsets = [0, 0], sizes = [4, 128], strides = [1, 1]} : vector<22x128xf32> to vector<4x128xf32>
    %c0_40 = arith.constant 0 : index
    %c0_41 = arith.constant 0 : index
    %c0_42 = arith.constant 0 : index
    %51 = vector.load %arg6[%c0_40, %c0_41, %c0_42] : memref<1x16x128xbf16, #tpu.memory_space<vmem>>, vector<1x4x128xbf16>
    %52 = vector.shape_cast %51 : vector<1x4x128xbf16> to vector<4x128xbf16>
    %53 = arith.extf %52 : vector<4x128xbf16> to vector<4x128xf32>
    %54 = arith.addf %50, %53 : vector<4x128xf32>
    %cst_43 = arith.constant 0.000000e+00 : f32
    %55 = vector.broadcast %cst_43 : f32 to vector<4x128xf32>
    %56 = arith.maximumf %54, %55 : vector<4x128xf32>
    %57 = arith.truncf %56 : vector<4x128xf32> to vector<4x128xbf16>
    %c0_44 = arith.constant 0 : index
    %c0_45 = arith.constant 0 : index
    %c0_46 = arith.constant 0 : index
    %58 = vector.load %arg7[%c0_44, %c0_45, %c0_46] : memref<1x16x128xbf16, #tpu.memory_space<vmem>>, vector<1x4x128xbf16>
    %59 = vector.shape_cast %58 : vector<1x4x128xbf16> to vector<4x128xbf16>
    %60 = vector.shape_cast %57 : vector<4x128xbf16> to vector<1x4x128xbf16>
    tpu.vector_store %arg7[%c0_44, %c0_45, %c0_46], %60 {strides = array<i32>} : memref<1x16x128xbf16, #tpu.memory_space<vmem>>, vector<1x4x128xbf16>,
    %61 = vector.extract_strided_slice %49 {offsets = [6, 0], sizes = [4, 128], strides = [1, 1]} : vector<22x128xf32> to vector<4x128xf32>
    %c0_47 = arith.constant 0 : index
    %c4 = arith.constant 4 : index
    %c0_48 = arith.constant 0 : index
    %62 = vector.load %arg6[%c0_47, %c4, %c0_48] : memref<1x16x128xbf16, #tpu.memory_space<vmem>>, vector<1x4x128xbf16>
    %63 = vector.shape_cast %62 : vector<1x4x128xbf16> to vector<4x128xbf16>
    %64 = arith.extf %63 : vector<4x128xbf16> to vector<4x128xf32>
    %65 = arith.addf %61, %64 : vector<4x128xf32>
    %cst_49 = arith.constant 0.000000e+00 : f32
    %66 = vector.broadcast %cst_49 : f32 to vector<4x128xf32>
    %67 = arith.maximumf %65, %66 : vector<4x128xf32>
    %68 = arith.truncf %67 : vector<4x128xf32> to vector<4x128xbf16>
    %c0_50 = arith.constant 0 : index
    %c4_51 = arith.constant 4 : index
    %c0_52 = arith.constant 0 : index
    %69 = vector.load %arg7[%c0_50, %c4_51, %c0_52] : memref<1x16x128xbf16, #tpu.memory_space<vmem>>, vector<1x4x128xbf16>
    %70 = vector.shape_cast %69 : vector<1x4x128xbf16> to vector<4x128xbf16>
    %71 = vector.shape_cast %68 : vector<4x128xbf16> to vector<1x4x128xbf16>
    tpu.vector_store %arg7[%c0_50, %c4_51, %c0_52], %71 {strides = array<i32>} : memref<1x16x128xbf16, #tpu.memory_space<vmem>>, vector<1x4x128xbf16>,
    %72 = vector.extract_strided_slice %49 {offsets = [12, 0], sizes = [4, 128], strides = [1, 1]} : vector<22x128xf32> to vector<4x128xf32>
    %c0_53 = arith.constant 0 : index
    %c8_54 = arith.constant 8 : index
    %c0_55 = arith.constant 0 : index
    %73 = vector.load %arg6[%c0_53, %c8_54, %c0_55] : memref<1x16x128xbf16, #tpu.memory_space<vmem>>, vector<1x4x128xbf16>
    %74 = vector.shape_cast %73 : vector<1x4x128xbf16> to vector<4x128xbf16>
    %75 = arith.extf %74 : vector<4x128xbf16> to vector<4x128xf32>
    %76 = arith.addf %72, %75 : vector<4x128xf32>
    %cst_56 = arith.constant 0.000000e+00 : f32
    %77 = vector.broadcast %cst_56 : f32 to vector<4x128xf32>
    %78 = arith.maximumf %76, %77 : vector<4x128xf32>
    %79 = arith.truncf %78 : vector<4x128xf32> to vector<4x128xbf16>
    %c0_57 = arith.constant 0 : index
    %c8_58 = arith.constant 8 : index
    %c0_59 = arith.constant 0 : index
    %80 = vector.load %arg7[%c0_57, %c8_58, %c0_59] : memref<1x16x128xbf16, #tpu.memory_space<vmem>>, vector<1x4x128xbf16>
    %81 = vector.shape_cast %80 : vector<1x4x128xbf16> to vector<4x128xbf16>
    %82 = vector.shape_cast %79 : vector<4x128xbf16> to vector<1x4x128xbf16>
    tpu.vector_store %arg7[%c0_57, %c8_58, %c0_59], %82 {strides = array<i32>} : memref<1x16x128xbf16, #tpu.memory_space<vmem>>, vector<1x4x128xbf16>,
    %83 = vector.extract_strided_slice %49 {offsets = [18, 0], sizes = [4, 128], strides = [1, 1]} : vector<22x128xf32> to vector<4x128xf32>
    %c0_60 = arith.constant 0 : index
    %c12_61 = arith.constant 12 : index
    %c0_62 = arith.constant 0 : index
    %84 = vector.load %arg6[%c0_60, %c12_61, %c0_62] : memref<1x16x128xbf16, #tpu.memory_space<vmem>>, vector<1x4x128xbf16>
    %85 = vector.shape_cast %84 : vector<1x4x128xbf16> to vector<4x128xbf16>
    %86 = arith.extf %85 : vector<4x128xbf16> to vector<4x128xf32>
    %87 = arith.addf %83, %86 : vector<4x128xf32>
    %cst_63 = arith.constant 0.000000e+00 : f32
    %88 = vector.broadcast %cst_63 : f32 to vector<4x128xf32>
    %89 = arith.maximumf %87, %88 : vector<4x128xf32>
    %90 = arith.truncf %89 : vector<4x128xf32> to vector<4x128xbf16>
    %c0_64 = arith.constant 0 : index
    %c12_65 = arith.constant 12 : index
    %c0_66 = arith.constant 0 : index
    %91 = vector.load %arg7[%c0_64, %c12_65, %c0_66] : memref<1x16x128xbf16, #tpu.memory_space<vmem>>, vector<1x4x128xbf16>
    %92 = vector.shape_cast %91 : vector<1x4x128xbf16> to vector<4x128xbf16>
    %93 = vector.shape_cast %90 : vector<4x128xbf16> to vector<1x4x128xbf16>
    tpu.vector_store %arg7[%c0_64, %c12_65, %c0_66], %93 {strides = array<i32>} : memref<1x16x128xbf16, #tpu.memory_space<vmem>>, vector<1x4x128xbf16>,
    return
  }
  func.func @transform_0(%arg0: i32, %arg1: i32) -> (i32, i32, i32) {
    %c0_i32 = arith.constant 0 : i32
    %c0_i32_0 = arith.constant 0 : i32
    %c0_i32_1 = arith.constant 0 : i32
    return %arg0, %c0_i32, %c0_i32_0 : i32, i32, i32
  }
  func.func @transform_1(%arg0: i32, %arg1: i32) -> (i32, i32) {
    %c0_i32 = arith.constant 0 : i32
    %c0_i32_0 = arith.constant 0 : i32
    %c0_i32_1 = arith.constant 0 : i32
    return %c0_i32, %c0_i32_0 : i32, i32
  }
  func.func @transform_2(%arg0: i32, %arg1: i32) -> (i32, i32) {
    %c0_i32 = arith.constant 0 : i32
    %c0_i32_0 = arith.constant 0 : i32
    %c0_i32_1 = arith.constant 0 : i32
    return %c0_i32, %c0_i32_0 : i32, i32
  }
  func.func @transform_3(%arg0: i32, %arg1: i32) -> (i32, i32) {
    %c0_i32 = arith.constant 0 : i32
    %c0_i32_0 = arith.constant 0 : i32
    %c0_i32_1 = arith.constant 0 : i32
    return %c0_i32, %c0_i32_0 : i32, i32
  }
  func.func @transform_4(%arg0: i32, %arg1: i32) -> (i32, i32, i32) {
    %c0_i32 = arith.constant 0 : i32
    %c0_i32_0 = arith.constant 0 : i32
    return %arg0, %arg1, %c0_i32 : i32, i32, i32
  }
  func.func @transform_5(%arg0: i32, %arg1: i32) -> (i32, i32, i32) {
    %c0_i32 = arith.constant 0 : i32
    %c0_i32_0 = arith.constant 0 : i32
    return %arg0, %arg1, %c0_i32 : i32, i32, i32
  }
}

module attributes {stable_mosaic.version = 11 : i64} {
  func.func @_conv_kernel(%arg0: i32, %arg1: i32, %arg2: memref<1x32x128xbf16, #tpu.memory_space<vmem>>, %arg3: memref<128x128xbf16, #tpu.memory_space<vmem>>, %arg4: memref<1x128xf32, #tpu.memory_space<vmem>>, %arg5: memref<1x128xf32, #tpu.memory_space<vmem>>, %arg6: memref<1x4x128xbf16, #tpu.memory_space<vmem>>) attributes {dimension_semantics = [#tpu.dimension_semantics<parallel>, #tpu.dimension_semantics<parallel>], iteration_bounds = array<i64: 2, 1>, scalar_prefetch = 0 : i64, scratch_operands = 0 : i64, tpu.core_type = #tpu.core_type<tc>, window_params = [{transform_indices = @transform_0, window_bounds = array<i64: 1, 32, 128>}, {pipeline_mode = #tpu.pipeline_mode<synchronous>, transform_indices = @transform_1, window_bounds = array<i64: 128, 128>}, {pipeline_mode = #tpu.pipeline_mode<synchronous>, transform_indices = @transform_2, window_bounds = array<i64: 1, 128>}, {pipeline_mode = #tpu.pipeline_mode<synchronous>, transform_indices = @transform_3, window_bounds = array<i64: 1, 128>}, {transform_indices = @transform_4, window_bounds = array<i64: 1, 4, 128>}]} {
    %c0 = arith.constant 0 : index
    %c0_0 = arith.constant 0 : index
    %c0_1 = arith.constant 0 : index
    %0 = vector.load %arg2[%c0, %c0_0, %c0_1] : memref<1x32x128xbf16, #tpu.memory_space<vmem>>, vector<1x4x128xbf16>
    %1 = vector.shape_cast %0 : vector<1x4x128xbf16> to vector<4x128xbf16>
    %c0_2 = arith.constant 0 : index
    %c0_3 = arith.constant 0 : index
    %2 = vector.load %arg3[%c0_2, %c0_3] : memref<128x128xbf16, #tpu.memory_space<vmem>>, vector<128x128xbf16>
    %cst = arith.constant dense<0.000000e+00> : vector<4x128xf32>
    %3 = tpu.matmul %1, %2, %cst {dimension_numbers = #tpu.dot_dimension_numbers<[1], [0], [0], [1], [0, 0, 1, 1], [], []>} : vector<4x128xbf16>, vector<128x128xbf16>, vector<4x128xf32> -> vector<4x128xf32>
    %c0_4 = arith.constant 0 : index
    %c0_5 = arith.constant 0 : index
    %4 = vector.load %arg4[%c0_4, %c0_5] : memref<1x128xf32, #tpu.memory_space<vmem>>, vector<1x128xf32>
    %5 = vector.broadcast %4 : vector<1x128xf32> to vector<4x128xf32>
    %6 = arith.mulf %3, %5 : vector<4x128xf32>
    %c0_6 = arith.constant 0 : index
    %c0_7 = arith.constant 0 : index
    %7 = vector.load %arg5[%c0_6, %c0_7] : memref<1x128xf32, #tpu.memory_space<vmem>>, vector<1x128xf32>
    %8 = vector.broadcast %7 : vector<1x128xf32> to vector<4x128xf32>
    %9 = arith.addf %6, %8 : vector<4x128xf32>
    %10 = arith.truncf %9 : vector<4x128xf32> to vector<4x128xbf16>
    %c0_8 = arith.constant 0 : index
    %c0_9 = arith.constant 0 : index
    %c0_10 = arith.constant 0 : index
    %11 = vector.load %arg6[%c0_8, %c0_9, %c0_10] : memref<1x4x128xbf16, #tpu.memory_space<vmem>>, vector<1x4x128xbf16>
    %12 = vector.shape_cast %11 : vector<1x4x128xbf16> to vector<4x128xbf16>
    %13 = vector.shape_cast %10 : vector<4x128xbf16> to vector<1x4x128xbf16>
    tpu.vector_store %arg6[%c0_8, %c0_9, %c0_10], %13 {strides = array<i32>} : memref<1x4x128xbf16, #tpu.memory_space<vmem>>, vector<1x4x128xbf16>,
    return
  }
  func.func @transform_0(%arg0: i32, %arg1: i32) -> (i32, i32, i32) {
    %c0_i32 = arith.constant 0 : i32
    %c0_i32_0 = arith.constant 0 : i32
    %c0_i32_1 = arith.constant 0 : i32
    return %arg0, %c0_i32, %c0_i32_0 : i32, i32, i32
  }
  func.func @transform_1(%arg0: i32, %arg1: i32) -> (i32, i32) {
    %c0_i32 = arith.constant 0 : i32
    %c0_i32_0 = arith.constant 0 : i32
    %c0_i32_1 = arith.constant 0 : i32
    return %c0_i32, %c0_i32_0 : i32, i32
  }
  func.func @transform_2(%arg0: i32, %arg1: i32) -> (i32, i32) {
    %c0_i32 = arith.constant 0 : i32
    %c0_i32_0 = arith.constant 0 : i32
    %c0_i32_1 = arith.constant 0 : i32
    return %c0_i32, %c0_i32_0 : i32, i32
  }
  func.func @transform_3(%arg0: i32, %arg1: i32) -> (i32, i32) {
    %c0_i32 = arith.constant 0 : i32
    %c0_i32_0 = arith.constant 0 : i32
    %c0_i32_1 = arith.constant 0 : i32
    return %c0_i32, %c0_i32_0 : i32, i32
  }
  func.func @transform_4(%arg0: i32, %arg1: i32) -> (i32, i32, i32) {
    %c0_i32 = arith.constant 0 : i32
    %c0_i32_0 = arith.constant 0 : i32
    return %arg0, %arg1, %c0_i32 : i32, i32, i32
  }
}

module attributes {stable_mosaic.version = 11 : i64} {
  func.func @_conv_kernel(%arg0: i32, %arg1: i32, %arg2: memref<1x64x128xbf16, #tpu.memory_space<vmem>>, %arg3: memref<1152x128xbf16, #tpu.memory_space<vmem>>, %arg4: memref<1x128xf32, #tpu.memory_space<vmem>>, %arg5: memref<1x128xf32, #tpu.memory_space<vmem>>, %arg6: memref<1x4x128xbf16, #tpu.memory_space<vmem>>) attributes {dimension_semantics = [#tpu.dimension_semantics<parallel>, #tpu.dimension_semantics<parallel>], iteration_bounds = array<i64: 2, 1>, scalar_prefetch = 0 : i64, scratch_operands = 0 : i64, tpu.core_type = #tpu.core_type<tc>, window_params = [{transform_indices = @transform_0, window_bounds = array<i64: 1, 64, 128>}, {pipeline_mode = #tpu.pipeline_mode<synchronous>, transform_indices = @transform_1, window_bounds = array<i64: 1152, 128>}, {pipeline_mode = #tpu.pipeline_mode<synchronous>, transform_indices = @transform_2, window_bounds = array<i64: 1, 128>}, {pipeline_mode = #tpu.pipeline_mode<synchronous>, transform_indices = @transform_3, window_bounds = array<i64: 1, 128>}, {transform_indices = @transform_4, window_bounds = array<i64: 1, 4, 128>}]} {
    %c0 = arith.constant 0 : index
    %c0_0 = arith.constant 0 : index
    %c0_1 = arith.constant 0 : index
    %0 = vector.load %arg2[%c0, %c0_0, %c0_1] : memref<1x64x128xbf16, #tpu.memory_space<vmem>>, vector<1x5x128xbf16>
    %1 = vector.shape_cast %0 : vector<1x5x128xbf16> to vector<5x128xbf16>
    %c0_2 = arith.constant 0 : index
    %c0_3 = arith.constant 0 : index
    %2 = vector.load %arg3[%c0_2, %c0_3] : memref<1152x128xbf16, #tpu.memory_space<vmem>>, vector<128x128xbf16>
    %cst = arith.constant dense<0.000000e+00> : vector<5x128xf32>
    %3 = tpu.matmul %1, %2, %cst {dimension_numbers = #tpu.dot_dimension_numbers<[1], [0], [0], [1], [0, 0, 1, 1], [], []>} : vector<5x128xbf16>, vector<128x128xbf16>, vector<5x128xf32> -> vector<5x128xf32>
    %c0_4 = arith.constant 0 : index
    %c16 = arith.constant 16 : index
    %c0_5 = arith.constant 0 : index
    %4 = vector.load %arg2[%c0_4, %c16, %c0_5] : memref<1x64x128xbf16, #tpu.memory_space<vmem>>, vector<1x5x128xbf16>
    %5 = vector.shape_cast %4 : vector<1x5x128xbf16> to vector<5x128xbf16>
    %c128 = arith.constant 128 : index
    %c0_6 = arith.constant 0 : index
    %6 = vector.load %arg3[%c128, %c0_6] : memref<1152x128xbf16, #tpu.memory_space<vmem>>, vector<128x128xbf16>
    %cst_7 = arith.constant dense<0.000000e+00> : vector<5x128xf32>
    %7 = tpu.matmul %5, %6, %cst_7 {dimension_numbers = #tpu.dot_dimension_numbers<[1], [0], [0], [1], [0, 0, 1, 1], [], []>} : vector<5x128xbf16>, vector<128x128xbf16>, vector<5x128xf32> -> vector<5x128xf32>
    %8 = arith.addf %3, %7 : vector<5x128xf32>
    %c0_8 = arith.constant 0 : index
    %c1 = arith.constant 1 : index
    %c0_9 = arith.constant 0 : index
    %9 = vector.load %arg2[%c0_8, %c1, %c0_9] : memref<1x64x128xbf16, #tpu.memory_space<vmem>>, vector<1x5x128xbf16>
    %10 = vector.shape_cast %9 : vector<1x5x128xbf16> to vector<5x128xbf16>
    %c256 = arith.constant 256 : index
    %c0_10 = arith.constant 0 : index
    %11 = vector.load %arg3[%c256, %c0_10] : memref<1152x128xbf16, #tpu.memory_space<vmem>>, vector<128x128xbf16>
    %cst_11 = arith.constant dense<0.000000e+00> : vector<5x128xf32>
    %12 = tpu.matmul %10, %11, %cst_11 {dimension_numbers = #tpu.dot_dimension_numbers<[1], [0], [0], [1], [0, 0, 1, 1], [], []>} : vector<5x128xbf16>, vector<128x128xbf16>, vector<5x128xf32> -> vector<5x128xf32>
    %13 = arith.addf %8, %12 : vector<5x128xf32>
    %c0_12 = arith.constant 0 : index
    %c32 = arith.constant 32 : index
    %c0_13 = arith.constant 0 : index
    %14 = vector.load %arg2[%c0_12, %c32, %c0_13] : memref<1x64x128xbf16, #tpu.memory_space<vmem>>, vector<1x5x128xbf16>
    %15 = vector.shape_cast %14 : vector<1x5x128xbf16> to vector<5x128xbf16>
    %c384 = arith.constant 384 : index
    %c0_14 = arith.constant 0 : index
    %16 = vector.load %arg3[%c384, %c0_14] : memref<1152x128xbf16, #tpu.memory_space<vmem>>, vector<128x128xbf16>
    %cst_15 = arith.constant dense<0.000000e+00> : vector<5x128xf32>
    %17 = tpu.matmul %15, %16, %cst_15 {dimension_numbers = #tpu.dot_dimension_numbers<[1], [0], [0], [1], [0, 0, 1, 1], [], []>} : vector<5x128xbf16>, vector<128x128xbf16>, vector<5x128xf32> -> vector<5x128xf32>
    %18 = arith.addf %13, %17 : vector<5x128xf32>
    %c0_16 = arith.constant 0 : index
    %c48 = arith.constant 48 : index
    %c0_17 = arith.constant 0 : index
    %19 = vector.load %arg2[%c0_16, %c48, %c0_17] : memref<1x64x128xbf16, #tpu.memory_space<vmem>>, vector<1x5x128xbf16>
    %20 = vector.shape_cast %19 : vector<1x5x128xbf16> to vector<5x128xbf16>
    %c512 = arith.constant 512 : index
    %c0_18 = arith.constant 0 : index
    %21 = vector.load %arg3[%c512, %c0_18] : memref<1152x128xbf16, #tpu.memory_space<vmem>>, vector<128x128xbf16>
    %cst_19 = arith.constant dense<0.000000e+00> : vector<5x128xf32>
    %22 = tpu.matmul %20, %21, %cst_19 {dimension_numbers = #tpu.dot_dimension_numbers<[1], [0], [0], [1], [0, 0, 1, 1], [], []>} : vector<5x128xbf16>, vector<128x128xbf16>, vector<5x128xf32> -> vector<5x128xf32>
    %23 = arith.addf %18, %22 : vector<5x128xf32>
    %c0_20 = arith.constant 0 : index
    %c33 = arith.constant 33 : index
    %c0_21 = arith.constant 0 : index
    %24 = vector.load %arg2[%c0_20, %c33, %c0_21] : memref<1x64x128xbf16, #tpu.memory_space<vmem>>, vector<1x5x128xbf16>
    %25 = vector.shape_cast %24 : vector<1x5x128xbf16> to vector<5x128xbf16>
    %c640 = arith.constant 640 : index
    %c0_22 = arith.constant 0 : index
    %26 = vector.load %arg3[%c640, %c0_22] : memref<1152x128xbf16, #tpu.memory_space<vmem>>, vector<128x128xbf16>
    %cst_23 = arith.constant dense<0.000000e+00> : vector<5x128xf32>
    %27 = tpu.matmul %25, %26, %cst_23 {dimension_numbers = #tpu.dot_dimension_numbers<[1], [0], [0], [1], [0, 0, 1, 1], [], []>} : vector<5x128xbf16>, vector<128x128xbf16>, vector<5x128xf32> -> vector<5x128xf32>
    %28 = arith.addf %23, %27 : vector<5x128xf32>
    %c0_24 = arith.constant 0 : index
    %c3 = arith.constant 3 : index
    %c0_25 = arith.constant 0 : index
    %29 = vector.load %arg2[%c0_24, %c3, %c0_25] : memref<1x64x128xbf16, #tpu.memory_space<vmem>>, vector<1x5x128xbf16>
    %30 = vector.shape_cast %29 : vector<1x5x128xbf16> to vector<5x128xbf16>
    %c768 = arith.constant 768 : index
    %c0_26 = arith.constant 0 : index
    %31 = vector.load %arg3[%c768, %c0_26] : memref<1152x128xbf16, #tpu.memory_space<vmem>>, vector<128x128xbf16>
    %cst_27 = arith.constant dense<0.000000e+00> : vector<5x128xf32>
    %32 = tpu.matmul %30, %31, %cst_27 {dimension_numbers = #tpu.dot_dimension_numbers<[1], [0], [0], [1], [0, 0, 1, 1], [], []>} : vector<5x128xbf16>, vector<128x128xbf16>, vector<5x128xf32> -> vector<5x128xf32>
    %33 = arith.addf %28, %32 : vector<5x128xf32>
    %c0_28 = arith.constant 0 : index
    %c19 = arith.constant 19 : index
    %c0_29 = arith.constant 0 : index
    %34 = vector.load %arg2[%c0_28, %c19, %c0_29] : memref<1x64x128xbf16, #tpu.memory_space<vmem>>, vector<1x5x128xbf16>
    %35 = vector.shape_cast %34 : vector<1x5x128xbf16> to vector<5x128xbf16>
    %c896 = arith.constant 896 : index
    %c0_30 = arith.constant 0 : index
    %36 = vector.load %arg3[%c896, %c0_30] : memref<1152x128xbf16, #tpu.memory_space<vmem>>, vector<128x128xbf16>
    %cst_31 = arith.constant dense<0.000000e+00> : vector<5x128xf32>
    %37 = tpu.matmul %35, %36, %cst_31 {dimension_numbers = #tpu.dot_dimension_numbers<[1], [0], [0], [1], [0, 0, 1, 1], [], []>} : vector<5x128xbf16>, vector<128x128xbf16>, vector<5x128xf32> -> vector<5x128xf32>
    %38 = arith.addf %33, %37 : vector<5x128xf32>
    %c0_32 = arith.constant 0 : index
    %c4 = arith.constant 4 : index
    %c0_33 = arith.constant 0 : index
    %39 = vector.load %arg2[%c0_32, %c4, %c0_33] : memref<1x64x128xbf16, #tpu.memory_space<vmem>>, vector<1x5x128xbf16>
    %40 = vector.shape_cast %39 : vector<1x5x128xbf16> to vector<5x128xbf16>
    %c1024 = arith.constant 1024 : index
    %c0_34 = arith.constant 0 : index
    %41 = vector.load %arg3[%c1024, %c0_34] : memref<1152x128xbf16, #tpu.memory_space<vmem>>, vector<128x128xbf16>
    %cst_35 = arith.constant dense<0.000000e+00> : vector<5x128xf32>
    %42 = tpu.matmul %40, %41, %cst_35 {dimension_numbers = #tpu.dot_dimension_numbers<[1], [0], [0], [1], [0, 0, 1, 1], [], []>} : vector<5x128xbf16>, vector<128x128xbf16>, vector<5x128xf32> -> vector<5x128xf32>
    %43 = arith.addf %38, %42 : vector<5x128xf32>
    %c0_36 = arith.constant 0 : index
    %c0_37 = arith.constant 0 : index
    %44 = vector.load %arg4[%c0_36, %c0_37] : memref<1x128xf32, #tpu.memory_space<vmem>>, vector<1x128xf32>
    %45 = vector.broadcast %44 : vector<1x128xf32> to vector<5x128xf32>
    %46 = arith.mulf %43, %45 : vector<5x128xf32>
    %c0_38 = arith.constant 0 : index
    %c0_39 = arith.constant 0 : index
    %47 = vector.load %arg5[%c0_38, %c0_39] : memref<1x128xf32, #tpu.memory_space<vmem>>, vector<1x128xf32>
    %48 = vector.broadcast %47 : vector<1x128xf32> to vector<5x128xf32>
    %49 = arith.addf %46, %48 : vector<5x128xf32>
    %50 = vector.extract_strided_slice %49 {offsets = [0, 0], sizes = [2, 128], strides = [1, 1]} : vector<5x128xf32> to vector<2x128xf32>
    %cst_40 = arith.constant 0.000000e+00 : f32
    %51 = vector.broadcast %cst_40 : f32 to vector<2x128xf32>
    %52 = arith.maximumf %50, %51 : vector<2x128xf32>
    %53 = arith.truncf %52 : vector<2x128xf32> to vector<2x128xbf16>
    %c0_41 = arith.constant 0 : index
    %c0_42 = arith.constant 0 : index
    %c0_43 = arith.constant 0 : index
    %54 = vector.load %arg6[%c0_41, %c0_42, %c0_43] : memref<1x4x128xbf16, #tpu.memory_space<vmem>>, vector<1x2x128xbf16>
    %55 = vector.shape_cast %54 : vector<1x2x128xbf16> to vector<2x128xbf16>
    %56 = vector.shape_cast %53 : vector<2x128xbf16> to vector<1x2x128xbf16>
    tpu.vector_store %arg6[%c0_41, %c0_42, %c0_43], %56 {strides = array<i32>} : memref<1x4x128xbf16, #tpu.memory_space<vmem>>, vector<1x2x128xbf16>,
    %57 = vector.extract_strided_slice %49 {offsets = [3, 0], sizes = [2, 128], strides = [1, 1]} : vector<5x128xf32> to vector<2x128xf32>
    %cst_44 = arith.constant 0.000000e+00 : f32
    %58 = vector.broadcast %cst_44 : f32 to vector<2x128xf32>
    %59 = arith.maximumf %57, %58 : vector<2x128xf32>
    %60 = arith.truncf %59 : vector<2x128xf32> to vector<2x128xbf16>
    %c0_45 = arith.constant 0 : index
    %c2 = arith.constant 2 : index
    %c0_46 = arith.constant 0 : index
    %61 = vector.load %arg6[%c0_45, %c2, %c0_46] : memref<1x4x128xbf16, #tpu.memory_space<vmem>>, vector<1x2x128xbf16>
    %62 = vector.shape_cast %61 : vector<1x2x128xbf16> to vector<2x128xbf16>
    %63 = vector.shape_cast %60 : vector<2x128xbf16> to vector<1x2x128xbf16>
    tpu.vector_store %arg6[%c0_45, %c2, %c0_46], %63 {strides = array<i32>} : memref<1x4x128xbf16, #tpu.memory_space<vmem>>, vector<1x2x128xbf16>,
    return
  }
  func.func @transform_0(%arg0: i32, %arg1: i32) -> (i32, i32, i32) {
    %c0_i32 = arith.constant 0 : i32
    %c0_i32_0 = arith.constant 0 : i32
    %c0_i32_1 = arith.constant 0 : i32
    return %arg0, %c0_i32, %c0_i32_0 : i32, i32, i32
  }
  func.func @transform_1(%arg0: i32, %arg1: i32) -> (i32, i32) {
    %c0_i32 = arith.constant 0 : i32
    %c0_i32_0 = arith.constant 0 : i32
    %c0_i32_1 = arith.constant 0 : i32
    return %c0_i32, %c0_i32_0 : i32, i32
  }
  func.func @transform_2(%arg0: i32, %arg1: i32) -> (i32, i32) {
    %c0_i32 = arith.constant 0 : i32
    %c0_i32_0 = arith.constant 0 : i32
    %c0_i32_1 = arith.constant 0 : i32
    return %c0_i32, %c0_i32_0 : i32, i32
  }
  func.func @transform_3(%arg0: i32, %arg1: i32) -> (i32, i32) {
    %c0_i32 = arith.constant 0 : i32
    %c0_i32_0 = arith.constant 0 : i32
    %c0_i32_1 = arith.constant 0 : i32
    return %c0_i32, %c0_i32_0 : i32, i32
  }
  func.func @transform_4(%arg0: i32, %arg1: i32) -> (i32, i32, i32) {
    %c0_i32 = arith.constant 0 : i32
    %c0_i32_0 = arith.constant 0 : i32
    return %arg0, %arg1, %c0_i32 : i32, i32, i32
  }
}

module attributes {stable_mosaic.version = 11 : i64} {
  func.func @_conv_kernel(%arg0: i32, %arg1: i32, %arg2: memref<1x16x128xbf16, #tpu.memory_space<vmem>>, %arg3: memref<1152x128xbf16, #tpu.memory_space<vmem>>, %arg4: memref<1x128xf32, #tpu.memory_space<vmem>>, %arg5: memref<1x128xf32, #tpu.memory_space<vmem>>, %arg6: memref<1x4x128xbf16, #tpu.memory_space<vmem>>, %arg7: memref<1x4x128xbf16, #tpu.memory_space<vmem>>) attributes {dimension_semantics = [#tpu.dimension_semantics<parallel>, #tpu.dimension_semantics<parallel>], iteration_bounds = array<i64: 2, 1>, scalar_prefetch = 0 : i64, scratch_operands = 0 : i64, tpu.core_type = #tpu.core_type<tc>, window_params = [{transform_indices = @transform_0, window_bounds = array<i64: 1, 16, 128>}, {pipeline_mode = #tpu.pipeline_mode<synchronous>, transform_indices = @transform_1, window_bounds = array<i64: 1152, 128>}, {pipeline_mode = #tpu.pipeline_mode<synchronous>, transform_indices = @transform_2, window_bounds = array<i64: 1, 128>}, {pipeline_mode = #tpu.pipeline_mode<synchronous>, transform_indices = @transform_3, window_bounds = array<i64: 1, 128>}, {transform_indices = @transform_4, window_bounds = array<i64: 1, 4, 128>}, {transform_indices = @transform_5, window_bounds = array<i64: 1, 4, 128>}]} {
    %c0 = arith.constant 0 : index
    %c0_0 = arith.constant 0 : index
    %c0_1 = arith.constant 0 : index
    %0 = vector.load %arg2[%c0, %c0_0, %c0_1] : memref<1x16x128xbf16, #tpu.memory_space<vmem>>, vector<1x6x128xbf16>
    %1 = vector.shape_cast %0 : vector<1x6x128xbf16> to vector<6x128xbf16>
    %c0_2 = arith.constant 0 : index
    %c0_3 = arith.constant 0 : index
    %2 = vector.load %arg3[%c0_2, %c0_3] : memref<1152x128xbf16, #tpu.memory_space<vmem>>, vector<128x128xbf16>
    %cst = arith.constant dense<0.000000e+00> : vector<6x128xf32>
    %3 = tpu.matmul %1, %2, %cst {dimension_numbers = #tpu.dot_dimension_numbers<[1], [0], [0], [1], [0, 0, 1, 1], [], []>} : vector<6x128xbf16>, vector<128x128xbf16>, vector<6x128xf32> -> vector<6x128xf32>
    %c0_4 = arith.constant 0 : index
    %c1 = arith.constant 1 : index
    %c0_5 = arith.constant 0 : index
    %4 = vector.load %arg2[%c0_4, %c1, %c0_5] : memref<1x16x128xbf16, #tpu.memory_space<vmem>>, vector<1x6x128xbf16>
    %5 = vector.shape_cast %4 : vector<1x6x128xbf16> to vector<6x128xbf16>
    %c128 = arith.constant 128 : index
    %c0_6 = arith.constant 0 : index
    %6 = vector.load %arg3[%c128, %c0_6] : memref<1152x128xbf16, #tpu.memory_space<vmem>>, vector<128x128xbf16>
    %cst_7 = arith.constant dense<0.000000e+00> : vector<6x128xf32>
    %7 = tpu.matmul %5, %6, %cst_7 {dimension_numbers = #tpu.dot_dimension_numbers<[1], [0], [0], [1], [0, 0, 1, 1], [], []>} : vector<6x128xbf16>, vector<128x128xbf16>, vector<6x128xf32> -> vector<6x128xf32>
    %8 = arith.addf %3, %7 : vector<6x128xf32>
    %c0_8 = arith.constant 0 : index
    %c2 = arith.constant 2 : index
    %c0_9 = arith.constant 0 : index
    %9 = vector.load %arg2[%c0_8, %c2, %c0_9] : memref<1x16x128xbf16, #tpu.memory_space<vmem>>, vector<1x6x128xbf16>
    %10 = vector.shape_cast %9 : vector<1x6x128xbf16> to vector<6x128xbf16>
    %c256 = arith.constant 256 : index
    %c0_10 = arith.constant 0 : index
    %11 = vector.load %arg3[%c256, %c0_10] : memref<1152x128xbf16, #tpu.memory_space<vmem>>, vector<128x128xbf16>
    %cst_11 = arith.constant dense<0.000000e+00> : vector<6x128xf32>
    %12 = tpu.matmul %10, %11, %cst_11 {dimension_numbers = #tpu.dot_dimension_numbers<[1], [0], [0], [1], [0, 0, 1, 1], [], []>} : vector<6x128xbf16>, vector<128x128xbf16>, vector<6x128xf32> -> vector<6x128xf32>
    %13 = arith.addf %8, %12 : vector<6x128xf32>
    %c0_12 = arith.constant 0 : index
    %c4 = arith.constant 4 : index
    %c0_13 = arith.constant 0 : index
    %14 = vector.load %arg2[%c0_12, %c4, %c0_13] : memref<1x16x128xbf16, #tpu.memory_space<vmem>>, vector<1x6x128xbf16>
    %15 = vector.shape_cast %14 : vector<1x6x128xbf16> to vector<6x128xbf16>
    %c384 = arith.constant 384 : index
    %c0_14 = arith.constant 0 : index
    %16 = vector.load %arg3[%c384, %c0_14] : memref<1152x128xbf16, #tpu.memory_space<vmem>>, vector<128x128xbf16>
    %cst_15 = arith.constant dense<0.000000e+00> : vector<6x128xf32>
    %17 = tpu.matmul %15, %16, %cst_15 {dimension_numbers = #tpu.dot_dimension_numbers<[1], [0], [0], [1], [0, 0, 1, 1], [], []>} : vector<6x128xbf16>, vector<128x128xbf16>, vector<6x128xf32> -> vector<6x128xf32>
    %18 = arith.addf %13, %17 : vector<6x128xf32>
    %c0_16 = arith.constant 0 : index
    %c5 = arith.constant 5 : index
    %c0_17 = arith.constant 0 : index
    %19 = vector.load %arg2[%c0_16, %c5, %c0_17] : memref<1x16x128xbf16, #tpu.memory_space<vmem>>, vector<1x6x128xbf16>
    %20 = vector.shape_cast %19 : vector<1x6x128xbf16> to vector<6x128xbf16>
    %c512 = arith.constant 512 : index
    %c0_18 = arith.constant 0 : index
    %21 = vector.load %arg3[%c512, %c0_18] : memref<1152x128xbf16, #tpu.memory_space<vmem>>, vector<128x128xbf16>
    %cst_19 = arith.constant dense<0.000000e+00> : vector<6x128xf32>
    %22 = tpu.matmul %20, %21, %cst_19 {dimension_numbers = #tpu.dot_dimension_numbers<[1], [0], [0], [1], [0, 0, 1, 1], [], []>} : vector<6x128xbf16>, vector<128x128xbf16>, vector<6x128xf32> -> vector<6x128xf32>
    %23 = arith.addf %18, %22 : vector<6x128xf32>
    %c0_20 = arith.constant 0 : index
    %c6 = arith.constant 6 : index
    %c0_21 = arith.constant 0 : index
    %24 = vector.load %arg2[%c0_20, %c6, %c0_21] : memref<1x16x128xbf16, #tpu.memory_space<vmem>>, vector<1x6x128xbf16>
    %25 = vector.shape_cast %24 : vector<1x6x128xbf16> to vector<6x128xbf16>
    %c640 = arith.constant 640 : index
    %c0_22 = arith.constant 0 : index
    %26 = vector.load %arg3[%c640, %c0_22] : memref<1152x128xbf16, #tpu.memory_space<vmem>>, vector<128x128xbf16>
    %cst_23 = arith.constant dense<0.000000e+00> : vector<6x128xf32>
    %27 = tpu.matmul %25, %26, %cst_23 {dimension_numbers = #tpu.dot_dimension_numbers<[1], [0], [0], [1], [0, 0, 1, 1], [], []>} : vector<6x128xbf16>, vector<128x128xbf16>, vector<6x128xf32> -> vector<6x128xf32>
    %28 = arith.addf %23, %27 : vector<6x128xf32>
    %c0_24 = arith.constant 0 : index
    %c8 = arith.constant 8 : index
    %c0_25 = arith.constant 0 : index
    %29 = vector.load %arg2[%c0_24, %c8, %c0_25] : memref<1x16x128xbf16, #tpu.memory_space<vmem>>, vector<1x6x128xbf16>
    %30 = vector.shape_cast %29 : vector<1x6x128xbf16> to vector<6x128xbf16>
    %c768 = arith.constant 768 : index
    %c0_26 = arith.constant 0 : index
    %31 = vector.load %arg3[%c768, %c0_26] : memref<1152x128xbf16, #tpu.memory_space<vmem>>, vector<128x128xbf16>
    %cst_27 = arith.constant dense<0.000000e+00> : vector<6x128xf32>
    %32 = tpu.matmul %30, %31, %cst_27 {dimension_numbers = #tpu.dot_dimension_numbers<[1], [0], [0], [1], [0, 0, 1, 1], [], []>} : vector<6x128xbf16>, vector<128x128xbf16>, vector<6x128xf32> -> vector<6x128xf32>
    %33 = arith.addf %28, %32 : vector<6x128xf32>
    %c0_28 = arith.constant 0 : index
    %c9 = arith.constant 9 : index
    %c0_29 = arith.constant 0 : index
    %34 = vector.load %arg2[%c0_28, %c9, %c0_29] : memref<1x16x128xbf16, #tpu.memory_space<vmem>>, vector<1x6x128xbf16>
    %35 = vector.shape_cast %34 : vector<1x6x128xbf16> to vector<6x128xbf16>
    %c896 = arith.constant 896 : index
    %c0_30 = arith.constant 0 : index
    %36 = vector.load %arg3[%c896, %c0_30] : memref<1152x128xbf16, #tpu.memory_space<vmem>>, vector<128x128xbf16>
    %cst_31 = arith.constant dense<0.000000e+00> : vector<6x128xf32>
    %37 = tpu.matmul %35, %36, %cst_31 {dimension_numbers = #tpu.dot_dimension_numbers<[1], [0], [0], [1], [0, 0, 1, 1], [], []>} : vector<6x128xbf16>, vector<128x128xbf16>, vector<6x128xf32> -> vector<6x128xf32>
    %38 = arith.addf %33, %37 : vector<6x128xf32>
    %c0_32 = arith.constant 0 : index
    %c10 = arith.constant 10 : index
    %c0_33 = arith.constant 0 : index
    %39 = vector.load %arg2[%c0_32, %c10, %c0_33] : memref<1x16x128xbf16, #tpu.memory_space<vmem>>, vector<1x6x128xbf16>
    %40 = vector.shape_cast %39 : vector<1x6x128xbf16> to vector<6x128xbf16>
    %c1024 = arith.constant 1024 : index
    %c0_34 = arith.constant 0 : index
    %41 = vector.load %arg3[%c1024, %c0_34] : memref<1152x128xbf16, #tpu.memory_space<vmem>>, vector<128x128xbf16>
    %cst_35 = arith.constant dense<0.000000e+00> : vector<6x128xf32>
    %42 = tpu.matmul %40, %41, %cst_35 {dimension_numbers = #tpu.dot_dimension_numbers<[1], [0], [0], [1], [0, 0, 1, 1], [], []>} : vector<6x128xbf16>, vector<128x128xbf16>, vector<6x128xf32> -> vector<6x128xf32>
    %43 = arith.addf %38, %42 : vector<6x128xf32>
    %c0_36 = arith.constant 0 : index
    %c0_37 = arith.constant 0 : index
    %44 = vector.load %arg4[%c0_36, %c0_37] : memref<1x128xf32, #tpu.memory_space<vmem>>, vector<1x128xf32>
    %45 = vector.broadcast %44 : vector<1x128xf32> to vector<6x128xf32>
    %46 = arith.mulf %43, %45 : vector<6x128xf32>
    %c0_38 = arith.constant 0 : index
    %c0_39 = arith.constant 0 : index
    %47 = vector.load %arg5[%c0_38, %c0_39] : memref<1x128xf32, #tpu.memory_space<vmem>>, vector<1x128xf32>
    %48 = vector.broadcast %47 : vector<1x128xf32> to vector<6x128xf32>
    %49 = arith.addf %46, %48 : vector<6x128xf32>
    %50 = vector.extract_strided_slice %49 {offsets = [0, 0], sizes = [2, 128], strides = [1, 1]} : vector<6x128xf32> to vector<2x128xf32>
    %c0_40 = arith.constant 0 : index
    %c0_41 = arith.constant 0 : index
    %c0_42 = arith.constant 0 : index
    %51 = vector.load %arg6[%c0_40, %c0_41, %c0_42] : memref<1x4x128xbf16, #tpu.memory_space<vmem>>, vector<1x2x128xbf16>
    %52 = vector.shape_cast %51 : vector<1x2x128xbf16> to vector<2x128xbf16>
    %53 = arith.extf %52 : vector<2x128xbf16> to vector<2x128xf32>
    %54 = arith.addf %50, %53 : vector<2x128xf32>
    %cst_43 = arith.constant 0.000000e+00 : f32
    %55 = vector.broadcast %cst_43 : f32 to vector<2x128xf32>
    %56 = arith.maximumf %54, %55 : vector<2x128xf32>
    %57 = arith.truncf %56 : vector<2x128xf32> to vector<2x128xbf16>
    %c0_44 = arith.constant 0 : index
    %c0_45 = arith.constant 0 : index
    %c0_46 = arith.constant 0 : index
    %58 = vector.load %arg7[%c0_44, %c0_45, %c0_46] : memref<1x4x128xbf16, #tpu.memory_space<vmem>>, vector<1x2x128xbf16>
    %59 = vector.shape_cast %58 : vector<1x2x128xbf16> to vector<2x128xbf16>
    %60 = vector.shape_cast %57 : vector<2x128xbf16> to vector<1x2x128xbf16>
    tpu.vector_store %arg7[%c0_44, %c0_45, %c0_46], %60 {strides = array<i32>} : memref<1x4x128xbf16, #tpu.memory_space<vmem>>, vector<1x2x128xbf16>,
    %61 = vector.extract_strided_slice %49 {offsets = [4, 0], sizes = [2, 128], strides = [1, 1]} : vector<6x128xf32> to vector<2x128xf32>
    %c0_47 = arith.constant 0 : index
    %c2_48 = arith.constant 2 : index
    %c0_49 = arith.constant 0 : index
    %62 = vector.load %arg6[%c0_47, %c2_48, %c0_49] : memref<1x4x128xbf16, #tpu.memory_space<vmem>>, vector<1x2x128xbf16>
    %63 = vector.shape_cast %62 : vector<1x2x128xbf16> to vector<2x128xbf16>
    %64 = arith.extf %63 : vector<2x128xbf16> to vector<2x128xf32>
    %65 = arith.addf %61, %64 : vector<2x128xf32>
    %cst_50 = arith.constant 0.000000e+00 : f32
    %66 = vector.broadcast %cst_50 : f32 to vector<2x128xf32>
    %67 = arith.maximumf %65, %66 : vector<2x128xf32>
    %68 = arith.truncf %67 : vector<2x128xf32> to vector<2x128xbf16>
    %c0_51 = arith.constant 0 : index
    %c2_52 = arith.constant 2 : index
    %c0_53 = arith.constant 0 : index
    %69 = vector.load %arg7[%c0_51, %c2_52, %c0_53] : memref<1x4x128xbf16, #tpu.memory_space<vmem>>, vector<1x2x128xbf16>
    %70 = vector.shape_cast %69 : vector<1x2x128xbf16> to vector<2x128xbf16>
    %71 = vector.shape_cast %68 : vector<2x128xbf16> to vector<1x2x128xbf16>
    tpu.vector_store %arg7[%c0_51, %c2_52, %c0_53], %71 {strides = array<i32>} : memref<1x4x128xbf16, #tpu.memory_space<vmem>>, vector<1x2x128xbf16>,
    return
  }
  func.func @transform_0(%arg0: i32, %arg1: i32) -> (i32, i32, i32) {
    %c0_i32 = arith.constant 0 : i32
    %c0_i32_0 = arith.constant 0 : i32
    %c0_i32_1 = arith.constant 0 : i32
    return %arg0, %c0_i32, %c0_i32_0 : i32, i32, i32
  }
  func.func @transform_1(%arg0: i32, %arg1: i32) -> (i32, i32) {
    %c0_i32 = arith.constant 0 : i32
    %c0_i32_0 = arith.constant 0 : i32
    %c0_i32_1 = arith.constant 0 : i32
    return %c0_i32, %c0_i32_0 : i32, i32
  }
  func.func @transform_2(%arg0: i32, %arg1: i32) -> (i32, i32) {
    %c0_i32 = arith.constant 0 : i32
    %c0_i32_0 = arith.constant 0 : i32
    %c0_i32_1 = arith.constant 0 : i32
    return %c0_i32, %c0_i32_0 : i32, i32
  }
  func.func @transform_3(%arg0: i32, %arg1: i32) -> (i32, i32) {
    %c0_i32 = arith.constant 0 : i32
    %c0_i32_0 = arith.constant 0 : i32
    %c0_i32_1 = arith.constant 0 : i32
    return %c0_i32, %c0_i32_0 : i32, i32
  }
  func.func @transform_4(%arg0: i32, %arg1: i32) -> (i32, i32, i32) {
    %c0_i32 = arith.constant 0 : i32
    %c0_i32_0 = arith.constant 0 : i32
    return %arg0, %arg1, %c0_i32 : i32, i32, i32
  }
  func.func @transform_5(%arg0: i32, %arg1: i32) -> (i32, i32, i32) {
    %c0_i32 = arith.constant 0 : i32
    %c0_i32_0 = arith.constant 0 : i32
    return %arg0, %arg1, %c0_i32 : i32, i32, i32
  }
}

module attributes {stable_mosaic.version = 11 : i64} {
  func.func @_conv_kernel(%arg0: i32, %arg1: i32, %arg2: memref<1x32x128xbf16, #tpu.memory_space<vmem>>, %arg3: memref<1152x128xbf16, #tpu.memory_space<vmem>>, %arg4: memref<1x128xf32, #tpu.memory_space<vmem>>, %arg5: memref<1x128xf32, #tpu.memory_space<vmem>>, %arg6: memref<1x1x128xbf16, #tpu.memory_space<vmem>>) attributes {dimension_semantics = [#tpu.dimension_semantics<parallel>, #tpu.dimension_semantics<parallel>], iteration_bounds = array<i64: 2, 1>, scalar_prefetch = 0 : i64, scratch_operands = 0 : i64, tpu.core_type = #tpu.core_type<tc>, window_params = [{transform_indices = @transform_0, window_bounds = array<i64: 1, 32, 128>}, {pipeline_mode = #tpu.pipeline_mode<synchronous>, transform_indices = @transform_1, window_bounds = array<i64: 1152, 128>}, {pipeline_mode = #tpu.pipeline_mode<synchronous>, transform_indices = @transform_2, window_bounds = array<i64: 1, 128>}, {pipeline_mode = #tpu.pipeline_mode<synchronous>, transform_indices = @transform_3, window_bounds = array<i64: 1, 128>}, {transform_indices = @transform_4, window_bounds = array<i64: 1, 1, 128>}]} {
    %c0 = arith.constant 0 : index
    %c0_0 = arith.constant 0 : index
    %c0_1 = arith.constant 0 : index
    %0 = vector.load %arg2[%c0, %c0_0, %c0_1] : memref<1x32x128xbf16, #tpu.memory_space<vmem>>, vector<1x1x128xbf16>
    %1 = vector.shape_cast %0 : vector<1x1x128xbf16> to vector<1x128xbf16>
    %c0_2 = arith.constant 0 : index
    %c0_3 = arith.constant 0 : index
    %2 = vector.load %arg3[%c0_2, %c0_3] : memref<1152x128xbf16, #tpu.memory_space<vmem>>, vector<128x128xbf16>
    %cst = arith.constant dense<0.000000e+00> : vector<1x128xf32>
    %3 = tpu.matmul %1, %2, %cst {dimension_numbers = #tpu.dot_dimension_numbers<[1], [0], [0], [1], [0, 0, 1, 1], [], []>} : vector<1x128xbf16>, vector<128x128xbf16>, vector<1x128xf32> -> vector<1x128xf32>
    %c0_4 = arith.constant 0 : index
    %c8 = arith.constant 8 : index
    %c0_5 = arith.constant 0 : index
    %4 = vector.load %arg2[%c0_4, %c8, %c0_5] : memref<1x32x128xbf16, #tpu.memory_space<vmem>>, vector<1x1x128xbf16>
    %5 = vector.shape_cast %4 : vector<1x1x128xbf16> to vector<1x128xbf16>
    %c128 = arith.constant 128 : index
    %c0_6 = arith.constant 0 : index
    %6 = vector.load %arg3[%c128, %c0_6] : memref<1152x128xbf16, #tpu.memory_space<vmem>>, vector<128x128xbf16>
    %cst_7 = arith.constant dense<0.000000e+00> : vector<1x128xf32>
    %7 = tpu.matmul %5, %6, %cst_7 {dimension_numbers = #tpu.dot_dimension_numbers<[1], [0], [0], [1], [0, 0, 1, 1], [], []>} : vector<1x128xbf16>, vector<128x128xbf16>, vector<1x128xf32> -> vector<1x128xf32>
    %8 = arith.addf %3, %7 : vector<1x128xf32>
    %c0_8 = arith.constant 0 : index
    %c1 = arith.constant 1 : index
    %c0_9 = arith.constant 0 : index
    %9 = vector.load %arg2[%c0_8, %c1, %c0_9] : memref<1x32x128xbf16, #tpu.memory_space<vmem>>, vector<1x1x128xbf16>
    %10 = vector.shape_cast %9 : vector<1x1x128xbf16> to vector<1x128xbf16>
    %c256 = arith.constant 256 : index
    %c0_10 = arith.constant 0 : index
    %11 = vector.load %arg3[%c256, %c0_10] : memref<1152x128xbf16, #tpu.memory_space<vmem>>, vector<128x128xbf16>
    %cst_11 = arith.constant dense<0.000000e+00> : vector<1x128xf32>
    %12 = tpu.matmul %10, %11, %cst_11 {dimension_numbers = #tpu.dot_dimension_numbers<[1], [0], [0], [1], [0, 0, 1, 1], [], []>} : vector<1x128xbf16>, vector<128x128xbf16>, vector<1x128xf32> -> vector<1x128xf32>
    %13 = arith.addf %8, %12 : vector<1x128xf32>
    %c0_12 = arith.constant 0 : index
    %c16 = arith.constant 16 : index
    %c0_13 = arith.constant 0 : index
    %14 = vector.load %arg2[%c0_12, %c16, %c0_13] : memref<1x32x128xbf16, #tpu.memory_space<vmem>>, vector<1x1x128xbf16>
    %15 = vector.shape_cast %14 : vector<1x1x128xbf16> to vector<1x128xbf16>
    %c384 = arith.constant 384 : index
    %c0_14 = arith.constant 0 : index
    %16 = vector.load %arg3[%c384, %c0_14] : memref<1152x128xbf16, #tpu.memory_space<vmem>>, vector<128x128xbf16>
    %cst_15 = arith.constant dense<0.000000e+00> : vector<1x128xf32>
    %17 = tpu.matmul %15, %16, %cst_15 {dimension_numbers = #tpu.dot_dimension_numbers<[1], [0], [0], [1], [0, 0, 1, 1], [], []>} : vector<1x128xbf16>, vector<128x128xbf16>, vector<1x128xf32> -> vector<1x128xf32>
    %18 = arith.addf %13, %17 : vector<1x128xf32>
    %c0_16 = arith.constant 0 : index
    %c24 = arith.constant 24 : index
    %c0_17 = arith.constant 0 : index
    %19 = vector.load %arg2[%c0_16, %c24, %c0_17] : memref<1x32x128xbf16, #tpu.memory_space<vmem>>, vector<1x1x128xbf16>
    %20 = vector.shape_cast %19 : vector<1x1x128xbf16> to vector<1x128xbf16>
    %c512 = arith.constant 512 : index
    %c0_18 = arith.constant 0 : index
    %21 = vector.load %arg3[%c512, %c0_18] : memref<1152x128xbf16, #tpu.memory_space<vmem>>, vector<128x128xbf16>
    %cst_19 = arith.constant dense<0.000000e+00> : vector<1x128xf32>
    %22 = tpu.matmul %20, %21, %cst_19 {dimension_numbers = #tpu.dot_dimension_numbers<[1], [0], [0], [1], [0, 0, 1, 1], [], []>} : vector<1x128xbf16>, vector<128x128xbf16>, vector<1x128xf32> -> vector<1x128xf32>
    %23 = arith.addf %18, %22 : vector<1x128xf32>
    %c0_20 = arith.constant 0 : index
    %c17 = arith.constant 17 : index
    %c0_21 = arith.constant 0 : index
    %24 = vector.load %arg2[%c0_20, %c17, %c0_21] : memref<1x32x128xbf16, #tpu.memory_space<vmem>>, vector<1x1x128xbf16>
    %25 = vector.shape_cast %24 : vector<1x1x128xbf16> to vector<1x128xbf16>
    %c640 = arith.constant 640 : index
    %c0_22 = arith.constant 0 : index
    %26 = vector.load %arg3[%c640, %c0_22] : memref<1152x128xbf16, #tpu.memory_space<vmem>>, vector<128x128xbf16>
    %cst_23 = arith.constant dense<0.000000e+00> : vector<1x128xf32>
    %27 = tpu.matmul %25, %26, %cst_23 {dimension_numbers = #tpu.dot_dimension_numbers<[1], [0], [0], [1], [0, 0, 1, 1], [], []>} : vector<1x128xbf16>, vector<128x128xbf16>, vector<1x128xf32> -> vector<1x128xf32>
    %28 = arith.addf %23, %27 : vector<1x128xf32>
    %c0_24 = arith.constant 0 : index
    %c2 = arith.constant 2 : index
    %c0_25 = arith.constant 0 : index
    %29 = vector.load %arg2[%c0_24, %c2, %c0_25] : memref<1x32x128xbf16, #tpu.memory_space<vmem>>, vector<1x1x128xbf16>
    %30 = vector.shape_cast %29 : vector<1x1x128xbf16> to vector<1x128xbf16>
    %c768 = arith.constant 768 : index
    %c0_26 = arith.constant 0 : index
    %31 = vector.load %arg3[%c768, %c0_26] : memref<1152x128xbf16, #tpu.memory_space<vmem>>, vector<128x128xbf16>
    %cst_27 = arith.constant dense<0.000000e+00> : vector<1x128xf32>
    %32 = tpu.matmul %30, %31, %cst_27 {dimension_numbers = #tpu.dot_dimension_numbers<[1], [0], [0], [1], [0, 0, 1, 1], [], []>} : vector<1x128xbf16>, vector<128x128xbf16>, vector<1x128xf32> -> vector<1x128xf32>
    %33 = arith.addf %28, %32 : vector<1x128xf32>
    %c0_28 = arith.constant 0 : index
    %c10 = arith.constant 10 : index
    %c0_29 = arith.constant 0 : index
    %34 = vector.load %arg2[%c0_28, %c10, %c0_29] : memref<1x32x128xbf16, #tpu.memory_space<vmem>>, vector<1x1x128xbf16>
    %35 = vector.shape_cast %34 : vector<1x1x128xbf16> to vector<1x128xbf16>
    %c896 = arith.constant 896 : index
    %c0_30 = arith.constant 0 : index
    %36 = vector.load %arg3[%c896, %c0_30] : memref<1152x128xbf16, #tpu.memory_space<vmem>>, vector<128x128xbf16>
    %cst_31 = arith.constant dense<0.000000e+00> : vector<1x128xf32>
    %37 = tpu.matmul %35, %36, %cst_31 {dimension_numbers = #tpu.dot_dimension_numbers<[1], [0], [0], [1], [0, 0, 1, 1], [], []>} : vector<1x128xbf16>, vector<128x128xbf16>, vector<1x128xf32> -> vector<1x128xf32>
    %38 = arith.addf %33, %37 : vector<1x128xf32>
    %c0_32 = arith.constant 0 : index
    %c3 = arith.constant 3 : index
    %c0_33 = arith.constant 0 : index
    %39 = vector.load %arg2[%c0_32, %c3, %c0_33] : memref<1x32x128xbf16, #tpu.memory_space<vmem>>, vector<1x1x128xbf16>
    %40 = vector.shape_cast %39 : vector<1x1x128xbf16> to vector<1x128xbf16>
    %c1024 = arith.constant 1024 : index
    %c0_34 = arith.constant 0 : index
    %41 = vector.load %arg3[%c1024, %c0_34] : memref<1152x128xbf16, #tpu.memory_space<vmem>>, vector<128x128xbf16>
    %cst_35 = arith.constant dense<0.000000e+00> : vector<1x128xf32>
    %42 = tpu.matmul %40, %41, %cst_35 {dimension_numbers = #tpu.dot_dimension_numbers<[1], [0], [0], [1], [0, 0, 1, 1], [], []>} : vector<1x128xbf16>, vector<128x128xbf16>, vector<1x128xf32> -> vector<1x128xf32>
    %43 = arith.addf %38, %42 : vector<1x128xf32>
    %c0_36 = arith.constant 0 : index
    %c0_37 = arith.constant 0 : index
    %44 = vector.load %arg4[%c0_36, %c0_37] : memref<1x128xf32, #tpu.memory_space<vmem>>, vector<1x128xf32>
    %45 = arith.mulf %43, %44 : vector<1x128xf32>
    %c0_38 = arith.constant 0 : index
    %c0_39 = arith.constant 0 : index
    %46 = vector.load %arg5[%c0_38, %c0_39] : memref<1x128xf32, #tpu.memory_space<vmem>>, vector<1x128xf32>
    %47 = arith.addf %45, %46 : vector<1x128xf32>
    %cst_40 = arith.constant 0.000000e+00 : f32
    %48 = vector.broadcast %cst_40 : f32 to vector<1x128xf32>
    %49 = arith.maximumf %47, %48 : vector<1x128xf32>
    %50 = arith.truncf %49 : vector<1x128xf32> to vector<1x128xbf16>
    %c0_41 = arith.constant 0 : index
    %c0_42 = arith.constant 0 : index
    %c0_43 = arith.constant 0 : index
    %51 = vector.load %arg6[%c0_41, %c0_42, %c0_43] : memref<1x1x128xbf16, #tpu.memory_space<vmem>>, vector<1x1x128xbf16>
    %52 = vector.shape_cast %51 : vector<1x1x128xbf16> to vector<1x128xbf16>
    %53 = vector.shape_cast %50 : vector<1x128xbf16> to vector<1x1x128xbf16>
    tpu.vector_store %arg6[%c0_41, %c0_42, %c0_43], %53 {strides = array<i32>} : memref<1x1x128xbf16, #tpu.memory_space<vmem>>, vector<1x1x128xbf16>,
    return
  }
  func.func @transform_0(%arg0: i32, %arg1: i32) -> (i32, i32, i32) {
    %c0_i32 = arith.constant 0 : i32
    %c0_i32_0 = arith.constant 0 : i32
    %c0_i32_1 = arith.constant 0 : i32
    return %arg0, %c0_i32, %c0_i32_0 : i32, i32, i32
  }
  func.func @transform_1(%arg0: i32, %arg1: i32) -> (i32, i32) {
    %c0_i32 = arith.constant 0 : i32
    %c0_i32_0 = arith.constant 0 : i32
    %c0_i32_1 = arith.constant 0 : i32
    return %c0_i32, %c0_i32_0 : i32, i32
  }
  func.func @transform_2(%arg0: i32, %arg1: i32) -> (i32, i32) {
    %c0_i32 = arith.constant 0 : i32
    %c0_i32_0 = arith.constant 0 : i32
    %c0_i32_1 = arith.constant 0 : i32
    return %c0_i32, %c0_i32_0 : i32, i32
  }
  func.func @transform_3(%arg0: i32, %arg1: i32) -> (i32, i32) {
    %c0_i32 = arith.constant 0 : i32
    %c0_i32_0 = arith.constant 0 : i32
    %c0_i32_1 = arith.constant 0 : i32
    return %c0_i32, %c0_i32_0 : i32, i32
  }
  func.func @transform_4(%arg0: i32, %arg1: i32) -> (i32, i32, i32) {
    %c0_i32 = arith.constant 0 : i32
    %c0_i32_0 = arith.constant 0 : i32
    return %arg0, %arg1, %c0_i32 : i32, i32, i32
  }
}

module attributes {stable_mosaic.version = 11 : i64} {
  func.func @_conv_kernel(%arg0: i32, %arg1: i32, %arg2: memref<1x32x128xbf16, #tpu.memory_space<vmem>>, %arg3: memref<128x128xbf16, #tpu.memory_space<vmem>>, %arg4: memref<1x128xf32, #tpu.memory_space<vmem>>, %arg5: memref<1x128xf32, #tpu.memory_space<vmem>>, %arg6: memref<1x1x128xbf16, #tpu.memory_space<vmem>>) attributes {dimension_semantics = [#tpu.dimension_semantics<parallel>, #tpu.dimension_semantics<parallel>], iteration_bounds = array<i64: 2, 1>, scalar_prefetch = 0 : i64, scratch_operands = 0 : i64, tpu.core_type = #tpu.core_type<tc>, window_params = [{transform_indices = @transform_0, window_bounds = array<i64: 1, 32, 128>}, {pipeline_mode = #tpu.pipeline_mode<synchronous>, transform_indices = @transform_1, window_bounds = array<i64: 128, 128>}, {pipeline_mode = #tpu.pipeline_mode<synchronous>, transform_indices = @transform_2, window_bounds = array<i64: 1, 128>}, {pipeline_mode = #tpu.pipeline_mode<synchronous>, transform_indices = @transform_3, window_bounds = array<i64: 1, 128>}, {transform_indices = @transform_4, window_bounds = array<i64: 1, 1, 128>}]} {
    %c0 = arith.constant 0 : index
    %c0_0 = arith.constant 0 : index
    %c0_1 = arith.constant 0 : index
    %0 = vector.load %arg2[%c0, %c0_0, %c0_1] : memref<1x32x128xbf16, #tpu.memory_space<vmem>>, vector<1x1x128xbf16>
    %1 = vector.shape_cast %0 : vector<1x1x128xbf16> to vector<1x128xbf16>
    %c0_2 = arith.constant 0 : index
    %c0_3 = arith.constant 0 : index
    %2 = vector.load %arg3[%c0_2, %c0_3] : memref<128x128xbf16, #tpu.memory_space<vmem>>, vector<128x128xbf16>
    %cst = arith.constant dense<0.000000e+00> : vector<1x128xf32>
    %3 = tpu.matmul %1, %2, %cst {dimension_numbers = #tpu.dot_dimension_numbers<[1], [0], [0], [1], [0, 0, 1, 1], [], []>} : vector<1x128xbf16>, vector<128x128xbf16>, vector<1x128xf32> -> vector<1x128xf32>
    %c0_4 = arith.constant 0 : index
    %c0_5 = arith.constant 0 : index
    %4 = vector.load %arg4[%c0_4, %c0_5] : memref<1x128xf32, #tpu.memory_space<vmem>>, vector<1x128xf32>
    %5 = arith.mulf %3, %4 : vector<1x128xf32>
    %c0_6 = arith.constant 0 : index
    %c0_7 = arith.constant 0 : index
    %6 = vector.load %arg5[%c0_6, %c0_7] : memref<1x128xf32, #tpu.memory_space<vmem>>, vector<1x128xf32>
    %7 = arith.addf %5, %6 : vector<1x128xf32>
    %8 = arith.truncf %7 : vector<1x128xf32> to vector<1x128xbf16>
    %c0_8 = arith.constant 0 : index
    %c0_9 = arith.constant 0 : index
    %c0_10 = arith.constant 0 : index
    %9 = vector.load %arg6[%c0_8, %c0_9, %c0_10] : memref<1x1x128xbf16, #tpu.memory_space<vmem>>, vector<1x1x128xbf16>
    %10 = vector.shape_cast %9 : vector<1x1x128xbf16> to vector<1x128xbf16>
    %11 = vector.shape_cast %8 : vector<1x128xbf16> to vector<1x1x128xbf16>
    tpu.vector_store %arg6[%c0_8, %c0_9, %c0_10], %11 {strides = array<i32>} : memref<1x1x128xbf16, #tpu.memory_space<vmem>>, vector<1x1x128xbf16>,
    return
  }
  func.func @transform_0(%arg0: i32, %arg1: i32) -> (i32, i32, i32) {
    %c0_i32 = arith.constant 0 : i32
    %c0_i32_0 = arith.constant 0 : i32
    %c0_i32_1 = arith.constant 0 : i32
    return %arg0, %c0_i32, %c0_i32_0 : i32, i32, i32
  }
  func.func @transform_1(%arg0: i32, %arg1: i32) -> (i32, i32) {
    %c0_i32 = arith.constant 0 : i32
    %c0_i32_0 = arith.constant 0 : i32
    %c0_i32_1 = arith.constant 0 : i32
    return %c0_i32, %c0_i32_0 : i32, i32
  }
  func.func @transform_2(%arg0: i32, %arg1: i32) -> (i32, i32) {
    %c0_i32 = arith.constant 0 : i32
    %c0_i32_0 = arith.constant 0 : i32
    %c0_i32_1 = arith.constant 0 : i32
    return %c0_i32, %c0_i32_0 : i32, i32
  }
  func.func @transform_3(%arg0: i32, %arg1: i32) -> (i32, i32) {
    %c0_i32 = arith.constant 0 : i32
    %c0_i32_0 = arith.constant 0 : i32
    %c0_i32_1 = arith.constant 0 : i32
    return %c0_i32, %c0_i32_0 : i32, i32
  }
  func.func @transform_4(%arg0: i32, %arg1: i32) -> (i32, i32, i32) {
    %c0_i32 = arith.constant 0 : i32
    %c0_i32_0 = arith.constant 0 : i32
    return %arg0, %arg1, %c0_i32 : i32, i32, i32
  }
}

module attributes {stable_mosaic.version = 11 : i64} {
  func.func @_conv_kernel(%arg0: i32, %arg1: i32, %arg2: memref<1x1x128xbf16, #tpu.memory_space<vmem>>, %arg3: memref<128x128xbf16, #tpu.memory_space<vmem>>, %arg4: memref<1x128xf32, #tpu.memory_space<vmem>>, %arg5: memref<1x128xf32, #tpu.memory_space<vmem>>, %arg6: memref<1x1x128xbf16, #tpu.memory_space<vmem>>) attributes {dimension_semantics = [#tpu.dimension_semantics<parallel>, #tpu.dimension_semantics<parallel>], iteration_bounds = array<i64: 2, 1>, scalar_prefetch = 0 : i64, scratch_operands = 0 : i64, tpu.core_type = #tpu.core_type<tc>, window_params = [{transform_indices = @transform_0, window_bounds = array<i64: 1, 1, 128>}, {pipeline_mode = #tpu.pipeline_mode<synchronous>, transform_indices = @transform_1, window_bounds = array<i64: 128, 128>}, {pipeline_mode = #tpu.pipeline_mode<synchronous>, transform_indices = @transform_2, window_bounds = array<i64: 1, 128>}, {pipeline_mode = #tpu.pipeline_mode<synchronous>, transform_indices = @transform_3, window_bounds = array<i64: 1, 128>}, {transform_indices = @transform_4, window_bounds = array<i64: 1, 1, 128>}]} {
    %c0 = arith.constant 0 : index
    %c0_0 = arith.constant 0 : index
    %c0_1 = arith.constant 0 : index
    %0 = vector.load %arg2[%c0, %c0_0, %c0_1] : memref<1x1x128xbf16, #tpu.memory_space<vmem>>, vector<1x1x128xbf16>
    %1 = vector.shape_cast %0 : vector<1x1x128xbf16> to vector<1x128xbf16>
    %c0_2 = arith.constant 0 : index
    %c0_3 = arith.constant 0 : index
    %2 = vector.load %arg3[%c0_2, %c0_3] : memref<128x128xbf16, #tpu.memory_space<vmem>>, vector<128x128xbf16>
    %cst = arith.constant dense<0.000000e+00> : vector<1x128xf32>
    %3 = tpu.matmul %1, %2, %cst {dimension_numbers = #tpu.dot_dimension_numbers<[1], [0], [0], [1], [0, 0, 1, 1], [], []>} : vector<1x128xbf16>, vector<128x128xbf16>, vector<1x128xf32> -> vector<1x128xf32>
    %c0_4 = arith.constant 0 : index
    %c0_5 = arith.constant 0 : index
    %4 = vector.load %arg4[%c0_4, %c0_5] : memref<1x128xf32, #tpu.memory_space<vmem>>, vector<1x128xf32>
    %5 = arith.mulf %3, %4 : vector<1x128xf32>
    %c0_6 = arith.constant 0 : index
    %c0_7 = arith.constant 0 : index
    %6 = vector.load %arg5[%c0_6, %c0_7] : memref<1x128xf32, #tpu.memory_space<vmem>>, vector<1x128xf32>
    %7 = arith.addf %5, %6 : vector<1x128xf32>
    %8 = arith.truncf %7 : vector<1x128xf32> to vector<1x128xbf16>
    %c0_8 = arith.constant 0 : index
    %c0_9 = arith.constant 0 : index
    %c0_10 = arith.constant 0 : index
    %9 = vector.load %arg6[%c0_8, %c0_9, %c0_10] : memref<1x1x128xbf16, #tpu.memory_space<vmem>>, vector<1x1x128xbf16>
    %10 = vector.shape_cast %9 : vector<1x1x128xbf16> to vector<1x128xbf16>
    %11 = vector.shape_cast %8 : vector<1x128xbf16> to vector<1x1x128xbf16>
    tpu.vector_store %arg6[%c0_8, %c0_9, %c0_10], %11 {strides = array<i32>} : memref<1x1x128xbf16, #tpu.memory_space<vmem>>, vector<1x1x128xbf16>,
    return
  }
  func.func @transform_0(%arg0: i32, %arg1: i32) -> (i32, i32, i32) {
    %c0_i32 = arith.constant 0 : i32
    %c0_i32_0 = arith.constant 0 : i32
    return %arg0, %arg1, %c0_i32 : i32, i32, i32
  }
  func.func @transform_1(%arg0: i32, %arg1: i32) -> (i32, i32) {
    %c0_i32 = arith.constant 0 : i32
    %c0_i32_0 = arith.constant 0 : i32
    %c0_i32_1 = arith.constant 0 : i32
    return %c0_i32, %c0_i32_0 : i32, i32
  }
  func.func @transform_2(%arg0: i32, %arg1: i32) -> (i32, i32) {
    %c0_i32 = arith.constant 0 : i32
    %c0_i32_0 = arith.constant 0 : i32
    %c0_i32_1 = arith.constant 0 : i32
    return %c0_i32, %c0_i32_0 : i32, i32
  }
  func.func @transform_3(%arg0: i32, %arg1: i32) -> (i32, i32) {
    %c0_i32 = arith.constant 0 : i32
    %c0_i32_0 = arith.constant 0 : i32
    %c0_i32_1 = arith.constant 0 : i32
    return %c0_i32, %c0_i32_0 : i32, i32
  }
  func.func @transform_4(%arg0: i32, %arg1: i32) -> (i32, i32, i32) {
    %c0_i32 = arith.constant 0 : i32
    %c0_i32_0 = arith.constant 0 : i32
    return %arg0, %arg1, %c0_i32 : i32, i32, i32
  }
}

module attributes {stable_mosaic.version = 11 : i64} {
  func.func @_conv_kernel(%arg0: i32, %arg1: i32, %arg2: memref<1x16x128xbf16, #tpu.memory_space<vmem>>, %arg3: memref<1152x128xbf16, #tpu.memory_space<vmem>>, %arg4: memref<1x128xf32, #tpu.memory_space<vmem>>, %arg5: memref<1x128xf32, #tpu.memory_space<vmem>>, %arg6: memref<1x1x128xbf16, #tpu.memory_space<vmem>>, %arg7: memref<1x1x128xbf16, #tpu.memory_space<vmem>>) attributes {dimension_semantics = [#tpu.dimension_semantics<parallel>, #tpu.dimension_semantics<parallel>], iteration_bounds = array<i64: 2, 1>, scalar_prefetch = 0 : i64, scratch_operands = 0 : i64, tpu.core_type = #tpu.core_type<tc>, window_params = [{transform_indices = @transform_0, window_bounds = array<i64: 1, 16, 128>}, {pipeline_mode = #tpu.pipeline_mode<synchronous>, transform_indices = @transform_1, window_bounds = array<i64: 1152, 128>}, {pipeline_mode = #tpu.pipeline_mode<synchronous>, transform_indices = @transform_2, window_bounds = array<i64: 1, 128>}, {pipeline_mode = #tpu.pipeline_mode<synchronous>, transform_indices = @transform_3, window_bounds = array<i64: 1, 128>}, {transform_indices = @transform_4, window_bounds = array<i64: 1, 1, 128>}, {transform_indices = @transform_5, window_bounds = array<i64: 1, 1, 128>}]} {
    %c0 = arith.constant 0 : index
    %c0_0 = arith.constant 0 : index
    %c0_1 = arith.constant 0 : index
    %0 = vector.load %arg2[%c0, %c0_0, %c0_1] : memref<1x16x128xbf16, #tpu.memory_space<vmem>>, vector<1x1x128xbf16>
    %1 = vector.shape_cast %0 : vector<1x1x128xbf16> to vector<1x128xbf16>
    %c0_2 = arith.constant 0 : index
    %c0_3 = arith.constant 0 : index
    %2 = vector.load %arg3[%c0_2, %c0_3] : memref<1152x128xbf16, #tpu.memory_space<vmem>>, vector<128x128xbf16>
    %cst = arith.constant dense<0.000000e+00> : vector<1x128xf32>
    %3 = tpu.matmul %1, %2, %cst {dimension_numbers = #tpu.dot_dimension_numbers<[1], [0], [0], [1], [0, 0, 1, 1], [], []>} : vector<1x128xbf16>, vector<128x128xbf16>, vector<1x128xf32> -> vector<1x128xf32>
    %c0_4 = arith.constant 0 : index
    %c1 = arith.constant 1 : index
    %c0_5 = arith.constant 0 : index
    %4 = vector.load %arg2[%c0_4, %c1, %c0_5] : memref<1x16x128xbf16, #tpu.memory_space<vmem>>, vector<1x1x128xbf16>
    %5 = vector.shape_cast %4 : vector<1x1x128xbf16> to vector<1x128xbf16>
    %c128 = arith.constant 128 : index
    %c0_6 = arith.constant 0 : index
    %6 = vector.load %arg3[%c128, %c0_6] : memref<1152x128xbf16, #tpu.memory_space<vmem>>, vector<128x128xbf16>
    %cst_7 = arith.constant dense<0.000000e+00> : vector<1x128xf32>
    %7 = tpu.matmul %5, %6, %cst_7 {dimension_numbers = #tpu.dot_dimension_numbers<[1], [0], [0], [1], [0, 0, 1, 1], [], []>} : vector<1x128xbf16>, vector<128x128xbf16>, vector<1x128xf32> -> vector<1x128xf32>
    %8 = arith.addf %3, %7 : vector<1x128xf32>
    %c0_8 = arith.constant 0 : index
    %c2 = arith.constant 2 : index
    %c0_9 = arith.constant 0 : index
    %9 = vector.load %arg2[%c0_8, %c2, %c0_9] : memref<1x16x128xbf16, #tpu.memory_space<vmem>>, vector<1x1x128xbf16>
    %10 = vector.shape_cast %9 : vector<1x1x128xbf16> to vector<1x128xbf16>
    %c256 = arith.constant 256 : index
    %c0_10 = arith.constant 0 : index
    %11 = vector.load %arg3[%c256, %c0_10] : memref<1152x128xbf16, #tpu.memory_space<vmem>>, vector<128x128xbf16>
    %cst_11 = arith.constant dense<0.000000e+00> : vector<1x128xf32>
    %12 = tpu.matmul %10, %11, %cst_11 {dimension_numbers = #tpu.dot_dimension_numbers<[1], [0], [0], [1], [0, 0, 1, 1], [], []>} : vector<1x128xbf16>, vector<128x128xbf16>, vector<1x128xf32> -> vector<1x128xf32>
    %13 = arith.addf %8, %12 : vector<1x128xf32>
    %c0_12 = arith.constant 0 : index
    %c3 = arith.constant 3 : index
    %c0_13 = arith.constant 0 : index
    %14 = vector.load %arg2[%c0_12, %c3, %c0_13] : memref<1x16x128xbf16, #tpu.memory_space<vmem>>, vector<1x1x128xbf16>
    %15 = vector.shape_cast %14 : vector<1x1x128xbf16> to vector<1x128xbf16>
    %c384 = arith.constant 384 : index
    %c0_14 = arith.constant 0 : index
    %16 = vector.load %arg3[%c384, %c0_14] : memref<1152x128xbf16, #tpu.memory_space<vmem>>, vector<128x128xbf16>
    %cst_15 = arith.constant dense<0.000000e+00> : vector<1x128xf32>
    %17 = tpu.matmul %15, %16, %cst_15 {dimension_numbers = #tpu.dot_dimension_numbers<[1], [0], [0], [1], [0, 0, 1, 1], [], []>} : vector<1x128xbf16>, vector<128x128xbf16>, vector<1x128xf32> -> vector<1x128xf32>
    %18 = arith.addf %13, %17 : vector<1x128xf32>
    %c0_16 = arith.constant 0 : index
    %c4 = arith.constant 4 : index
    %c0_17 = arith.constant 0 : index
    %19 = vector.load %arg2[%c0_16, %c4, %c0_17] : memref<1x16x128xbf16, #tpu.memory_space<vmem>>, vector<1x1x128xbf16>
    %20 = vector.shape_cast %19 : vector<1x1x128xbf16> to vector<1x128xbf16>
    %c512 = arith.constant 512 : index
    %c0_18 = arith.constant 0 : index
    %21 = vector.load %arg3[%c512, %c0_18] : memref<1152x128xbf16, #tpu.memory_space<vmem>>, vector<128x128xbf16>
    %cst_19 = arith.constant dense<0.000000e+00> : vector<1x128xf32>
    %22 = tpu.matmul %20, %21, %cst_19 {dimension_numbers = #tpu.dot_dimension_numbers<[1], [0], [0], [1], [0, 0, 1, 1], [], []>} : vector<1x128xbf16>, vector<128x128xbf16>, vector<1x128xf32> -> vector<1x128xf32>
    %23 = arith.addf %18, %22 : vector<1x128xf32>
    %c0_20 = arith.constant 0 : index
    %c5 = arith.constant 5 : index
    %c0_21 = arith.constant 0 : index
    %24 = vector.load %arg2[%c0_20, %c5, %c0_21] : memref<1x16x128xbf16, #tpu.memory_space<vmem>>, vector<1x1x128xbf16>
    %25 = vector.shape_cast %24 : vector<1x1x128xbf16> to vector<1x128xbf16>
    %c640 = arith.constant 640 : index
    %c0_22 = arith.constant 0 : index
    %26 = vector.load %arg3[%c640, %c0_22] : memref<1152x128xbf16, #tpu.memory_space<vmem>>, vector<128x128xbf16>
    %cst_23 = arith.constant dense<0.000000e+00> : vector<1x128xf32>
    %27 = tpu.matmul %25, %26, %cst_23 {dimension_numbers = #tpu.dot_dimension_numbers<[1], [0], [0], [1], [0, 0, 1, 1], [], []>} : vector<1x128xbf16>, vector<128x128xbf16>, vector<1x128xf32> -> vector<1x128xf32>
    %28 = arith.addf %23, %27 : vector<1x128xf32>
    %c0_24 = arith.constant 0 : index
    %c6 = arith.constant 6 : index
    %c0_25 = arith.constant 0 : index
    %29 = vector.load %arg2[%c0_24, %c6, %c0_25] : memref<1x16x128xbf16, #tpu.memory_space<vmem>>, vector<1x1x128xbf16>
    %30 = vector.shape_cast %29 : vector<1x1x128xbf16> to vector<1x128xbf16>
    %c768 = arith.constant 768 : index
    %c0_26 = arith.constant 0 : index
    %31 = vector.load %arg3[%c768, %c0_26] : memref<1152x128xbf16, #tpu.memory_space<vmem>>, vector<128x128xbf16>
    %cst_27 = arith.constant dense<0.000000e+00> : vector<1x128xf32>
    %32 = tpu.matmul %30, %31, %cst_27 {dimension_numbers = #tpu.dot_dimension_numbers<[1], [0], [0], [1], [0, 0, 1, 1], [], []>} : vector<1x128xbf16>, vector<128x128xbf16>, vector<1x128xf32> -> vector<1x128xf32>
    %33 = arith.addf %28, %32 : vector<1x128xf32>
    %c0_28 = arith.constant 0 : index
    %c7 = arith.constant 7 : index
    %c0_29 = arith.constant 0 : index
    %34 = vector.load %arg2[%c0_28, %c7, %c0_29] : memref<1x16x128xbf16, #tpu.memory_space<vmem>>, vector<1x1x128xbf16>
    %35 = vector.shape_cast %34 : vector<1x1x128xbf16> to vector<1x128xbf16>
    %c896 = arith.constant 896 : index
    %c0_30 = arith.constant 0 : index
    %36 = vector.load %arg3[%c896, %c0_30] : memref<1152x128xbf16, #tpu.memory_space<vmem>>, vector<128x128xbf16>
    %cst_31 = arith.constant dense<0.000000e+00> : vector<1x128xf32>
    %37 = tpu.matmul %35, %36, %cst_31 {dimension_numbers = #tpu.dot_dimension_numbers<[1], [0], [0], [1], [0, 0, 1, 1], [], []>} : vector<1x128xbf16>, vector<128x128xbf16>, vector<1x128xf32> -> vector<1x128xf32>
    %38 = arith.addf %33, %37 : vector<1x128xf32>
    %c0_32 = arith.constant 0 : index
    %c8 = arith.constant 8 : index
    %c0_33 = arith.constant 0 : index
    %39 = vector.load %arg2[%c0_32, %c8, %c0_33] : memref<1x16x128xbf16, #tpu.memory_space<vmem>>, vector<1x1x128xbf16>
    %40 = vector.shape_cast %39 : vector<1x1x128xbf16> to vector<1x128xbf16>
    %c1024 = arith.constant 1024 : index
    %c0_34 = arith.constant 0 : index
    %41 = vector.load %arg3[%c1024, %c0_34] : memref<1152x128xbf16, #tpu.memory_space<vmem>>, vector<128x128xbf16>
    %cst_35 = arith.constant dense<0.000000e+00> : vector<1x128xf32>
    %42 = tpu.matmul %40, %41, %cst_35 {dimension_numbers = #tpu.dot_dimension_numbers<[1], [0], [0], [1], [0, 0, 1, 1], [], []>} : vector<1x128xbf16>, vector<128x128xbf16>, vector<1x128xf32> -> vector<1x128xf32>
    %43 = arith.addf %38, %42 : vector<1x128xf32>
    %c0_36 = arith.constant 0 : index
    %c0_37 = arith.constant 0 : index
    %44 = vector.load %arg4[%c0_36, %c0_37] : memref<1x128xf32, #tpu.memory_space<vmem>>, vector<1x128xf32>
    %45 = arith.mulf %43, %44 : vector<1x128xf32>
    %c0_38 = arith.constant 0 : index
    %c0_39 = arith.constant 0 : index
    %46 = vector.load %arg5[%c0_38, %c0_39] : memref<1x128xf32, #tpu.memory_space<vmem>>, vector<1x128xf32>
    %47 = arith.addf %45, %46 : vector<1x128xf32>
    %c0_40 = arith.constant 0 : index
    %c0_41 = arith.constant 0 : index
    %c0_42 = arith.constant 0 : index
    %48 = vector.load %arg6[%c0_40, %c0_41, %c0_42] : memref<1x1x128xbf16, #tpu.memory_space<vmem>>, vector<1x1x128xbf16>
    %49 = vector.shape_cast %48 : vector<1x1x128xbf16> to vector<1x128xbf16>
    %50 = arith.extf %49 : vector<1x128xbf16> to vector<1x128xf32>
    %51 = arith.addf %47, %50 : vector<1x128xf32>
    %cst_43 = arith.constant 0.000000e+00 : f32
    %52 = vector.broadcast %cst_43 : f32 to vector<1x128xf32>
    %53 = arith.maximumf %51, %52 : vector<1x128xf32>
    %54 = arith.truncf %53 : vector<1x128xf32> to vector<1x128xbf16>
    %c0_44 = arith.constant 0 : index
    %c0_45 = arith.constant 0 : index
    %c0_46 = arith.constant 0 : index
    %55 = vector.load %arg7[%c0_44, %c0_45, %c0_46] : memref<1x1x128xbf16, #tpu.memory_space<vmem>>, vector<1x1x128xbf16>
    %56 = vector.shape_cast %55 : vector<1x1x128xbf16> to vector<1x128xbf16>
    %57 = vector.shape_cast %54 : vector<1x128xbf16> to vector<1x1x128xbf16>
    tpu.vector_store %arg7[%c0_44, %c0_45, %c0_46], %57 {strides = array<i32>} : memref<1x1x128xbf16, #tpu.memory_space<vmem>>, vector<1x1x128xbf16>,
    return
  }
  func.func @transform_0(%arg0: i32, %arg1: i32) -> (i32, i32, i32) {
    %c0_i32 = arith.constant 0 : i32
    %c0_i32_0 = arith.constant 0 : i32
    %c0_i32_1 = arith.constant 0 : i32
    return %arg0, %c0_i32, %c0_i32_0 : i32, i32, i32
  }
  func.func @transform_1(%arg0: i32, %arg1: i32) -> (i32, i32) {
    %c0_i32 = arith.constant 0 : i32
    %c0_i32_0 = arith.constant 0 : i32
    %c0_i32_1 = arith.constant 0 : i32
    return %c0_i32, %c0_i32_0 : i32, i32
  }
  func.func @transform_2(%arg0: i32, %arg1: i32) -> (i32, i32) {
    %c0_i32 = arith.constant 0 : i32
    %c0_i32_0 = arith.constant 0 : i32
    %c0_i32_1 = arith.constant 0 : i32
    return %c0_i32, %c0_i32_0 : i32, i32
  }
  func.func @transform_3(%arg0: i32, %arg1: i32) -> (i32, i32) {
    %c0_i32 = arith.constant 0 : i32
    %c0_i32_0 = arith.constant 0 : i32
    %c0_i32_1 = arith.constant 0 : i32
    return %c0_i32, %c0_i32_0 : i32, i32
  }
  func.func @transform_4(%arg0: i32, %arg1: i32) -> (i32, i32, i32) {
    %c0_i32 = arith.constant 0 : i32
    %c0_i32_0 = arith.constant 0 : i32
    return %arg0, %arg1, %c0_i32 : i32, i32, i32
  }
  func.func @transform_5(%arg0: i32, %arg1: i32) -> (i32, i32, i32) {
    %c0_i32 = arith.constant 0 : i32
    %c0_i32_0 = arith.constant 0 : i32
    return %arg0, %arg1, %c0_i32 : i32, i32, i32
  }
}

module attributes {stable_mosaic.version = 11 : i64} {
  func.func @_conv_kernel(%arg0: i32, %arg1: i32, %arg2: memref<1x4x128xbf16, #tpu.memory_space<vmem>>, %arg3: memref<128x128xbf16, #tpu.memory_space<vmem>>, %arg4: memref<1x128xf32, #tpu.memory_space<vmem>>, %arg5: memref<1x128xf32, #tpu.memory_space<vmem>>, %arg6: memref<1x4x128xbf16, #tpu.memory_space<vmem>>, %arg7: memref<1x4x128xbf16, #tpu.memory_space<vmem>>) attributes {dimension_semantics = [#tpu.dimension_semantics<parallel>, #tpu.dimension_semantics<parallel>], iteration_bounds = array<i64: 2, 1>, scalar_prefetch = 0 : i64, scratch_operands = 0 : i64, tpu.core_type = #tpu.core_type<tc>, window_params = [{transform_indices = @transform_0, window_bounds = array<i64: 1, 4, 128>}, {pipeline_mode = #tpu.pipeline_mode<synchronous>, transform_indices = @transform_1, window_bounds = array<i64: 128, 128>}, {pipeline_mode = #tpu.pipeline_mode<synchronous>, transform_indices = @transform_2, window_bounds = array<i64: 1, 128>}, {pipeline_mode = #tpu.pipeline_mode<synchronous>, transform_indices = @transform_3, window_bounds = array<i64: 1, 128>}, {transform_indices = @transform_4, window_bounds = array<i64: 1, 4, 128>}, {transform_indices = @transform_5, window_bounds = array<i64: 1, 4, 128>}]} {
    %c0 = arith.constant 0 : index
    %c0_0 = arith.constant 0 : index
    %c0_1 = arith.constant 0 : index
    %0 = vector.load %arg2[%c0, %c0_0, %c0_1] : memref<1x4x128xbf16, #tpu.memory_space<vmem>>, vector<1x4x128xbf16>
    %1 = vector.shape_cast %0 : vector<1x4x128xbf16> to vector<4x128xbf16>
    %c0_2 = arith.constant 0 : index
    %c0_3 = arith.constant 0 : index
    %2 = vector.load %arg3[%c0_2, %c0_3] : memref<128x128xbf16, #tpu.memory_space<vmem>>, vector<128x128xbf16>
    %cst = arith.constant dense<0.000000e+00> : vector<4x128xf32>
    %3 = tpu.matmul %1, %2, %cst {dimension_numbers = #tpu.dot_dimension_numbers<[1], [0], [0], [1], [0, 0, 1, 1], [], []>} : vector<4x128xbf16>, vector<128x128xbf16>, vector<4x128xf32> -> vector<4x128xf32>
    %c0_4 = arith.constant 0 : index
    %c0_5 = arith.constant 0 : index
    %4 = vector.load %arg4[%c0_4, %c0_5] : memref<1x128xf32, #tpu.memory_space<vmem>>, vector<1x128xf32>
    %5 = vector.broadcast %4 : vector<1x128xf32> to vector<4x128xf32>
    %6 = arith.mulf %3, %5 : vector<4x128xf32>
    %c0_6 = arith.constant 0 : index
    %c0_7 = arith.constant 0 : index
    %7 = vector.load %arg5[%c0_6, %c0_7] : memref<1x128xf32, #tpu.memory_space<vmem>>, vector<1x128xf32>
    %8 = vector.broadcast %7 : vector<1x128xf32> to vector<4x128xf32>
    %9 = arith.addf %6, %8 : vector<4x128xf32>
    %c0_8 = arith.constant 0 : index
    %c0_9 = arith.constant 0 : index
    %c0_10 = arith.constant 0 : index
    %10 = vector.load %arg6[%c0_8, %c0_9, %c0_10] : memref<1x4x128xbf16, #tpu.memory_space<vmem>>, vector<1x4x128xbf16>
    %11 = vector.shape_cast %10 : vector<1x4x128xbf16> to vector<4x128xbf16>
    %12 = arith.extf %11 : vector<4x128xbf16> to vector<4x128xf32>
    %13 = arith.addf %9, %12 : vector<4x128xf32>
    %14 = arith.truncf %13 : vector<4x128xf32> to vector<4x128xbf16>
    %c0_11 = arith.constant 0 : index
    %c0_12 = arith.constant 0 : index
    %c0_13 = arith.constant 0 : index
    %15 = vector.load %arg7[%c0_11, %c0_12, %c0_13] : memref<1x4x128xbf16, #tpu.memory_space<vmem>>, vector<1x4x128xbf16>
    %16 = vector.shape_cast %15 : vector<1x4x128xbf16> to vector<4x128xbf16>
    %17 = vector.shape_cast %14 : vector<4x128xbf16> to vector<1x4x128xbf16>
    tpu.vector_store %arg7[%c0_11, %c0_12, %c0_13], %17 {strides = array<i32>} : memref<1x4x128xbf16, #tpu.memory_space<vmem>>, vector<1x4x128xbf16>,
    return
  }
  func.func @transform_0(%arg0: i32, %arg1: i32) -> (i32, i32, i32) {
    %c0_i32 = arith.constant 0 : i32
    %c0_i32_0 = arith.constant 0 : i32
    return %arg0, %arg1, %c0_i32 : i32, i32, i32
  }
  func.func @transform_1(%arg0: i32, %arg1: i32) -> (i32, i32) {
    %c0_i32 = arith.constant 0 : i32
    %c0_i32_0 = arith.constant 0 : i32
    %c0_i32_1 = arith.constant 0 : i32
    return %c0_i32, %c0_i32_0 : i32, i32
  }
  func.func @transform_2(%arg0: i32, %arg1: i32) -> (i32, i32) {
    %c0_i32 = arith.constant 0 : i32
    %c0_i32_0 = arith.constant 0 : i32
    %c0_i32_1 = arith.constant 0 : i32
    return %c0_i32, %c0_i32_0 : i32, i32
  }
  func.func @transform_3(%arg0: i32, %arg1: i32) -> (i32, i32) {
    %c0_i32 = arith.constant 0 : i32
    %c0_i32_0 = arith.constant 0 : i32
    %c0_i32_1 = arith.constant 0 : i32
    return %c0_i32, %c0_i32_0 : i32, i32
  }
  func.func @transform_4(%arg0: i32, %arg1: i32) -> (i32, i32, i32) {
    %c0_i32 = arith.constant 0 : i32
    %c0_i32_0 = arith.constant 0 : i32
    return %arg0, %arg1, %c0_i32 : i32, i32, i32
  }
  func.func @transform_5(%arg0: i32, %arg1: i32) -> (i32, i32, i32) {
    %c0_i32 = arith.constant 0 : i32
    %c0_i32_0 = arith.constant 0 : i32
    return %arg0, %arg1, %c0_i32 : i32, i32, i32
  }
}

module attributes {stable_mosaic.version = 11 : i64} {
  func.func @_conv_kernel(%arg0: i32, %arg1: i32, %arg2: memref<1x16x128xbf16, #tpu.memory_space<vmem>>, %arg3: memref<128x128xbf16, #tpu.memory_space<vmem>>, %arg4: memref<1x128xf32, #tpu.memory_space<vmem>>, %arg5: memref<1x128xf32, #tpu.memory_space<vmem>>, %arg6: memref<1x16x128xbf16, #tpu.memory_space<vmem>>, %arg7: memref<1x16x128xbf16, #tpu.memory_space<vmem>>) attributes {dimension_semantics = [#tpu.dimension_semantics<parallel>, #tpu.dimension_semantics<parallel>], iteration_bounds = array<i64: 2, 1>, scalar_prefetch = 0 : i64, scratch_operands = 0 : i64, tpu.core_type = #tpu.core_type<tc>, window_params = [{transform_indices = @transform_0, window_bounds = array<i64: 1, 16, 128>}, {pipeline_mode = #tpu.pipeline_mode<synchronous>, transform_indices = @transform_1, window_bounds = array<i64: 128, 128>}, {pipeline_mode = #tpu.pipeline_mode<synchronous>, transform_indices = @transform_2, window_bounds = array<i64: 1, 128>}, {pipeline_mode = #tpu.pipeline_mode<synchronous>, transform_indices = @transform_3, window_bounds = array<i64: 1, 128>}, {transform_indices = @transform_4, window_bounds = array<i64: 1, 16, 128>}, {transform_indices = @transform_5, window_bounds = array<i64: 1, 16, 128>}]} {
    %c0 = arith.constant 0 : index
    %c0_0 = arith.constant 0 : index
    %c0_1 = arith.constant 0 : index
    %0 = vector.load %arg2[%c0, %c0_0, %c0_1] : memref<1x16x128xbf16, #tpu.memory_space<vmem>>, vector<1x16x128xbf16>
    %1 = vector.shape_cast %0 : vector<1x16x128xbf16> to vector<16x128xbf16>
    %c0_2 = arith.constant 0 : index
    %c0_3 = arith.constant 0 : index
    %2 = vector.load %arg3[%c0_2, %c0_3] : memref<128x128xbf16, #tpu.memory_space<vmem>>, vector<128x128xbf16>
    %cst = arith.constant dense<0.000000e+00> : vector<16x128xf32>
    %3 = tpu.matmul %1, %2, %cst {dimension_numbers = #tpu.dot_dimension_numbers<[1], [0], [0], [1], [0, 0, 1, 1], [], []>} : vector<16x128xbf16>, vector<128x128xbf16>, vector<16x128xf32> -> vector<16x128xf32>
    %c0_4 = arith.constant 0 : index
    %c0_5 = arith.constant 0 : index
    %4 = vector.load %arg4[%c0_4, %c0_5] : memref<1x128xf32, #tpu.memory_space<vmem>>, vector<1x128xf32>
    %5 = vector.broadcast %4 : vector<1x128xf32> to vector<16x128xf32>
    %6 = arith.mulf %3, %5 : vector<16x128xf32>
    %c0_6 = arith.constant 0 : index
    %c0_7 = arith.constant 0 : index
    %7 = vector.load %arg5[%c0_6, %c0_7] : memref<1x128xf32, #tpu.memory_space<vmem>>, vector<1x128xf32>
    %8 = vector.broadcast %7 : vector<1x128xf32> to vector<16x128xf32>
    %9 = arith.addf %6, %8 : vector<16x128xf32>
    %c0_8 = arith.constant 0 : index
    %c0_9 = arith.constant 0 : index
    %c0_10 = arith.constant 0 : index
    %10 = vector.load %arg6[%c0_8, %c0_9, %c0_10] : memref<1x16x128xbf16, #tpu.memory_space<vmem>>, vector<1x16x128xbf16>
    %11 = vector.shape_cast %10 : vector<1x16x128xbf16> to vector<16x128xbf16>
    %12 = arith.extf %11 : vector<16x128xbf16> to vector<16x128xf32>
    %13 = arith.addf %9, %12 : vector<16x128xf32>
    %14 = arith.truncf %13 : vector<16x128xf32> to vector<16x128xbf16>
    %c0_11 = arith.constant 0 : index
    %c0_12 = arith.constant 0 : index
    %c0_13 = arith.constant 0 : index
    %15 = vector.load %arg7[%c0_11, %c0_12, %c0_13] : memref<1x16x128xbf16, #tpu.memory_space<vmem>>, vector<1x16x128xbf16>
    %16 = vector.shape_cast %15 : vector<1x16x128xbf16> to vector<16x128xbf16>
    %17 = vector.shape_cast %14 : vector<16x128xbf16> to vector<1x16x128xbf16>
    tpu.vector_store %arg7[%c0_11, %c0_12, %c0_13], %17 {strides = array<i32>} : memref<1x16x128xbf16, #tpu.memory_space<vmem>>, vector<1x16x128xbf16>,
    return
  }
  func.func @transform_0(%arg0: i32, %arg1: i32) -> (i32, i32, i32) {
    %c0_i32 = arith.constant 0 : i32
    %c0_i32_0 = arith.constant 0 : i32
    return %arg0, %arg1, %c0_i32 : i32, i32, i32
  }
  func.func @transform_1(%arg0: i32, %arg1: i32) -> (i32, i32) {
    %c0_i32 = arith.constant 0 : i32
    %c0_i32_0 = arith.constant 0 : i32
    %c0_i32_1 = arith.constant 0 : i32
    return %c0_i32, %c0_i32_0 : i32, i32
  }
  func.func @transform_2(%arg0: i32, %arg1: i32) -> (i32, i32) {
    %c0_i32 = arith.constant 0 : i32
    %c0_i32_0 = arith.constant 0 : i32
    %c0_i32_1 = arith.constant 0 : i32
    return %c0_i32, %c0_i32_0 : i32, i32
  }
  func.func @transform_3(%arg0: i32, %arg1: i32) -> (i32, i32) {
    %c0_i32 = arith.constant 0 : i32
    %c0_i32_0 = arith.constant 0 : i32
    %c0_i32_1 = arith.constant 0 : i32
    return %c0_i32, %c0_i32_0 : i32, i32
  }
  func.func @transform_4(%arg0: i32, %arg1: i32) -> (i32, i32, i32) {
    %c0_i32 = arith.constant 0 : i32
    %c0_i32_0 = arith.constant 0 : i32
    return %arg0, %arg1, %c0_i32 : i32, i32, i32
  }
  func.func @transform_5(%arg0: i32, %arg1: i32) -> (i32, i32, i32) {
    %c0_i32 = arith.constant 0 : i32
    %c0_i32_0 = arith.constant 0 : i32
    return %arg0, %arg1, %c0_i32 : i32, i32, i32
  }
}

module attributes {stable_mosaic.version = 11 : i64} {
  func.func @_conv_kernel(%arg0: i32, %arg1: i32, %arg2: memref<1x40x128xbf16, #tpu.memory_space<vmem>>, %arg3: memref<1152x128xbf16, #tpu.memory_space<vmem>>, %arg4: memref<1x128xf32, #tpu.memory_space<vmem>>, %arg5: memref<1x128xf32, #tpu.memory_space<vmem>>, %arg6: memref<1x16x128xbf16, #tpu.memory_space<vmem>>) attributes {dimension_semantics = [#tpu.dimension_semantics<parallel>, #tpu.dimension_semantics<parallel>], iteration_bounds = array<i64: 2, 1>, scalar_prefetch = 0 : i64, scratch_operands = 0 : i64, tpu.core_type = #tpu.core_type<tc>, window_params = [{transform_indices = @transform_0, window_bounds = array<i64: 1, 40, 128>}, {pipeline_mode = #tpu.pipeline_mode<synchronous>, transform_indices = @transform_1, window_bounds = array<i64: 1152, 128>}, {pipeline_mode = #tpu.pipeline_mode<synchronous>, transform_indices = @transform_2, window_bounds = array<i64: 1, 128>}, {pipeline_mode = #tpu.pipeline_mode<synchronous>, transform_indices = @transform_3, window_bounds = array<i64: 1, 128>}, {transform_indices = @transform_4, window_bounds = array<i64: 1, 16, 128>}]} {
    %c0 = arith.constant 0 : index
    %c0_0 = arith.constant 0 : index
    %c0_1 = arith.constant 0 : index
    %0 = vector.load %arg2[%c0, %c0_0, %c0_1] : memref<1x40x128xbf16, #tpu.memory_space<vmem>>, vector<1x22x128xbf16>
    %1 = vector.shape_cast %0 : vector<1x22x128xbf16> to vector<22x128xbf16>
    %c0_2 = arith.constant 0 : index
    %c0_3 = arith.constant 0 : index
    %2 = vector.load %arg3[%c0_2, %c0_3] : memref<1152x128xbf16, #tpu.memory_space<vmem>>, vector<128x128xbf16>
    %cst = arith.constant dense<0.000000e+00> : vector<22x128xf32>
    %3 = tpu.matmul %1, %2, %cst {dimension_numbers = #tpu.dot_dimension_numbers<[1], [0], [0], [1], [0, 0, 1, 1], [], []>} : vector<22x128xbf16>, vector<128x128xbf16>, vector<22x128xf32> -> vector<22x128xf32>
    %c0_4 = arith.constant 0 : index
    %c1 = arith.constant 1 : index
    %c0_5 = arith.constant 0 : index
    %4 = vector.load %arg2[%c0_4, %c1, %c0_5] : memref<1x40x128xbf16, #tpu.memory_space<vmem>>, vector<1x22x128xbf16>
    %5 = vector.shape_cast %4 : vector<1x22x128xbf16> to vector<22x128xbf16>
    %c128 = arith.constant 128 : index
    %c0_6 = arith.constant 0 : index
    %6 = vector.load %arg3[%c128, %c0_6] : memref<1152x128xbf16, #tpu.memory_space<vmem>>, vector<128x128xbf16>
    %cst_7 = arith.constant dense<0.000000e+00> : vector<22x128xf32>
    %7 = tpu.matmul %5, %6, %cst_7 {dimension_numbers = #tpu.dot_dimension_numbers<[1], [0], [0], [1], [0, 0, 1, 1], [], []>} : vector<22x128xbf16>, vector<128x128xbf16>, vector<22x128xf32> -> vector<22x128xf32>
    %8 = arith.addf %3, %7 : vector<22x128xf32>
    %c0_8 = arith.constant 0 : index
    %c2 = arith.constant 2 : index
    %c0_9 = arith.constant 0 : index
    %9 = vector.load %arg2[%c0_8, %c2, %c0_9] : memref<1x40x128xbf16, #tpu.memory_space<vmem>>, vector<1x22x128xbf16>
    %10 = vector.shape_cast %9 : vector<1x22x128xbf16> to vector<22x128xbf16>
    %c256 = arith.constant 256 : index
    %c0_10 = arith.constant 0 : index
    %11 = vector.load %arg3[%c256, %c0_10] : memref<1152x128xbf16, #tpu.memory_space<vmem>>, vector<128x128xbf16>
    %cst_11 = arith.constant dense<0.000000e+00> : vector<22x128xf32>
    %12 = tpu.matmul %10, %11, %cst_11 {dimension_numbers = #tpu.dot_dimension_numbers<[1], [0], [0], [1], [0, 0, 1, 1], [], []>} : vector<22x128xbf16>, vector<128x128xbf16>, vector<22x128xf32> -> vector<22x128xf32>
    %13 = arith.addf %8, %12 : vector<22x128xf32>
    %c0_12 = arith.constant 0 : index
    %c6 = arith.constant 6 : index
    %c0_13 = arith.constant 0 : index
    %14 = vector.load %arg2[%c0_12, %c6, %c0_13] : memref<1x40x128xbf16, #tpu.memory_space<vmem>>, vector<1x22x128xbf16>
    %15 = vector.shape_cast %14 : vector<1x22x128xbf16> to vector<22x128xbf16>
    %c384 = arith.constant 384 : index
    %c0_14 = arith.constant 0 : index
    %16 = vector.load %arg3[%c384, %c0_14] : memref<1152x128xbf16, #tpu.memory_space<vmem>>, vector<128x128xbf16>
    %cst_15 = arith.constant dense<0.000000e+00> : vector<22x128xf32>
    %17 = tpu.matmul %15, %16, %cst_15 {dimension_numbers = #tpu.dot_dimension_numbers<[1], [0], [0], [1], [0, 0, 1, 1], [], []>} : vector<22x128xbf16>, vector<128x128xbf16>, vector<22x128xf32> -> vector<22x128xf32>
    %18 = arith.addf %13, %17 : vector<22x128xf32>
    %c0_16 = arith.constant 0 : index
    %c7 = arith.constant 7 : index
    %c0_17 = arith.constant 0 : index
    %19 = vector.load %arg2[%c0_16, %c7, %c0_17] : memref<1x40x128xbf16, #tpu.memory_space<vmem>>, vector<1x22x128xbf16>
    %20 = vector.shape_cast %19 : vector<1x22x128xbf16> to vector<22x128xbf16>
    %c512 = arith.constant 512 : index
    %c0_18 = arith.constant 0 : index
    %21 = vector.load %arg3[%c512, %c0_18] : memref<1152x128xbf16, #tpu.memory_space<vmem>>, vector<128x128xbf16>
    %cst_19 = arith.constant dense<0.000000e+00> : vector<22x128xf32>
    %22 = tpu.matmul %20, %21, %cst_19 {dimension_numbers = #tpu.dot_dimension_numbers<[1], [0], [0], [1], [0, 0, 1, 1], [], []>} : vector<22x128xbf16>, vector<128x128xbf16>, vector<22x128xf32> -> vector<22x128xf32>
    %23 = arith.addf %18, %22 : vector<22x128xf32>
    %c0_20 = arith.constant 0 : index
    %c8 = arith.constant 8 : index
    %c0_21 = arith.constant 0 : index
    %24 = vector.load %arg2[%c0_20, %c8, %c0_21] : memref<1x40x128xbf16, #tpu.memory_space<vmem>>, vector<1x22x128xbf16>
    %25 = vector.shape_cast %24 : vector<1x22x128xbf16> to vector<22x128xbf16>
    %c640 = arith.constant 640 : index
    %c0_22 = arith.constant 0 : index
    %26 = vector.load %arg3[%c640, %c0_22] : memref<1152x128xbf16, #tpu.memory_space<vmem>>, vector<128x128xbf16>
    %cst_23 = arith.constant dense<0.000000e+00> : vector<22x128xf32>
    %27 = tpu.matmul %25, %26, %cst_23 {dimension_numbers = #tpu.dot_dimension_numbers<[1], [0], [0], [1], [0, 0, 1, 1], [], []>} : vector<22x128xbf16>, vector<128x128xbf16>, vector<22x128xf32> -> vector<22x128xf32>
    %28 = arith.addf %23, %27 : vector<22x128xf32>
    %c0_24 = arith.constant 0 : index
    %c12 = arith.constant 12 : index
    %c0_25 = arith.constant 0 : index
    %29 = vector.load %arg2[%c0_24, %c12, %c0_25] : memref<1x40x128xbf16, #tpu.memory_space<vmem>>, vector<1x22x128xbf16>
    %30 = vector.shape_cast %29 : vector<1x22x128xbf16> to vector<22x128xbf16>
    %c768 = arith.constant 768 : index
    %c0_26 = arith.constant 0 : index
    %31 = vector.load %arg3[%c768, %c0_26] : memref<1152x128xbf16, #tpu.memory_space<vmem>>, vector<128x128xbf16>
    %cst_27 = arith.constant dense<0.000000e+00> : vector<22x128xf32>
    %32 = tpu.matmul %30, %31, %cst_27 {dimension_numbers = #tpu.dot_dimension_numbers<[1], [0], [0], [1], [0, 0, 1, 1], [], []>} : vector<22x128xbf16>, vector<128x128xbf16>, vector<22x128xf32> -> vector<22x128xf32>
    %33 = arith.addf %28, %32 : vector<22x128xf32>
    %c0_28 = arith.constant 0 : index
    %c13 = arith.constant 13 : index
    %c0_29 = arith.constant 0 : index
    %34 = vector.load %arg2[%c0_28, %c13, %c0_29] : memref<1x40x128xbf16, #tpu.memory_space<vmem>>, vector<1x22x128xbf16>
    %35 = vector.shape_cast %34 : vector<1x22x128xbf16> to vector<22x128xbf16>
    %c896 = arith.constant 896 : index
    %c0_30 = arith.constant 0 : index
    %36 = vector.load %arg3[%c896, %c0_30] : memref<1152x128xbf16, #tpu.memory_space<vmem>>, vector<128x128xbf16>
    %cst_31 = arith.constant dense<0.000000e+00> : vector<22x128xf32>
    %37 = tpu.matmul %35, %36, %cst_31 {dimension_numbers = #tpu.dot_dimension_numbers<[1], [0], [0], [1], [0, 0, 1, 1], [], []>} : vector<22x128xbf16>, vector<128x128xbf16>, vector<22x128xf32> -> vector<22x128xf32>
    %38 = arith.addf %33, %37 : vector<22x128xf32>
    %c0_32 = arith.constant 0 : index
    %c14 = arith.constant 14 : index
    %c0_33 = arith.constant 0 : index
    %39 = vector.load %arg2[%c0_32, %c14, %c0_33] : memref<1x40x128xbf16, #tpu.memory_space<vmem>>, vector<1x22x128xbf16>
    %40 = vector.shape_cast %39 : vector<1x22x128xbf16> to vector<22x128xbf16>
    %c1024 = arith.constant 1024 : index
    %c0_34 = arith.constant 0 : index
    %41 = vector.load %arg3[%c1024, %c0_34] : memref<1152x128xbf16, #tpu.memory_space<vmem>>, vector<128x128xbf16>
    %cst_35 = arith.constant dense<0.000000e+00> : vector<22x128xf32>
    %42 = tpu.matmul %40, %41, %cst_35 {dimension_numbers = #tpu.dot_dimension_numbers<[1], [0], [0], [1], [0, 0, 1, 1], [], []>} : vector<22x128xbf16>, vector<128x128xbf16>, vector<22x128xf32> -> vector<22x128xf32>
    %43 = arith.addf %38, %42 : vector<22x128xf32>
    %c0_36 = arith.constant 0 : index
    %c0_37 = arith.constant 0 : index
    %44 = vector.load %arg4[%c0_36, %c0_37] : memref<1x128xf32, #tpu.memory_space<vmem>>, vector<1x128xf32>
    %45 = vector.broadcast %44 : vector<1x128xf32> to vector<22x128xf32>
    %46 = arith.mulf %43, %45 : vector<22x128xf32>
    %c0_38 = arith.constant 0 : index
    %c0_39 = arith.constant 0 : index
    %47 = vector.load %arg5[%c0_38, %c0_39] : memref<1x128xf32, #tpu.memory_space<vmem>>, vector<1x128xf32>
    %48 = vector.broadcast %47 : vector<1x128xf32> to vector<22x128xf32>
    %49 = arith.addf %46, %48 : vector<22x128xf32>
    %50 = vector.extract_strided_slice %49 {offsets = [0, 0], sizes = [4, 128], strides = [1, 1]} : vector<22x128xf32> to vector<4x128xf32>
    %51 = arith.truncf %50 : vector<4x128xf32> to vector<4x128xbf16>
    %c0_40 = arith.constant 0 : index
    %c0_41 = arith.constant 0 : index
    %c0_42 = arith.constant 0 : index
    %52 = vector.load %arg6[%c0_40, %c0_41, %c0_42] : memref<1x16x128xbf16, #tpu.memory_space<vmem>>, vector<1x4x128xbf16>
    %53 = vector.shape_cast %52 : vector<1x4x128xbf16> to vector<4x128xbf16>
    %54 = vector.shape_cast %51 : vector<4x128xbf16> to vector<1x4x128xbf16>
    tpu.vector_store %arg6[%c0_40, %c0_41, %c0_42], %54 {strides = array<i32>} : memref<1x16x128xbf16, #tpu.memory_space<vmem>>, vector<1x4x128xbf16>,
    %55 = vector.extract_strided_slice %49 {offsets = [6, 0], sizes = [4, 128], strides = [1, 1]} : vector<22x128xf32> to vector<4x128xf32>
    %56 = arith.truncf %55 : vector<4x128xf32> to vector<4x128xbf16>
    %c0_43 = arith.constant 0 : index
    %c4 = arith.constant 4 : index
    %c0_44 = arith.constant 0 : index
    %57 = vector.load %arg6[%c0_43, %c4, %c0_44] : memref<1x16x128xbf16, #tpu.memory_space<vmem>>, vector<1x4x128xbf16>
    %58 = vector.shape_cast %57 : vector<1x4x128xbf16> to vector<4x128xbf16>
    %59 = vector.shape_cast %56 : vector<4x128xbf16> to vector<1x4x128xbf16>
    tpu.vector_store %arg6[%c0_43, %c4, %c0_44], %59 {strides = array<i32>} : memref<1x16x128xbf16, #tpu.memory_space<vmem>>, vector<1x4x128xbf16>,
    %60 = vector.extract_strided_slice %49 {offsets = [12, 0], sizes = [4, 128], strides = [1, 1]} : vector<22x128xf32> to vector<4x128xf32>
    %61 = arith.truncf %60 : vector<4x128xf32> to vector<4x128xbf16>
    %c0_45 = arith.constant 0 : index
    %c8_46 = arith.constant 8 : index
    %c0_47 = arith.constant 0 : index
    %62 = vector.load %arg6[%c0_45, %c8_46, %c0_47] : memref<1x16x128xbf16, #tpu.memory_space<vmem>>, vector<1x4x128xbf16>
    %63 = vector.shape_cast %62 : vector<1x4x128xbf16> to vector<4x128xbf16>
    %64 = vector.shape_cast %61 : vector<4x128xbf16> to vector<1x4x128xbf16>
    tpu.vector_store %arg6[%c0_45, %c8_46, %c0_47], %64 {strides = array<i32>} : memref<1x16x128xbf16, #tpu.memory_space<vmem>>, vector<1x4x128xbf16>,
    %65 = vector.extract_strided_slice %49 {offsets = [18, 0], sizes = [4, 128], strides = [1, 1]} : vector<22x128xf32> to vector<4x128xf32>
    %66 = arith.truncf %65 : vector<4x128xf32> to vector<4x128xbf16>
    %c0_48 = arith.constant 0 : index
    %c12_49 = arith.constant 12 : index
    %c0_50 = arith.constant 0 : index
    %67 = vector.load %arg6[%c0_48, %c12_49, %c0_50] : memref<1x16x128xbf16, #tpu.memory_space<vmem>>, vector<1x4x128xbf16>
    %68 = vector.shape_cast %67 : vector<1x4x128xbf16> to vector<4x128xbf16>
    %69 = vector.shape_cast %66 : vector<4x128xbf16> to vector<1x4x128xbf16>
    tpu.vector_store %arg6[%c0_48, %c12_49, %c0_50], %69 {strides = array<i32>} : memref<1x16x128xbf16, #tpu.memory_space<vmem>>, vector<1x4x128xbf16>,
    return
  }
  func.func @transform_0(%arg0: i32, %arg1: i32) -> (i32, i32, i32) {
    %c0_i32 = arith.constant 0 : i32
    %c0_i32_0 = arith.constant 0 : i32
    %c0_i32_1 = arith.constant 0 : i32
    return %arg0, %c0_i32, %c0_i32_0 : i32, i32, i32
  }
  func.func @transform_1(%arg0: i32, %arg1: i32) -> (i32, i32) {
    %c0_i32 = arith.constant 0 : i32
    %c0_i32_0 = arith.constant 0 : i32
    %c0_i32_1 = arith.constant 0 : i32
    return %c0_i32, %c0_i32_0 : i32, i32
  }
  func.func @transform_2(%arg0: i32, %arg1: i32) -> (i32, i32) {
    %c0_i32 = arith.constant 0 : i32
    %c0_i32_0 = arith.constant 0 : i32
    %c0_i32_1 = arith.constant 0 : i32
    return %c0_i32, %c0_i32_0 : i32, i32
  }
  func.func @transform_3(%arg0: i32, %arg1: i32) -> (i32, i32) {
    %c0_i32 = arith.constant 0 : i32
    %c0_i32_0 = arith.constant 0 : i32
    %c0_i32_1 = arith.constant 0 : i32
    return %c0_i32, %c0_i32_0 : i32, i32
  }
  func.func @transform_4(%arg0: i32, %arg1: i32) -> (i32, i32, i32) {
    %c0_i32 = arith.constant 0 : i32
    %c0_i32_0 = arith.constant 0 : i32
    return %arg0, %arg1, %c0_i32 : i32, i32, i32
  }
}

</mosaic_0001>

<bundles_post_ra>
// kernel: _lambda_.17
= control target key start
LH: loop header
LB: loop body
LE: loop exit
PB: predicated region body
PF: predicated region fallthrough
CT: control target
= control target key end

     0   :  { %s1087_s15 = smov 0   ;;  %s1089_s16 = smov 0   ;;  %s1290_s0 = inlined_call_operand.vmem [shape: bf16[2,256,256], index: 0, kind: input, shape index: {}]   ;;  %s1291_s1 = inlined_call_operand.vmem [shape: bf16[256,128], index: 1, kind: input, shape index: {}]   ;;  %s1292_s2 = inlined_call_operand.vmem [shape: f32[1,128], index: 2, kind: input, shape index: {}]   ;;  %s1293_s3 = inlined_call_operand.vmem [shape: f32[1,128], index: 3, kind: input, shape index: {}]   ;;  %s1294_s4 = inlined_call_operand.vmem [shape: bf16[2,256,128], index: 4, kind: output, shape index: {}]  }
   0x1   :  { %s1091_s17 = smov 0   ;;  %s1093_s18 = smov 0  }
   0x2   :  { %s1095_s19 = smov 0  }
   0x3 LB: > { %s23_s20 = sadd.s32 1, %s1052_s17  ;;  %s26_s21 = sadd.s32 1, %s1056_s18  ;;  %s1060_s19 = sphi %s1095_s19, %s14_s19   ;;  %s1056_s18 = sphi %s1093_s18, %s1298_s18   ;;  %s1052_s17 = sphi %s1091_s17, %s1297_s17   ;;  %s1048_s16 = sphi %s1089_s16, %s1296_s16   ;;  %s1044_s15 = sphi %s1087_s15, %s1295_s15  }
   0x4   : > { %p24_p0 = scmp.ge.s32.totalorder %s23_s20, 2  ;;  %p747_p1 = scmp.ge.s32.totalorder %s1060_s19, 1 }
   0x5   : > { %p184_p2 = scmp.lt.s32.totalorder %s1060_s19, 5 }
   0x6   : > { %s1300_s20 = smov (%p24_p0, %s23_s20), 0  ;;  %s1302_s21 = smov (!%p24_p0, %s26_s21), %s1056_s18 }
   0x7   : > { %p185_p3 = pnand %p747_p1, %p184_p2  ;;  %p28_p4 = scmp.ge.s32.totalorder %s1302_s21, 2 }
   0x8   : > { %s748_s28 = sshll.u32 (!%p185_p3), %s1044_s15, 4  ;;  %p220_p5 = scmp.lt.s32.totalorder (!%p185_p3), %s1048_s16, 1 }
   0x9   : > { %s1304_s21 = smov (%p28_p4, %s1302_s21), 0  ;;  %188 = sbr.rel (%p185_p3) target bundleno = 246 (0xf6), region = 36 }
   0xa   : > { %p222_p6 = scmp.lt.s32.totalorder (!%p185_p3), %s748_s28, 31 }
   0xe   : > { %v908_v0 = vld [vmem:[%s1291_s1 + $0x38] sm:$0xff]  ;;  %v907_v2 = vld [vmem:[%s1291_s1 + $0x30] sm:$0xff]  ;;  %v906_v4 = vld [vmem:[%s1291_s1 + $0x28] sm:$0xff]  ;;  %s1306_s16 = smov (!%p220_p5, %s1048_s16), 1  ;;  %s1308_s28 = smov (!%p222_p6, %s748_s28), 31 }
   0xf   : > { %v916_v1 = vld [vmem:[%s1291_s1 + $0x78] sm:$0xff]  ;;  %464 = vmatpush.bf16.msra.mxu0 %v908_v0  ;;  %964 = vmatpush.bf16.msra.mxu2 %v908_v0  ;;  %v915_v3 = vld [vmem:[%s1291_s1 + $0x70] sm:$0xff]  ;;  %v914_v5 = vld [vmem:[%s1291_s1 + $0x68] sm:$0xff]  ;;  %s749_s13 = sshll.u32 %s1308_s28, 1  ;;  %s750_s14 = sshll.u32 %s1306_s16, 6 }
  0x10   : > { %513 = vmatpush.bf16.msra.mxu1 %v916_v1  ;;  %972 = vmatpush.bf16.msra.mxu3 %v916_v1  ;;  %v905_v6 = vld [vmem:[%s1291_s1 + $0x20] sm:$0xff]  ;;  %v904_v8 = vld [vmem:[%s1291_s1 + $0x18] sm:$0xff]  ;;  %s226_s25 = sadd.s32 %s750_s14, %s749_s13  ;;  %v903_v10 = vld [vmem:[%s1291_s1 + $0x10] sm:$0xff]  ;;  %s753_s23 = sshll.u32 %s1306_s16, 5 }
  0x11   : > { %v913_v7 = vld [vmem:[%s1291_s1 + $0x60] sm:$0xff]  ;;  %v912_v9 = vld [vmem:[%s1291_s1 + $0x58] sm:$0xff]  ;;  %v911_v11 = vld [vmem:[%s1291_s1 + $0x50] sm:$0xff]  ;;  %s751_s5 = sshll.u32 %s226_s25, 2  ;;  %s1201_s24 = sadd.s32 %s753_s23, %s1308_s28 }
  0x12   : > { %v902_v12 = vld [vmem:[%s1291_s1 + $0x8] sm:$0xff]  ;;  %s1172_s10 = scalar_lea.vmem %s1290_s0, %s751_s5  ;;  %v901_v14 = vld [vmem:[%s1291_s1] sm:$0xff]  ;;  %s754_s27 = sshll.u32 %s1201_s24, 2 }
  0x13   : > { %465 = vmatpush.bf16.msra.mxu0 %v907_v2  ;;  %965 = vmatpush.bf16.msra.mxu2 %v907_v2  ;;  %v910_v13 = vld [vmem:[%s1291_s1 + $0x48] sm:$0xff]  ;;  %v909_v15 = vld [vmem:[%s1291_s1 + $0x40] sm:$0xff]  ;;  %v765_v28 = vld [vmem:[%s1172_s10 + $0x10] sm:$0xf]  ;;  %s1238_s5 = scalar_lea.vmem %s1294_s4, %s754_s27 }
  0x14   : > { %514 = vmatpush.bf16.msra.mxu1 %v915_v3  ;;  %973 = vmatpush.bf16.msra.mxu3 %v915_v3  ;;  %v757_v16 = vld [vmem:[%s1172_s10] sm:$0xf]  ;;  %v886_v17 = vld [vmem:[%s1172_s10 + $0x4] sm:$0xf0]  ;;  %v885_v20 = vld [vmem:[%s1172_s10 + $0x4] sm:$0xf] }
  0x15   : > { %v789_v18 = vld [vmem:[%s1172_s10 + $0x40] sm:$0xf]  ;;  %v894_v19 = vld [vmem:[%s1172_s10 + $0x44] sm:$0xf0]  ;;  %v759_v21 = vld [vmem:[%s1172_s10 + $0x8] sm:$0xf0]  ;;  %v758_v24 = vor.u32 %v886_v17, %v757_v16 }
  0x16   : > { %v893_v22 = vld [vmem:[%s1172_s10 + $0x44] sm:$0xf]  ;;  %v791_v23 = vld [vmem:[%s1172_s10 + $0x48] sm:$0xf0]  ;;  %v790_v25 = vor.u32 %v894_v19, %v789_v18  ;;  %v762_v26 = vor.u32 %v885_v20, %v759_v21  ;;  %v888_v29 = vld [vmem:[%s1172_s10 + $0x14] sm:$0xf0] }
  0x17   : > { %466 = vmatpush.bf16.msra.mxu0 %v906_v4  ;;  %966 = vmatpush.bf16.msra.mxu2 %v906_v4  ;;  %v794_v27 = vor.u32 %v893_v22, %v791_v23  ;;  %v797_v30 = vld [vmem:[%s1172_s10 + $0x50] sm:$0xf]  ;;  %v896_v31 = vld [vmem:[%s1172_s10 + $0x54] sm:$0xf0]  ;;  %v887_v32 = vld [vmem:[%s1172_s10 + $0x14] sm:$0xf]  ;;  %v766_v36 = vor.u32 %v888_v29, %v765_v28 }
  0x18   : > { %515 = vmatpush.bf16.msra.mxu1 %v914_v5  ;;  %974 = vmatpush.bf16.msra.mxu3 %v914_v5  ;;  %v767_v33 = vld [vmem:[%s1172_s10 + $0x18] sm:$0xf0]  ;;  %v895_v34 = vld [vmem:[%s1172_s10 + $0x54] sm:$0xf]  ;;  %v798_v37 = vor.u32 %v896_v31, %v797_v30  ;;  %v773_v40 = vld [vmem:[%s1172_s10 + $0x20] sm:$0xf] }
  0x19   : > { %v799_v35 = vld [vmem:[%s1172_s10 + $0x58] sm:$0xf0]  ;;  %v770_v38 = vor.u32 %v887_v32, %v767_v33  ;;  %v890_v41 = vld [vmem:[%s1172_s10 + $0x24] sm:$0xf0]  ;;  %v805_v42 = vld [vmem:[%s1172_s10 + $0x60] sm:$0xf] }
  0x1a   : > { %v802_v39 = vor.u32 %v895_v34, %v799_v35  ;;  %v898_v43 = vld [vmem:[%s1172_s10 + $0x64] sm:$0xf0]  ;;  %v889_v44 = vld [vmem:[%s1172_s10 + $0x24] sm:$0xf]  ;;  %v775_v45 = vld [vmem:[%s1172_s10 + $0x28] sm:$0xf0]  ;;  %v774_v48 = vor.u32 %v890_v41, %v773_v40 }
  0x1b   : > { %467 = vmatpush.bf16.msra.mxu0 %v905_v6  ;;  %967 = vmatpush.bf16.msra.mxu2 %v905_v6  ;;  %v897_v46 = vld [vmem:[%s1172_s10 + $0x64] sm:$0xf]  ;;  %v807_v47 = vld [vmem:[%s1172_s10 + $0x68] sm:$0xf0]  ;;  %v806_v49 = vor.u32 %v898_v43, %v805_v42  ;;  %v778_v50 = vor.u32 %v889_v44, %v775_v45  ;;  %v781_v52 = vld [vmem:[%s1172_s10 + $0x30] sm:$0xf] }
  0x1c   : > { %516 = vmatpush.bf16.msra.mxu1 %v913_v7  ;;  %975 = vmatpush.bf16.msra.mxu3 %v913_v7  ;;  %v810_v51 = vor.u32 %v897_v46, %v807_v47  ;;  %v892_v53 = vld [vmem:[%s1172_s10 + $0x34] sm:$0xf0]  ;;  %v813_v54 = vld [vmem:[%s1172_s10 + $0x70] sm:$0xf]  ;;  %v891_v56 = vld [vmem:[%s1172_s10 + $0x34] sm:$0xf] }
  0x1d   : > { %v900_v55 = vld [vmem:[%s1172_s10 + $0x74] sm:$0xf0]  ;;  %v783_v57 = vld [vmem:[%s1172_s10 + $0x38] sm:$0xf0]  ;;  %v899_v58 = vld [vmem:[%s1172_s10 + $0x74] sm:$0xf]  ;;  %v782_v60 = vor.u32 %v892_v53, %v781_v52 }
  0x1e   : > { %v815_v59 = vld [vmem:[%s1172_s10 + $0x78] sm:$0xf0]  ;;  %v814_v61 = vor.u32 %v900_v55, %v813_v54  ;;  %v786_v62 = vor.u32 %v891_v56, %v783_v57  ;;  %v1222_v3 = vld [vmem:[%s1292_s2] ss:$0 sm:$0xff] }
  0x1f   : > { %468 = vmatpush.bf16.msra.mxu0 %v904_v8  ;;  %968 = vmatpush.bf16.msra.mxu2 %v904_v8  ;;  %v818_v63 = vor.u32 %v899_v58, %v815_v59  ;;  %v1228_v7 = vld [vmem:[%s1293_s3] ss:$0 sm:$0xff] }
  0x20   : > { %517 = vmatpush.bf16.msra.mxu1 %v912_v9  ;;  %976 = vmatpush.bf16.msra.mxu3 %v912_v9 }
  0x23   : > { %469 = vmatpush.bf16.msra.mxu0 %v903_v10  ;;  %969 = vmatpush.bf16.msra.mxu2 %v903_v10 }
  0x24   : > { %518 = vmatpush.bf16.msra.mxu1 %v911_v11  ;;  %977 = vmatpush.bf16.msra.mxu3 %v911_v11 }
  0x27   : > { %470 = vmatpush.bf16.msra.mxu0 %v902_v12  ;;  %970 = vmatpush.bf16.msra.mxu2 %v902_v12 }
  0x28   : > { %519 = vmatpush.bf16.msra.mxu1 %v910_v13  ;;  %978 = vmatpush.bf16.msra.mxu3 %v910_v13 }
  0x2b   : > { %471 = vmatpush.bf16.msra.mxu0 %v901_v14  ;;  %971 = vmatpush.bf16.msra.mxu2 %v901_v14 }
  0x2c   : > { %520 = vmatpush.bf16.msra.mxu1 %v909_v15  ;;  %979 = vmatpush.bf16.msra.mxu3 %v909_v15 }
  0x2e   : > { %472 = vmatmul.bf16.vlgmr.msra.gmra.mxu0 %v758_v24  ;;  %492 = vmatmul.bf16.vlgmr.msra.gmra.mxu2 %v790_v25 }
  0x2f   : > { %521 = vmatmul.bf16.vlgmr.msra.gmra.mxu1 %v762_v26  ;;  %541 = vmatmul.bf16.vlgmr.msra.gmra.mxu3 %v794_v27 }
  0x3e   : > { %477 = vmatmul.bf16.gmra.mxu0 %v766_v36  ;;  %497 = vmatmul.bf16.gmra.mxu2 %v798_v37 }
  0x3f   : > { %526 = vmatmul.bf16.gmra.mxu1 %v770_v38  ;;  %546 = vmatmul.bf16.gmra.mxu3 %v802_v39 }
  0x4e   : > { %482 = vmatmul.bf16.gmra.mxu0 %v774_v48  ;;  %502 = vmatmul.bf16.gmra.mxu2 %v806_v49 }
  0x4f   : > { %531 = vmatmul.bf16.gmra.mxu1 %v778_v50  ;;  %551 = vmatmul.bf16.gmra.mxu3 %v810_v51 }
  0x5e   : > { %487 = vmatmul.bf16.gmra.mxu0 %v782_v60  ;;  %507 = vmatmul.bf16.gmra.mxu2 %v814_v61 }
  0x5f   : > { %536 = vmatmul.bf16.gmra.mxu1 %v786_v62  ;;  %556 = vmatmul.bf16.gmra.mxu3 %v818_v63 }
  0xab   : > { %v473_v0 = vpop.f32.mrf.mxu0 }
  0xac   : > { %v522_v1 = vpop.f32.mrf.mxu1 }
  0xad   : > { %v523_v2 = vadd.f32 %v522_v1, %v473_v0 }
  0xaf   : > { %v566_v6 = vmul.f32 %v1222_v3, %v523_v2 }
  0xb1   : > { %v493_v4 = vpop.f32.mrf.mxu2  ;;  %v586_v12 = vadd.f32 %v1228_v7, %v566_v6 }
  0xb2   : > { %v542_v5 = vpop.f32.mrf.mxu3 }
  0xb3   : > { %v475_v8 = vpop.f32.mrf.mxu0  ;;  %v543_v10 = vadd.f32 %v542_v5, %v493_v4  ;;  %v602_v18 = vmax.f32 %v586_v12, 0.0 }
  0xb4   : > { %v524_v9 = vpop.f32.mrf.mxu1 }
  0xb5   : > { %v525_v11 = vadd.f32 %v524_v9, %v475_v8  ;;  %v574_v14 = vmul.f32 %v1222_v3, %v543_v10 }
  0xb7   : > { %v567_v13 = vmul.f32 %v1222_v3, %v525_v11  ;;  %v594_v23 = vadd.f32 %v1228_v7, %v574_v14 }
  0xb9   : > { %v587_v15 = vadd.f32 %v1228_v7, %v567_v13  ;;  %v495_v16 = vpop.f32.mrf.mxu2  ;;  %v610_v28 = vmax.f32 %v594_v23, 0.0 }
  0xba   : > { %v544_v17 = vpop.f32.mrf.mxu3 }
  0xbb   : > { %v603_v19 = vmax.f32 %v587_v15, 0.0  ;;  %v545_v20 = vadd.f32 %v544_v17, %v495_v16  ;;  %v478_v21 = vpop.f32.mrf.mxu0 }
  0xbc   : > { %v527_v22 = vpop.f32.mrf.mxu1 }
  0xbd   : > { %v920_v24 = vpack.c.bf16 %v603_v19, %v602_v18  ;;  %v575_v25 = vmul.f32 %v1222_v3, %v545_v20  ;;  %v528_v27 = vadd.f32 %v527_v22, %v478_v21 }
  0xbf   : > { %921 = vst [vmem:[%s1238_s5] sm:$0xff] %v920_v24   ;;  %v595_v26 = vadd.f32 %v1228_v7, %v575_v25  ;;  %v568_v33 = vmul.f32 %v1222_v3, %v528_v27 }
  0xc1   : > { %v611_v29 = vmax.f32 %v595_v26, 0.0  ;;  %v498_v30 = vpop.f32.mrf.mxu2  ;;  %v588_v38 = vadd.f32 %v1228_v7, %v568_v33 }
  0xc2   : > { %v547_v31 = vpop.f32.mrf.mxu3 }
  0xc3   : > { %v940_v32 = vpack.c.bf16 %v611_v29, %v610_v28  ;;  %v480_v34 = vpop.f32.mrf.mxu0  ;;  %v548_v36 = vadd.f32 %v547_v31, %v498_v30  ;;  %v604_v44 = vmax.f32 %v588_v38, 0.0 }
  0xc4   : > { %v529_v35 = vpop.f32.mrf.mxu1 }
  0xc5   : > { %960 = vst [vmem:[%s1238_s5 + $0x20] sm:$0xff] %v940_v32   ;;  %v530_v37 = vadd.f32 %v529_v35, %v480_v34  ;;  %v576_v40 = vmul.f32 %v1222_v3, %v548_v36 }
  0xc7   : > { %v569_v39 = vmul.f32 %v1222_v3, %v530_v37  ;;  %v596_v49 = vadd.f32 %v1228_v7, %v576_v40 }
  0xc9   : > { %v589_v41 = vadd.f32 %v1228_v7, %v569_v39  ;;  %v500_v42 = vpop.f32.mrf.mxu2  ;;  %v612_v54 = vmax.f32 %v596_v49, 0.0 }
  0xca   : > { %v549_v43 = vpop.f32.mrf.mxu3 }
  0xcb   : > { %v605_v45 = vmax.f32 %v589_v41, 0.0  ;;  %v550_v46 = vadd.f32 %v549_v43, %v500_v42  ;;  %v483_v47 = vpop.f32.mrf.mxu0 }
  0xcc   : > { %v532_v48 = vpop.f32.mrf.mxu1 }
  0xcd   : > { %v925_v50 = vpack.c.bf16 %v605_v45, %v604_v44  ;;  %v577_v51 = vmul.f32 %v1222_v3, %v550_v46  ;;  %v533_v53 = vadd.f32 %v532_v48, %v483_v47 }
  0xcf   : > { %957 = vst [vmem:[%s1238_s5 + $0x8] sm:$0xff] %v925_v50   ;;  %v597_v52 = vadd.f32 %v1228_v7, %v577_v51  ;;  %v570_v59 = vmul.f32 %v1222_v3, %v533_v53 }
  0xd1   : > { %v613_v55 = vmax.f32 %v597_v52, 0.0  ;;  %v503_v56 = vpop.f32.mrf.mxu2  ;;  %v590_v0 = vadd.f32 %v1228_v7, %v570_v59 }
  0xd2   : > { %v552_v57 = vpop.f32.mrf.mxu3 }
  0xd3   : > { %v945_v58 = vpack.c.bf16 %v613_v55, %v612_v54  ;;  %v485_v60 = vpop.f32.mrf.mxu0  ;;  %v553_v62 = vadd.f32 %v552_v57, %v503_v56  ;;  %v606_v8 = vmax.f32 %v590_v0, 0.0 }
  0xd4   : > { %v534_v61 = vpop.f32.mrf.mxu1 }
  0xd5   : > { %961 = vst [vmem:[%s1238_s5 + $0x28] sm:$0xff] %v945_v58   ;;  %v535_v63 = vadd.f32 %v534_v61, %v485_v60  ;;  %v578_v2 = vmul.f32 %v1222_v3, %v553_v62 }
  0xd7   : > { %v571_v1 = vmul.f32 %v1222_v3, %v535_v63  ;;  %v598_v13 = vadd.f32 %v1228_v7, %v578_v2 }
  0xd9   : > { %v591_v4 = vadd.f32 %v1228_v7, %v571_v1  ;;  %v505_v5 = vpop.f32.mrf.mxu2  ;;  %v614_v18 = vmax.f32 %v598_v13, 0.0 }
  0xda   : > { %v554_v6 = vpop.f32.mrf.mxu3 }
  0xdb   : > { %v607_v9 = vmax.f32 %v591_v4, 0.0  ;;  %v555_v10 = vadd.f32 %v554_v6, %v505_v5  ;;  %v488_v11 = vpop.f32.mrf.mxu0 }
  0xdc   : > { %v537_v12 = vpop.f32.mrf.mxu1 }
  0xdd   : > { %v930_v14 = vpack.c.bf16 %v607_v9, %v606_v8  ;;  %v579_v15 = vmul.f32 %v1222_v3, %v555_v10  ;;  %v538_v17 = vadd.f32 %v537_v12, %v488_v11 }
  0xdf   : > { %958 = vst [vmem:[%s1238_s5 + $0x10] sm:$0xff] %v930_v14   ;;  %v599_v16 = vadd.f32 %v1228_v7, %v579_v15  ;;  %v572_v23 = vmul.f32 %v1222_v3, %v538_v17 }
  0xe1   : > { %v615_v19 = vmax.f32 %v599_v16, 0.0  ;;  %v508_v20 = vpop.f32.mrf.mxu2  ;;  %v592_v28 = vadd.f32 %v1228_v7, %v572_v23 }
  0xe2   : > { %v557_v21 = vpop.f32.mrf.mxu3 }
  0xe3   : > { %v950_v22 = vpack.c.bf16 %v615_v19, %v614_v18  ;;  %v490_v24 = vpop.f32.mrf.mxu0  ;;  %v558_v26 = vadd.f32 %v557_v21, %v508_v20  ;;  %v608_v34 = vmax.f32 %v592_v28, 0.0 }
  0xe4   : > { %v539_v25 = vpop.f32.mrf.mxu1 }
  0xe5   : > { %962 = vst [vmem:[%s1238_s5 + $0x30] sm:$0xff] %v950_v22   ;;  %v540_v27 = vadd.f32 %v539_v25, %v490_v24  ;;  %v580_v30 = vmul.f32 %v1222_v3, %v558_v26 }
  0xe7   : > { %v573_v29 = vmul.f32 %v1222_v3, %v540_v27  ;;  %v600_v37 = vadd.f32 %v1228_v7, %v580_v30 }
  0xe9   : > { %v593_v31 = vadd.f32 %v1228_v7, %v573_v29  ;;  %v510_v32 = vpop.f32.mrf.mxu2  ;;  %v616_v41 = vmax.f32 %v600_v37, 0.0 }
  0xea   : > { %v559_v33 = vpop.f32.mrf.mxu3 }
  0xeb   : > { %v609_v35 = vmax.f32 %v593_v31, 0.0  ;;  %v560_v36 = vadd.f32 %v559_v33, %v510_v32 }
  0xed   : > { %v935_v38 = vpack.c.bf16 %v609_v35, %v608_v34  ;;  %v581_v39 = vmul.f32 %v1222_v3, %v560_v36 }
  0xef   : > { %959 = vst [vmem:[%s1238_s5 + $0x18] sm:$0xff] %v935_v38   ;;  %v601_v40 = vadd.f32 %v1228_v7, %v581_v39 }
  0xf1   : > { %v617_v42 = vmax.f32 %v601_v40, 0.0 }
  0xf3   : > { %v955_v43 = vpack.c.bf16 %v617_v42, %v616_v41 }
  0xf5   : > { %963 = vst [vmem:[%s1238_s5 + $0x38] sm:$0xff] %v955_v43  }
  0xf6 PF: > { %s14_s19 = sadd.s32 1, %s1060_s19   ;;  %s1295_s15 = smov %s1052_s17 }
  0xf7   : > { %p11_p7 = scmp.ge.s32.totalorder %s14_s19, 6   ;;  %s1296_s16 = smov %s1056_s18 }
  0xf8   : > { %s1297_s17 = smov %s1300_s20  ;;  %s1298_s18 = smov %s1304_s21 }
  0xf9   :  { %13 = sbr.rel (!%p11_p7) target bundleno = 3 (0x3), region = 66 }

// kernel: _lambda_.18
= control target key start
LH: loop header
LB: loop body
LE: loop exit
PB: predicated region body
PF: predicated region fallthrough
CT: control target
= control target key end

     0   :  { %s920_s6 = smov 0   ;;  %s922_s7 = smov 0   ;;  %s1098_s0 = inlined_call_operand.vmem [shape: bf16[2,352,128], index: 0, kind: input, shape index: {}]   ;;  %s1099_s1 = inlined_call_operand.vmem [shape: bf16[2,64,128], index: 1, kind: output, shape index: {}]  }
   0x1   :  { %s924_s8 = smov 0  }
   0x2 LB: > { %s23_s9 = sadd.s32 1, %s904_s7  ;;  %p771_p0 = scmp.ge.s32.totalorder %s908_s8, 1  ;;  %s908_s8 = sphi %s924_s8, %s11_s8   ;;  %s904_s7 = sphi %s922_s7, %s1103_s7   ;;  %s900_s6 = sphi %s920_s6, %s1102_s6  }
   0x3   : > { %p25_p1 = scmp.ge.s32.totalorder %s23_s9, 2  ;;  %p101_p2 = scmp.lt.s32.totalorder %s908_s8, 3 }
   0x5   : > { %s1105_s9 = smov (%p25_p1, %s23_s9), 0  ;;  %p102_p3 = pnand %p771_p0, %p101_p2 }
   0x6   : > { %p125_p4 = scmp.lt.s32.totalorder (!%p102_p3), %s900_s6, 1 }
   0x7   : > { %105 = sbr.rel (%p102_p3) target bundleno = 92 (0x5c), region = 24 }
   0xc   : > { %s1107_s6 = smov (!%p125_p4, %s900_s6), 1  ;;  %vm212_vm0 = vcmask 1046528   ;;  %vm522_vm1 = vcmask 1045504   ;;  %vm570_vm2 = vsmask.f32 3328  ;;  %vm591_vm5 = vcmask 1042432  }
   0xd   : > { %s861_s10 = smul.u32 176, %s1107_s6  ;;  %s781_s14 = sshll.u32 %s1107_s6, 5  ;;  %vm571_vm3 = vsmask.f32 7440  ;;  %vm592_vm6 = vcmask 1046532   ;;  %vm625_vm10 = vcmask 1041408  }
   0xe   : > { %s1000_s17 = scalar_lea.vmem %s1099_s1, %s781_s14  ;;  %vm1018_vm4 = vmor %vm570_vm2, %vm571_vm3  ;;  %vm600_vm7 = vsmask.f32 2304  ;;  %vm601_vm9 = vsmask.f32 6416  ;;  %vm626_vm12 = vcmask 1045508   ;;  %vm660_vm3 = vcmask 1044484  }
   0xf   : > { %s944_s13 = scalar_lea.vmem %s1098_s0, %s861_s10  ;;  %vm593_vm8 = vmor %vm591_vm5, %vm592_vm6  ;;  %vm634_vm14 = vsmask.f32 1280  ;;  %vm635_vm15 = vsmask.f32 5392  ;;  %vm668_vm5 = vsmask.f32 256 }
  0x10   : > { %v783_v0 = vld [vmem:[%s944_s13] sm:$0xff]   ;;  %v846_v1 = vld [vmem:[%s944_s13 + $0x8] sm:$0xff]   ;;  %v849_v7 = vld [vmem:[%s944_s13 + $0x30] sm:$0xff]   ;;  %vm669_vm6 = vsmask.f32 4368 }
  0x11   : > { %v149_v2 = vld [vmem:[%s944_s13 + $0x2c] sm:$0xf]  ;;  %v784_v3 = vunpack.c.l.bf16 %v783_v0  ;;  %v785_v4 = vunpack.c.h.bf16 %v783_v0  ;;  %v949_v5 = vunpack.c.l.bf16 %v846_v1  ;;  %v951_v6 = vunpack.c.h.bf16 %v846_v1  ;;  %v853_v8 = vld [vmem:[%s944_s13 + $0x58] sm:$0xff]   ;;  %v956_v13 = vld [vmem:[%s944_s13 + $0x60] sm:$0xff]  }
  0x12   : > { %v800_v9 = vunpack.c.l.bf16 %v849_v7  ;;  %v801_v10 = vunpack.c.h.bf16 %v849_v7  ;;  %v167_v11 = vunpack.c.l.bf16 %v149_v2  ;;  %v816_v12 = vunpack.c.l.bf16 %v853_v8  ;;  %v857_v18 = vld [vmem:[%s944_s13 + $0x88] sm:$0xff]   ;;  %v302_v23 = vld [vmem:[%s944_s13 + $0x84] sm:$0xf]  ;;  %v847_v40 = vld [vmem:[%s944_s13 + $0x10] sm:$0xff]  }
  0x13   : > { %v213_v14 = vrot.slane %v784_v3, 1  ;;  %v214_v15 = vrot.slane %v785_v4, 1  ;;  %v216_v16 = vrot.slane %v949_v5, 1  ;;  %v218_v17 = vrot.slane %v951_v6, 1  ;;  %v507_v32 = vld [vmem:[%s944_s13 + $0x4] sm:$0xe]  ;;  %vm602_vm11 = vmor %vm600_vm7, %vm601_vm9 }
  0x14   : > { %v176_v19 = vmax.f32 %v784_v3, %v167_v11  ;;  %v177_v20 = vmax.f32 %v785_v4, %v800_v9  ;;  %v178_v21 = vmax.f32 %v949_v5, %v801_v10  ;;  %v817_v22 = vunpack.c.h.bf16 %v853_v8  ;;  %v850_v41 = vld [vmem:[%s944_s13 + $0x38] sm:$0xff]   ;;  %v986_v11 = vld [vmem:[%s944_s13 + $0x40] sm:$0xff]   ;;  %vm627_vm13 = vmor %vm625_vm10, %vm626_vm12 }
  0x15   : > { %v215_v24 = vsel %vm212_vm0, %v213_v14, %v214_v15  ;;  %v217_v25 = vsel %vm212_vm0, %v214_v15, %v216_v16  ;;  %v219_v26 = vsel %vm212_vm0, %v216_v16, %v218_v17  ;;  %v820_v27 = vunpack.c.l.bf16 %v956_v13  ;;  %v991_v16 = vld [vmem:[%s944_s13 + $0x68] sm:$0xff]   ;;  %vm636_vm2 = vmor %vm634_vm14, %vm635_vm15 }
  0x16   : > { %v239_v28 = vmax.f32 %v176_v19, %v215_v24  ;;  %v240_v29 = vmax.f32 %v177_v20, %v217_v25  ;;  %v241_v30 = vmax.f32 %v178_v21, %v219_v26  ;;  %v832_v31 = vunpack.c.l.bf16 %v857_v18  ;;  %v858_v20 = vld [vmem:[%s944_s13 + $0x90] sm:$0xff]   ;;  %vm670_vm7 = vmor %vm668_vm5, %vm669_vm6 }
  0x17   : > { %v320_v33 = vunpack.c.l.bf16 %v302_v23  ;;  %v365_v34 = vrot.slane %v816_v12, 1  ;;  %v366_v35 = vrot.slane %v817_v22, 1  ;;  %v833_v38 = vunpack.c.h.bf16 %v857_v18 }
  0x18   : > { %v284_v36 = vmax.f32 %v239_v28, %v816_v12  ;;  %v285_v37 = vmax.f32 %v240_v29, %v817_v22  ;;  %v368_v39 = vrot.slane %v820_v27, 1  ;;  %v286_v42 = vmax.f32 %v241_v30, %v820_v27 }
  0x19   : > { %v367_v43 = vsel %vm212_vm0, %v365_v34, %v366_v35  ;;  %v463_v44 = vrot.slane %v800_v9, 1  ;;  %v518_v45 = vunpack.c.l.bf16 %v507_v32  ;;  %v464_v49 = vrot.slane %v801_v10, 1 }
  0x1a   : > { %v329_v46 = vmax.f32 %v284_v36, %v320_v33  ;;  %v330_v47 = vmax.f32 %v285_v37, %v832_v31  ;;  %v369_v48 = vsel %vm212_vm0, %v366_v35, %v368_v39  ;;  %v524_v51 = vrot.slane %v949_v5, 2 }
  0x1b   : > { %v523_v50 = vrot.slane %v518_v45, 2  ;;  %v973_v52 = vunpack.c.l.bf16 %v847_v40  ;;  %v804_v53 = vunpack.c.l.bf16 %v850_v41  ;;  %v465_v56 = vsel %vm212_vm0, %v463_v44, %v464_v49 }
  0x1c   : > { %v391_v54 = vmax.f32 %v329_v46, %v367_v43  ;;  %v392_v55 = vmax.f32 %v330_v47, %v369_v48  ;;  %v821_v57 = vunpack.c.h.bf16 %v956_v13  ;;  %v805_v58 = vunpack.c.h.bf16 %v850_v41  ;;  %v848_v48 = vld [vmem:[%s944_s13 + $0x18] sm:$0xff]  }
  0x1d   : > { %v179_v59 = vmax.f32 %v951_v6, %v804_v53  ;;  %v220_v60 = vrot.slane %v973_v52, 1  ;;  %v331_v61 = vmax.f32 %v286_v42, %v833_v38  ;;  %v466_v1 = vrot.slane %v804_v53, 1 }
  0x1e   : > { %v425_v62 = vmax.f32 %v391_v54, %v217_v25  ;;  %v370_v63 = vrot.slane %v821_v57, 1  ;;  %v426_v0 = vmax.f32 %v392_v55, %v219_v26  ;;  %v525_v2 = vsel %vm522_vm1, %v523_v50, %v524_v51 }
  0x1f   : > { %v221_v3 = vsel %vm212_vm0, %v218_v17, %v220_v60  ;;  %v468_v4 = vrot.slane %v805_v58, 1  ;;  %v526_v5 = vrot.slane %v951_v6, 2  ;;  %v467_v10 = vsel %vm212_vm0, %v464_v49, %v466_v1 }
  0x20   : > { %v489_v7 = vmax.f32 %v425_v62, %v465_v56  ;;  %v242_v8 = vmax.f32 %v179_v59, %v221_v3  ;;  %v371_v9 = vsel %vm212_vm0, %v368_v39, %v370_v63  ;;  %v490_v13 = vmax.f32 %v426_v0, %v467_v10  ;;  %v1062_v56 = vld [vmem:[%s944_s13 + $0x78] sm:$0xf] }
  0x21   : > { %v393_v12 = vmax.f32 %v331_v61, %v371_v9  ;;  %v527_v14 = vsel %vm522_vm1, %v524_v51, %v526_v5  ;;  %v528_v15 = vrot.slane %v973_v52, 2  ;;  %v469_v18 = vsel %vm212_vm0, %v466_v1, %v468_v4 }
  0x22   : > { %v551_v6 = vmax.f32 %v489_v7, %v525_v2  ;;  %v287_v17 = vmax.f32 %v242_v8, %v821_v57  ;;  %v994_v19 = vunpack.c.h.bf16 %v847_v40  ;;  %v552_v23 = vmax.f32 %v490_v13, %v527_v14  ;;  %v1031_v8 = vld [vmem:[%s944_s13 + $0x70] sm:$0xff]   ;;  %v859_v13 = vld [vmem:[%s944_s13 + $0x98] sm:$0xff]  }
  0x23   : > { %v427_v21 = vmax.f32 %v393_v12, %v221_v3  ;;  %v529_v22 = vsel %vm522_vm1, %v526_v5, %v528_v15  ;;  %v808_v24 = vunpack.c.l.bf16 %v986_v11  ;;  %v180_v26 = vmax.f32 %v973_v52, %v805_v58 }
  0x24   : > { %v560_v25 = vpack.c.bf16 %v551_v6, %v551_v6  ;;  %v222_v27 = vrot.slane %v994_v19, 1  ;;  %v824_v28 = vunpack.c.l.bf16 %v991_v16  ;;  %v561_v30 = vpack.c.bf16 %v552_v23, %v552_v23 }
  0x25   : > { %v491_v29 = vmax.f32 %v427_v21, %v469_v18  ;;  %v836_v31 = vunpack.c.l.bf16 %v858_v20  ;;  %v837_v33 = vunpack.c.h.bf16 %v858_v20  ;;  %v470_v35 = vrot.slane %v808_v24, 1 }
  0x26   : > { %569 = vst [vmem:[%s1000_s17] sm:$0xf] %v560_v25  ;;  %v223_v32 = vsel %vm212_vm0, %v220_v60, %v222_v27  ;;  %v372_v34 = vrot.slane %v824_v28, 1  ;;  %v574_v37 = vshrl.u32 %v561_v30, 16  ;;  %v577_v38 = vshll.u32 %v561_v30, 16 }
  0x27   : > { %v553_v36 = vmax.f32 %v491_v29, %v529_v22  ;;  %v243_v39 = vmax.f32 %v180_v26, %v223_v32  ;;  %v825_v40 = vunpack.c.h.bf16 %v991_v16  ;;  %v332_v41 = vmax.f32 %v287_v17, %v836_v31  ;;  %v1041_v17 = vld [vmem:[%s944_s13 + $0x48] sm:$0xff]  }
  0x28   : > { %v373_v42 = vsel %vm212_vm0, %v370_v63, %v372_v34  ;;  %v530_v43 = vrot.slane %v994_v19, 2  ;;  %v576_v45 = vrot.slane %v574_v37, 4  ;;  %v579_v46 = vrot.slane %v577_v38, 5 }
  0x29   : > { %v562_v44 = vpack.c.bf16 %v553_v36, %v553_v36  ;;  %v288_v47 = vmax.f32 %v243_v39, %v824_v28  ;;  %v809_v49 = vunpack.c.h.bf16 %v986_v11  ;;  %v394_v50 = vmax.f32 %v332_v41, %v373_v42 }
  0x2a   : > { %v471_v51 = vsel %vm212_vm0, %v468_v4, %v470_v35  ;;  %v580_v52 = vor.u32 %v579_v46, %v576_v45  ;;  %v531_v55 = vsel %vm522_vm1, %v528_v15, %v530_v43  ;;  %v1022_v58 = vunpack.c.l.bf16 %v848_v48 }
  0x2b   : > { %v583_v53 = vshll.u32 %v562_v44, 16  ;;  %v333_v54 = vmax.f32 %v288_v47, %v837_v33  ;;  %v428_v57 = vmax.f32 %v394_v50, %v223_v32  ;;  %v374_v59 = vrot.slane %v825_v40, 1 }
  0x2c   : > { %v581_v60 = vrot.slane %v580_v52, 4  ;;  %v181_v62 = vmax.f32 %v994_v19, %v808_v24  ;;  %v224_v0 = vrot.slane %v1022_v58, 1  ;;  %v472_v2 = vrot.slane %v809_v49, 1 }
  0x2d   : > { %v585_v61 = vrot.slane %v583_v53, 5  ;;  %v492_v63 = vmax.f32 %v428_v57, %v471_v51  ;;  %v375_v1 = vsel %vm212_vm0, %v372_v34, %v374_v59  ;;  %v775_v4 = vrot.slane %v562_v44, 9  ;;  %v148_v44 = vld [vmem:[%s944_s13 + $0x20] sm:$0xff]  }
  0x2e   : > { %v395_v5 = vmax.f32 %v333_v54, %v375_v1  ;;  %v532_v7 = vrot.slane %v1022_v58, 2  ;;  %v225_v10 = vsel %vm212_vm0, %v222_v27, %v224_v0  ;;  %v473_v11 = vsel %vm212_vm0, %v470_v35, %v472_v2 }
  0x2f   : > { %v586_v3 = vsel %vm1018_vm4, %v581_v60, %v585_v61  ;;  %v554_v9 = vmax.f32 %v492_v63, %v531_v55  ;;  %v1036_v12 = vunpack.c.h.bf16 %v848_v48  ;;  %v244_v14 = vmax.f32 %v181_v62, %v225_v10 }
  0x30   : > { %588 = vst [vmem:[%s1000_s17 + $0x4] sm:$0xf] %v586_v3  ;;  %v429_v15 = vmax.f32 %v395_v5, %v225_v10  ;;  %v533_v16 = vsel %vm522_vm1, %v530_v43, %v532_v7  ;;  %v182_v18 = vmax.f32 %v1022_v58, %v809_v49  ;;  %v828_v20 = vunpack.c.l.bf16 %v1031_v8  ;;  %v860_v10 = vld [vmem:[%s944_s13 + $0xa0] sm:$0xff]  }
  0x31   : > { %v563_v6 = vpack.c.bf16 %v554_v9, %v554_v9  ;;  %v226_v19 = vrot.slane %v1036_v12, 1  ;;  %v812_v22 = vunpack.c.l.bf16 %v1041_v17  ;;  %v289_v23 = vmax.f32 %v244_v14, %v825_v40 }
  0x32   : > { %v493_v21 = vmax.f32 %v429_v15, %v473_v11  ;;  %v840_v24 = vunpack.c.l.bf16 %v859_v13  ;;  %v841_v31 = vunpack.c.h.bf16 %v859_v13  ;;  %v376_v36 = vrot.slane %v828_v20, 1 }
  0x33   : > { %v596_v25 = vrot.slane %v563_v6, 5  ;;  %v604_v26 = vshrl.u32 %v563_v6, 16  ;;  %v607_v27 = vshll.u32 %v563_v6, 16  ;;  %v227_v28 = vsel %vm212_vm0, %v224_v0, %v226_v19 }
  0x34   : > { %v555_v29 = vmax.f32 %v493_v21, %v533_v16  ;;  %v245_v30 = vmax.f32 %v182_v18, %v227_v28  ;;  %v334_v32 = vmax.f32 %v289_v23, %v840_v24  ;;  %v474_v39 = vrot.slane %v812_v22, 1 }
  0x35   : > { %v597_v33 = vsel %vm593_vm8, %v775_v4, %v596_v25  ;;  %v606_v34 = vrot.slane %v604_v26, 5  ;;  %v609_v35 = vrot.slane %v607_v27, 6  ;;  %v829_v41 = vunpack.c.h.bf16 %v1031_v8  ;;  %v443_v4 = vld [vmem:[%s944_s13 + $0x50] sm:$0xf] }
  0x36   : > { %599 = vst [vmem:[%s1000_s17 + $0x8] sm:$0xf] %v597_v33  ;;  %v1051_v37 = vpack.c.bf16 %v555_v29, %v555_v29  ;;  %v290_v38 = vmax.f32 %v245_v30, %v828_v20  ;;  %v377_v42 = vsel %vm212_vm0, %v374_v59, %v376_v36  ;;  %v534_v43 = vrot.slane %v1036_v12, 2 }
  0x37   : > { %v610_v40 = vor.u32 %v609_v35, %v606_v34  ;;  %v813_v47 = vunpack.c.h.bf16 %v1041_v17  ;;  %v396_v48 = vmax.f32 %v334_v32, %v377_v42  ;;  %v475_v51 = vsel %vm212_vm0, %v472_v2, %v474_v39 }
  0x38   : > { %v613_v45 = vshrl.u32 %v1051_v37, 16  ;;  %v616_v46 = vshll.u32 %v1051_v37, 16  ;;  %v335_v50 = vmax.f32 %v290_v38, %v841_v31  ;;  %v166_v55 = vunpack.c.l.bf16 %v148_v44 }
  0x39   : > { %v611_v49 = vrot.slane %v610_v40, 4  ;;  %v430_v54 = vmax.f32 %v396_v48, %v227_v28  ;;  %v535_v57 = vsel %vm522_vm1, %v532_v7, %v534_v43  ;;  %v183_v58 = vmax.f32 %v1036_v12, %v812_v22  ;;  %v508_v40 = vld [vmem:[%s944_s13 + $0x28] sm:$0x1] }
  0x3a   : > { %v615_v52 = vrot.slane %v613_v45, 5  ;;  %v618_v53 = vrot.slane %v616_v46, 6  ;;  %v378_v59 = vrot.slane %v829_v41, 1  ;;  %v476_v60 = vrot.slane %v813_v47, 1 }
  0x3b   : > { %v494_v62 = vmax.f32 %v430_v54, %v475_v51  ;;  %v228_v63 = vrot.slane %v166_v55, 1  ;;  %v776_v0 = vrot.slane %v1051_v37, 10  ;;  %v536_v2 = vrot.slane %v166_v55, 2 }
  0x3c   : > { %v619_v61 = vor.u32 %v618_v53, %v615_v52  ;;  %v379_v1 = vsel %vm212_vm0, %v376_v36, %v378_v59  ;;  %v283_v3 = vunpack.c.l.bf16 %v1062_v56  ;;  %v477_v12 = vsel %vm212_vm0, %v474_v39, %v476_v60 }
  0x3d   : > { %v556_v7 = vmax.f32 %v494_v62, %v535_v57  ;;  %v229_v8 = vsel %vm212_vm0, %v226_v19, %v228_v63  ;;  %v397_v9 = vmax.f32 %v335_v50, %v379_v1  ;;  %v844_v13 = vunpack.c.l.bf16 %v860_v10 }
  0x3e   : > { %v620_v5 = vsel %vm602_vm11, %v611_v49, %v619_v61  ;;  %v246_v11 = vmax.f32 %v183_v58, %v229_v8  ;;  %v380_v14 = vrot.slane %v283_v3, 1  ;;  %v419_v6 = vunpack.c.h.bf16 %v148_v44 }
  0x3f   : > { %622 = vst [vmem:[%s1000_s17 + $0xc] sm:$0xf] %v620_v5  ;;  %v565_v15 = vpack.c.bf16 %v556_v7, %v556_v7  ;;  %v431_v16 = vmax.f32 %v397_v9, %v229_v8  ;;  %v453_v17 = vunpack.c.l.bf16 %v443_v4  ;;  %v537_v18 = vsel %vm522_vm1, %v534_v43, %v536_v2 }
  0x40   : > { %v291_v20 = vmax.f32 %v246_v11, %v829_v41  ;;  %v381_v19 = vsel %vm212_vm0, %v378_v59, %v380_v14  ;;  %v421_v26 = vrot.slane %v419_v6, 1  ;;  %v538_v34 = vrot.slane %v419_v6, 2 }
  0x41   : > { %v630_v21 = vrot.slane %v565_v15, 6  ;;  %v495_v22 = vmax.f32 %v431_v16, %v477_v12  ;;  %v638_v23 = vshrl.u32 %v565_v15, 16  ;;  %v641_v24 = vshll.u32 %v565_v15, 16 }
  0x42   : > { %v336_v25 = vmax.f32 %v291_v20, %v844_v13  ;;  %v478_v27 = vrot.slane %v453_v17, 1  ;;  %v422_v33 = vsel %vm212_vm0, %v228_v63, %v421_v26  ;;  %v184_v38 = vmax.f32 %v166_v55, %v813_v47 }
  0x43   : > { %v631_v28 = vsel %vm627_vm13, %v776_v0, %v630_v21  ;;  %v557_v29 = vmax.f32 %v495_v22, %v537_v18  ;;  %v640_v30 = vrot.slane %v638_v23, 6  ;;  %v643_v31 = vrot.slane %v641_v24, 7 }
  0x44   : > { %633 = vst [vmem:[%s1000_s17 + $0x10] sm:$0xf] %v631_v28  ;;  %v398_v32 = vmax.f32 %v336_v25, %v381_v19  ;;  %v479_v37 = vsel %vm212_vm0, %v476_v60, %v478_v27  ;;  %v539_v43 = vsel %vm522_vm1, %v536_v2, %v538_v34  ;;  %v247_v45 = vmax.f32 %v184_v38, %v228_v63 }
  0x45   : > { %v566_v35 = vpack.c.bf16 %v557_v29, %v557_v29  ;;  %v644_v36 = vor.u32 %v643_v31, %v640_v30  ;;  %v845_v46 = vunpack.c.h.bf16 %v860_v10  ;;  %v519_v51 = vunpack.c.l.bf16 %v508_v40 }
  0x46   : > { %v432_v39 = vmax.f32 %v398_v32, %v422_v33  ;;  %vm659_vm0 = vcmask 1040384   ;;  %v292_v47 = vmax.f32 %v247_v45, %v283_v3 }
  0x47   : > { %v647_v41 = vshrl.u32 %v566_v35, 16  ;;  %v650_v42 = vshll.u32 %v566_v35, 16  ;;  %v645_v48 = vrot.slane %v644_v36, 4  ;;  %v777_v55 = vrot.slane %v566_v35, 11  ;;  %vm661_vm4 = vmor %vm659_vm0, %vm660_vm3 }
  0x48   : > { %v496_v44 = vmax.f32 %v432_v39, %v479_v37  ;;  %v337_v56 = vmax.f32 %v292_v47, %v845_v46  ;;  %v540_v58 = vrot.slane %v519_v51, 2 }
  0x49   : > { %v649_v49 = vrot.slane %v647_v41, 6  ;;  %v652_v50 = vrot.slane %v650_v42, 7 }
  0x4a   : > { %v558_v52 = vmax.f32 %v496_v44, %v539_v43  ;;  %v399_v60 = vmax.f32 %v337_v56, %v380_v14  ;;  %v541_v63 = vsel %vm522_vm1, %v538_v34, %v540_v58 }
  0x4b   : > { %v653_v53 = vor.u32 %v652_v50, %v649_v49 }
  0x4c   : > { %v567_v54 = vpack.c.bf16 %v558_v52, %v558_v52  ;;  %v433_v62 = vmax.f32 %v399_v60, %v421_v26 }
  0x4d   : > { %v654_v57 = vsel %vm636_vm2, %v645_v48, %v653_v53 }
  0x4e   : > { %656 = vst [vmem:[%s1000_s17 + $0x14] sm:$0xf] %v654_v57  ;;  %v664_v59 = vrot.slane %v567_v54, 7  ;;  %v497_v0 = vmax.f32 %v433_v62, %v478_v27  ;;  %v672_v3 = vshrl.u32 %v567_v54, 16 }
  0x50   : > { %v665_v61 = vsel %vm661_vm4, %v777_v55, %v664_v59  ;;  %v559_v1 = vmax.f32 %v497_v0, %v541_v63  ;;  %v778_v7 = vrot.slane %v672_v3, 11 }
  0x51   : > { %667 = vst [vmem:[%s1000_s17 + $0x18] sm:$0xf] %v665_v61 }
  0x52   : > { %v568_v2 = vpack.c.bf16 %v559_v1, %v559_v1 }
  0x54   : > { %v677_v4 = vshrl.u32 %v568_v2, 16  ;;  %v680_v5 = vshll.u32 %v568_v2, 16 }
  0x56   : > { %v679_v8 = vrot.slane %v677_v4, 7 }
  0x58   : > { %v682_v9 = vor.u32 %v680_v5, %v679_v8 }
  0x5a   : > { %v683_v10 = vsel %vm670_vm7, %v778_v7, %v682_v9 }
  0x5b   : > { %685 = vst [vmem:[%s1000_s17 + $0x1c] sm:$0xf] %v683_v10 }
  0x5c PF: > { %s11_s8 = sadd.s32 1, %s908_s8   ;;  %s1102_s6 = smov %s904_s7 }
  0x5d   : > { %p8_p5 = scmp.ge.s32.totalorder %s11_s8, 4   ;;  %s1103_s7 = smov %s1105_s9 }
  0x5f   :  { %10 = sbr.rel (!%p8_p5) target bundleno = 2 (0x2), region = 54 }

// kernel: _lambda_.22
= control target key start
LH: loop header
LB: loop body
LE: loop exit
PB: predicated region body
PF: predicated region fallthrough
CT: control target
= control target key end

     0   :  { %s542_s15 = smov 0   ;;  %s544_s16 = smov 0   ;;  %s605_s0 = inlined_call_operand.vmem [shape: bf16[2,64,128], index: 0, kind: input, shape index: {}]   ;;  %s606_s1 = inlined_call_operand.vmem [shape: bf16[128,128], index: 1, kind: input, shape index: {}]   ;;  %s607_s2 = inlined_call_operand.vmem [shape: f32[1,128], index: 2, kind: input, shape index: {}]   ;;  %s608_s3 = inlined_call_operand.vmem [shape: f32[1,128], index: 3, kind: input, shape index: {}]   ;;  %s609_s4 = inlined_call_operand.vmem [shape: bf16[2,16,128], index: 4, kind: output, shape index: {}]  }
   0x1   :  { %s546_s17 = smov 0  }
   0x2 LB: > { %s26_s18 = sadd.s32 1, %s511_s16  ;;  %p408_p0 = scmp.ge.s32.totalorder %s515_s17, 1  ;;  %s515_s17 = sphi %s546_s17, %s14_s17   ;;  %s511_s16 = sphi %s544_s16, %s611_s16   ;;  %s507_s15 = sphi %s542_s15, %s610_s15  }
   0x3   : > { %p28_p1 = scmp.ge.s32.totalorder %s26_s18, 2  ;;  %p176_p2 = scmp.lt.s32.totalorder %s515_s17, 3 }
   0x5   : > { %s613_s18 = smov (%p28_p1, %s26_s18), 0  ;;  %p177_p3 = pnand %p408_p0, %p176_p2 }
   0x6   : > { %p206_p4 = scmp.lt.s32.totalorder (!%p177_p3), %s507_s15, 1 }
   0x7   : > { %180 = sbr.rel (%p177_p3) target bundleno = 185 (0xb9), region = 36 }
   0xc   : > { %v461_v0 = vld [vmem:[%s606_s1 + $0x38] sm:$0xff]  ;;  %v460_v1 = vld [vmem:[%s606_s1 + $0x30] sm:$0xff]  ;;  %v459_v2 = vld [vmem:[%s606_s1 + $0x28] sm:$0xff]  ;;  %s615_s15 = smov (!%p206_p4, %s507_s15), 1 }
   0xd   : > { %293 = vmatpush.bf16.msra.mxu0 %v461_v0  ;;  %v458_v3 = vld [vmem:[%s606_s1 + $0x20] sm:$0xff]  ;;  %v457_v4 = vld [vmem:[%s606_s1 + $0x18] sm:$0xff]  ;;  %v456_v5 = vld [vmem:[%s606_s1 + $0x10] sm:$0xff]  ;;  %s451_s7 = sshll.u32 %s615_s15, 5  ;;  %s452_s21 = sshll.u32 %s615_s15, 3 }
   0xe   : > { %v455_v6 = vld [vmem:[%s606_s1 + $0x8] sm:$0xff]  ;;  %v454_v7 = vld [vmem:[%s606_s1] sm:$0xff]  ;;  %s210_s12 = scalar_lea.vmem %s605_s0, %s451_s7  ;;  %s219_s24 = scalar_lea.vmem %s609_s4, %s452_s21 }
   0xf   : > { %v453_v8 = vld [vmem:[%s210_s12] sm:$0xff] }
  0x10   : > { %v491_v10 = vld [vmem:[%s607_s2] ss:$0 sm:$0xff] }
  0x11   : > { %294 = vmatpush.bf16.msra.mxu0 %v460_v1  ;;  %v492_v12 = vld [vmem:[%s608_s3] ss:$0 sm:$0xff] }
  0x15   : > { %295 = vmatpush.bf16.msra.mxu0 %v459_v2 }
  0x19   : > { %296 = vmatpush.bf16.msra.mxu0 %v458_v3 }
  0x1d   : > { %297 = vmatpush.bf16.msra.mxu0 %v457_v4 }
  0x21   : > { %298 = vmatpush.bf16.msra.mxu0 %v456_v5 }
  0x25   : > { %299 = vmatpush.bf16.msra.mxu0 %v455_v6 }
  0x29   : > { %300 = vmatpush.bf16.msra.mxu0 %v454_v7 }
  0x2c   : > { %301 = vmatmul.bf16.vlgmr.msra.gmra.mxu0 %v453_v8 }
  0xa9   : > { %v302_v9 = vpop.f32.mrf.mxu0 }
  0xaa   : > { %v311_v11 = vmul.f32 %v491_v10, %v302_v9 }
  0xac   : > { %v317_v15 = vadd.f32 %v492_v12, %v311_v11 }
  0xb1   : > { %v304_v13 = vpop.f32.mrf.mxu0 }
  0xb2   : > { %v312_v14 = vmul.f32 %v491_v10, %v304_v13 }
  0xb4   : > { %v318_v16 = vadd.f32 %v492_v12, %v312_v14 }
  0xb6   : > { %v465_v17 = vpack.c.bf16 %v318_v16, %v317_v15 }
  0xb8   : > { %466 = vst [vmem:[%s219_s24] sm:$0xff] %v465_v17  }
  0xb9 PF: > { %s14_s17 = sadd.s32 1, %s515_s17   ;;  %s610_s15 = smov %s511_s16 }
  0xba   : > { %p11_p5 = scmp.ge.s32.totalorder %s14_s17, 4   ;;  %s611_s16 = smov %s613_s18 }
  0xbc   :  { %13 = sbr.rel (!%p11_p5) target bundleno = 2 (0x2), region = 66 }

// kernel: _lambda_.19
= control target key start
LH: loop header
LB: loop body
LE: loop exit
PB: predicated region body
PF: predicated region fallthrough
CT: control target
= control target key end

     0   :  { %s2329_s15 = smov 0   ;;  %s2331_s16 = smov 0   ;;  %s2901_s0 = inlined_call_operand.vmem [shape: bf16[2,104,128], index: 0, kind: input, shape index: {}]   ;;  %s2902_s1 = inlined_call_operand.vmem [shape: bf16[1152,128], index: 1, kind: input, shape index: {}]   ;;  %s2903_s2 = inlined_call_operand.vmem [shape: f32[1,128], index: 2, kind: input, shape index: {}]   ;;  %s2904_s3 = inlined_call_operand.vmem [shape: f32[1,128], index: 3, kind: input, shape index: {}]   ;;  %s2905_s4 = inlined_call_operand.vmem [shape: bf16[2,64,128], index: 4, kind: output, shape index: {}]  }
   0x1   :  { %s2333_s17 = smov 0  }
   0x2 LB: > { %s26_s18 = sadd.s32 1, %s2298_s16  ;;  %p1772_p0 = scmp.ge.s32.totalorder %s2302_s17, 1  ;;  %s2302_s17 = sphi %s2333_s17, %s14_s17   ;;  %s2298_s16 = sphi %s2331_s16, %s2913_s16   ;;  %s2294_s15 = sphi %s2329_s15, %s2912_s15  }
   0x3   : > { %p28_p1 = scmp.ge.s32.totalorder %s26_s18, 2  ;;  %p176_p2 = scmp.lt.s32.totalorder %s2302_s17, 3 }
   0x5   : > { %s2915_s18 = smov (%p28_p1, %s26_s18), 0  ;;  %p177_p3 = pnand %p1772_p0, %p176_p2 }
   0x6   : > { %p206_p4 = scmp.lt.s32.totalorder (!%p177_p3), %s2294_s15, 1 }
   0x7   : > { %180 = sbr.rel (%p177_p3) target bundleno = 381 (0x17d), region = 36 }
   0xc   : > { %v2155_v0 = vld [vmem:[%s2902_s1 + $0x78] sm:$0xff]  ;;  %v2154_v1 = vld [vmem:[%s2902_s1 + $0x70] sm:$0xff]  ;;  %s2917_s15 = smov (!%p206_p4, %s2294_s15), 1  ;;  %v2153_v4 = vld [vmem:[%s2902_s1 + $0x68] sm:$0xff]  ;;  %vm289_vm0 = vsmask.f32 7424 }
   0xd   : > { %382 = vmatpush.bf16.msra.mxu0 %v2155_v0  ;;  %2232 = vmatpush.bf16.msra.mxu1 %v2155_v0  ;;  %v2176_v2 = vld [vmem:[%s2902_s1 + $0xf8] sm:$0xff]  ;;  %v2175_v3 = vld [vmem:[%s2902_s1 + $0xf0] sm:$0xff]  ;;  %s2248_s29 = smul.u32 52, %s2917_s15  ;;  %v2174_v5 = vld [vmem:[%s2902_s1 + $0xe8] sm:$0xff]  ;;  %vm526_vm1 = vcmask 1046528   ;;  %vm1012_vm4 = vcmask 1045504  }
   0xe   : > { %2233 = vmatpush.bf16.msra.mxu2 %v2155_v0  ;;  %746 = vmatpush.bf16.msra.mxu3 %v2176_v2  ;;  %v2152_v6 = vld [vmem:[%s2902_s1 + $0x60] sm:$0xff]  ;;  %v2151_v10 = vld [vmem:[%s2902_s1 + $0x58] sm:$0xff]  ;;  %v2150_v17 = vld [vmem:[%s2902_s1 + $0x50] sm:$0xff]  ;;  %vm845_vm2 = vsmask.f32 6400  ;;  %vm1475_vm5 = vcmask 1044480  }
   0xf   : > { %s2374_s10 = scalar_lea.vmem %s2901_s0, %s2248_s29  ;;  %v2173_v9 = vld [vmem:[%s2902_s1 + $0xe0] sm:$0xff]  ;;  %v2172_v13 = vld [vmem:[%s2902_s1 + $0xd8] sm:$0xff]  ;;  %v2171_v19 = vld [vmem:[%s2902_s1 + $0xd0] sm:$0xff]  ;;  %vm1304_vm3 = vsmask.f32 5376  ;;  %s2136_s22 = sshll.u32 %s2917_s15, 5 }
  0x10   : > { %v2377_v7 = vld [vmem:[%s2374_s10 + $0x20] sm:$0xff]   ;;  %v2392_v12 = vld [vmem:[%s2374_s10 + $0x10] sm:$0xff]  ;;  %v2398_v14 = vld [vmem:[%s2374_s10 + $0x8] sm:$0xff]  ;;  %s2832_s25 = scalar_lea.vmem %s2905_s4, %s2136_s22  ;;  %vm1621_vm6 = vcmask 1042432   ;;  %vm1622_vm7 = vcmask 1046532   ;;  %vm1633_vm9 = vcmask 1041408  }
  0x11   : > { %383 = vmatpush.bf16.msra.mxu0 %v2154_v1  ;;  %2234 = vmatpush.bf16.msra.mxu1 %v2154_v1  ;;  %v2380_v8 = vld [vmem:[%s2374_s10 + $0x20] sm:$0xf]   ;;  %v2402_v16 = vld [vmem:[%s2374_s10 + $0x18] sm:$0xff]  ;;  %v306_v18 = vshll.u32 %v2392_v12, 16  ;;  %v298_v22 = vshll.u32 %v2398_v14, 16  ;;  %v2149_v24 = vld [vmem:[%s2902_s1 + $0x48] sm:$0xff] }
  0x12   : > { %2235 = vmatpush.bf16.msra.mxu2 %v2154_v1  ;;  %747 = vmatpush.bf16.msra.mxu3 %v2175_v3  ;;  %v2389_v11 = vld [vmem:[%s2374_s10] sm:$0xff]   ;;  %v314_v23 = vshll.u32 %v2402_v16, 16  ;;  %v310_v26 = vshrl.u32 %v2392_v12, 16  ;;  %v322_v27 = vshll.u32 %v2377_v7, 16  ;;  %v2164_v29 = vld [vmem:[%s2374_s10 + $0x4] sm:$0xf0]  ;;  %vm2842_vm8 = vmor %vm1621_vm6, %vm1622_vm7 }
  0x13   : > { %v293_v15 = vshll.u32 %v2389_v11, 16  ;;  %v291_v20 = vshrl.u32 %v2389_v11, 16  ;;  %v2417_v25 = vrot.slane %v306_v18, 1  ;;  %v1886_v28 = vld [vmem:[%s2374_s10 + $0x4] sm:$0xe]  ;;  %v2170_v30 = vld [vmem:[%s2902_s1 + $0xc8] sm:$0xff] }
  0x14   : > { %v300_v32 = vrot.slane %v298_v22, 1  ;;  %v316_v33 = vrot.slane %v314_v23, 1  ;;  %v2148_v34 = vld [vmem:[%s2902_s1 + $0x40] sm:$0xff]  ;;  %v2430_v36 = vrot.slane %v322_v27, 1  ;;  %v326_v37 = vshrl.u32 %v2377_v7, 16  ;;  %v2434_v38 = vld [vmem:[%s2374_s10 + $0xc] sm:$0xff] }
  0x15   : > { %384 = vmatpush.bf16.msra.mxu0 %v2153_v4  ;;  %2236 = vmatpush.bf16.msra.mxu1 %v2153_v4  ;;  %v295_v21 = vrot.slane %v293_v15, 1  ;;  %v312_v35 = vor.u32 %v310_v26, %v2417_v25  ;;  %v1887_v39 = vor.u32 %v2164_v29, %v1886_v28  ;;  %v2147_v40 = vld [vmem:[%s2902_s1 + $0x38] sm:$0xff]  ;;  %v2169_v46 = vld [vmem:[%s2902_s1 + $0xc0] sm:$0xff]  ;;  %v685_v48 = vrot.slane %v2434_v38, 1  ;;  %v2146_v49 = vld [vmem:[%s2902_s1 + $0x30] sm:$0xff] }
  0x16   : > { %2237 = vmatpush.bf16.msra.mxu2 %v2153_v4  ;;  %748 = vmatpush.bf16.msra.mxu3 %v2174_v5  ;;  %v2163_v41 = vld [vmem:[%s2902_s1 + $0xb8] sm:$0xff]  ;;  %v328_v45 = vor.u32 %v326_v37, %v2430_v36  ;;  %v2162_v51 = vld [vmem:[%s2902_s1 + $0xb0] sm:$0xff]  ;;  %v2145_v54 = vld [vmem:[%s2902_s1 + $0x28] sm:$0xff]  ;;  %v302_v58 = vshrl.u32 %v2398_v14, 16  ;;  %v318_v59 = vshrl.u32 %v2402_v16, 16  ;;  %vm1634_vm10 = vcmask 1045508  }
  0x17   : > { %v296_v31 = vor.u32 %v295_v21, %v291_v20  ;;  %v2188_v42 = vld [vmem:[%s2902_s1 + $0x138] sm:$0xff]  ;;  %v317_v44 = vsel %vm289_vm0, %v312_v35, %v316_v33  ;;  %v684_v47 = vrot.slane %v1887_v39, 1  ;;  %v2187_v52 = vld [vmem:[%s2902_s1 + $0x130] sm:$0xff]  ;;  %v2161_v56 = vld [vmem:[%s2902_s1 + $0xa8] sm:$0xff]  ;;  %vm1645_vm12 = vcmask 1040384  }
  0x18   : > { %v2216_v50 = vld [vmem:[%s2902_s1 + $0x1f8] sm:$0xff]  ;;  %v2215_v55 = vld [vmem:[%s2902_s1 + $0x1f0] sm:$0xff]  ;;  %v2186_v57 = vld [vmem:[%s2902_s1 + $0x128] sm:$0xff]  ;;  %v304_v3 = vor.u32 %v302_v58, %v300_v32  ;;  %v320_v4 = vor.u32 %v318_v59, %v316_v33  ;;  %v532_v58 = vrot.slane %v2402_v16, 1  ;;  %v534_v59 = vrot.slane %v2377_v7, 1 }
  0x19   : > { %385 = vmatpush.bf16.msra.mxu0 %v2152_v6  ;;  %2238 = vmatpush.bf16.msra.mxu1 %v2152_v6  ;;  %v301_v43 = vsel %vm289_vm0, %v296_v31, %v300_v32  ;;  %v686_v53 = vsel %vm526_vm1, %v684_v47, %v685_v48  ;;  %v790_v60 = vld [vmem:[%s2374_s10 + $0x4] sm:$0xe]  ;;  %v2483_v61 = vld [vmem:[%s2374_s10 + $0x8] sm:$0xff]   ;;  %v2496_v5 = vld [vmem:[%s2374_s10 + $0x14] sm:$0xff]  ;;  %vm1646_vm13 = vcmask 1044484  }
  0x1a   : > { %2239 = vmatpush.bf16.msra.mxu2 %v2152_v6  ;;  %749 = vmatpush.bf16.msra.mxu3 %v2173_v9  ;;  %v2144_v62 = vld [vmem:[%s2902_s1 + $0x20] sm:$0xff]  ;;  %v828_v1 = vunpack.c.l.b16 %v790_v60  ;;  %v829_v2 = vunpack.c.l.b16 %v2483_v61  ;;  %v2143_v6 = vld [vmem:[%s2902_s1 + $0x18] sm:$0xff]  ;;  %v309_v15 = vsel %vm289_vm0, %v304_v3, %v2417_v25  ;;  %v2514_v18 = vld [vmem:[%s2374_s10 + $0xc] sm:$0xff] }
  0x1b   : > { %v2160_v63 = vld [vmem:[%s2902_s1 + $0xa0] sm:$0xff]  ;;  %v2159_v9 = vld [vmem:[%s2902_s1 + $0x98] sm:$0xff]  ;;  %v2142_v20 = vld [vmem:[%s2902_s1 + $0x10] sm:$0xff]  ;;  %v855_v28 = vshrl.u32 %v2514_v18, 16  ;;  %v858_v29 = vshll.u32 %v2514_v18, 16 }
  0x1c   : > { %v2185_v0 = vld [vmem:[%s2902_s1 + $0x120] sm:$0xff]  ;;  %v2158_v21 = vld [vmem:[%s2902_s1 + $0x90] sm:$0xff]  ;;  %v2214_v26 = vld [vmem:[%s2902_s1 + $0x1e8] sm:$0xff] }
  0x1d   : > { %386 = vmatpush.bf16.msra.mxu0 %v2151_v10  ;;  %2240 = vmatpush.bf16.msra.mxu1 %v2151_v10  ;;  %v2183_v22 = vld [vmem:[%s2902_s1 + $0x110] sm:$0xff]  ;;  %v2229_v23 = vld [vmem:[%s2374_s10] sm:$0xf0]  ;;  %v2141_v31 = vld [vmem:[%s2902_s1 + $0x8] sm:$0xff]  ;;  %v857_v37 = vrot.slane %v855_v28, 1  ;;  %v860_v38 = vrot.slane %v858_v29, 2 }
  0x1e   : > { %2241 = vmatpush.bf16.msra.mxu2 %v2151_v10  ;;  %750 = vmatpush.bf16.msra.mxu3 %v2172_v13  ;;  %v2184_v10 = vld [vmem:[%s2902_s1 + $0x118] sm:$0xff]  ;;  %v839_v13 = vpack.c.b16 %v829_v2, %v828_v1  ;;  %v2157_v32 = vld [vmem:[%s2902_s1 + $0x88] sm:$0xff]  ;;  %v2140_v39 = vld [vmem:[%s2902_s1] sm:$0xff] }
  0x1f   : > { %v2182_v33 = vld [vmem:[%s2902_s1 + $0x108] sm:$0xff]  ;;  %v861_v47 = vor.u32 %v860_v38, %v857_v37  ;;  %v2212_v3 = vld [vmem:[%s2902_s1 + $0x1d8] sm:$0xff]  ;;  %v2211_v28 = vld [vmem:[%s2902_s1 + $0x1d0] sm:$0xff] }
  0x20   : > { %v847_v25 = vshrl.u32 %v839_v13, 16  ;;  %v850_v27 = vshll.u32 %v839_v13, 16  ;;  %v2222_v1 = vld [vmem:[%s2902_s1 + $0x228] sm:$0xff]  ;;  %v2221_v13 = vld [vmem:[%s2902_s1 + $0x220] sm:$0xff]  ;;  %v2191_v29 = vld [vmem:[%s2902_s1 + $0x150] sm:$0xff] }
  0x21   : > { %387 = vmatpush.bf16.msra.mxu0 %v2150_v17  ;;  %2242 = vmatpush.bf16.msra.mxu1 %v2150_v17  ;;  %vm2852_vm11 = vmor %vm1633_vm9, %vm1634_vm10 }
  0x22   : > { %2243 = vmatpush.bf16.msra.mxu2 %v2150_v17  ;;  %751 = vmatpush.bf16.msra.mxu3 %v2171_v19  ;;  %v325_v17 = vsel %vm289_vm0, %v320_v4, %v2430_v36  ;;  %v687_v19 = vrot.slane %v2496_v5, 1  ;;  %v849_v35 = vrot.slane %v847_v25, 1  ;;  %v852_v36 = vrot.slane %v850_v27, 2  ;;  %v2220_v27 = vld [vmem:[%s2902_s1 + $0x218] sm:$0xff]  ;;  %vm2862_vm14 = vmor %vm1645_vm12, %vm1646_vm13 }
  0x23   : > { %v2612_v4 = vsel %vm526_vm1, %v532_v58, %v534_v59 }
  0x25   : > { %388 = vmatpush.bf16.msra.mxu0 %v2149_v24  ;;  %2244 = vmatpush.bf16.msra.mxu1 %v2149_v24 }
  0x26   : > { %2245 = vmatpush.bf16.msra.mxu2 %v2149_v24  ;;  %752 = vmatpush.bf16.msra.mxu3 %v2170_v30  ;;  %v2230_v24 = vld [vmem:[%s2374_s10] sm:$0xe]  ;;  %v688_v30 = vsel %vm526_vm1, %v685_v48, %v687_v19  ;;  %v2224_v48 = vld [vmem:[%s2902_s1 + $0x238] sm:$0xff] }
  0x29   : > { %389 = vmatpush.bf16.msra.mxu0 %v2148_v34  ;;  %2246 = vmatpush.bf16.msra.mxu1 %v2148_v34 }
  0x2a   : > { %2247 = vmatpush.bf16.msra.mxu2 %v2148_v34  ;;  %753 = vmatpush.bf16.msra.mxu3 %v2169_v46  ;;  %v2231_v34 = vor.u32 %v2230_v24, %v2229_v23  ;;  %v853_v46 = vor.u32 %v852_v36, %v849_v35  ;;  %v2634_v24 = vld [vmem:[%s2374_s10 + $0x1c] sm:$0xff] }
  0x2c   : > { %390 = vmatmul.bf16.vlgmr.msra.gmra.mxu0 %v301_v43  ;;  %400 = vmatmul.bf16.vlgmr.msra.gmra.mxu1 %v317_v44  ;;  %v2181_v43 = vld [vmem:[%s2902_s1 + $0x100] sm:$0xff]  ;;  %v2208_v44 = vld [vmem:[%s2902_s1 + $0x1b8] sm:$0xff] }
  0x2d   : > { %472 = vmatpush.bf16.msrb.mxu1 %v2147_v40  ;;  %948 = vmatpush.bf16.msrb.mxu0 %v2188_v42  ;;  %v2156_v40 = vld [vmem:[%s2902_s1 + $0x80] sm:$0xff]  ;;  %v528_v42 = vrot.slane %v2398_v14, 1 }
  0x2e   : > { %589 = vmatpush.bf16.msrb.mxu2 %v2163_v41  ;;  %1411 = vmatpush.bf16.msrb.mxu3 %v2216_v50  ;;  %v527_v41 = vrot.slane %v2231_v34, 1  ;;  %v2210_v34 = vld [vmem:[%s2902_s1 + $0x1c8] sm:$0xff] }
  0x2f   : > { %410 = vmatmul.bf16.vlgmr.msra.gmra.mxu2 %v328_v45  ;;  %754 = vmatmul.bf16.vlgmr.msra.gmra.mxu3 %v686_v53  ;;  %v2196_v45 = vld [vmem:[%s2902_s1 + $0x178] sm:$0xff]  ;;  %v2195_v53 = vld [vmem:[%s2902_s1 + $0x170] sm:$0xff] }
  0x30   : > { %v529_v50 = vsel %vm526_vm1, %v527_v41, %v528_v42 }
  0x31   : > { %473 = vmatpush.bf16.msrb.mxu1 %v2146_v49  ;;  %949 = vmatpush.bf16.msrb.mxu0 %v2187_v52  ;;  %v2567_v49 = vld [vmem:[%s2374_s10 + $0x1c] sm:$0xff]  ;;  %v2207_v52 = vld [vmem:[%s2902_s1 + $0x1b0] sm:$0xff] }
  0x32   : > { %590 = vmatpush.bf16.msrb.mxu2 %v2162_v51  ;;  %1412 = vmatpush.bf16.msrb.mxu3 %v2215_v55  ;;  %v862_v51 = vsel %vm845_vm2, %v853_v46, %v861_v47  ;;  %v689_v55 = vrot.slane %v2567_v49, 1  ;;  %v2209_v49 = vld [vmem:[%s2902_s1 + $0x1c0] sm:$0xff] }
  0x35   : > { %474 = vmatpush.bf16.msrb.mxu1 %v2145_v54  ;;  %950 = vmatpush.bf16.msrb.mxu0 %v2186_v57  ;;  %v2578_v54 = vld [vmem:[%s2374_s10 + $0x14] sm:$0xff]  ;;  %v2213_v57 = vld [vmem:[%s2902_s1 + $0x1e0] sm:$0xff] }
  0x36   : > { %591 = vmatpush.bf16.msrb.mxu2 %v2161_v56  ;;  %1413 = vmatpush.bf16.msrb.mxu3 %v2214_v26  ;;  %v2223_v56 = vld [vmem:[%s2902_s1 + $0x230] sm:$0xff]  ;;  %v864_v60 = vshrl.u32 %v2578_v54, 16 }
  0x37   : > { %v2203_v26 = vld [vmem:[%s2902_s1 + $0x190] sm:$0xff] }
  0x38   : > { %v866_v5 = vrot.slane %v864_v60, 1 }
  0x39   : > { %475 = vmatpush.bf16.msrb.mxu1 %v2144_v62  ;;  %951 = vmatpush.bf16.msrb.mxu0 %v2185_v0  ;;  %v867_v62 = vshll.u32 %v2578_v54, 16  ;;  %v2194_v0 = vld [vmem:[%s2902_s1 + $0x168] sm:$0xff] }
  0x3a   : > { %592 = vmatpush.bf16.msrb.mxu2 %v2160_v63  ;;  %v2206_v63 = vld [vmem:[%s2902_s1 + $0x1a8] sm:$0xff]  ;;  %1414 = vmatpush.bf16.msrb.mxu3 %v2213_v57 }
  0x3c   : > { %395 = vmatmul.bf16.gmra.mxu0 %v309_v15  ;;  %405 = vmatmul.bf16.gmra.mxu1 %v325_v17  ;;  %v530_v15 = vrot.slane %v2392_v12, 1 }
  0x3d   : > { %476 = vmatpush.bf16.msrb.mxu1 %v2143_v6  ;;  %952 = vmatpush.bf16.msrb.mxu0 %v2184_v10  ;;  %v869_v6 = vrot.slane %v867_v62, 2  ;;  %v2193_v10 = vld [vmem:[%s2902_s1 + $0x160] sm:$0xff] }
  0x3e   : > { %593 = vmatpush.bf16.msrb.mxu2 %v2159_v9  ;;  %v2205_v9 = vld [vmem:[%s2902_s1 + $0x1a0] sm:$0xff]  ;;  %1415 = vmatpush.bf16.msrb.mxu3 %v2212_v3  ;;  %v533_v38 = vsel %vm526_vm1, %v530_v15, %v532_v58 }
  0x3f   : > { %759 = vmatmul.bf16.gmra.mxu3 %v688_v30  ;;  %v870_v17 = vor.u32 %v869_v6, %v866_v5  ;;  %v873_v30 = vshrl.u32 %v2634_v24, 16  ;;  %v2217_v3 = vld [vmem:[%s2902_s1 + $0x200] sm:$0xff] }
  0x41   : > { %477 = vmatpush.bf16.msrb.mxu1 %v2142_v20  ;;  %953 = vmatpush.bf16.msrb.mxu0 %v2183_v22  ;;  %v2168_v20 = vld [vmem:[%s2374_s10 + $0x24] sm:$0xff]  ;;  %v531_v22 = vsel %vm526_vm1, %v528_v42, %v530_v15  ;;  %v871_v23 = vsel %vm845_vm2, %v861_v47, %v870_v17  ;;  %v875_v35 = vrot.slane %v873_v30, 1 }
  0x42   : > { %594 = vmatpush.bf16.msrb.mxu2 %v2158_v21  ;;  %v2192_v21 = vld [vmem:[%s2902_s1 + $0x158] sm:$0xff]  ;;  %v691_v25 = vrot.slane %v2168_v20, 1  ;;  %1416 = vmatpush.bf16.msrb.mxu3 %v2211_v28  ;;  %v2201_v47 = vld [vmem:[%s2902_s1 + $0x180] sm:$0xff] }
  0x45   : > { %478 = vmatpush.bf16.msrb.mxu1 %v2141_v31  ;;  %954 = vmatpush.bf16.msrb.mxu0 %v2182_v33  ;;  %v876_v31 = vshll.u32 %v2634_v24, 16  ;;  %v2219_v33 = vld [vmem:[%s2902_s1 + $0x210] sm:$0xff] }
  0x46   : > { %595 = vmatpush.bf16.msrb.mxu2 %v2157_v32  ;;  %v692_v32 = vsel %vm526_vm1, %v689_v55, %v691_v25  ;;  %1417 = vmatpush.bf16.msrb.mxu3 %v2210_v34 }
  0x47   : > { %v878_v36 = vrot.slane %v876_v31, 2 }
  0x49   : > { %479 = vmatpush.bf16.msrb.mxu1 %v2140_v39  ;;  %955 = vmatpush.bf16.msrb.mxu0 %v2181_v43  ;;  %v879_v37 = vor.u32 %v878_v36, %v875_v35  ;;  %v2665_v39 = vld [vmem:[%s2374_s10 + $0x24] sm:$0xff]  ;;  %v1160_v43 = vunpack.c.h.b16 %v2483_v61 }
  0x4a   : > { %596 = vmatpush.bf16.msrb.mxu2 %v2156_v40  ;;  %v1121_v40 = vld [vmem:[%s2374_s10 + $0x8] sm:$0xc]  ;;  %v885_v46 = vshll.u32 %v2665_v39, 16  ;;  %1418 = vmatpush.bf16.msrb.mxu3 %v2209_v49  ;;  %v1016_v49 = vrot.slane %v2578_v54, 2 }
  0x4b   : > { %v880_v41 = vsel %vm845_vm2, %v870_v17, %v879_v37  ;;  %v1159_v42 = vunpack.c.l.b16 %v1121_v40  ;;  %v2710_v17 = vld [vmem:[%s2374_s10 + $0x18] sm:$0xff] }
  0x4c   : > { %480 = vmatmul.bf16.vlgmr.msrb.gmra.mxu1 %v2389_v11  ;;  %956 = vmatmul.bf16.vlgmr.msrb.gmra.mxu0 %v862_v51  ;;  %v690_v11 = vsel %vm526_vm1, %v687_v19, %v689_v55  ;;  %v2204_v19 = vld [vmem:[%s2902_s1 + $0x198] sm:$0xff] }
  0x4d   : > { %1077 = vmatpush.bf16.msra.mxu1 %v2196_v45  ;;  %1540 = vmatpush.bf16.msra.mxu0 %v2224_v48  ;;  %v882_v45 = vshrl.u32 %v2665_v39, 16  ;;  %v2218_v48 = vld [vmem:[%s2902_s1 + $0x208] sm:$0xff]  ;;  %v2693_v51 = vpack.c.b16 %v1160_v43, %v1159_v42 }
  0x4e   : > { %1240 = vmatpush.bf16.msra.mxu2 %v2208_v44  ;;  %v2190_v44 = vld [vmem:[%s2902_s1 + $0x148] sm:$0xff] }
  0x4f   : > { %597 = vmatmul.bf16.vlgmr.msrb.gmra.mxu2 %v529_v50  ;;  %764 = vmatmul.bf16.gmra.mxu3 %v690_v11  ;;  %v2689_v50 = vld [vmem:[%s2374_s10 + $0x10] sm:$0xff]  ;;  %v1306_v55 = vshrl.u32 %v2693_v51, 16 }
  0x50   : > { %v1314_v57 = vshrl.u32 %v2689_v50, 16  ;;  %v1317_v58 = vshll.u32 %v2689_v50, 16  ;;  %v1177_v35 = vrot.slane %v2689_v50, 2 }
  0x51   : > { %1078 = vmatpush.bf16.msra.mxu1 %v2195_v53  ;;  %1541 = vmatpush.bf16.msra.mxu0 %v2223_v56  ;;  %v887_v53 = vrot.slane %v885_v46, 2  ;;  %v1309_v56 = vshll.u32 %v2693_v51, 16  ;;  %v1308_v62 = vrot.slane %v1306_v55, 2 }
  0x52   : > { %1241 = vmatpush.bf16.msra.mxu2 %v2207_v52  ;;  %v884_v52 = vrot.slane %v882_v45, 1  ;;  %v1319_v11 = vrot.slane %v1317_v58, 3 }
  0x54   : > { %v888_v60 = vor.u32 %v887_v53, %v884_v52  ;;  %v1284_v53 = vld [vmem:[%s2374_s10 + $0x30] sm:$0x3] }
  0x55   : > { %1079 = vmatpush.bf16.msra.mxu1 %v2194_v0  ;;  %1542 = vmatpush.bf16.msra.mxu0 %v2222_v1  ;;  %v1316_v0 = vrot.slane %v1314_v57, 2  ;;  %v800_v1 = vld [vmem:[%s2374_s10 + $0x2c] sm:$0x1] }
  0x56   : > { %1242 = vmatpush.bf16.msra.mxu2 %v2206_v63  ;;  %v1311_v63 = vrot.slane %v1309_v56, 3  ;;  %v889_v5 = vsel %vm845_vm2, %v879_v37, %v888_v60  ;;  %v838_v6 = vunpack.c.l.b16 %v800_v1  ;;  %v1014_v37 = vrot.slane %v2514_v18, 2  ;;  %v2741_v18 = vld [vmem:[%s2374_s10 + $0x28] sm:$0xff] }
  0x57   : > { %v1341_v46 = vshrl.u32 %v2741_v18, 16 }
  0x58   : > { %v1017_v57 = vsel %vm1012_vm4, %v1014_v37, %v1016_v49 }
  0x59   : > { %1080 = vmatpush.bf16.msra.mxu1 %v2193_v10  ;;  %1543 = vmatpush.bf16.msra.mxu0 %v2221_v13  ;;  %v1320_v10 = vor.u32 %v1319_v11, %v1316_v0  ;;  %v2706_v13 = vpack.c.b16 %v838_v6, %v838_v6 }
  0x5a   : > { %1243 = vmatpush.bf16.msra.mxu2 %v2205_v9  ;;  %v1312_v9 = vor.u32 %v1311_v63, %v1308_v62  ;;  %v1302_v62 = vunpack.c.l.b16 %v1284_v53 }
  0x5b   : > { %v891_v20 = vshll.u32 %v2706_v13, 16 }
  0x5c   : > { %485 = vmatmul.bf16.gmra.mxu1 %v2398_v14  ;;  %961 = vmatmul.bf16.gmra.mxu0 %v871_v23  ;;  %v2202_v14 = vld [vmem:[%s2902_s1 + $0x188] sm:$0xff]  ;;  %v1321_v15 = vsel %vm1304_vm3, %v1312_v9, %v1320_v10  ;;  %v2755_v63 = vpack.c.b16 %v1302_v62, %v1302_v62  ;;  %v1018_v9 = vrot.slane %v2634_v24, 2 }
  0x5d   : > { %1081 = vmatpush.bf16.msra.mxu1 %v2192_v21  ;;  %1544 = vmatpush.bf16.msra.mxu0 %v2220_v27  ;;  %v1323_v21 = vshrl.u32 %v2710_v17, 16  ;;  %v992_v27 = vld [vmem:[%s2374_s10 + $0x4] sm:$0xc] }
  0x5e   : > { %1244 = vmatpush.bf16.msra.mxu2 %v2204_v19  ;;  %v2291_v19 = vld [vmem:[%s2374_s10 + $0x20] sm:$0x70]  ;;  %v1010_v30 = vunpack.c.l.b16 %v992_v27  ;;  %v1350_v1 = vshrl.u32 %v2755_v63, 16 }
  0x5f   : > { %602 = vmatmul.bf16.gmra.mxu2 %v531_v22  ;;  %769 = vmatmul.bf16.gmra.mxu3 %v692_v32  ;;  %v893_v22 = vrot.slane %v891_v20, 2  ;;  %v1325_v23 = vrot.slane %v1323_v21, 2 }
  0x61   : > { %1082 = vmatpush.bf16.msra.mxu1 %v2191_v29  ;;  %1545 = vmatpush.bf16.msra.mxu0 %v2219_v33  ;;  %v1455_v29 = vld [vmem:[%s2374_s10 + $0x8] sm:$0x8]  ;;  %v1011_v33 = vpack.c.b16 %v829_v2, %v1010_v30  ;;  %v1477_v2 = vrot.slane %v2689_v50, 3  ;;  %v1343_v50 = vrot.slane %v1341_v46, 2  ;;  %v1022_v46 = vrot.slane %v2706_v13, 2 }
  0x62   : > { %1245 = vmatpush.bf16.msra.mxu2 %v2203_v26  ;;  %v894_v26 = vsel %vm845_vm2, %v888_v60, %v893_v22  ;;  %v1473_v31 = vunpack.c.l.b16 %v1455_v29 }
  0x63   : > { %v1013_v36 = vrot.slane %v1011_v33, 2  ;;  %v1131_v33 = vld [vmem:[%s2374_s10 + $0x30] sm:$0x1] }
  0x65   : > { %1083 = vmatpush.bf16.msra.mxu1 %v2190_v44  ;;  %1546 = vmatpush.bf16.msra.mxu0 %v2218_v48  ;;  %v1015_v42 = vsel %vm1012_vm4, %v1013_v36, %v1014_v37  ;;  %v1179_v48 = vrot.slane %v2710_v17, 2  ;;  %v1169_v36 = vunpack.c.l.b16 %v1131_v33 }
  0x66   : > { %1246 = vmatpush.bf16.msra.mxu2 %v2202_v14  ;;  %v2724_v14 = vld [vmem:[%s2374_s10 + $0x20] sm:$0xff] }
  0x67   : > { %v1332_v34 = vshrl.u32 %v2724_v14, 16  ;;  %v1335_v7 = vshll.u32 %v2724_v14, 16  ;;  %v1180_v52 = vsel %vm1012_vm4, %v1177_v35, %v1179_v48 }
  0x69   : > { %1547 = vmatpush.bf16.msra.mxu0 %v2217_v3  ;;  %v1334_v40 = vrot.slane %v1332_v34, 2  ;;  %v1353_v3 = vshll.u32 %v2755_v63, 16 }
  0x6a   : > { %1247 = vmatpush.bf16.msra.mxu2 %v2201_v47  ;;  %v1344_v47 = vshll.u32 %v2741_v18, 16 }
  0x6c   : > { %490 = vmatmul.bf16.gmra.mxu1 %v2392_v12  ;;  %966 = vmatmul.bf16.gmra.mxu0 %v880_v41  ;;  %v2189_v12 = vld [vmem:[%s2902_s1 + $0x140] sm:$0xff]  ;;  %v1337_v41 = vrot.slane %v1335_v7, 3 }
  0x6d   : > { %1084 = vmatpush.bf16.msra.mxu1 %v2189_v12  ;;  %v1479_v12 = vrot.slane %v2710_v17, 3 }
  0x6e   : > { %v1338_v44 = vor.u32 %v1337_v41, %v1334_v40 }
  0x6f   : > { %607 = vmatmul.bf16.gmra.mxu2 %v533_v38  ;;  %774 = vmatmul.bf16.gmra.mxu3 %v691_v25  ;;  %v2278_v25 = vor.u32 %v2291_v19, %v2380_v8  ;;  %v1474_v8 = vpack.c.b16 %v1160_v43, %v1473_v31  ;;  %v1480_v58 = vsel %vm1475_vm5, %v1477_v2, %v1479_v12  ;;  %v1020_v31 = vrot.slane %v2665_v39, 2 }
  0x70   : > { %v1175_v39 = vpack.c.b16 %v1169_v36, %v1169_v36 }
  0x71   : > { %v1476_v38 = vrot.slane %v1474_v8, 3  ;;  %v1021_v7 = vsel %vm1012_vm4, %v1018_v9, %v1020_v31 }
  0x73   : > { %v1478_v43 = vsel %vm1475_vm5, %v1476_v38, %v1477_v2 }
  0x7c   : > { %495 = vmatmul.bf16.gmra.mxu1 %v2402_v16  ;;  %971 = vmatmul.bf16.gmra.mxu0 %v889_v5  ;;  %v1181_v5 = vrot.slane %v2724_v14, 2 }
  0x7e   : > { %v1182_v19 = vsel %vm1012_vm4, %v1179_v48, %v1181_v5 }
  0x7f   : > { %612 = vmatmul.bf16.gmra.mxu2 %v2612_v4  ;;  %1419 = vmatmul.bf16.vlgmr.msrb.gmra.mxu3 %v1321_v15  ;;  %v1326_v4 = vshll.u32 %v2710_v17, 16  ;;  %v1352_v15 = vrot.slane %v1350_v1, 2  ;;  %v1355_v17 = vrot.slane %v1353_v3, 3 }
  0x81   : > { %v1328_v16 = vrot.slane %v1326_v4, 3  ;;  %v1019_v4 = vsel %vm1012_vm4, %v1016_v49, %v1018_v9 }
  0x83   : > { %v1329_v28 = vor.u32 %v1328_v16, %v1325_v23  ;;  %v1356_v23 = vor.u32 %v1355_v17, %v1352_v15 }
  0x85   : > { %v1330_v32 = vsel %vm1304_vm3, %v1320_v10, %v1329_v28  ;;  %v1339_v45 = vsel %vm1304_vm3, %v1329_v28, %v1338_v44  ;;  %v1481_v10 = vrot.slane %v2724_v14, 3  ;;  %v1183_v28 = vrot.slane %v2741_v18, 2 }
  0x87   : > { %v1482_v22 = vsel %vm1475_vm5, %v1479_v12, %v1481_v10  ;;  %v1184_v14 = vsel %vm1012_vm4, %v1181_v5, %v1183_v28 }
  0x8c   : > { %500 = vmatmul.bf16.gmra.mxu1 %v2278_v25  ;;  %976 = vmatmul.bf16.gmra.mxu0 %v894_v26 }
  0x8f   : > { %617 = vmatmul.bf16.gmra.mxu2 %v534_v59  ;;  %1424 = vmatmul.bf16.gmra.mxu3 %v1330_v32  ;;  %v1176_v59 = vrot.slane %v2693_v51, 2  ;;  %v1346_v51 = vrot.slane %v1344_v47, 3  ;;  %v1483_v32 = vrot.slane %v2741_v18, 3  ;;  %v1485_v47 = vrot.slane %v2755_v63, 3 }
  0x91   : > { %v1178_v61 = vsel %vm1012_vm4, %v1176_v59, %v1177_v35  ;;  %v1347_v60 = vor.u32 %v1346_v51, %v1343_v50  ;;  %v1484_v59 = vsel %vm1475_vm5, %v1481_v10, %v1483_v32  ;;  %v1486_v53 = vsel %vm1475_vm5, %v1483_v32, %v1485_v47 }
  0x93   : > { %v1348_v54 = vsel %vm1304_vm3, %v1338_v44, %v1347_v60  ;;  %v1357_v24 = vsel %vm1304_vm3, %v1347_v60, %v1356_v23  ;;  %v1185_v44 = vrot.slane %v1175_v39, 2 }
  0x95   : > { %v1186_v49 = vsel %vm1012_vm4, %v1183_v28, %v1185_v44 }
  0x9c   : > { %1085 = vmatmul.bf16.vlgmr.msra.gmra.mxu1 %v1015_v42  ;;  %1548 = vmatmul.bf16.vlgmr.msra.gmra.mxu0 %v1478_v43 }
  0x9f   : > { %1248 = vmatmul.bf16.vlgmr.msra.gmra.mxu2 %v1178_v61  ;;  %1429 = vmatmul.bf16.gmra.mxu3 %v1339_v45 }
  0xa9   : > { %v391_v55 = vpop.f32.mrf.mxu0  ;;  %v2750_v56 = vpop.f32.mrf.mxu1 }
  0xac   : > { %1090 = vmatmul.bf16.gmra.mxu1 %v1017_v57  ;;  %1553 = vmatmul.bf16.gmra.mxu0 %v1480_v58 }
  0xaf   : > { %1253 = vmatmul.bf16.gmra.mxu2 %v1180_v52  ;;  %1434 = vmatmul.bf16.gmra.mxu3 %v1348_v54  ;;  %v1023_v52 = vsel %vm1012_vm4, %v1020_v31, %v1022_v46 }
  0xb1   : > { %v393_v0 = vpop.f32.mrf.mxu0  ;;  %v2757_v11 = vpop.f32.mrf.mxu1 }
  0xb2   : > { %v755_v6 = vpop.f32.mrf.mxu3  ;;  %v2769_v16 = vpop.f32.mrf.mxu2 }
  0xb9   : > { %v396_v20 = vpop.f32.mrf.mxu0  ;;  %v2765_v21 = vpop.f32.mrf.mxu1 }
  0xba   : > { %v757_v25 = vpop.f32.mrf.mxu3  ;;  %v2775_v30 = vpop.f32.mrf.mxu2 }
  0xbc   : > { %1095 = vmatmul.bf16.gmra.mxu1 %v1019_v4  ;;  %1558 = vmatmul.bf16.gmra.mxu0 %v1482_v22 }
  0xbf   : > { %1258 = vmatmul.bf16.gmra.mxu2 %v1182_v19  ;;  %1439 = vmatmul.bf16.gmra.mxu3 %v1357_v24 }
  0xc1   : > { %v398_v26 = vpop.f32.mrf.mxu0  ;;  %v2772_v27 = vpop.f32.mrf.mxu1 }
  0xc2   : > { %v760_v29 = vpop.f32.mrf.mxu3 }
  0xc9   : > { %v481_v8 = vpop.f32.mrf.mxu1  ;;  %v957_v34 = vpop.f32.mrf.mxu0 }
  0xca   : > { %v482_v35 = vadd.f32 %v481_v8, %v391_v55  ;;  %v762_v37 = vpop.f32.mrf.mxu3 }
  0xcc   : > { %1100 = vmatmul.bf16.gmra.mxu1 %v1021_v7  ;;  %1563 = vmatmul.bf16.gmra.mxu0 %v1484_v59 }
  0xcf   : > { %1263 = vmatmul.bf16.gmra.mxu2 %v1184_v14 }
  0xd1   : > { %v483_v41 = vpop.f32.mrf.mxu1  ;;  %v959_v61 = vpop.f32.mrf.mxu0 }
  0xd2   : > { %v598_v38 = vpop.f32.mrf.mxu2  ;;  %v484_v42 = vadd.f32 %v483_v41, %v393_v0  ;;  %v765_v45 = vpop.f32.mrf.mxu3 }
  0xd3   : > { %v623_v2 = vadd.f32 %v598_v38, %v482_v35 }
  0xd5   : > { %v780_v40 = vadd.f32 %v755_v6, %v623_v2 }
  0xd7   : > { %v2783_v43 = vadd.f32 %v957_v34, %v780_v40 }
  0xd9   : > { %v486_v50 = vpop.f32.mrf.mxu1  ;;  %v962_v51 = vpop.f32.mrf.mxu0 }
  0xda   : > { %v600_v18 = vpop.f32.mrf.mxu2  ;;  %v487_v55 = vadd.f32 %v486_v50, %v396_v20  ;;  %v767_v58 = vpop.f32.mrf.mxu3 }
  0xdb   : > { %v624_v48 = vadd.f32 %v600_v18, %v484_v42 }
  0xdc   : > { %1105 = vmatmul.bf16.gmra.mxu1 %v1023_v52  ;;  %1568 = vmatmul.bf16.gmra.mxu0 %v1486_v53 }
  0xdd   : > { %v781_v12 = vadd.f32 %v757_v25, %v624_v48 }
  0xdf   : > { %1268 = vmatmul.bf16.gmra.mxu2 %v1186_v49  ;;  %v2790_v57 = vadd.f32 %v959_v61, %v781_v12 }
  0xe1   : > { %v488_v54 = vpop.f32.mrf.mxu1  ;;  %v964_v63 = vpop.f32.mrf.mxu0 }
  0xe2   : > { %v603_v13 = vpop.f32.mrf.mxu2  ;;  %v489_v0 = vadd.f32 %v488_v54, %v398_v26  ;;  %v770_v3 = vpop.f32.mrf.mxu3 }
  0xe3   : > { %v625_v60 = vadd.f32 %v603_v13, %v487_v55 }
  0xe5   : > { %v782_v62 = vadd.f32 %v760_v29, %v625_v60 }
  0xe7   : > { %v2792_v1 = vadd.f32 %v962_v51, %v782_v62 }
  0xe9   : > { %v491_v10 = vpop.f32.mrf.mxu1  ;;  %v967_v15 = vpop.f32.mrf.mxu0 }
  0xea   : > { %v605_v5 = vpop.f32.mrf.mxu2  ;;  %v492_v17 = vadd.f32 %v491_v10, %v2750_v56  ;;  %v772_v22 = vpop.f32.mrf.mxu3 }
  0xeb   : > { %v626_v6 = vadd.f32 %v605_v5, %v489_v0 }
  0xed   : > { %v783_v9 = vadd.f32 %v762_v37, %v626_v6  ;;  %v2823_v6 = vld [vmem:[%s2904_s3] ss:$0 sm:$0xff] }
  0xef   : > { %v2795_v19 = vadd.f32 %v964_v63, %v783_v9 }
  0xf1   : > { %v493_v25 = vpop.f32.mrf.mxu1  ;;  %v969_v24 = vpop.f32.mrf.mxu0 }
  0xf2   : > { %v608_v20 = vpop.f32.mrf.mxu2  ;;  %v494_v26 = vadd.f32 %v493_v25, %v2757_v11  ;;  %v775_v14 = vpop.f32.mrf.mxu3 }
  0xf3   : > { %v627_v4 = vadd.f32 %v608_v20, %v492_v17 }
  0xf5   : > { %v784_v23 = vadd.f32 %v765_v45, %v627_v4 }
  0xf7   : > { %v2798_v28 = vadd.f32 %v967_v15, %v784_v23 }
  0xf9   : > { %v496_v33 = vpop.f32.mrf.mxu1  ;;  %v972_v8 = vpop.f32.mrf.mxu0 }
  0xfa   : > { %v610_v29 = vpop.f32.mrf.mxu2  ;;  %v497_v56 = vadd.f32 %v496_v33, %v2765_v21  ;;  %v777_v11 = vpop.f32.mrf.mxu3 }
  0xfb   : > { %v628_v31 = vadd.f32 %v610_v29, %v494_v26 }
  0xfd   : > { %v785_v32 = vadd.f32 %v767_v58, %v628_v31 }
  0xff   : > { %v2801_v34 = vadd.f32 %v969_v24, %v785_v32 }
 0x101   : > { %v498_v36 = vpop.f32.mrf.mxu1  ;;  %v974_v37 = vpop.f32.mrf.mxu0 }
 0x102   : > { %v613_v7 = vpop.f32.mrf.mxu2  ;;  %v499_v38 = vadd.f32 %v498_v36, %v2772_v27  ;;  %v1420_v45 = vpop.f32.mrf.mxu3 }
 0x103   : > { %v629_v59 = vadd.f32 %v613_v7, %v497_v56 }
 0x105   : > { %v786_v35 = vadd.f32 %v770_v3, %v629_v59 }
 0x107   : > { %v2804_v2 = vadd.f32 %v972_v8, %v786_v35 }
 0x109   : > { %v501_v61 = vpop.f32.mrf.mxu1  ;;  %v977_v42 = vpop.f32.mrf.mxu0 }
 0x10a   : > { %v615_v39 = vpop.f32.mrf.mxu2  ;;  %v502_v44 = vadd.f32 %v501_v61, %v2769_v16  ;;  %v1422_v52 = vpop.f32.mrf.mxu3 }
 0x10b   : > { %v630_v40 = vadd.f32 %v615_v39, %v499_v38 }
 0x10d   : > { %v787_v41 = vadd.f32 %v772_v22, %v630_v40 }
 0x10f   : > { %v2807_v21 = vadd.f32 %v974_v37, %v787_v41 }
 0x111   : > { %v503_v48 = vpop.f32.mrf.mxu1  ;;  %v979_v49 = vpop.f32.mrf.mxu0 }
 0x112   : > { %v618_v18 = vpop.f32.mrf.mxu2  ;;  %v504_v27 = vadd.f32 %v503_v48, %v2775_v30  ;;  %v2818_v30 = vld [vmem:[%s2903_s2] ss:$0 sm:$0xff]  ;;  %v1425_v63 = vpop.f32.mrf.mxu3 }
 0x113   : > { %v631_v46 = vadd.f32 %v618_v18, %v502_v44 }
 0x115   : > { %v788_v47 = vadd.f32 %v775_v14, %v631_v46 }
 0x117   : > { %v2810_v12 = vadd.f32 %v977_v42, %v788_v47 }
 0x119   : > { %v1086_v55 = vpop.f32.mrf.mxu1  ;;  %v1549_v58 = vpop.f32.mrf.mxu0 }
 0x11a   : > { %v620_v50 = vpop.f32.mrf.mxu2  ;;  %v1111_v16 = vadd.f32 %v1086_v55, %v2783_v43  ;;  %v1427_v26 = vpop.f32.mrf.mxu3 }
 0x11b   : > { %v632_v51 = vadd.f32 %v620_v50, %v504_v27 }
 0x11d   : > { %v789_v53 = vadd.f32 %v777_v11, %v632_v51 }
 0x11f   : > { %v2813_v13 = vadd.f32 %v979_v49, %v789_v53 }
 0x121   : > { %v1088_v0 = vpop.f32.mrf.mxu1  ;;  %v1551_v3 = vpop.f32.mrf.mxu0 }
 0x122   : > { %v1249_v60 = vpop.f32.mrf.mxu2  ;;  %v1112_v43 = vadd.f32 %v1088_v0, %v2790_v57  ;;  %v1430_v38 = vpop.f32.mrf.mxu3 }
 0x123   : > { %v1274_v62 = vadd.f32 %v1249_v60, %v1111_v16 }
 0x125   : > { %v1445_v54 = vadd.f32 %v1420_v45, %v1274_v62 }
 0x127   : > { %v1574_v5 = vadd.f32 %v1549_v58, %v1445_v54 }
 0x129   : > { %v1588_v9 = vmul.f32 %v2818_v30, %v1574_v5  ;;  %v1091_v22 = vpop.f32.mrf.mxu1  ;;  %v1554_v23 = vpop.f32.mrf.mxu0 }
 0x12a   : > { %v1251_v10 = vpop.f32.mrf.mxu2  ;;  %v1113_v57 = vadd.f32 %v1091_v22, %v2792_v1 }
 0x12b   : > { %v1602_v15 = vadd.f32 %v2823_v6, %v1588_v9  ;;  %v1275_v17 = vadd.f32 %v1251_v10, %v1112_v43 }
 0x12d   : > { %v1612_v20 = vmax.f32 %v1602_v15, 0.0  ;;  %v1446_v4 = vadd.f32 %v1422_v52, %v1275_v17  ;;  %v1432_v52 = vpop.f32.mrf.mxu3 }
 0x12f   : > { %v1613_v25 = vpack.c.bf16 %v1612_v20, %v1612_v20  ;;  %v1575_v24 = vadd.f32 %v1551_v3, %v1446_v4 }
 0x131   : > { %1614 = vst [vmem:[%s2832_s25] sm:$0xf] %v1613_v25  ;;  %v1589_v29 = vmul.f32 %v2818_v30, %v1575_v24  ;;  %v1093_v8 = vpop.f32.mrf.mxu1  ;;  %v1556_v56 = vpop.f32.mrf.mxu0 }
 0x132   : > { %v1254_v31 = vpop.f32.mrf.mxu2  ;;  %v1114_v59 = vadd.f32 %v1093_v8, %v2795_v19 }
 0x133   : > { %v1276_v32 = vadd.f32 %v1254_v31, %v1113_v57  ;;  %v1603_v14 = vadd.f32 %v2823_v6, %v1589_v29 }
 0x135   : > { %v1447_v33 = vadd.f32 %v1425_v63, %v1276_v32  ;;  %v1615_v35 = vmax.f32 %v1603_v14, 0.0  ;;  %v1435_v17 = vpop.f32.mrf.mxu3 }
 0x137   : > { %v1576_v7 = vadd.f32 %v1554_v23, %v1447_v33  ;;  %v1617_v39 = vpack.c.bf16 %v1615_v35, %v1615_v35 }
 0x139   : > { %v1590_v36 = vmul.f32 %v2818_v30, %v1576_v7  ;;  %v1096_v61 = vpop.f32.mrf.mxu1  ;;  %v1559_v42 = vpop.f32.mrf.mxu0  ;;  %v2128_v46 = vrot.slane %v1617_v39, 9 }
 0x13a   : > { %v1256_v37 = vpop.f32.mrf.mxu2  ;;  %v1115_v19 = vadd.f32 %v1096_v61, %v2798_v28 }
 0x13b   : > { %v1604_v1 = vadd.f32 %v2823_v6, %v1590_v36  ;;  %v1277_v11 = vadd.f32 %v1256_v37, %v1114_v59 }
 0x13d   : > { %v1616_v40 = vmax.f32 %v1604_v1, 0.0  ;;  %v1448_v41 = vadd.f32 %v1427_v26, %v1277_v11  ;;  %v1437_v36 = vpop.f32.mrf.mxu3 }
 0x13f   : > { %v1618_v44 = vpack.c.bf16 %v1616_v40, %v1616_v40  ;;  %v1577_v45 = vadd.f32 %v1556_v56, %v1448_v41 }
 0x141   : > { %v1626_v47 = vrot.slane %v1618_v44, 5  ;;  %v1591_v48 = vmul.f32 %v2818_v30, %v1577_v45  ;;  %v1098_v55 = vpop.f32.mrf.mxu1  ;;  %v1561_v58 = vpop.f32.mrf.mxu0  ;;  %v2129_v63 = vrot.slane %v1618_v44, 10 }
 0x142   : > { %v1259_v49 = vpop.f32.mrf.mxu2  ;;  %v1116_v62 = vadd.f32 %v1098_v55, %v2801_v34 }
 0x143   : > { %v1627_v27 = vsel %vm2842_vm8, %v2128_v46, %v1626_v47  ;;  %v1605_v50 = vadd.f32 %v2823_v6, %v1591_v48  ;;  %v1278_v51 = vadd.f32 %v1259_v49, %v1115_v19 }
 0x144   : > { %1629 = vst [vmem:[%s2832_s25 + $0x4] sm:$0xf] %v1627_v27 }
 0x145   : > { %v1630_v53 = vmax.f32 %v1605_v50, 0.0  ;;  %v1449_v28 = vadd.f32 %v1430_v38, %v1278_v51  ;;  %v1440_v19 = vpop.f32.mrf.mxu3 }
 0x147   : > { %v1631_v16 = vpack.c.bf16 %v1630_v53, %v1630_v53  ;;  %v1578_v60 = vadd.f32 %v1559_v42, %v1449_v28 }
 0x149   : > { %v1638_v0 = vrot.slane %v1631_v16, 6  ;;  %v1592_v3 = vmul.f32 %v2818_v30, %v1578_v60  ;;  %v1101_v20 = vpop.f32.mrf.mxu1  ;;  %v1564_v24 = vpop.f32.mrf.mxu0  ;;  %v2130_v57 = vrot.slane %v1631_v16, 11 }
 0x14a   : > { %v1261_v5 = vpop.f32.mrf.mxu2  ;;  %v1117_v23 = vadd.f32 %v1101_v20, %v2804_v2 }
 0x14b   : > { %v1639_v43 = vsel %vm2852_vm11, %v2129_v63, %v1638_v0  ;;  %v1606_v9 = vadd.f32 %v2823_v6, %v1592_v3  ;;  %v1279_v10 = vadd.f32 %v1261_v5, %v1116_v62 }
 0x14c   : > { %1641 = vst [vmem:[%s2832_s25 + $0x8] sm:$0xf] %v1639_v43 }
 0x14d   : > { %v1642_v15 = vmax.f32 %v1606_v9, 0.0  ;;  %v1450_v34 = vadd.f32 %v1432_v52, %v1279_v10  ;;  %v1442_v0 = vpop.f32.mrf.mxu3 }
 0x14f   : > { %v1643_v4 = vpack.c.bf16 %v1642_v15, %v1642_v15  ;;  %v1579_v22 = vadd.f32 %v1561_v58, %v1450_v34 }
 0x151   : > { %v1650_v26 = vrot.slane %v1643_v4, 7  ;;  %v1593_v29 = vmul.f32 %v2818_v30, %v1579_v22  ;;  %v1103_v56 = vpop.f32.mrf.mxu1  ;;  %v1566_v38 = vpop.f32.mrf.mxu0 }
 0x152   : > { %v1264_v31 = vpop.f32.mrf.mxu2  ;;  %v1118_v35 = vadd.f32 %v1103_v56, %v2807_v21 }
 0x153   : > { %v1651_v32 = vsel %vm2862_vm14, %v2130_v57, %v1650_v26  ;;  %v1607_v14 = vadd.f32 %v2823_v6, %v1593_v29  ;;  %v1280_v33 = vadd.f32 %v1264_v31, %v1117_v23 }
 0x154   : > { %1653 = vst [vmem:[%s2832_s25 + $0xc] sm:$0xf] %v1651_v32 }
 0x155   : > { %v1654_v8 = vmax.f32 %v1607_v14, 0.0  ;;  %v1451_v2 = vadd.f32 %v1435_v17, %v1280_v33 }
 0x157   : > { %v1655_v7 = vpack.c.bf16 %v1654_v8, %v1654_v8  ;;  %v1580_v59 = vadd.f32 %v1564_v24, %v1451_v2 }
 0x159   : > { %1656 = vst [vmem:[%s2832_s25 + $0x10] sm:$0xf] %v1655_v7  ;;  %v1594_v37 = vmul.f32 %v2818_v30, %v1580_v59  ;;  %v1106_v41 = vpop.f32.mrf.mxu1  ;;  %v1569_v48 = vpop.f32.mrf.mxu0 }
 0x15a   : > { %v1266_v1 = vpop.f32.mrf.mxu2  ;;  %v1119_v42 = vadd.f32 %v1106_v41, %v2810_v12 }
 0x15b   : > { %v1281_v11 = vadd.f32 %v1266_v1, %v1118_v35  ;;  %v1608_v39 = vadd.f32 %v2823_v6, %v1594_v37 }
 0x15d   : > { %v1452_v40 = vadd.f32 %v1437_v36, %v1281_v11  ;;  %v1657_v44 = vmax.f32 %v1608_v39, 0.0 }
 0x15f   : > { %v1581_v61 = vadd.f32 %v1566_v38, %v1452_v40  ;;  %v1659_v49 = vpack.c.bf16 %v1657_v44, %v1657_v44 }
 0x161   : > { %v1595_v45 = vmul.f32 %v2818_v30, %v1581_v61  ;;  %v1108_v51 = vpop.f32.mrf.mxu1  ;;  %v2131_v55 = vrot.slane %v1659_v49, 9  ;;  %v1571_v43 = vpop.f32.mrf.mxu0 }
 0x162   : > { %v1269_v46 = vpop.f32.mrf.mxu2  ;;  %v1120_v28 = vadd.f32 %v1108_v51, %v2813_v13 }
 0x163   : > { %v1609_v21 = vadd.f32 %v2823_v6, %v1595_v45  ;;  %v1282_v47 = vadd.f32 %v1269_v46, %v1119_v42 }
 0x165   : > { %v1658_v27 = vmax.f32 %v1609_v21, 0.0  ;;  %v1453_v50 = vadd.f32 %v1440_v19, %v1282_v47 }
 0x167   : > { %v1660_v52 = vpack.c.bf16 %v1658_v27, %v1658_v27  ;;  %v1582_v53 = vadd.f32 %v1569_v48, %v1453_v50 }
 0x169   : > { %v1665_v12 = vrot.slane %v1660_v52, 5  ;;  %v1596_v58 = vmul.f32 %v2818_v30, %v1582_v53  ;;  %v2132_v10 = vrot.slane %v1660_v52, 10 }
 0x16a   : > { %v1271_v16 = vpop.f32.mrf.mxu2 }
 0x16b   : > { %v1666_v60 = vsel %vm2842_vm8, %v2131_v55, %v1665_v12  ;;  %v1610_v62 = vadd.f32 %v2823_v6, %v1596_v58  ;;  %v1283_v63 = vadd.f32 %v1271_v16, %v1120_v28 }
 0x16c   : > { %1668 = vst [vmem:[%s2832_s25 + $0x14] sm:$0xf] %v1666_v60 }
 0x16d   : > { %v1669_v3 = vmax.f32 %v1610_v62, 0.0  ;;  %v1454_v5 = vadd.f32 %v1442_v0, %v1283_v63 }
 0x16f   : > { %v1670_v9 = vpack.c.bf16 %v1669_v3, %v1669_v3  ;;  %v1583_v13 = vadd.f32 %v1571_v43, %v1454_v5 }
 0x171   : > { %v1674_v15 = vrot.slane %v1670_v9, 6  ;;  %v1597_v34 = vmul.f32 %v2818_v30, %v1583_v13  ;;  %v2133_v22 = vrot.slane %v1670_v9, 11 }
 0x173   : > { %v1675_v18 = vsel %vm2852_vm11, %v2132_v10, %v1674_v15  ;;  %v1611_v17 = vadd.f32 %v2823_v6, %v1597_v34 }
 0x174   : > { %1677 = vst [vmem:[%s2832_s25 + $0x18] sm:$0xf] %v1675_v18 }
 0x175   : > { %v1678_v20 = vmax.f32 %v1611_v17, 0.0 }
 0x177   : > { %v1679_v4 = vpack.c.bf16 %v1678_v20, %v1678_v20 }
 0x179   : > { %v1683_v23 = vrot.slane %v1679_v4, 7 }
 0x17b   : > { %v1684_v24 = vsel %vm2862_vm14, %v2133_v22, %v1683_v23 }
 0x17c   : > { %1686 = vst [vmem:[%s2832_s25 + $0x1c] sm:$0xf] %v1684_v24 }
 0x17d PF: > { %s14_s17 = sadd.s32 1, %s2302_s17   ;;  %s2912_s15 = smov %s2298_s16 }
 0x17e   : > { %p11_p5 = scmp.ge.s32.totalorder %s14_s17, 4   ;;  %s2913_s16 = smov %s2915_s18 }
 0x180   :  { %13 = sbr.rel (!%p11_p5) target bundleno = 2 (0x2), region = 66 }

// kernel: _lambda_.20
= control target key start
LH: loop header
LB: loop body
LE: loop exit
PB: predicated region body
PF: predicated region fallthrough
CT: control target
= control target key end

     0   :  { %s2478_s18 = smov 0   ;;  %s2480_s19 = smov 0   ;;  %s3059_s0 = inlined_call_operand.vmem [shape: bf16[2,104,128], index: 0, kind: input, shape index: {}]   ;;  %s3060_s1 = inlined_call_operand.vmem [shape: bf16[1152,128], index: 1, kind: input, shape index: {}]   ;;  %s3061_s2 = inlined_call_operand.vmem [shape: f32[1,128], index: 2, kind: input, shape index: {}]   ;;  %s3062_s3 = inlined_call_operand.vmem [shape: f32[1,128], index: 3, kind: input, shape index: {}]   ;;  %s3063_s4 = inlined_call_operand.vmem [shape: bf16[2,64,128], index: 4, kind: input, shape index: {}]   ;;  %s3064_s5 = inlined_call_operand.vmem [shape: bf16[2,64,128], index: 5, kind: output, shape index: {}]  }
   0x1   :  { %s2482_s20 = smov 0  }
   0x2 LB: > { %s27_s21 = sadd.s32 1, %s2442_s19  ;;  %p1913_p0 = scmp.ge.s32.totalorder %s2446_s20, 1  ;;  %s2446_s20 = sphi %s2482_s20, %s15_s20   ;;  %s2442_s19 = sphi %s2480_s19, %s3072_s19   ;;  %s2438_s18 = sphi %s2478_s18, %s3071_s18  }
   0x3   : > { %p29_p1 = scmp.ge.s32.totalorder %s27_s21, 2  ;;  %p218_p2 = scmp.lt.s32.totalorder %s2446_s20, 3 }
   0x5   : > { %s3074_s21 = smov (%p29_p1, %s27_s21), 0  ;;  %p219_p3 = pnand %p1913_p0, %p218_p2 }
   0x6   : > { %p259_p4 = scmp.lt.s32.totalorder (!%p219_p3), %s2438_s18, 1 }
   0x7   : > { %222 = sbr.rel (%p219_p3) target bundleno = 383 (0x17f), region = 40 }
   0xc   : > { %v2299_v0 = vld [vmem:[%s3060_s1 + $0x78] sm:$0xff]  ;;  %v2298_v1 = vld [vmem:[%s3060_s1 + $0x70] sm:$0xff]  ;;  %s3076_s18 = smov (!%p259_p4, %s2438_s18), 1  ;;  %v2297_v4 = vld [vmem:[%s3060_s1 + $0x68] sm:$0xff]  ;;  %vm352_vm0 = vsmask.f32 7424 }
   0xd   : > { %445 = vmatpush.bf16.msra.mxu0 %v2299_v0  ;;  %2376 = vmatpush.bf16.msra.mxu1 %v2299_v0  ;;  %v2320_v2 = vld [vmem:[%s3060_s1 + $0xf8] sm:$0xff]  ;;  %v2319_v3 = vld [vmem:[%s3060_s1 + $0xf0] sm:$0xff]  ;;  %s2392_s7 = smul.u32 52, %s3076_s18  ;;  %v2318_v5 = vld [vmem:[%s3060_s1 + $0xe8] sm:$0xff]  ;;  %vm589_vm1 = vcmask 1046528   ;;  %vm1075_vm4 = vcmask 1045504  }
   0xe   : > { %2377 = vmatpush.bf16.msra.mxu2 %v2299_v0  ;;  %809 = vmatpush.bf16.msra.mxu3 %v2320_v2  ;;  %v2296_v6 = vld [vmem:[%s3060_s1 + $0x60] sm:$0xff]  ;;  %v2295_v10 = vld [vmem:[%s3060_s1 + $0x58] sm:$0xff]  ;;  %v2294_v17 = vld [vmem:[%s3060_s1 + $0x50] sm:$0xff]  ;;  %vm908_vm2 = vsmask.f32 6400  ;;  %vm1538_vm5 = vcmask 1044480  }
   0xf   : > { %s2523_s14 = scalar_lea.vmem %s3059_s0, %s2392_s7  ;;  %v2317_v9 = vld [vmem:[%s3060_s1 + $0xe0] sm:$0xff]  ;;  %v2316_v13 = vld [vmem:[%s3060_s1 + $0xd8] sm:$0xff]  ;;  %v2315_v19 = vld [vmem:[%s3060_s1 + $0xd0] sm:$0xff]  ;;  %vm1367_vm3 = vsmask.f32 5376  ;;  %vm1694_vm6 = vcmask 1042432  }
  0x10   : > { %v2526_v7 = vld [vmem:[%s2523_s14 + $0x20] sm:$0xff]   ;;  %v2541_v12 = vld [vmem:[%s2523_s14 + $0x10] sm:$0xff]  ;;  %v2547_v14 = vld [vmem:[%s2523_s14 + $0x8] sm:$0xff]  ;;  %vm1695_vm7 = vcmask 1046532   ;;  %vm1716_vm9 = vcmask 1041408   ;;  %vm1717_vm10 = vcmask 1045508  }
  0x11   : > { %446 = vmatpush.bf16.msra.mxu0 %v2298_v1  ;;  %2378 = vmatpush.bf16.msra.mxu1 %v2298_v1  ;;  %v2529_v8 = vld [vmem:[%s2523_s14 + $0x20] sm:$0xf]   ;;  %v2551_v16 = vld [vmem:[%s2523_s14 + $0x18] sm:$0xff]  ;;  %v369_v18 = vshll.u32 %v2541_v12, 16  ;;  %v361_v22 = vshll.u32 %v2547_v14, 16  ;;  %v2293_v24 = vld [vmem:[%s3060_s1 + $0x48] sm:$0xff] }
  0x12   : > { %2379 = vmatpush.bf16.msra.mxu2 %v2298_v1  ;;  %810 = vmatpush.bf16.msra.mxu3 %v2319_v3  ;;  %v2538_v11 = vld [vmem:[%s2523_s14] sm:$0xff]   ;;  %v377_v23 = vshll.u32 %v2551_v16, 16  ;;  %v373_v26 = vshrl.u32 %v2541_v12, 16  ;;  %v385_v27 = vshll.u32 %v2526_v7, 16  ;;  %v2308_v29 = vld [vmem:[%s2523_s14 + $0x4] sm:$0xf0]  ;;  %vm2999_vm8 = vmor %vm1694_vm6, %vm1695_vm7 }
  0x13   : > { %v356_v15 = vshll.u32 %v2538_v11, 16  ;;  %v354_v20 = vshrl.u32 %v2538_v11, 16  ;;  %v2566_v25 = vrot.slane %v369_v18, 1  ;;  %v2029_v28 = vld [vmem:[%s2523_s14 + $0x4] sm:$0xe]  ;;  %v2314_v30 = vld [vmem:[%s3060_s1 + $0xc8] sm:$0xff]  ;;  %vm3009_vm11 = vmor %vm1716_vm9, %vm1717_vm10 }
  0x14   : > { %v363_v32 = vrot.slane %v361_v22, 1  ;;  %v379_v33 = vrot.slane %v377_v23, 1  ;;  %v2292_v34 = vld [vmem:[%s3060_s1 + $0x40] sm:$0xff]  ;;  %v2579_v36 = vrot.slane %v385_v27, 1  ;;  %v389_v37 = vshrl.u32 %v2526_v7, 16  ;;  %v2583_v38 = vld [vmem:[%s2523_s14 + $0xc] sm:$0xff] }
  0x15   : > { %447 = vmatpush.bf16.msra.mxu0 %v2297_v4  ;;  %2380 = vmatpush.bf16.msra.mxu1 %v2297_v4  ;;  %v358_v21 = vrot.slane %v356_v15, 1  ;;  %v375_v35 = vor.u32 %v373_v26, %v2566_v25  ;;  %v2030_v39 = vor.u32 %v2308_v29, %v2029_v28  ;;  %v2291_v40 = vld [vmem:[%s3060_s1 + $0x38] sm:$0xff]  ;;  %v2313_v46 = vld [vmem:[%s3060_s1 + $0xc0] sm:$0xff]  ;;  %v748_v48 = vrot.slane %v2583_v38, 1  ;;  %v2290_v49 = vld [vmem:[%s3060_s1 + $0x30] sm:$0xff] }
  0x16   : > { %2381 = vmatpush.bf16.msra.mxu2 %v2297_v4  ;;  %811 = vmatpush.bf16.msra.mxu3 %v2318_v5  ;;  %v2307_v41 = vld [vmem:[%s3060_s1 + $0xb8] sm:$0xff]  ;;  %v391_v45 = vor.u32 %v389_v37, %v2579_v36  ;;  %v2306_v51 = vld [vmem:[%s3060_s1 + $0xb0] sm:$0xff]  ;;  %v2289_v54 = vld [vmem:[%s3060_s1 + $0x28] sm:$0xff]  ;;  %v365_v58 = vshrl.u32 %v2547_v14, 16  ;;  %v381_v59 = vshrl.u32 %v2551_v16, 16  ;;  %vm1738_vm12 = vcmask 1040384  }
  0x17   : > { %v359_v31 = vor.u32 %v358_v21, %v354_v20  ;;  %v2332_v42 = vld [vmem:[%s3060_s1 + $0x138] sm:$0xff]  ;;  %v380_v44 = vsel %vm352_vm0, %v375_v35, %v379_v33  ;;  %v747_v47 = vrot.slane %v2030_v39, 1  ;;  %v2331_v52 = vld [vmem:[%s3060_s1 + $0x130] sm:$0xff]  ;;  %v2305_v56 = vld [vmem:[%s3060_s1 + $0xa8] sm:$0xff]  ;;  %vm1739_vm13 = vcmask 1044484  }
  0x18   : > { %v2360_v50 = vld [vmem:[%s3060_s1 + $0x1f8] sm:$0xff]  ;;  %v2359_v55 = vld [vmem:[%s3060_s1 + $0x1f0] sm:$0xff]  ;;  %v2330_v57 = vld [vmem:[%s3060_s1 + $0x128] sm:$0xff]  ;;  %v367_v3 = vor.u32 %v365_v58, %v363_v32  ;;  %v383_v4 = vor.u32 %v381_v59, %v379_v33  ;;  %v595_v58 = vrot.slane %v2551_v16, 1  ;;  %v597_v59 = vrot.slane %v2526_v7, 1 }
  0x19   : > { %448 = vmatpush.bf16.msra.mxu0 %v2296_v6  ;;  %2382 = vmatpush.bf16.msra.mxu1 %v2296_v6  ;;  %v364_v43 = vsel %vm352_vm0, %v359_v31, %v363_v32  ;;  %v749_v53 = vsel %vm589_vm1, %v747_v47, %v748_v48  ;;  %v853_v60 = vld [vmem:[%s2523_s14 + $0x4] sm:$0xe]  ;;  %v2632_v61 = vld [vmem:[%s2523_s14 + $0x8] sm:$0xff]   ;;  %v2645_v5 = vld [vmem:[%s2523_s14 + $0x14] sm:$0xff] }
  0x1a   : > { %2383 = vmatpush.bf16.msra.mxu2 %v2296_v6  ;;  %812 = vmatpush.bf16.msra.mxu3 %v2317_v9  ;;  %v2288_v62 = vld [vmem:[%s3060_s1 + $0x20] sm:$0xff]  ;;  %v891_v1 = vunpack.c.l.b16 %v853_v60  ;;  %v892_v2 = vunpack.c.l.b16 %v2632_v61  ;;  %v2287_v6 = vld [vmem:[%s3060_s1 + $0x18] sm:$0xff]  ;;  %v372_v15 = vsel %vm352_vm0, %v367_v3, %v2566_v25  ;;  %v2663_v18 = vld [vmem:[%s2523_s14 + $0xc] sm:$0xff] }
  0x1b   : > { %v2304_v63 = vld [vmem:[%s3060_s1 + $0xa0] sm:$0xff]  ;;  %v2303_v9 = vld [vmem:[%s3060_s1 + $0x98] sm:$0xff]  ;;  %v2286_v20 = vld [vmem:[%s3060_s1 + $0x10] sm:$0xff]  ;;  %v918_v28 = vshrl.u32 %v2663_v18, 16  ;;  %v921_v29 = vshll.u32 %v2663_v18, 16 }
  0x1c   : > { %v2329_v0 = vld [vmem:[%s3060_s1 + $0x120] sm:$0xff]  ;;  %v2302_v21 = vld [vmem:[%s3060_s1 + $0x90] sm:$0xff]  ;;  %v2358_v26 = vld [vmem:[%s3060_s1 + $0x1e8] sm:$0xff] }
  0x1d   : > { %449 = vmatpush.bf16.msra.mxu0 %v2295_v10  ;;  %2384 = vmatpush.bf16.msra.mxu1 %v2295_v10  ;;  %v2327_v22 = vld [vmem:[%s3060_s1 + $0x110] sm:$0xff]  ;;  %v2373_v23 = vld [vmem:[%s2523_s14] sm:$0xf0]  ;;  %v2285_v31 = vld [vmem:[%s3060_s1 + $0x8] sm:$0xff]  ;;  %v920_v37 = vrot.slane %v918_v28, 1  ;;  %v923_v38 = vrot.slane %v921_v29, 2 }
  0x1e   : > { %2385 = vmatpush.bf16.msra.mxu2 %v2295_v10  ;;  %813 = vmatpush.bf16.msra.mxu3 %v2316_v13  ;;  %v2328_v10 = vld [vmem:[%s3060_s1 + $0x118] sm:$0xff]  ;;  %v902_v13 = vpack.c.b16 %v892_v2, %v891_v1  ;;  %v2301_v32 = vld [vmem:[%s3060_s1 + $0x88] sm:$0xff]  ;;  %v2284_v39 = vld [vmem:[%s3060_s1] sm:$0xff] }
  0x1f   : > { %v2326_v33 = vld [vmem:[%s3060_s1 + $0x108] sm:$0xff]  ;;  %v924_v47 = vor.u32 %v923_v38, %v920_v37  ;;  %v2356_v3 = vld [vmem:[%s3060_s1 + $0x1d8] sm:$0xff]  ;;  %v2355_v28 = vld [vmem:[%s3060_s1 + $0x1d0] sm:$0xff] }
  0x20   : > { %v910_v25 = vshrl.u32 %v902_v13, 16  ;;  %v913_v27 = vshll.u32 %v902_v13, 16  ;;  %v2366_v1 = vld [vmem:[%s3060_s1 + $0x228] sm:$0xff]  ;;  %v2365_v13 = vld [vmem:[%s3060_s1 + $0x220] sm:$0xff]  ;;  %v2335_v29 = vld [vmem:[%s3060_s1 + $0x150] sm:$0xff] }
  0x21   : > { %450 = vmatpush.bf16.msra.mxu0 %v2294_v17  ;;  %2386 = vmatpush.bf16.msra.mxu1 %v2294_v17  ;;  %vm3020_vm14 = vmor %vm1738_vm12, %vm1739_vm13 }
  0x22   : > { %2387 = vmatpush.bf16.msra.mxu2 %v2294_v17  ;;  %814 = vmatpush.bf16.msra.mxu3 %v2315_v19  ;;  %v388_v17 = vsel %vm352_vm0, %v383_v4, %v2579_v36  ;;  %v750_v19 = vrot.slane %v2645_v5, 1  ;;  %v912_v35 = vrot.slane %v910_v25, 1  ;;  %v915_v36 = vrot.slane %v913_v27, 2  ;;  %v2364_v27 = vld [vmem:[%s3060_s1 + $0x218] sm:$0xff] }
  0x23   : > { %v2761_v4 = vsel %vm589_vm1, %v595_v58, %v597_v59 }
  0x25   : > { %451 = vmatpush.bf16.msra.mxu0 %v2293_v24  ;;  %2388 = vmatpush.bf16.msra.mxu1 %v2293_v24 }
  0x26   : > { %2389 = vmatpush.bf16.msra.mxu2 %v2293_v24  ;;  %815 = vmatpush.bf16.msra.mxu3 %v2314_v30  ;;  %v2374_v24 = vld [vmem:[%s2523_s14] sm:$0xe]  ;;  %v751_v30 = vsel %vm589_vm1, %v748_v48, %v750_v19  ;;  %v2368_v48 = vld [vmem:[%s3060_s1 + $0x238] sm:$0xff] }
  0x29   : > { %452 = vmatpush.bf16.msra.mxu0 %v2292_v34  ;;  %2390 = vmatpush.bf16.msra.mxu1 %v2292_v34 }
  0x2a   : > { %2391 = vmatpush.bf16.msra.mxu2 %v2292_v34  ;;  %816 = vmatpush.bf16.msra.mxu3 %v2313_v46  ;;  %v2375_v34 = vor.u32 %v2374_v24, %v2373_v23  ;;  %v916_v46 = vor.u32 %v915_v36, %v912_v35  ;;  %v2783_v24 = vld [vmem:[%s2523_s14 + $0x1c] sm:$0xff] }
  0x2c   : > { %453 = vmatmul.bf16.vlgmr.msra.gmra.mxu0 %v364_v43  ;;  %463 = vmatmul.bf16.vlgmr.msra.gmra.mxu1 %v380_v44  ;;  %v2325_v43 = vld [vmem:[%s3060_s1 + $0x100] sm:$0xff]  ;;  %v2352_v44 = vld [vmem:[%s3060_s1 + $0x1b8] sm:$0xff] }
  0x2d   : > { %535 = vmatpush.bf16.msrb.mxu1 %v2291_v40  ;;  %1011 = vmatpush.bf16.msrb.mxu0 %v2332_v42  ;;  %v2300_v40 = vld [vmem:[%s3060_s1 + $0x80] sm:$0xff]  ;;  %v591_v42 = vrot.slane %v2547_v14, 1 }
  0x2e   : > { %652 = vmatpush.bf16.msrb.mxu2 %v2307_v41  ;;  %1474 = vmatpush.bf16.msrb.mxu3 %v2360_v50  ;;  %v590_v41 = vrot.slane %v2375_v34, 1  ;;  %v2354_v34 = vld [vmem:[%s3060_s1 + $0x1c8] sm:$0xff] }
  0x2f   : > { %473 = vmatmul.bf16.vlgmr.msra.gmra.mxu2 %v391_v45  ;;  %817 = vmatmul.bf16.vlgmr.msra.gmra.mxu3 %v749_v53  ;;  %v2340_v45 = vld [vmem:[%s3060_s1 + $0x178] sm:$0xff]  ;;  %v2339_v53 = vld [vmem:[%s3060_s1 + $0x170] sm:$0xff] }
  0x30   : > { %v592_v50 = vsel %vm589_vm1, %v590_v41, %v591_v42 }
  0x31   : > { %536 = vmatpush.bf16.msrb.mxu1 %v2290_v49  ;;  %1012 = vmatpush.bf16.msrb.mxu0 %v2331_v52  ;;  %v2716_v49 = vld [vmem:[%s2523_s14 + $0x1c] sm:$0xff]  ;;  %v2351_v52 = vld [vmem:[%s3060_s1 + $0x1b0] sm:$0xff] }
  0x32   : > { %653 = vmatpush.bf16.msrb.mxu2 %v2306_v51  ;;  %1475 = vmatpush.bf16.msrb.mxu3 %v2359_v55  ;;  %v925_v51 = vsel %vm908_vm2, %v916_v46, %v924_v47  ;;  %v752_v55 = vrot.slane %v2716_v49, 1  ;;  %v2353_v49 = vld [vmem:[%s3060_s1 + $0x1c0] sm:$0xff] }
  0x35   : > { %537 = vmatpush.bf16.msrb.mxu1 %v2289_v54  ;;  %1013 = vmatpush.bf16.msrb.mxu0 %v2330_v57  ;;  %v2727_v54 = vld [vmem:[%s2523_s14 + $0x14] sm:$0xff]  ;;  %v2357_v57 = vld [vmem:[%s3060_s1 + $0x1e0] sm:$0xff] }
  0x36   : > { %654 = vmatpush.bf16.msrb.mxu2 %v2305_v56  ;;  %1476 = vmatpush.bf16.msrb.mxu3 %v2358_v26  ;;  %v2367_v56 = vld [vmem:[%s3060_s1 + $0x230] sm:$0xff]  ;;  %v927_v60 = vshrl.u32 %v2727_v54, 16 }
  0x37   : > { %v2347_v26 = vld [vmem:[%s3060_s1 + $0x190] sm:$0xff] }
  0x38   : > { %v929_v5 = vrot.slane %v927_v60, 1 }
  0x39   : > { %538 = vmatpush.bf16.msrb.mxu1 %v2288_v62  ;;  %1014 = vmatpush.bf16.msrb.mxu0 %v2329_v0  ;;  %v930_v62 = vshll.u32 %v2727_v54, 16  ;;  %v2338_v0 = vld [vmem:[%s3060_s1 + $0x168] sm:$0xff] }
  0x3a   : > { %655 = vmatpush.bf16.msrb.mxu2 %v2304_v63  ;;  %v2350_v63 = vld [vmem:[%s3060_s1 + $0x1a8] sm:$0xff]  ;;  %1477 = vmatpush.bf16.msrb.mxu3 %v2357_v57 }
  0x3c   : > { %458 = vmatmul.bf16.gmra.mxu0 %v372_v15  ;;  %468 = vmatmul.bf16.gmra.mxu1 %v388_v17  ;;  %v593_v15 = vrot.slane %v2541_v12, 1 }
  0x3d   : > { %539 = vmatpush.bf16.msrb.mxu1 %v2287_v6  ;;  %1015 = vmatpush.bf16.msrb.mxu0 %v2328_v10  ;;  %v932_v6 = vrot.slane %v930_v62, 2  ;;  %v2337_v10 = vld [vmem:[%s3060_s1 + $0x160] sm:$0xff] }
  0x3e   : > { %656 = vmatpush.bf16.msrb.mxu2 %v2303_v9  ;;  %v2349_v9 = vld [vmem:[%s3060_s1 + $0x1a0] sm:$0xff]  ;;  %1478 = vmatpush.bf16.msrb.mxu3 %v2356_v3  ;;  %v596_v38 = vsel %vm589_vm1, %v593_v15, %v595_v58 }
  0x3f   : > { %822 = vmatmul.bf16.gmra.mxu3 %v751_v30  ;;  %v933_v17 = vor.u32 %v932_v6, %v929_v5  ;;  %v936_v30 = vshrl.u32 %v2783_v24, 16  ;;  %v2361_v3 = vld [vmem:[%s3060_s1 + $0x200] sm:$0xff] }
  0x41   : > { %540 = vmatpush.bf16.msrb.mxu1 %v2286_v20  ;;  %1016 = vmatpush.bf16.msrb.mxu0 %v2327_v22  ;;  %v2312_v20 = vld [vmem:[%s2523_s14 + $0x24] sm:$0xff]  ;;  %v594_v22 = vsel %vm589_vm1, %v591_v42, %v593_v15  ;;  %v934_v23 = vsel %vm908_vm2, %v924_v47, %v933_v17  ;;  %v938_v35 = vrot.slane %v936_v30, 1 }
  0x42   : > { %657 = vmatpush.bf16.msrb.mxu2 %v2302_v21  ;;  %v2336_v21 = vld [vmem:[%s3060_s1 + $0x158] sm:$0xff]  ;;  %v754_v25 = vrot.slane %v2312_v20, 1  ;;  %1479 = vmatpush.bf16.msrb.mxu3 %v2355_v28  ;;  %v2345_v47 = vld [vmem:[%s3060_s1 + $0x180] sm:$0xff] }
  0x45   : > { %541 = vmatpush.bf16.msrb.mxu1 %v2285_v31  ;;  %1017 = vmatpush.bf16.msrb.mxu0 %v2326_v33  ;;  %v939_v31 = vshll.u32 %v2783_v24, 16  ;;  %v2363_v33 = vld [vmem:[%s3060_s1 + $0x210] sm:$0xff] }
  0x46   : > { %658 = vmatpush.bf16.msrb.mxu2 %v2301_v32  ;;  %v755_v32 = vsel %vm589_vm1, %v752_v55, %v754_v25  ;;  %1480 = vmatpush.bf16.msrb.mxu3 %v2354_v34 }
  0x47   : > { %v941_v36 = vrot.slane %v939_v31, 2 }
  0x49   : > { %542 = vmatpush.bf16.msrb.mxu1 %v2284_v39  ;;  %1018 = vmatpush.bf16.msrb.mxu0 %v2325_v43  ;;  %v942_v37 = vor.u32 %v941_v36, %v938_v35  ;;  %v2814_v39 = vld [vmem:[%s2523_s14 + $0x24] sm:$0xff]  ;;  %v1223_v43 = vunpack.c.h.b16 %v2632_v61 }
  0x4a   : > { %659 = vmatpush.bf16.msrb.mxu2 %v2300_v40  ;;  %v1184_v40 = vld [vmem:[%s2523_s14 + $0x8] sm:$0xc]  ;;  %v948_v46 = vshll.u32 %v2814_v39, 16  ;;  %1481 = vmatpush.bf16.msrb.mxu3 %v2353_v49  ;;  %v1079_v49 = vrot.slane %v2727_v54, 2 }
  0x4b   : > { %v943_v41 = vsel %vm908_vm2, %v933_v17, %v942_v37  ;;  %v1222_v42 = vunpack.c.l.b16 %v1184_v40  ;;  %v2859_v17 = vld [vmem:[%s2523_s14 + $0x18] sm:$0xff] }
  0x4c   : > { %543 = vmatmul.bf16.vlgmr.msrb.gmra.mxu1 %v2538_v11  ;;  %1019 = vmatmul.bf16.vlgmr.msrb.gmra.mxu0 %v925_v51  ;;  %v753_v11 = vsel %vm589_vm1, %v750_v19, %v752_v55  ;;  %v2348_v19 = vld [vmem:[%s3060_s1 + $0x198] sm:$0xff] }
  0x4d   : > { %1140 = vmatpush.bf16.msra.mxu1 %v2340_v45  ;;  %1603 = vmatpush.bf16.msra.mxu0 %v2368_v48  ;;  %v945_v45 = vshrl.u32 %v2814_v39, 16  ;;  %v2362_v48 = vld [vmem:[%s3060_s1 + $0x208] sm:$0xff]  ;;  %v2842_v51 = vpack.c.b16 %v1223_v43, %v1222_v42 }
  0x4e   : > { %1303 = vmatpush.bf16.msra.mxu2 %v2352_v44  ;;  %v2334_v44 = vld [vmem:[%s3060_s1 + $0x148] sm:$0xff] }
  0x4f   : > { %660 = vmatmul.bf16.vlgmr.msrb.gmra.mxu2 %v592_v50  ;;  %827 = vmatmul.bf16.gmra.mxu3 %v753_v11  ;;  %v2838_v50 = vld [vmem:[%s2523_s14 + $0x10] sm:$0xff]  ;;  %v1369_v55 = vshrl.u32 %v2842_v51, 16 }
  0x50   : > { %v1377_v57 = vshrl.u32 %v2838_v50, 16  ;;  %v1380_v58 = vshll.u32 %v2838_v50, 16  ;;  %v1240_v35 = vrot.slane %v2838_v50, 2 }
  0x51   : > { %1141 = vmatpush.bf16.msra.mxu1 %v2339_v53  ;;  %1604 = vmatpush.bf16.msra.mxu0 %v2367_v56  ;;  %v950_v53 = vrot.slane %v948_v46, 2  ;;  %v1372_v56 = vshll.u32 %v2842_v51, 16  ;;  %v1371_v62 = vrot.slane %v1369_v55, 2 }
  0x52   : > { %1304 = vmatpush.bf16.msra.mxu2 %v2351_v52  ;;  %v947_v52 = vrot.slane %v945_v45, 1  ;;  %v1382_v11 = vrot.slane %v1380_v58, 3 }
  0x54   : > { %v951_v60 = vor.u32 %v950_v53, %v947_v52  ;;  %v1347_v53 = vld [vmem:[%s2523_s14 + $0x30] sm:$0x3] }
  0x55   : > { %1142 = vmatpush.bf16.msra.mxu1 %v2338_v0  ;;  %1605 = vmatpush.bf16.msra.mxu0 %v2366_v1  ;;  %v1379_v0 = vrot.slane %v1377_v57, 2  ;;  %v863_v1 = vld [vmem:[%s2523_s14 + $0x2c] sm:$0x1] }
  0x56   : > { %1305 = vmatpush.bf16.msra.mxu2 %v2350_v63  ;;  %v1374_v63 = vrot.slane %v1372_v56, 3  ;;  %v952_v5 = vsel %vm908_vm2, %v942_v37, %v951_v60  ;;  %v901_v6 = vunpack.c.l.b16 %v863_v1  ;;  %v1077_v37 = vrot.slane %v2663_v18, 2  ;;  %v2890_v18 = vld [vmem:[%s2523_s14 + $0x28] sm:$0xff] }
  0x57   : > { %v1404_v46 = vshrl.u32 %v2890_v18, 16 }
  0x58   : > { %v1080_v57 = vsel %vm1075_vm4, %v1077_v37, %v1079_v49 }
  0x59   : > { %1143 = vmatpush.bf16.msra.mxu1 %v2337_v10  ;;  %1606 = vmatpush.bf16.msra.mxu0 %v2365_v13  ;;  %v1383_v10 = vor.u32 %v1382_v11, %v1379_v0  ;;  %v2855_v13 = vpack.c.b16 %v901_v6, %v901_v6 }
  0x5a   : > { %1306 = vmatpush.bf16.msra.mxu2 %v2349_v9  ;;  %v1375_v9 = vor.u32 %v1374_v63, %v1371_v62  ;;  %v1365_v62 = vunpack.c.l.b16 %v1347_v53 }
  0x5b   : > { %v954_v20 = vshll.u32 %v2855_v13, 16 }
  0x5c   : > { %548 = vmatmul.bf16.gmra.mxu1 %v2547_v14  ;;  %1024 = vmatmul.bf16.gmra.mxu0 %v934_v23  ;;  %v2346_v14 = vld [vmem:[%s3060_s1 + $0x188] sm:$0xff]  ;;  %v1384_v15 = vsel %vm1367_vm3, %v1375_v9, %v1383_v10  ;;  %v2904_v63 = vpack.c.b16 %v1365_v62, %v1365_v62  ;;  %v1081_v9 = vrot.slane %v2783_v24, 2 }
  0x5d   : > { %1144 = vmatpush.bf16.msra.mxu1 %v2336_v21  ;;  %1607 = vmatpush.bf16.msra.mxu0 %v2364_v27  ;;  %v1386_v21 = vshrl.u32 %v2859_v17, 16  ;;  %v1055_v27 = vld [vmem:[%s2523_s14 + $0x4] sm:$0xc] }
  0x5e   : > { %1307 = vmatpush.bf16.msra.mxu2 %v2348_v19  ;;  %v2435_v19 = vld [vmem:[%s2523_s14 + $0x20] sm:$0x70]  ;;  %v1073_v30 = vunpack.c.l.b16 %v1055_v27  ;;  %v1413_v1 = vshrl.u32 %v2904_v63, 16 }
  0x5f   : > { %665 = vmatmul.bf16.gmra.mxu2 %v594_v22  ;;  %832 = vmatmul.bf16.gmra.mxu3 %v755_v32  ;;  %v956_v22 = vrot.slane %v954_v20, 2  ;;  %v1388_v23 = vrot.slane %v1386_v21, 2 }
  0x61   : > { %1145 = vmatpush.bf16.msra.mxu1 %v2335_v29  ;;  %1608 = vmatpush.bf16.msra.mxu0 %v2363_v33  ;;  %v1518_v29 = vld [vmem:[%s2523_s14 + $0x8] sm:$0x8]  ;;  %v1074_v33 = vpack.c.b16 %v892_v2, %v1073_v30  ;;  %v1540_v2 = vrot.slane %v2838_v50, 3  ;;  %v1406_v50 = vrot.slane %v1404_v46, 2  ;;  %v1085_v46 = vrot.slane %v2855_v13, 2 }
  0x62   : > { %1308 = vmatpush.bf16.msra.mxu2 %v2347_v26  ;;  %v957_v26 = vsel %vm908_vm2, %v951_v60, %v956_v22  ;;  %v1536_v31 = vunpack.c.l.b16 %v1518_v29 }
  0x63   : > { %v1076_v36 = vrot.slane %v1074_v33, 2  ;;  %v1194_v33 = vld [vmem:[%s2523_s14 + $0x30] sm:$0x1] }
  0x65   : > { %1146 = vmatpush.bf16.msra.mxu1 %v2334_v44  ;;  %1609 = vmatpush.bf16.msra.mxu0 %v2362_v48  ;;  %v1078_v42 = vsel %vm1075_vm4, %v1076_v36, %v1077_v37  ;;  %v1242_v48 = vrot.slane %v2859_v17, 2  ;;  %v1232_v36 = vunpack.c.l.b16 %v1194_v33 }
  0x66   : > { %1309 = vmatpush.bf16.msra.mxu2 %v2346_v14  ;;  %v2873_v14 = vld [vmem:[%s2523_s14 + $0x20] sm:$0xff]  ;;  %s2279_s14 = sshll.u32 %s3076_s18, 5 }
  0x67   : > { %v1395_v34 = vshrl.u32 %v2873_v14, 16  ;;  %v1398_v7 = vshll.u32 %v2873_v14, 16  ;;  %v1243_v52 = vsel %vm1075_vm4, %v1240_v35, %v1242_v48  ;;  %s2968_s6 = scalar_lea.vmem %s3063_s4, %s2279_s14  ;;  %s2988_s12 = scalar_lea.vmem %s3064_s5, %s2279_s14 }
  0x69   : > { %1610 = vmatpush.bf16.msra.mxu0 %v2361_v3  ;;  %v1397_v40 = vrot.slane %v1395_v34, 2  ;;  %v1416_v3 = vshll.u32 %v2904_v63, 16 }
  0x6a   : > { %1310 = vmatpush.bf16.msra.mxu2 %v2345_v47  ;;  %v1407_v47 = vshll.u32 %v2890_v18, 16 }
  0x6c   : > { %553 = vmatmul.bf16.gmra.mxu1 %v2541_v12  ;;  %1029 = vmatmul.bf16.gmra.mxu0 %v943_v41  ;;  %v2333_v12 = vld [vmem:[%s3060_s1 + $0x140] sm:$0xff]  ;;  %v1400_v41 = vrot.slane %v1398_v7, 3 }
  0x6d   : > { %1147 = vmatpush.bf16.msra.mxu1 %v2333_v12  ;;  %v1542_v12 = vrot.slane %v2859_v17, 3 }
  0x6e   : > { %v1401_v44 = vor.u32 %v1400_v41, %v1397_v40 }
  0x6f   : > { %670 = vmatmul.bf16.gmra.mxu2 %v596_v38  ;;  %837 = vmatmul.bf16.gmra.mxu3 %v754_v25  ;;  %v2422_v25 = vor.u32 %v2435_v19, %v2529_v8  ;;  %v1537_v8 = vpack.c.b16 %v1223_v43, %v1536_v31  ;;  %v1543_v58 = vsel %vm1538_vm5, %v1540_v2, %v1542_v12  ;;  %v1083_v31 = vrot.slane %v2814_v39, 2 }
  0x70   : > { %v1238_v39 = vpack.c.b16 %v1232_v36, %v1232_v36 }
  0x71   : > { %v1539_v38 = vrot.slane %v1537_v8, 3  ;;  %v1084_v7 = vsel %vm1075_vm4, %v1081_v9, %v1083_v31 }
  0x73   : > { %v1541_v43 = vsel %vm1538_vm5, %v1539_v38, %v1540_v2 }
  0x7c   : > { %558 = vmatmul.bf16.gmra.mxu1 %v2551_v16  ;;  %1034 = vmatmul.bf16.gmra.mxu0 %v952_v5  ;;  %v1244_v5 = vrot.slane %v2873_v14, 2 }
  0x7e   : > { %v1245_v19 = vsel %vm1075_vm4, %v1242_v48, %v1244_v5 }
  0x7f   : > { %675 = vmatmul.bf16.gmra.mxu2 %v2761_v4  ;;  %1482 = vmatmul.bf16.vlgmr.msrb.gmra.mxu3 %v1384_v15  ;;  %v1389_v4 = vshll.u32 %v2859_v17, 16  ;;  %v1415_v15 = vrot.slane %v1413_v1, 2  ;;  %v1418_v17 = vrot.slane %v1416_v3, 3 }
  0x81   : > { %v1391_v16 = vrot.slane %v1389_v4, 3  ;;  %v1082_v4 = vsel %vm1075_vm4, %v1079_v49, %v1081_v9 }
  0x83   : > { %v1392_v28 = vor.u32 %v1391_v16, %v1388_v23  ;;  %v1419_v23 = vor.u32 %v1418_v17, %v1415_v15 }
  0x85   : > { %v1393_v32 = vsel %vm1367_vm3, %v1383_v10, %v1392_v28  ;;  %v1402_v45 = vsel %vm1367_vm3, %v1392_v28, %v1401_v44  ;;  %v1544_v10 = vrot.slane %v2873_v14, 3  ;;  %v1246_v28 = vrot.slane %v2890_v18, 2 }
  0x87   : > { %v1545_v22 = vsel %vm1538_vm5, %v1542_v12, %v1544_v10  ;;  %v1247_v14 = vsel %vm1075_vm4, %v1244_v5, %v1246_v28 }
  0x8c   : > { %563 = vmatmul.bf16.gmra.mxu1 %v2422_v25  ;;  %1039 = vmatmul.bf16.gmra.mxu0 %v957_v26 }
  0x8f   : > { %680 = vmatmul.bf16.gmra.mxu2 %v597_v59  ;;  %1487 = vmatmul.bf16.gmra.mxu3 %v1393_v32  ;;  %v1239_v59 = vrot.slane %v2842_v51, 2  ;;  %v1409_v51 = vrot.slane %v1407_v47, 3  ;;  %v1546_v32 = vrot.slane %v2890_v18, 3  ;;  %v1548_v47 = vrot.slane %v2904_v63, 3 }
  0x91   : > { %v1241_v61 = vsel %vm1075_vm4, %v1239_v59, %v1240_v35  ;;  %v1410_v60 = vor.u32 %v1409_v51, %v1406_v50  ;;  %v1547_v59 = vsel %vm1538_vm5, %v1544_v10, %v1546_v32  ;;  %v1549_v53 = vsel %vm1538_vm5, %v1546_v32, %v1548_v47 }
  0x93   : > { %v1411_v54 = vsel %vm1367_vm3, %v1401_v44, %v1410_v60  ;;  %v1420_v24 = vsel %vm1367_vm3, %v1410_v60, %v1419_v23  ;;  %v1248_v44 = vrot.slane %v1238_v39, 2 }
  0x95   : > { %v1249_v49 = vsel %vm1075_vm4, %v1246_v28, %v1248_v44 }
  0x9c   : > { %1148 = vmatmul.bf16.vlgmr.msra.gmra.mxu1 %v1078_v42  ;;  %1611 = vmatmul.bf16.vlgmr.msra.gmra.mxu0 %v1541_v43 }
  0x9f   : > { %1311 = vmatmul.bf16.vlgmr.msra.gmra.mxu2 %v1241_v61  ;;  %1492 = vmatmul.bf16.gmra.mxu3 %v1402_v45 }
  0xa9   : > { %v454_v55 = vpop.f32.mrf.mxu0  ;;  %v2899_v56 = vpop.f32.mrf.mxu1 }
  0xac   : > { %1153 = vmatmul.bf16.gmra.mxu1 %v1080_v57  ;;  %1616 = vmatmul.bf16.gmra.mxu0 %v1543_v58 }
  0xaf   : > { %1316 = vmatmul.bf16.gmra.mxu2 %v1243_v52  ;;  %1497 = vmatmul.bf16.gmra.mxu3 %v1411_v54  ;;  %v1086_v52 = vsel %vm1075_vm4, %v1083_v31, %v1085_v46 }
  0xb1   : > { %v456_v0 = vpop.f32.mrf.mxu0  ;;  %v2906_v11 = vpop.f32.mrf.mxu1 }
  0xb2   : > { %v818_v6 = vpop.f32.mrf.mxu3  ;;  %v2918_v16 = vpop.f32.mrf.mxu2 }
  0xb9   : > { %v459_v20 = vpop.f32.mrf.mxu0  ;;  %v2914_v21 = vpop.f32.mrf.mxu1 }
  0xba   : > { %v820_v25 = vpop.f32.mrf.mxu3  ;;  %v2924_v30 = vpop.f32.mrf.mxu2 }
  0xbc   : > { %1158 = vmatmul.bf16.gmra.mxu1 %v1082_v4  ;;  %1621 = vmatmul.bf16.gmra.mxu0 %v1545_v22 }
  0xbf   : > { %1321 = vmatmul.bf16.gmra.mxu2 %v1245_v19  ;;  %1502 = vmatmul.bf16.gmra.mxu3 %v1420_v24 }
  0xc1   : > { %v461_v26 = vpop.f32.mrf.mxu0  ;;  %v2921_v27 = vpop.f32.mrf.mxu1 }
  0xc2   : > { %v823_v29 = vpop.f32.mrf.mxu3 }
  0xc9   : > { %v544_v8 = vpop.f32.mrf.mxu1  ;;  %v1020_v34 = vpop.f32.mrf.mxu0 }
  0xca   : > { %v545_v35 = vadd.f32 %v544_v8, %v454_v55  ;;  %v825_v37 = vpop.f32.mrf.mxu3 }
  0xcc   : > { %1163 = vmatmul.bf16.gmra.mxu1 %v1084_v7  ;;  %1626 = vmatmul.bf16.gmra.mxu0 %v1547_v59 }
  0xcf   : > { %1326 = vmatmul.bf16.gmra.mxu2 %v1247_v14 }
  0xd1   : > { %v546_v41 = vpop.f32.mrf.mxu1  ;;  %v1022_v61 = vpop.f32.mrf.mxu0 }
  0xd2   : > { %v661_v38 = vpop.f32.mrf.mxu2  ;;  %v547_v42 = vadd.f32 %v546_v41, %v456_v0  ;;  %v828_v45 = vpop.f32.mrf.mxu3 }
  0xd3   : > { %v686_v2 = vadd.f32 %v661_v38, %v545_v35 }
  0xd5   : > { %v843_v40 = vadd.f32 %v818_v6, %v686_v2 }
  0xd7   : > { %v2932_v43 = vadd.f32 %v1020_v34, %v843_v40 }
  0xd9   : > { %v549_v50 = vpop.f32.mrf.mxu1  ;;  %v1025_v51 = vpop.f32.mrf.mxu0 }
  0xda   : > { %v663_v18 = vpop.f32.mrf.mxu2  ;;  %v550_v55 = vadd.f32 %v549_v50, %v459_v20  ;;  %v830_v58 = vpop.f32.mrf.mxu3 }
  0xdb   : > { %v687_v48 = vadd.f32 %v663_v18, %v547_v42 }
  0xdc   : > { %1168 = vmatmul.bf16.gmra.mxu1 %v1086_v52  ;;  %1631 = vmatmul.bf16.gmra.mxu0 %v1549_v53 }
  0xdd   : > { %v844_v12 = vadd.f32 %v820_v25, %v687_v48 }
  0xdf   : > { %1331 = vmatmul.bf16.gmra.mxu2 %v1249_v49  ;;  %v2939_v57 = vadd.f32 %v1022_v61, %v844_v12 }
  0xe1   : > { %v551_v54 = vpop.f32.mrf.mxu1  ;;  %v1027_v63 = vpop.f32.mrf.mxu0 }
  0xe2   : > { %v666_v13 = vpop.f32.mrf.mxu2  ;;  %v552_v0 = vadd.f32 %v551_v54, %v461_v26  ;;  %v833_v3 = vpop.f32.mrf.mxu3  ;;  %v2973_v54 = vld [vmem:[%s3061_s2] ss:$0 sm:$0xff] }
  0xe3   : > { %v688_v60 = vadd.f32 %v666_v13, %v550_v55 }
  0xe5   : > { %v845_v62 = vadd.f32 %v823_v29, %v688_v60 }
  0xe7   : > { %v2941_v1 = vadd.f32 %v1025_v51, %v845_v62 }
  0xe9   : > { %v554_v10 = vpop.f32.mrf.mxu1  ;;  %v1030_v15 = vpop.f32.mrf.mxu0 }
  0xea   : > { %v668_v5 = vpop.f32.mrf.mxu2  ;;  %v555_v17 = vadd.f32 %v554_v10, %v2899_v56  ;;  %v835_v22 = vpop.f32.mrf.mxu3 }
  0xeb   : > { %v689_v6 = vadd.f32 %v668_v5, %v552_v0  ;;  %v1675_v0 = vld [vmem:[%s2968_s6] sm:$0xff]  }
  0xed   : > { %v846_v9 = vadd.f32 %v825_v37, %v689_v6  ;;  %v2979_v6 = vld [vmem:[%s3062_s3] ss:$0 sm:$0xff] }
  0xef   : > { %v2944_v19 = vadd.f32 %v1027_v63, %v846_v9 }
  0xf1   : > { %v556_v25 = vpop.f32.mrf.mxu1  ;;  %v1032_v24 = vpop.f32.mrf.mxu0 }
  0xf2   : > { %v671_v20 = vpop.f32.mrf.mxu2  ;;  %v557_v26 = vadd.f32 %v556_v25, %v2906_v11  ;;  %v838_v14 = vpop.f32.mrf.mxu3 }
  0xf3   : > { %v690_v4 = vadd.f32 %v671_v20, %v555_v17 }
  0xf5   : > { %v847_v23 = vadd.f32 %v828_v45, %v690_v4 }
  0xf7   : > { %v2947_v28 = vadd.f32 %v1030_v15, %v847_v23  ;;  %v1676_v15 = vunpack.c.l.bf16 %v1675_v0 }
  0xf9   : > { %v559_v33 = vpop.f32.mrf.mxu1  ;;  %v1035_v8 = vpop.f32.mrf.mxu0 }
  0xfa   : > { %v673_v29 = vpop.f32.mrf.mxu2  ;;  %v560_v56 = vadd.f32 %v559_v33, %v2914_v21  ;;  %v840_v11 = vpop.f32.mrf.mxu3 }
  0xfb   : > { %v691_v31 = vadd.f32 %v673_v29, %v557_v26 }
  0xfd   : > { %v848_v32 = vadd.f32 %v830_v58, %v691_v31  ;;  %v1682_v31 = vunpack.c.h.bf16 %v1675_v0 }
  0xff   : > { %v2950_v34 = vadd.f32 %v1032_v24, %v848_v32 }
 0x101   : > { %v561_v36 = vpop.f32.mrf.mxu1  ;;  %v1037_v37 = vpop.f32.mrf.mxu0 }
 0x102   : > { %v676_v7 = vpop.f32.mrf.mxu2  ;;  %v562_v38 = vadd.f32 %v561_v36, %v2921_v27  ;;  %v1483_v45 = vpop.f32.mrf.mxu3 }
 0x103   : > { %v692_v59 = vadd.f32 %v676_v7, %v560_v56  ;;  %v1684_v7 = vrot.slane %v1682_v31, 6 }
 0x105   : > { %v849_v35 = vadd.f32 %v833_v3, %v692_v59 }
 0x107   : > { %v2953_v2 = vadd.f32 %v1035_v8, %v849_v35  ;;  %v1703_v35 = vld [vmem:[%s2968_s6 + $0x8] sm:$0xff]  }
 0x109   : > { %v564_v61 = vpop.f32.mrf.mxu1  ;;  %v1040_v42 = vpop.f32.mrf.mxu0 }
 0x10a   : > { %v678_v39 = vpop.f32.mrf.mxu2  ;;  %v565_v44 = vadd.f32 %v564_v61, %v2918_v16  ;;  %v1485_v52 = vpop.f32.mrf.mxu3 }
 0x10b   : > { %v693_v40 = vadd.f32 %v678_v39, %v562_v38 }
 0x10d   : > { %v850_v41 = vadd.f32 %v835_v22, %v693_v40 }
 0x10f   : > { %v2956_v21 = vadd.f32 %v1037_v37, %v850_v41  ;;  %v1704_v37 = vunpack.c.l.bf16 %v1703_v35 }
 0x111   : > { %v566_v48 = vpop.f32.mrf.mxu1  ;;  %v1042_v49 = vpop.f32.mrf.mxu0  ;;  %v1706_v61 = vrot.slane %v1704_v37, 4 }
 0x112   : > { %v681_v18 = vpop.f32.mrf.mxu2  ;;  %v567_v27 = vadd.f32 %v566_v48, %v2924_v30  ;;  %v1488_v63 = vpop.f32.mrf.mxu3 }
 0x113   : > { %v694_v46 = vadd.f32 %v681_v18, %v565_v44 }
 0x115   : > { %v851_v47 = vadd.f32 %v838_v14, %v694_v46 }
 0x117   : > { %v2959_v12 = vadd.f32 %v1040_v42, %v851_v47 }
 0x119   : > { %v1149_v55 = vpop.f32.mrf.mxu1  ;;  %v1612_v58 = vpop.f32.mrf.mxu0 }
 0x11a   : > { %v683_v50 = vpop.f32.mrf.mxu2  ;;  %v1174_v16 = vadd.f32 %v1149_v55, %v2932_v43 }
 0x11b   : > { %v695_v51 = vadd.f32 %v683_v50, %v567_v27  ;;  %v1726_v27 = vunpack.c.h.bf16 %v1703_v35  ;;  %v1747_v35 = vld [vmem:[%s2968_s6 + $0x10] sm:$0xff]  }
 0x11d   : > { %v852_v53 = vadd.f32 %v840_v11, %v695_v51 }
 0x11f   : > { %v2962_v13 = vadd.f32 %v1042_v49, %v852_v53 }
 0x121   : > { %v1151_v43 = vpop.f32.mrf.mxu1  ;;  %v1614_v3 = vpop.f32.mrf.mxu0 }
 0x122   : > { %v1312_v60 = vpop.f32.mrf.mxu2  ;;  %v1175_v9 = vadd.f32 %v1151_v43, %v2939_v57  ;;  %v1490_v57 = vpop.f32.mrf.mxu3 }
 0x123   : > { %v1337_v30 = vadd.f32 %v1312_v60, %v1174_v16 }
 0x125   : > { %v1508_v62 = vadd.f32 %v1483_v45, %v1337_v30 }
 0x127   : > { %v1637_v5 = vadd.f32 %v1612_v58, %v1508_v62  ;;  %v1728_v62 = vrot.slane %v1726_v27, 2 }
 0x129   : > { %v1651_v10 = vmul.f32 %v2973_v54, %v1637_v5  ;;  %v1154_v25 = vpop.f32.mrf.mxu1  ;;  %v1617_v24 = vpop.f32.mrf.mxu0 }
 0x12a   : > { %v1314_v17 = vpop.f32.mrf.mxu2  ;;  %v1176_v32 = vadd.f32 %v1154_v25, %v2941_v1  ;;  %v1493_v44 = vpop.f32.mrf.mxu3 }
 0x12b   : > { %v1665_v20 = vadd.f32 %v2979_v6, %v1651_v10  ;;  %v1338_v4 = vadd.f32 %v1314_v17, %v1175_v9 }
 0x12d   : > { %v1677_v22 = vadd.f32 %v1676_v15, %v1665_v20  ;;  %v1509_v23 = vadd.f32 %v1485_v52, %v1338_v4 }
 0x12f   : > { %v1678_v26 = vmax.f32 %v1677_v22, 0.0  ;;  %v1638_v29 = vadd.f32 %v1614_v3, %v1509_v23 }
 0x131   : > { %v1679_v14 = vpack.c.bf16 %v1678_v26, %v1678_v26  ;;  %v1652_v33 = vmul.f32 %v2973_v54, %v1638_v29  ;;  %v1156_v1 = vpop.f32.mrf.mxu1  ;;  %v1619_v38 = vpop.f32.mrf.mxu0 }
 0x132   : > { %v1317_v8 = vpop.f32.mrf.mxu2  ;;  %v1177_v40 = vadd.f32 %v1156_v1, %v2944_v19  ;;  %v1495_v9 = vpop.f32.mrf.mxu3 }
 0x133   : > { %1680 = vst [vmem:[%s2988_s12] sm:$0xf] %v1679_v14  ;;  %v1666_v56 = vadd.f32 %v2979_v6, %v1652_v33  ;;  %v1339_v59 = vadd.f32 %v1317_v8, %v1176_v32 }
 0x135   : > { %v1510_v36 = vadd.f32 %v1488_v63, %v1339_v59  ;;  %v1686_v11 = vadd.f32 %v1684_v7, %v1666_v56 }
 0x137   : > { %v1639_v39 = vadd.f32 %v1617_v24, %v1510_v36  ;;  %v1688_v45 = vmax.f32 %v1686_v11, 0.0 }
 0x139   : > { %v1653_v41 = vmul.f32 %v2973_v54, %v1639_v39  ;;  %v1159_v50 = vpop.f32.mrf.mxu1  ;;  %v1622_v51 = vpop.f32.mrf.mxu0  ;;  %v1690_v52 = vpack.c.bf16 %v1688_v45, %v1688_v45 }
 0x13a   : > { %v1319_v42 = vpop.f32.mrf.mxu2  ;;  %v1178_v55 = vadd.f32 %v1159_v50, %v2947_v28  ;;  %v1498_v36 = vpop.f32.mrf.mxu3  ;;  %v1754_v50 = vunpack.c.h.bf16 %v1747_v35 }
 0x13b   : > { %v1667_v18 = vadd.f32 %v2979_v6, %v1653_v41  ;;  %v1340_v46 = vadd.f32 %v1319_v42, %v1177_v40  ;;  %v2271_v0 = vrot.slane %v1690_v52, 9  ;;  %v1748_v42 = vunpack.c.l.bf16 %v1747_v35 }
 0x13d   : > { %v1687_v47 = vadd.f32 %v1684_v7, %v1667_v18  ;;  %v1511_v48 = vadd.f32 %v1490_v57, %v1340_v46  ;;  %v1708_v49 = vadd.f32 %v1706_v61, %v1667_v18 }
 0x13f   : > { %v1689_v53 = vmax.f32 %v1687_v47, 0.0  ;;  %v1640_v19 = vadd.f32 %v1619_v38, %v1511_v48  ;;  %v1710_v30 = vmax.f32 %v1708_v49, 0.0 }
 0x141   : > { %v1691_v58 = vpack.c.bf16 %v1689_v53, %v1689_v53  ;;  %v1654_v16 = vmul.f32 %v2973_v54, %v1640_v19  ;;  %v1712_v17 = vpack.c.bf16 %v1710_v30, %v1710_v30  ;;  %v1161_v20 = vpop.f32.mrf.mxu1  ;;  %v1624_v4 = vpop.f32.mrf.mxu0  ;;  %v1756_v30 = vrot.slane %v1754_v50, 6 }
 0x142   : > { %v1322_v63 = vpop.f32.mrf.mxu2  ;;  %v1179_v24 = vadd.f32 %v1161_v20, %v2950_v34 }
 0x143   : > { %v1699_v43 = vrot.slane %v1691_v58, 5  ;;  %v1668_v3 = vadd.f32 %v2979_v6, %v1654_v16  ;;  %v1341_v5 = vadd.f32 %v1322_v63, %v1178_v55  ;;  %v2272_v31 = vrot.slane %v1712_v17, 10  ;;  %v1500_v55 = vpop.f32.mrf.mxu3 }
 0x145   : > { %v1700_v10 = vsel %vm2999_vm8, %v2271_v0, %v1699_v43  ;;  %v1709_v28 = vadd.f32 %v1706_v61, %v1668_v3  ;;  %v1512_v15 = vadd.f32 %v1493_v44, %v1341_v5  ;;  %v1730_v23 = vadd.f32 %v1728_v62, %v1668_v3  ;;  %v1772_v3 = vld [vmem:[%s2968_s6 + $0x18] sm:$0xff]  }
 0x146   : > { %1702 = vst [vmem:[%s2988_s12 + $0x4] sm:$0xf] %v1700_v10 }
 0x147   : > { %v1711_v22 = vmax.f32 %v1709_v28, 0.0  ;;  %v1641_v25 = vadd.f32 %v1622_v51, %v1512_v15  ;;  %v1732_v33 = vmax.f32 %v1730_v23, 0.0  ;;  %v1773_v15 = vunpack.c.l.bf16 %v1772_v3 }
 0x149   : > { %v1713_v26 = vpack.c.bf16 %v1711_v22, %v1711_v22  ;;  %v1655_v29 = vmul.f32 %v2973_v54, %v1641_v25  ;;  %v1164_v37 = vpop.f32.mrf.mxu1  ;;  %v1734_v1 = vpack.c.bf16 %v1732_v33, %v1732_v33  ;;  %v1627_v40 = vpop.f32.mrf.mxu0  ;;  %v1775_v25 = vrot.slane %v1773_v15, 4 }
 0x14a   : > { %v1324_v57 = vpop.f32.mrf.mxu2  ;;  %v1180_v39 = vadd.f32 %v1164_v37, %v2953_v2 }
 0x14b   : > { %v1721_v14 = vrot.slane %v1713_v26, 6  ;;  %v1669_v8 = vadd.f32 %v2979_v6, %v1655_v29  ;;  %v1342_v56 = vadd.f32 %v1324_v57, %v1179_v24  ;;  %v2273_v18 = vrot.slane %v1734_v1, 11 }
 0x14d   : > { %v1722_v7 = vsel %vm3009_vm11, %v2272_v31, %v1721_v14  ;;  %v1731_v59 = vadd.f32 %v1728_v62, %v1669_v8  ;;  %v1513_v34 = vadd.f32 %v1495_v9, %v1342_v56  ;;  %v1792_v14 = vunpack.c.h.bf16 %v1772_v3 }
 0x14e   : > { %1724 = vst [vmem:[%s2988_s12 + $0x8] sm:$0xf] %v1722_v7 }
 0x14f   : > { %v1733_v38 = vmax.f32 %v1731_v59, 0.0  ;;  %v1642_v11 = vadd.f32 %v1624_v4, %v1513_v34  ;;  %v1503_v4 = vpop.f32.mrf.mxu3 }
 0x151   : > { %v1735_v41 = vpack.c.bf16 %v1733_v38, %v1733_v38  ;;  %v1656_v61 = vmul.f32 %v2973_v54, %v1642_v11  ;;  %v1166_v51 = vpop.f32.mrf.mxu1  ;;  %v1629_v62 = vpop.f32.mrf.mxu0 }
 0x152   : > { %v1327_v45 = vpop.f32.mrf.mxu2  ;;  %v1181_v19 = vadd.f32 %v1166_v51, %v2956_v21 }
 0x153   : > { %v1743_v46 = vrot.slane %v1735_v41, 7  ;;  %v1670_v47 = vadd.f32 %v2979_v6, %v1656_v61  ;;  %v1343_v48 = vadd.f32 %v1327_v45, %v1180_v39 }
 0x155   : > { %v1744_v49 = vsel %vm3020_vm14, %v2273_v18, %v1743_v46  ;;  %v1749_v2 = vadd.f32 %v1748_v42, %v1670_v47  ;;  %v1514_v27 = vadd.f32 %v1498_v36, %v1343_v48  ;;  %v1794_v36 = vrot.slane %v1792_v14, 2 }
 0x156   : > { %1746 = vst [vmem:[%s2988_s12 + $0xc] sm:$0xf] %v1744_v49 }
 0x157   : > { %v1750_v52 = vmax.f32 %v1749_v2, 0.0  ;;  %v1643_v53 = vadd.f32 %v1627_v40, %v1514_v27  ;;  %v1505_v40 = vpop.f32.mrf.mxu3 }
 0x159   : > { %v1751_v58 = vpack.c.bf16 %v1750_v52, %v1750_v52  ;;  %v1657_v16 = vmul.f32 %v2973_v54, %v1643_v53  ;;  %v1169_v10 = vpop.f32.mrf.mxu1  ;;  %v1632_v26 = vpop.f32.mrf.mxu0 }
 0x15a   : > { %v1329_v63 = vpop.f32.mrf.mxu2  ;;  %v1182_v17 = vadd.f32 %v1169_v10, %v2959_v12 }
 0x15b   : > { %1752 = vst [vmem:[%s2988_s12 + $0x10] sm:$0xf] %v1751_v58  ;;  %v1671_v0 = vadd.f32 %v2979_v6, %v1657_v16  ;;  %v1344_v43 = vadd.f32 %v1329_v63, %v1181_v19 }
 0x15d   : > { %v1515_v5 = vadd.f32 %v1500_v55, %v1344_v43  ;;  %v1758_v9 = vadd.f32 %v1756_v30, %v1671_v0 }
 0x15f   : > { %v1644_v28 = vadd.f32 %v1629_v62, %v1515_v5  ;;  %v1760_v20 = vmax.f32 %v1758_v9, 0.0 }
 0x161   : > { %v1658_v21 = vmul.f32 %v2973_v54, %v1644_v28  ;;  %v1762_v57 = vpack.c.bf16 %v1760_v20, %v1760_v20  ;;  %v1171_v33 = vpop.f32.mrf.mxu1 }
 0x162   : > { %v1332_v22 = vpop.f32.mrf.mxu2  ;;  %v1183_v12 = vadd.f32 %v1171_v33, %v2962_v13  ;;  %v1634_v13 = vpop.f32.mrf.mxu0 }
 0x163   : > { %v1672_v23 = vadd.f32 %v2979_v6, %v1658_v21  ;;  %v1345_v24 = vadd.f32 %v1332_v22, %v1182_v17  ;;  %v2274_v35 = vrot.slane %v1762_v57, 9 }
 0x165   : > { %v1759_v29 = vadd.f32 %v1756_v30, %v1672_v23  ;;  %v1516_v31 = vadd.f32 %v1503_v4, %v1345_v24  ;;  %v1777_v56 = vadd.f32 %v1775_v25, %v1672_v23 }
 0x167   : > { %v1761_v8 = vmax.f32 %v1759_v29, 0.0  ;;  %v1645_v7 = vadd.f32 %v1632_v26, %v1516_v31  ;;  %v1779_v38 = vmax.f32 %v1777_v56, 0.0 }
 0x169   : > { %v1763_v59 = vpack.c.bf16 %v1761_v8, %v1761_v8  ;;  %v1659_v34 = vmul.f32 %v2973_v54, %v1645_v7  ;;  %v1781_v45 = vpack.c.bf16 %v1779_v38, %v1779_v38 }
 0x16a   : > { %v1334_v37 = vpop.f32.mrf.mxu2 }
 0x16b   : > { %v1768_v1 = vrot.slane %v1763_v59, 5  ;;  %v1673_v11 = vadd.f32 %v2979_v6, %v1659_v34  ;;  %v1346_v39 = vadd.f32 %v1334_v37, %v1183_v12  ;;  %v2275_v2 = vrot.slane %v1781_v45, 10 }
 0x16d   : > { %v1769_v41 = vsel %vm2999_vm8, %v2274_v35, %v1768_v1  ;;  %v1778_v61 = vadd.f32 %v1775_v25, %v1673_v11  ;;  %v1517_v42 = vadd.f32 %v1505_v40, %v1346_v39  ;;  %v1796_v46 = vadd.f32 %v1794_v36, %v1673_v11 }
 0x16e   : > { %1771 = vst [vmem:[%s2988_s12 + $0x14] sm:$0xf] %v1769_v41 }
 0x16f   : > { %v1780_v18 = vmax.f32 %v1778_v61, 0.0  ;;  %v1646_v47 = vadd.f32 %v1634_v13, %v1517_v42  ;;  %v1798_v50 = vmax.f32 %v1796_v46, 0.0 }
 0x171   : > { %v1782_v48 = vpack.c.bf16 %v1780_v18, %v1780_v18  ;;  %v1660_v49 = vmul.f32 %v2973_v54, %v1646_v47  ;;  %v1800_v53 = vpack.c.bf16 %v1798_v50, %v1798_v50 }
 0x173   : > { %v1787_v27 = vrot.slane %v1782_v48, 6  ;;  %v1674_v51 = vadd.f32 %v2979_v6, %v1660_v49  ;;  %v2276_v58 = vrot.slane %v1800_v53, 11 }
 0x175   : > { %v1788_v60 = vsel %vm3009_vm11, %v2275_v2, %v1787_v27  ;;  %v1797_v52 = vadd.f32 %v1794_v36, %v1674_v51 }
 0x176   : > { %1790 = vst [vmem:[%s2988_s12 + $0x18] sm:$0xf] %v1788_v60 }
 0x177   : > { %v1799_v19 = vmax.f32 %v1797_v52, 0.0 }
 0x179   : > { %v1801_v55 = vpack.c.bf16 %v1799_v19, %v1799_v19 }
 0x17b   : > { %v1806_v16 = vrot.slane %v1801_v55, 7 }
 0x17d   : > { %v1807_v30 = vsel %vm3020_vm14, %v2276_v58, %v1806_v16 }
 0x17e   : > { %1809 = vst [vmem:[%s2988_s12 + $0x1c] sm:$0xf] %v1807_v30 }
 0x17f PF: > { %s15_s20 = sadd.s32 1, %s2446_s20   ;;  %s3071_s18 = smov %s2442_s19 }
 0x180   : > { %p12_p5 = scmp.ge.s32.totalorder %s15_s20, 4   ;;  %s3072_s19 = smov %s3074_s21 }
 0x182   :  { %14 = sbr.rel (!%p12_p5) target bundleno = 2 (0x2), region = 73 }

// kernel: _lambda_.21
= control target key start
LH: loop header
LB: loop body
LE: loop exit
PB: predicated region body
PF: predicated region fallthrough
CT: control target
= control target key end

     0   :  { %s1779_s15 = smov 0   ;;  %s1781_s16 = smov 0   ;;  %s2081_s0 = inlined_call_operand.vmem [shape: bf16[2,128,128], index: 0, kind: input, shape index: {}]   ;;  %s2082_s1 = inlined_call_operand.vmem [shape: bf16[1152,128], index: 1, kind: input, shape index: {}]   ;;  %s2083_s2 = inlined_call_operand.vmem [shape: f32[1,128], index: 2, kind: input, shape index: {}]   ;;  %s2084_s3 = inlined_call_operand.vmem [shape: f32[1,128], index: 3, kind: input, shape index: {}]   ;;  %s2085_s4 = inlined_call_operand.vmem [shape: bf16[2,16,128], index: 4, kind: output, shape index: {}]  }
   0x1   :  { %s1783_s17 = smov 0  }
   0x2 LB: > { %s26_s18 = sadd.s32 1, %s1748_s16  ;;  %p1290_p0 = scmp.ge.s32.totalorder %s1752_s17, 1  ;;  %s1752_s17 = sphi %s1783_s17, %s14_s17   ;;  %s1748_s16 = sphi %s1781_s16, %s2087_s16   ;;  %s1744_s15 = sphi %s1779_s15, %s2086_s15  }
   0x3   : > { %p28_p1 = scmp.ge.s32.totalorder %s26_s18, 2  ;;  %p176_p2 = scmp.lt.s32.totalorder %s1752_s17, 3 }
   0x5   : > { %s2089_s18 = smov (%p28_p1, %s26_s18), 0  ;;  %p177_p3 = pnand %p1290_p0, %p176_p2 }
   0x6   : > { %p206_p4 = scmp.lt.s32.totalorder (!%p177_p3), %s1744_s15, 1 }
   0x7   : > { %180 = sbr.rel (%p177_p3) target bundleno = 259 (0x103), region = 36 }
   0xc   : > { %v1620_v0 = vld [vmem:[%s2082_s1 + $0x78] sm:$0xff]  ;;  %v1619_v4 = vld [vmem:[%s2082_s1 + $0x70] sm:$0xff]  ;;  %s2091_s15 = smov (!%p206_p4, %s1744_s15), 1  ;;  %v1618_v8 = vld [vmem:[%s2082_s1 + $0x68] sm:$0xff]  ;;  %vm427_vm0 = vsmask.f32 7424 }
   0xd   : > { %v1612_v1 = vld [vmem:[%s2082_s1 + $0x38] sm:$0xff]  ;;  %317 = vmatpush.bf16.msra.mxu0 %v1620_v0  ;;  %v1611_v5 = vld [vmem:[%s2082_s1 + $0x30] sm:$0xff]  ;;  %v1610_v9 = vld [vmem:[%s2082_s1 + $0x28] sm:$0xff]  ;;  %s1603_s13 = sshll.u32 %s2091_s15, 6  ;;  %vm836_vm1 = vsmask.f32 5376 }
   0xe   : > { %v1628_v2 = vld [vmem:[%s2082_s1 + $0xb8] sm:$0xff]  ;;  %393 = vmatpush.bf16.msra.mxu1 %v1612_v1  ;;  %v1627_v6 = vld [vmem:[%s2082_s1 + $0xb0] sm:$0xff]  ;;  %v1626_v10 = vld [vmem:[%s2082_s1 + $0xa8] sm:$0xff]  ;;  %s1839_s24 = scalar_lea.vmem %s2081_s0, %s1603_s13  ;;  %vm1067_vm2 = vcmask 1044480   ;;  %s1604_s21 = sshll.u32 %s2091_s15, 3 }
   0xf   : > { %v1637_v3 = vld [vmem:[%s2082_s1 + $0xf8] sm:$0xff]  ;;  %493 = vmatpush.bf16.msra.mxu2 %v1628_v2  ;;  %v1636_v7 = vld [vmem:[%s2082_s1 + $0xf0] sm:$0xff]  ;;  %v1635_v11 = vld [vmem:[%s2082_s1 + $0xe8] sm:$0xff]  ;;  %s2066_s25 = scalar_lea.vmem %s2085_s4, %s1604_s21  ;;  %vm1161_vm3 = vsmask.f32 3328 }
  0x10   : > { %591 = vmatpush.bf16.msra.mxu3 %v1637_v3  ;;  %v1617_v12 = vld [vmem:[%s2082_s1 + $0x60] sm:$0xff]  ;;  %v223_v16 = vld [vmem:[%s1839_s24 + $0x8] sm:$0x3]  ;;  %v1616_v17 = vld [vmem:[%s2082_s1 + $0x58] sm:$0xff]  ;;  %vm1162_vm4 = vsmask.f32 7440 }
  0x11   : > { %318 = vmatpush.bf16.msra.mxu0 %v1619_v4  ;;  %v1609_v13 = vld [vmem:[%s2082_s1 + $0x20] sm:$0xff]  ;;  %v1608_v18 = vld [vmem:[%s2082_s1 + $0x18] sm:$0xff]  ;;  %v340_v21 = vunpack.c.l.b16 %v223_v16  ;;  %v1615_v23 = vld [vmem:[%s2082_s1 + $0x50] sm:$0xff]  ;;  %vm1187_vm5 = vsmask.f32 2304 }
  0x12   : > { %394 = vmatpush.bf16.msra.mxu1 %v1611_v5  ;;  %v1625_v14 = vld [vmem:[%s2082_s1 + $0xa0] sm:$0xff]  ;;  %v1624_v19 = vld [vmem:[%s2082_s1 + $0x98] sm:$0xff]  ;;  %v1607_v24 = vld [vmem:[%s2082_s1 + $0x10] sm:$0xff]  ;;  %vm1188_vm6 = vsmask.f32 6416 }
  0x13   : > { %494 = vmatpush.bf16.msra.mxu2 %v1627_v6  ;;  %v1634_v15 = vld [vmem:[%s2082_s1 + $0xe0] sm:$0xff]  ;;  %v1633_v20 = vld [vmem:[%s2082_s1 + $0xd8] sm:$0xff]  ;;  %v1623_v25 = vld [vmem:[%s2082_s1 + $0x90] sm:$0xff]  ;;  %v1879_v28 = vpack.c.b16 %v340_v21, %v340_v21 }
  0x14   : > { %592 = vmatpush.bf16.msra.mxu3 %v1636_v7  ;;  %v1682_v22 = vld [vmem:[%s1839_s24] sm:$0xff]   ;;  %v1632_v26 = vld [vmem:[%s2082_s1 + $0xd0] sm:$0xff]  ;;  %v1614_v29 = vld [vmem:[%s2082_s1 + $0x48] sm:$0xff] }
  0x15   : > { %319 = vmatpush.bf16.msra.mxu0 %v1618_v8  ;;  %v431_v27 = vshll.u32 %v1682_v22, 16  ;;  %v1606_v30 = vld [vmem:[%s2082_s1 + $0x8] sm:$0xff]  ;;  %v429_v33 = vshrl.u32 %v1682_v22, 16  ;;  %v436_v35 = vshll.u32 %v1879_v28, 16  ;;  %v1613_v36 = vld [vmem:[%s2082_s1 + $0x40] sm:$0xff]  ;;  %v1646_v42 = vld [vmem:[%s2082_s1 + $0x138] sm:$0xff] }
  0x16   : > { %395 = vmatpush.bf16.msra.mxu1 %v1610_v9  ;;  %v1622_v31 = vld [vmem:[%s2082_s1 + $0x88] sm:$0xff]  ;;  %v1605_v37 = vld [vmem:[%s2082_s1] sm:$0xff]  ;;  %v1654_v43 = vld [vmem:[%s2082_s1 + $0x178] sm:$0xff]  ;;  %v440_v2 = vshrl.u32 %v1879_v28, 16 }
  0x17   : > { %495 = vmatpush.bf16.msra.mxu2 %v1626_v10  ;;  %v1631_v32 = vld [vmem:[%s2082_s1 + $0xc8] sm:$0xff]  ;;  %v433_v34 = vrot.slane %v431_v27, 1  ;;  %v1621_v38 = vld [vmem:[%s2082_s1 + $0x80] sm:$0xff]  ;;  %v438_v41 = vrot.slane %v436_v35, 1  ;;  %v1689_v44 = vld [vmem:[%s1839_s24 + $0x10] sm:$0xff]  }
  0x18   : > { %593 = vmatpush.bf16.msra.mxu3 %v1635_v11  ;;  %v1630_v39 = vld [vmem:[%s2082_s1 + $0xc0] sm:$0xff]  ;;  %v1662_v47 = vld [vmem:[%s2082_s1 + $0x1b8] sm:$0xff]  ;;  %v1645_v49 = vld [vmem:[%s2082_s1 + $0x130] sm:$0xff] }
  0x19   : > { %320 = vmatpush.bf16.msra.mxu0 %v1617_v12  ;;  %v434_v40 = vor.u32 %v433_v34, %v429_v33  ;;  %v1914_v45 = vld [vmem:[%s1839_s24 + $0x20] sm:$0xff]  ;;  %v1670_v48 = vld [vmem:[%s2082_s1 + $0x1f8] sm:$0xff]  ;;  %v1653_v50 = vld [vmem:[%s2082_s1 + $0x170] sm:$0xff] }
  0x1a   : > { %396 = vmatpush.bf16.msra.mxu1 %v1609_v13  ;;  %v1661_v51 = vld [vmem:[%s2082_s1 + $0x1b0] sm:$0xff]  ;;  %v1644_v53 = vld [vmem:[%s2082_s1 + $0x128] sm:$0xff]  ;;  %v242_v56 = vld [vmem:[%s1839_s24 + $0x18] sm:$0x3]  ;;  %v442_v13 = vor.u32 %v440_v2, %v438_v41 }
  0x1b   : > { %496 = vmatpush.bf16.msra.mxu2 %v1625_v14  ;;  %v439_v46 = vsel %vm427_vm0, %v434_v40, %v438_v41  ;;  %v1669_v52 = vld [vmem:[%s2082_s1 + $0x1f0] sm:$0xff]  ;;  %v1652_v54 = vld [vmem:[%s2082_s1 + $0x168] sm:$0xff]  ;;  %v1643_v60 = vld [vmem:[%s2082_s1 + $0x120] sm:$0xff]  ;;  %v264_v63 = vunpack.c.l.b16 %v242_v56 }
  0x1c   : > { %594 = vmatpush.bf16.msra.mxu3 %v1634_v15  ;;  %v1660_v55 = vld [vmem:[%s2082_s1 + $0x1a8] sm:$0xff]  ;;  %v1651_v61 = vld [vmem:[%s2082_s1 + $0x160] sm:$0xff]  ;;  %v926_v62 = vld [vmem:[%s1839_s24 + $0x18] sm:$0xf] }
  0x1d   : > { %321 = vmatpush.bf16.msra.mxu0 %v1616_v17  ;;  %v1668_v57 = vld [vmem:[%s2082_s1 + $0x1e8] sm:$0xff]  ;;  %v1659_v0 = vld [vmem:[%s2082_s1 + $0x1a0] sm:$0xff]  ;;  %v1642_v5 = vld [vmem:[%s2082_s1 + $0x118] sm:$0xff]  ;;  %v946_v8 = vunpack.c.l.b16 %v926_v62  ;;  %v266_v12 = vpack.c.b16 %v264_v63, %v264_v63 }
  0x1e   : > { %397 = vmatpush.bf16.msra.mxu1 %v1608_v18  ;;  %v516_v58 = vld [vmem:[%s1839_s24 + $0x28] sm:$0x3]  ;;  %v1667_v1 = vld [vmem:[%s2082_s1 + $0x1e0] sm:$0xff]  ;;  %v1650_v9 = vld [vmem:[%s2082_s1 + $0x158] sm:$0xff] }
  0x1f   : > { %497 = vmatpush.bf16.msra.mxu2 %v1624_v19  ;;  %v813_v59 = vld [vmem:[%s1839_s24 + $0x8] sm:$0xf]  ;;  %v538_v3 = vunpack.c.l.b16 %v516_v58  ;;  %v1690_v6 = vld [vmem:[%s1839_s24] sm:$0xf0]  ;;  %v1691_v7 = vld [vmem:[%s1839_s24] sm:$0xc] }
  0x20   : > { %595 = vmatpush.bf16.msra.mxu3 %v1633_v20  ;;  %v833_v4 = vunpack.c.l.b16 %v813_v59  ;;  %v1693_v10 = vld [vmem:[%s1839_s24 + $0x10] sm:$0xf0]  ;;  %v1694_v11 = vld [vmem:[%s1839_s24 + $0x10] sm:$0xc]  ;;  %v1692_v15 = vor.u32 %v1691_v7, %v1690_v6  ;;  %v1658_v17 = vld [vmem:[%s2082_s1 + $0x198] sm:$0xff]  ;;  %v948_v20 = vpack.c.b16 %v946_v8, %v946_v8 }
  0x21   : > { %322 = vmatpush.bf16.msra.mxu0 %v1615_v23  ;;  %v1975_v14 = vpack.c.b16 %v538_v3, %v538_v3  ;;  %v1666_v18 = vld [vmem:[%s2082_s1 + $0x1d8] sm:$0xff]  ;;  %v1695_v19 = vor.u32 %v1694_v11, %v1693_v10  ;;  %v1641_v21 = vld [vmem:[%s2082_s1 + $0x110] sm:$0xff]  ;;  %v729_v23 = vshll.u32 %v1914_v45, 16  ;;  %v1640_v34 = vld [vmem:[%s2082_s1 + $0x108] sm:$0xff] }
  0x22   : > { %398 = vmatpush.bf16.msra.mxu1 %v1607_v24  ;;  %v835_v16 = vpack.c.b16 %v833_v4, %v833_v4  ;;  %v838_v24 = vshrl.u32 %v1692_v15, 16  ;;  %v961_v33 = vshll.u32 %v948_v20, 16  ;;  %v1648_v35 = vld [vmem:[%s2082_s1 + $0x148] sm:$0xff]  ;;  %v1663_v56 = vld [vmem:[%s2082_s1 + $0x1c0] sm:$0xff]  ;;  %v614_v2 = vld [vmem:[%s1839_s24 + $0x38] sm:$0x3] }
  0x23   : > { %498 = vmatpush.bf16.msra.mxu2 %v1623_v25  ;;  %v841_v25 = vshll.u32 %v1692_v15, 16  ;;  %v1677_v3 = vld [vmem:[%s2082_s1 + $0x220] sm:$0xff]  ;;  %v636_v4 = vunpack.c.l.b16 %v614_v2  ;;  %v1676_v6 = vld [vmem:[%s2082_s1 + $0x218] sm:$0xff]  ;;  %v1674_v10 = vld [vmem:[%s2082_s1 + $0x208] sm:$0xff] }
  0x24   : > { %596 = vmatpush.bf16.msra.mxu3 %v1632_v26  ;;  %v846_v26 = vshrl.u32 %v835_v16, 16  ;;  %v849_v27 = vshll.u32 %v835_v16, 16  ;;  %v1561_v11 = vld [vmem:[%s1839_s24] sm:$0x8]  ;;  %vm1163_vm7 = vmor %vm1161_vm3, %vm1162_vm4 }
  0x25   : > { %323 = vmatpush.bf16.msra.mxu0 %v1614_v29  ;;  %v1657_v29 = vld [vmem:[%s2082_s1 + $0x190] sm:$0xff]  ;;  %v843_v40 = vrot.slane %v841_v25, 3  ;;  %v638_v7 = vpack.c.b16 %v636_v4, %v636_v4  ;;  %vm1189_vm8 = vmor %vm1187_vm5, %vm1188_vm6 }
  0x26   : > { %399 = vmatpush.bf16.msra.mxu1 %v1606_v30  ;;  %v1665_v30 = vld [vmem:[%s2082_s1 + $0x1d0] sm:$0xff]  ;;  %v848_v41 = vrot.slane %v846_v26, 2 }
  0x27   : > { %499 = vmatpush.bf16.msra.mxu2 %v1622_v31  ;;  %v950_v31 = vshrl.u32 %v1695_v19, 16 }
  0x28   : > { %597 = vmatpush.bf16.msra.mxu3 %v1631_v32  ;;  %v953_v32 = vshll.u32 %v1695_v19, 16 }
  0x29   : > { %324 = vmatpush.bf16.msra.mxu0 %v1613_v36  ;;  %v727_v36 = vshrl.u32 %v1914_v45, 16 }
  0x2a   : > { %400 = vmatpush.bf16.msra.mxu1 %v1605_v37  ;;  %v731_v37 = vrot.slane %v729_v23, 1 }
  0x2b   : > { %500 = vmatpush.bf16.msra.mxu2 %v1621_v38  ;;  %v734_v38 = vshll.u32 %v1975_v14, 16 }
  0x2c   : > { %598 = vmatpush.bf16.msra.mxu3 %v1630_v39  ;;  %325 = vmatmul.bf16.vlgmr.msra.gmra.mxu0 %v1689_v44  ;;  %v840_v39 = vrot.slane %v838_v24, 2  ;;  %v1664_v44 = vld [vmem:[%s2082_s1 + $0x1c8] sm:$0xff] }
  0x2d   : > { %689 = vmatpush.bf16.msrb.mxu0 %v1646_v42  ;;  %401 = vmatmul.bf16.vlgmr.msra.gmra.mxu1 %v1682_v22  ;;  %v1649_v22 = vld [vmem:[%s2082_s1 + $0x150] sm:$0xff]  ;;  %v851_v42 = vrot.slane %v849_v27, 3 }
  0x2e   : > { %791 = vmatpush.bf16.msrb.mxu1 %v1654_v43  ;;  %501 = vmatmul.bf16.vlgmr.msra.gmra.mxu2 %v439_v46  ;;  %v1656_v43 = vld [vmem:[%s2082_s1 + $0x188] sm:$0xff]  ;;  %v952_v46 = vrot.slane %v950_v31, 2 }
  0x2f   : > { %599 = vmatmul.bf16.vlgmr.msra.gmra.mxu3 %v1914_v45  ;;  %904 = vmatpush.bf16.msrb.mxu2 %v1662_v47  ;;  %v955_v47 = vrot.slane %v953_v32, 3 }
  0x30   : > { %1016 = vmatpush.bf16.msrb.mxu3 %v1670_v48  ;;  %v963_v48 = vrot.slane %v961_v33, 3 }
  0x31   : > { %690 = vmatpush.bf16.msrb.mxu0 %v1645_v49  ;;  %v1639_v49 = vld [vmem:[%s2082_s1 + $0x100] sm:$0xff]  ;;  %v956_v58 = vor.u32 %v955_v47, %v952_v46 }
  0x32   : > { %792 = vmatpush.bf16.msrb.mxu1 %v1653_v50  ;;  %v1647_v50 = vld [vmem:[%s2082_s1 + $0x140] sm:$0xff] }
  0x33   : > { %905 = vmatpush.bf16.msrb.mxu2 %v1661_v51  ;;  %v1680_v51 = vld [vmem:[%s2082_s1 + $0x238] sm:$0xff] }
  0x34   : > { %1017 = vmatpush.bf16.msrb.mxu3 %v1669_v52  ;;  %v732_v52 = vor.u32 %v731_v37, %v727_v36 }
  0x35   : > { %691 = vmatpush.bf16.msrb.mxu0 %v1644_v53  ;;  %v736_v53 = vrot.slane %v734_v38, 1 }
  0x36   : > { %793 = vmatpush.bf16.msrb.mxu1 %v1652_v54  ;;  %v844_v54 = vor.u32 %v843_v40, %v840_v39 }
  0x37   : > { %906 = vmatpush.bf16.msrb.mxu2 %v1660_v55  ;;  %v1655_v55 = vld [vmem:[%s2082_s1 + $0x180] sm:$0xff] }
  0x38   : > { %1018 = vmatpush.bf16.msrb.mxu3 %v1668_v57  ;;  %v852_v57 = vor.u32 %v851_v42, %v848_v41 }
  0x39   : > { %692 = vmatpush.bf16.msrb.mxu0 %v1643_v60  ;;  %v1638_v60 = vld [vmem:[%s1839_s24 + $0x30] sm:$0xff] }
  0x3a   : > { %794 = vmatpush.bf16.msrb.mxu1 %v1651_v61  ;;  %v737_v61 = vsel %vm427_vm0, %v732_v52, %v736_v53  ;;  %v853_v62 = vsel %vm836_vm1, %v844_v54, %v852_v57 }
  0x3b   : > { %907 = vmatpush.bf16.msrb.mxu2 %v1659_v0  ;;  %v1679_v0 = vld [vmem:[%s2082_s1 + $0x230] sm:$0xff] }
  0x3c   : > { %1019 = vmatpush.bf16.msrb.mxu3 %v1667_v1  ;;  %330 = vmatmul.bf16.gmra.mxu0 %v266_v12  ;;  %v1678_v1 = vld [vmem:[%s2082_s1 + $0x228] sm:$0xff]  ;;  %v1671_v12 = vld [vmem:[%s1839_s24] sm:$0xf0] }
  0x3d   : > { %693 = vmatpush.bf16.msrb.mxu0 %v1642_v5  ;;  %406 = vmatmul.bf16.gmra.mxu1 %v1879_v28  ;;  %v958_v28 = vshrl.u32 %v948_v20, 16  ;;  %v738_v5 = vshrl.u32 %v1975_v14, 16  ;;  %v1562_v15 = vor.u32 %v1671_v12, %v1561_v11  ;;  %v1729_v12 = vld [vmem:[%s2084_s3] ss:$0 sm:$0xff] }
  0x3e   : > { %795 = vmatpush.bf16.msrb.mxu1 %v1650_v9  ;;  %506 = vmatmul.bf16.gmra.mxu2 %v442_v13  ;;  %v1675_v9 = vld [vmem:[%s2082_s1 + $0x210] sm:$0xff]  ;;  %v1565_v13 = vld [vmem:[%s1839_s24 + $0x8] sm:$0xf] }
  0x3f   : > { %604 = vmatmul.bf16.gmra.mxu3 %v1975_v14  ;;  %908 = vmatpush.bf16.msrb.mxu2 %v1658_v17  ;;  %v960_v45 = vrot.slane %v958_v28, 2  ;;  %v740_v8 = vor.u32 %v738_v5, %v736_v53  ;;  %v1672_v14 = vld [vmem:[%s1839_s24 + $0x8] sm:$0x10]  ;;  %v1673_v17 = vld [vmem:[%s2082_s1 + $0x200] sm:$0xff] }
  0x40   : > { %1020 = vmatpush.bf16.msrb.mxu3 %v1666_v18  ;;  %v1566_v16 = vor.u32 %v1672_v14, %v1565_v13  ;;  %v1068_v18 = vrot.slane %v1562_v15, 3  ;;  %v1728_v5 = vld [vmem:[%s2083_s2] ss:$0 sm:$0xff] }
  0x41   : > { %694 = vmatpush.bf16.msrb.mxu0 %v1641_v21  ;;  %v964_v59 = vor.u32 %v963_v48, %v960_v45 }
  0x42   : > { %796 = vmatpush.bf16.msrb.mxu1 %v1649_v22  ;;  %v1069_v19 = vrot.slane %v1566_v16, 3 }
  0x43   : > { %909 = vmatpush.bf16.msrb.mxu2 %v1657_v29  ;;  %v965_v63 = vsel %vm836_vm1, %v956_v58, %v964_v59 }
  0x44   : > { %1021 = vmatpush.bf16.msrb.mxu3 %v1665_v30  ;;  %v1070_v20 = vsel %vm1067_vm2, %v1068_v18, %v1069_v19 }
  0x45   : > { %695 = vmatpush.bf16.msrb.mxu0 %v1640_v34 }
  0x46   : > { %797 = vmatpush.bf16.msrb.mxu1 %v1648_v35 }
  0x47   : > { %910 = vmatpush.bf16.msrb.mxu2 %v1656_v43 }
  0x48   : > { %1022 = vmatpush.bf16.msrb.mxu3 %v1664_v44 }
  0x49   : > { %696 = vmatpush.bf16.msrb.mxu0 %v1639_v49 }
  0x4a   : > { %798 = vmatpush.bf16.msrb.mxu1 %v1647_v50 }
  0x4b   : > { %911 = vmatpush.bf16.msrb.mxu2 %v1655_v55 }
  0x4c   : > { %1023 = vmatpush.bf16.msrb.mxu3 %v1663_v56  ;;  %697 = vmatmul.bf16.vlgmr.msrb.gmra.mxu0 %v1638_v60 }
  0x4d   : > { %1121 = vmatpush.bf16.msra.mxu0 %v1680_v51  ;;  %799 = vmatmul.bf16.vlgmr.msrb.gmra.mxu1 %v737_v61 }
  0x4e   : > { %1696 = vmatpush.bf16.msra.mxu1 %v1680_v51  ;;  %912 = vmatmul.bf16.vlgmr.msrb.gmra.mxu2 %v853_v62 }
  0x4f   : > { %1024 = vmatmul.bf16.vlgmr.msrb.gmra.mxu3 %v965_v63 }
  0x51   : > { %1122 = vmatpush.bf16.msra.mxu0 %v1679_v0 }
  0x52   : > { %1697 = vmatpush.bf16.msra.mxu1 %v1679_v0 }
  0x55   : > { %1123 = vmatpush.bf16.msra.mxu0 %v1678_v1 }
  0x56   : > { %1698 = vmatpush.bf16.msra.mxu1 %v1678_v1 }
  0x59   : > { %1124 = vmatpush.bf16.msra.mxu0 %v1677_v3 }
  0x5a   : > { %1699 = vmatpush.bf16.msra.mxu1 %v1677_v3 }
  0x5c   : > { %702 = vmatmul.bf16.gmra.mxu0 %v638_v7 }
  0x5d   : > { %1125 = vmatpush.bf16.msra.mxu0 %v1676_v6  ;;  %804 = vmatmul.bf16.gmra.mxu1 %v740_v8 }
  0x5e   : > { %1700 = vmatpush.bf16.msra.mxu1 %v1676_v6  ;;  %917 = vmatmul.bf16.gmra.mxu2 %v852_v57 }
  0x5f   : > { %1029 = vmatmul.bf16.gmra.mxu3 %v964_v59 }
  0x61   : > { %1126 = vmatpush.bf16.msra.mxu0 %v1675_v9 }
  0x62   : > { %1701 = vmatpush.bf16.msra.mxu1 %v1675_v9 }
  0x65   : > { %1127 = vmatpush.bf16.msra.mxu0 %v1674_v10 }
  0x66   : > { %1702 = vmatpush.bf16.msra.mxu1 %v1674_v10 }
  0x69   : > { %1128 = vmatpush.bf16.msra.mxu0 %v1673_v17 }
  0x6a   : > { %1703 = vmatpush.bf16.msra.mxu1 %v1673_v17 }
  0x6c   : > { %1129 = vmatmul.bf16.vlgmr.msra.gmra.mxu0 %v1070_v20 }
  0x6d   : > { %1134 = vmatmul.bf16.vlgmr.msra.gmra.mxu1 %v1069_v19 }
  0xa9   : > { %v326_v21 = vpop.f32.mrf.mxu0 }
  0xaa   : > { %v402_v22 = vpop.f32.mrf.mxu1 }
  0xab   : > { %v403_v43 = vadd.f32 %v402_v22, %v326_v21 }
  0xb1   : > { %v502_v23 = vpop.f32.mrf.mxu2  ;;  %v328_v25 = vpop.f32.mrf.mxu0 }
  0xb2   : > { %v600_v24 = vpop.f32.mrf.mxu3  ;;  %v404_v26 = vpop.f32.mrf.mxu1  ;;  %v511_v46 = vadd.f32 %v502_v23, %v403_v43 }
  0xb3   : > { %v405_v53 = vadd.f32 %v404_v26, %v328_v25 }
  0xb4   : > { %v609_v51 = vadd.f32 %v600_v24, %v511_v46 }
  0xb9   : > { %v504_v27 = vpop.f32.mrf.mxu2  ;;  %v331_v30 = vpop.f32.mrf.mxu0 }
  0xba   : > { %v602_v29 = vpop.f32.mrf.mxu3  ;;  %v407_v31 = vpop.f32.mrf.mxu1  ;;  %v512_v56 = vadd.f32 %v504_v27, %v405_v53 }
  0xbb   : > { %v408_v44 = vadd.f32 %v407_v31, %v331_v30 }
  0xbc   : > { %v610_v63 = vadd.f32 %v602_v29, %v512_v56 }
  0xc1   : > { %v507_v32 = vpop.f32.mrf.mxu2  ;;  %v333_v33 = vpop.f32.mrf.mxu0 }
  0xc2   : > { %v605_v28 = vpop.f32.mrf.mxu3  ;;  %v409_v34 = vpop.f32.mrf.mxu1  ;;  %v513_v47 = vadd.f32 %v507_v32, %v408_v44 }
  0xc4   : > { %v611_v52 = vadd.f32 %v605_v28, %v513_v47 }
  0xc9   : > { %v509_v35 = vpop.f32.mrf.mxu2  ;;  %v698_v37 = vpop.f32.mrf.mxu0 }
  0xca   : > { %v607_v36 = vpop.f32.mrf.mxu3  ;;  %v800_v38 = vpop.f32.mrf.mxu1  ;;  %v707_v54 = vadd.f32 %v698_v37, %v609_v51 }
  0xcc   : > { %v809_v61 = vadd.f32 %v800_v38, %v707_v54 }
  0xd1   : > { %v913_v39 = vpop.f32.mrf.mxu2  ;;  %v700_v41 = vpop.f32.mrf.mxu0 }
  0xd2   : > { %v1025_v40 = vpop.f32.mrf.mxu3  ;;  %v802_v42 = vpop.f32.mrf.mxu1  ;;  %v922_v0 = vadd.f32 %v913_v39, %v809_v61  ;;  %v708_v2 = vadd.f32 %v700_v41, %v610_v63 }
  0xd4   : > { %v1034_v3 = vadd.f32 %v1025_v40, %v922_v0  ;;  %v810_v10 = vadd.f32 %v802_v42, %v708_v2 }
  0xd9   : > { %v915_v45 = vpop.f32.mrf.mxu2  ;;  %v703_v49 = vpop.f32.mrf.mxu0 }
  0xda   : > { %v1027_v48 = vpop.f32.mrf.mxu3  ;;  %v805_v50 = vpop.f32.mrf.mxu1  ;;  %v709_v55 = vadd.f32 %v703_v49, %v611_v52  ;;  %v923_v14 = vadd.f32 %v915_v45, %v810_v10 }
  0xdc   : > { %v811_v62 = vadd.f32 %v805_v50, %v709_v55  ;;  %v1035_v19 = vadd.f32 %v1027_v48, %v923_v14 }
  0xe1   : > { %v918_v57 = vpop.f32.mrf.mxu2  ;;  %v705_v59 = vpop.f32.mrf.mxu0 }
  0xe2   : > { %v1030_v58 = vpop.f32.mrf.mxu3  ;;  %v807_v60 = vpop.f32.mrf.mxu1  ;;  %v924_v1 = vadd.f32 %v918_v57, %v811_v62 }
  0xe4   : > { %v1036_v4 = vadd.f32 %v1030_v58, %v924_v1 }
  0xe9   : > { %v920_v6 = vpop.f32.mrf.mxu2  ;;  %v1130_v8 = vpop.f32.mrf.mxu0 }
  0xea   : > { %v1032_v7 = vpop.f32.mrf.mxu3  ;;  %v1135_v9 = vpop.f32.mrf.mxu1  ;;  %v1139_v11 = vadd.f32 %v1130_v8, %v1034_v3 }
  0xeb   : > { %v1141_v13 = vadd.f32 %v1135_v9, %v1036_v4 }
  0xec   : > { %v1146_v15 = vmul.f32 %v1728_v5, %v1139_v11 }
  0xed   : > { %v1148_v16 = vmul.f32 %v1728_v5, %v1141_v13 }
  0xee   : > { %v1153_v17 = vadd.f32 %v1729_v12, %v1146_v15 }
  0xef   : > { %v1155_v18 = vadd.f32 %v1729_v12, %v1148_v16 }
  0xf0   : > { %v1156_v20 = vmax.f32 %v1153_v17, 0.0 }
  0xf1   : > { %v1185_v21 = vmax.f32 %v1155_v18, 0.0  ;;  %v1132_v22 = vpop.f32.mrf.mxu0 }
  0xf2   : > { %v1137_v23 = vpop.f32.mrf.mxu1  ;;  %v1157_v24 = vpack.c.bf16 %v1156_v20, %v1156_v20  ;;  %v1140_v26 = vadd.f32 %v1132_v22, %v1035_v19 }
  0xf3   : > { %v1186_v25 = vpack.c.bf16 %v1185_v21, %v1185_v21 }
  0xf4   : > { %1158 = vst [vmem:[%s2066_s25] sm:$0x3] %v1157_v24  ;;  %v1165_v27 = vshrl.u32 %v1157_v24, 16  ;;  %v1168_v29 = vshll.u32 %v1157_v24, 16  ;;  %v1147_v30 = vmul.f32 %v1728_v5, %v1140_v26 }
  0xf5   : > { %v1195_v31 = vshrl.u32 %v1186_v25, 16  ;;  %v1198_v33 = vshll.u32 %v1186_v25, 16 }
  0xf6   : > { %v1167_v32 = vrot.slane %v1165_v27, 4  ;;  %v1170_v28 = vrot.slane %v1168_v29, 5  ;;  %v1154_v34 = vadd.f32 %v1729_v12, %v1147_v30 }
  0xf7   : > { %v1197_v37 = vrot.slane %v1195_v31, 5  ;;  %v1200_v38 = vrot.slane %v1198_v33, 6 }
  0xf8   : > { %v1159_v35 = vmax.f32 %v1154_v34, 0.0  ;;  %v1171_v36 = vor.u32 %v1170_v28, %v1167_v32 }
  0xf9   : > { %v1201_v44 = vor.u32 %v1200_v38, %v1197_v37 }
  0xfa   : > { %v1160_v39 = vpack.c.bf16 %v1159_v35, %v1159_v35  ;;  %v1172_v43 = vrot.slane %v1171_v36, 4 }
  0xfc   : > { %v1174_v40 = vshll.u32 %v1160_v39, 16  ;;  %v1599_v41 = vrot.slane %v1160_v39, 9  ;;  %v1190_v42 = vshrl.u32 %v1160_v39, 16 }
  0xfe   : > { %v1176_v46 = vrot.slane %v1174_v40, 5  ;;  %1184 = vst [vmem:[%s2066_s25 + $0x4] sm:$0x3] %v1599_v41  ;;  %v1600_v47 = vrot.slane %v1190_v42, 9 }
 0x100   : > { %v1177_v45 = vsel %vm1163_vm7, %v1172_v43, %v1176_v46  ;;  %v1202_v48 = vsel %vm1189_vm8, %v1600_v47, %v1201_v44 }
 0x101   : > { %1179 = vst [vmem:[%s2066_s25] sm:$0xc] %v1177_v45 }
 0x102   : > { %1204 = vst [vmem:[%s2066_s25 + $0x4] sm:$0xc] %v1202_v48 }
 0x103 PF: > { %s14_s17 = sadd.s32 1, %s1752_s17   ;;  %s2086_s15 = smov %s1748_s16 }
 0x104   : > { %p11_p5 = scmp.ge.s32.totalorder %s14_s17, 4   ;;  %s2087_s16 = smov %s2089_s18 }
 0x106   :  { %13 = sbr.rel (!%p11_p5) target bundleno = 2 (0x2), region = 66 }

// kernel: _lambda_.25
= control target key start
LH: loop header
LB: loop body
LE: loop exit
PB: predicated region body
PF: predicated region fallthrough
CT: control target
= control target key end

     0   :  { %s503_s15 = smov 0   ;;  %s505_s16 = smov 0   ;;  %s566_s0 = inlined_call_operand.vmem [shape: bf16[2,32,128], index: 0, kind: input, shape index: {}]   ;;  %s567_s1 = inlined_call_operand.vmem [shape: bf16[128,128], index: 1, kind: input, shape index: {}]   ;;  %s568_s2 = inlined_call_operand.vmem [shape: f32[1,128], index: 2, kind: input, shape index: {}]   ;;  %s569_s3 = inlined_call_operand.vmem [shape: f32[1,128], index: 3, kind: input, shape index: {}]   ;;  %s570_s4 = inlined_call_operand.vmem [shape: bf16[2,4,128], index: 4, kind: output, shape index: {}]  }
   0x1   :  { %s507_s17 = smov 0  }
   0x2 LB: > { %s26_s18 = sadd.s32 1, %s472_s16  ;;  %p381_p0 = scmp.ge.s32.totalorder %s476_s17, 1  ;;  %s476_s17 = sphi %s507_s17, %s14_s17   ;;  %s472_s16 = sphi %s505_s16, %s572_s16   ;;  %s468_s15 = sphi %s503_s15, %s571_s15  }
   0x3   : > { %p28_p1 = scmp.ge.s32.totalorder %s26_s18, 2  ;;  %p176_p2 = scmp.lt.s32.totalorder %s476_s17, 3 }
   0x5   : > { %s574_s18 = smov (%p28_p1, %s26_s18), 0  ;;  %p177_p3 = pnand %p381_p0, %p176_p2 }
   0x6   : > { %p204_p4 = scmp.lt.s32.totalorder (!%p177_p3), %s468_s15, 1 }
   0x7   : > { %180 = sbr.rel (%p177_p3) target bundleno = 178 (0xb2), region = 36 }
   0xc   : > { %v427_v0 = vld [vmem:[%s567_s1 + $0x38] sm:$0xff]  ;;  %v426_v1 = vld [vmem:[%s567_s1 + $0x30] sm:$0xff]  ;;  %v425_v2 = vld [vmem:[%s567_s1 + $0x28] sm:$0xff]  ;;  %s576_s15 = smov (!%p204_p4, %s468_s15), 1 }
   0xd   : > { %281 = vmatpush.bf16.msra.mxu0 %v427_v0  ;;  %v424_v3 = vld [vmem:[%s567_s1 + $0x20] sm:$0xff]  ;;  %v423_v4 = vld [vmem:[%s567_s1 + $0x18] sm:$0xff]  ;;  %v422_v5 = vld [vmem:[%s567_s1 + $0x10] sm:$0xff]  ;;  %s419_s7 = sshll.u32 %s576_s15, 4  ;;  %s384_s21 = sshll.u32 %s576_s15, 1 }
   0xe   : > { %v421_v6 = vld [vmem:[%s567_s1 + $0x8] sm:$0xff]  ;;  %v420_v7 = vld [vmem:[%s567_s1] sm:$0xff]  ;;  %s208_s12 = scalar_lea.vmem %s566_s0, %s419_s7  ;;  %s215_s24 = scalar_lea.vmem %s570_s4, %s384_s21 }
   0xf   : > { %v216_v8 = vld [vmem:[%s208_s12] sm:$0x3] }
  0x10   : > { %v452_v9 = vld [vmem:[%s568_s2] ss:$0 sm:$0xff] }
  0x11   : > { %282 = vmatpush.bf16.msra.mxu0 %v426_v1  ;;  %v453_v10 = vld [vmem:[%s569_s3] ss:$0 sm:$0xff] }
  0x15   : > { %283 = vmatpush.bf16.msra.mxu0 %v425_v2 }
  0x19   : > { %284 = vmatpush.bf16.msra.mxu0 %v424_v3 }
  0x1d   : > { %285 = vmatpush.bf16.msra.mxu0 %v423_v4 }
  0x21   : > { %286 = vmatpush.bf16.msra.mxu0 %v422_v5 }
  0x25   : > { %287 = vmatpush.bf16.msra.mxu0 %v421_v6 }
  0x29   : > { %288 = vmatpush.bf16.msra.mxu0 %v420_v7 }
  0x2c   : > { %289 = vmatmul.bf16.vlgmr.msra.gmra.mxu0 %v216_v8 }
  0xa9   : > { %v290_v11 = vpop.f32.mrf.mxu0 }
  0xaa   : > { %v298_v12 = vmul.f32 %v452_v9, %v290_v11 }
  0xac   : > { %v303_v13 = vadd.f32 %v453_v10, %v298_v12 }
  0xae   : > { %v304_v14 = vpack.c.bf16 %v303_v13, %v303_v13 }
  0xb0   : > { %305 = vst [vmem:[%s215_s24] sm:$0x3] %v304_v14 }
  0xb1   : > { %v292_v15 = vpop.f32.mrf.mxu0 }
  0xb2 PF: > { %s14_s17 = sadd.s32 1, %s476_s17   ;;  %s571_s15 = smov %s472_s16 }
  0xb3   : > { %p11_p5 = scmp.ge.s32.totalorder %s14_s17, 4   ;;  %s572_s16 = smov %s574_s18 }
  0xb5   :  { %13 = sbr.rel (!%p11_p5) target bundleno = 2 (0x2), region = 66 }

// kernel: _lambda_.23
= control target key start
LH: loop header
LB: loop body
LE: loop exit
PB: predicated region body
PF: predicated region fallthrough
CT: control target
= control target key end

     0   :  { %s1832_s18 = smov 0   ;;  %s1834_s19 = smov 0   ;;  %s2184_s0 = inlined_call_operand.vmem [shape: bf16[2,40,128], index: 0, kind: input, shape index: {}]   ;;  %s2185_s1 = inlined_call_operand.vmem [shape: bf16[1152,128], index: 1, kind: input, shape index: {}]   ;;  %s2186_s2 = inlined_call_operand.vmem [shape: f32[1,128], index: 2, kind: input, shape index: {}]   ;;  %s2187_s3 = inlined_call_operand.vmem [shape: f32[1,128], index: 3, kind: input, shape index: {}]   ;;  %s2188_s4 = inlined_call_operand.vmem [shape: bf16[2,16,128], index: 4, kind: input, shape index: {}]   ;;  %s2189_s5 = inlined_call_operand.vmem [shape: bf16[2,16,128], index: 5, kind: output, shape index: {}]  }
   0x1   :  { %s1836_s20 = smov 0  }
   0x2 LB: > { %s27_s21 = sadd.s32 1, %s1796_s19  ;;  %p1359_p0 = scmp.ge.s32.totalorder %s1800_s20, 1  ;;  %s1800_s20 = sphi %s1836_s20, %s15_s20   ;;  %s1796_s19 = sphi %s1834_s19, %s2191_s19   ;;  %s1792_s18 = sphi %s1832_s18, %s2190_s18  }
   0x3   : > { %p29_p1 = scmp.ge.s32.totalorder %s27_s21, 2  ;;  %p218_p2 = scmp.lt.s32.totalorder %s1800_s20, 3 }
   0x5   : > { %s2193_s21 = smov (%p29_p1, %s27_s21), 0  ;;  %p219_p3 = pnand %p1359_p0, %p218_p2 }
   0x6   : > { %p259_p4 = scmp.lt.s32.totalorder (!%p219_p3), %s1792_s18, 1 }
   0x7   : > { %222 = sbr.rel (%p219_p3) target bundleno = 258 (0x102), region = 40 }
   0xc   : > { %v1674_v0 = vld [vmem:[%s2185_s1 + $0x78] sm:$0xff]  ;;  %v1673_v4 = vld [vmem:[%s2185_s1 + $0x70] sm:$0xff]  ;;  %s2195_s18 = smov (!%p259_p4, %s1792_s18), 1  ;;  %v1672_v8 = vld [vmem:[%s2185_s1 + $0x68] sm:$0xff]  ;;  %vm328_vm0 = vsmask.f32 7424 }
   0xd   : > { %v1666_v1 = vld [vmem:[%s2185_s1 + $0x38] sm:$0xff]  ;;  %394 = vmatpush.bf16.msra.mxu0 %v1674_v0  ;;  %v1665_v5 = vld [vmem:[%s2185_s1 + $0x30] sm:$0xff]  ;;  %s1751_s13 = smul.u32 20, %s2195_s18  ;;  %v1664_v9 = vld [vmem:[%s2185_s1 + $0x28] sm:$0xff]  ;;  %vm503_vm1 = vcmask 1046528   ;;  %vm608_vm2 = vcmask 1044480  }
   0xe   : > { %v1682_v2 = vld [vmem:[%s2185_s1 + $0xb8] sm:$0xff]  ;;  %465 = vmatpush.bf16.msra.mxu1 %v1666_v1  ;;  %v1681_v6 = vld [vmem:[%s2185_s1 + $0xb0] sm:$0xff]  ;;  %v1680_v10 = vld [vmem:[%s2185_s1 + $0xa8] sm:$0xff]  ;;  %vm703_vm3 = vsmask.f32 4352  ;;  %vm911_vm4 = vcmask 1045504  }
   0xf   : > { %v1690_v3 = vld [vmem:[%s2185_s1 + $0xf8] sm:$0xff]  ;;  %557 = vmatpush.bf16.msra.mxu2 %v1682_v2  ;;  %v1689_v7 = vld [vmem:[%s2185_s1 + $0xf0] sm:$0xff]  ;;  %v1688_v11 = vld [vmem:[%s2185_s1 + $0xe8] sm:$0xff]  ;;  %s1892_s28 = scalar_lea.vmem %s2184_s0, %s1751_s13  ;;  %vm1006_vm5 = vsmask.f32 5376  ;;  %vm1222_vm6 = vcmask 1042432  }
  0x10   : > { %662 = vmatpush.bf16.msra.mxu3 %v1690_v3  ;;  %v1671_v12 = vld [vmem:[%s2185_s1 + $0x60] sm:$0xff]  ;;  %v1670_v17 = vld [vmem:[%s2185_s1 + $0x58] sm:$0xff]  ;;  %v580_v24 = vld [vmem:[%s1892_s28 + $0x8] sm:$0xf]  ;;  %vm1223_vm7 = vcmask 1046532  }
  0x11   : > { %395 = vmatpush.bf16.msra.mxu0 %v1673_v4  ;;  %v1663_v13 = vld [vmem:[%s2185_s1 + $0x20] sm:$0xff]  ;;  %v1662_v18 = vld [vmem:[%s2185_s1 + $0x18] sm:$0xff]  ;;  %v581_v25 = vld [vmem:[%s1892_s28 + $0xc] sm:$0x3]  ;;  %v1944_v34 = vunpack.c.l.b16 %v580_v24 }
  0x12   : > { %466 = vmatpush.bf16.msra.mxu1 %v1665_v5  ;;  %v1679_v14 = vld [vmem:[%s2185_s1 + $0xa0] sm:$0xff]  ;;  %v1678_v20 = vld [vmem:[%s2185_s1 + $0x98] sm:$0xff]  ;;  %v1669_v26 = vld [vmem:[%s2185_s1 + $0x50] sm:$0xff]  ;;  %v605_v35 = vunpack.c.l.b16 %v581_v25 }
  0x13   : > { %558 = vmatpush.bf16.msra.mxu2 %v1681_v6  ;;  %v1687_v15 = vld [vmem:[%s2185_s1 + $0xe0] sm:$0xff]  ;;  %v1686_v21 = vld [vmem:[%s2185_s1 + $0xd8] sm:$0xff]  ;;  %v1661_v27 = vld [vmem:[%s2185_s1 + $0x10] sm:$0xff] }
  0x14   : > { %663 = vmatpush.bf16.msra.mxu3 %v1689_v7  ;;  %v1907_v16 = vld [vmem:[%s1892_s28 + $0x4] sm:$0xff]   ;;  %v578_v23 = vld [vmem:[%s1892_s28] sm:$0x8]  ;;  %v1677_v30 = vld [vmem:[%s2185_s1 + $0x90] sm:$0xff]  ;;  %v1967_v47 = vpack.c.b16 %v605_v35, %v1944_v34 }
  0x15   : > { %396 = vmatpush.bf16.msra.mxu0 %v1672_v8  ;;  %v325_v19 = vunpack.c.h.b16 %v1907_v16  ;;  %v1923_v22 = vld [vmem:[%s1892_s28] sm:$0xff]   ;;  %v1685_v31 = vld [vmem:[%s2185_s1 + $0xd0] sm:$0xff]  ;;  %v602_v32 = vunpack.c.l.b16 %v578_v23  ;;  %v603_v33 = vunpack.c.l.b16 %v1907_v16  ;;  %v1668_v38 = vld [vmem:[%s2185_s1 + $0x48] sm:$0xff] }
  0x16   : > { %467 = vmatpush.bf16.msra.mxu1 %v1664_v9  ;;  %v332_v29 = vshll.u32 %v1923_v22, 16  ;;  %v1739_v36 = vld [vmem:[%s1892_s28] sm:$0xf0]  ;;  %v1740_v37 = vld [vmem:[%s1892_s28] sm:$0xe]  ;;  %v1660_v39 = vld [vmem:[%s2185_s1 + $0x8] sm:$0xff] }
  0x17   : > { %559 = vmatpush.bf16.msra.mxu2 %v1680_v10  ;;  %v1934_v28 = vpack.c.b16 %v325_v19, %v325_v19  ;;  %v330_v40 = vshrl.u32 %v1923_v22, 16  ;;  %v1676_v43 = vld [vmem:[%s2185_s1 + $0x88] sm:$0xff]  ;;  %v1741_v45 = vor.u32 %v1740_v37, %v1739_v36  ;;  %v1964_v46 = vpack.c.b16 %v603_v33, %v602_v32  ;;  %v1667_v48 = vld [vmem:[%s2185_s1 + $0x40] sm:$0xff]  ;;  %v1698_v58 = vld [vmem:[%s2185_s1 + $0x138] sm:$0xff] }
  0x18   : > { %664 = vmatpush.bf16.msra.mxu3 %v1688_v11  ;;  %v334_v41 = vrot.slane %v332_v29, 1  ;;  %v1684_v44 = vld [vmem:[%s2185_s1 + $0xc8] sm:$0xff]  ;;  %v1659_v49 = vld [vmem:[%s2185_s1] sm:$0xff]  ;;  %v610_v57 = vrot.slane %v1967_v47, 3  ;;  %v1706_v59 = vld [vmem:[%s2185_s1 + $0x178] sm:$0xff] }
  0x19   : > { %397 = vmatpush.bf16.msra.mxu0 %v1671_v12  ;;  %v337_v42 = vshll.u32 %v1934_v28, 16  ;;  %v1675_v52 = vld [vmem:[%s2185_s1 + $0x80] sm:$0xff]  ;;  %v504_v54 = vrot.slane %v1741_v45, 1  ;;  %v505_v55 = vrot.slane %v1934_v28, 1  ;;  %v609_v56 = vrot.slane %v1964_v46, 3  ;;  %v1714_v62 = vld [vmem:[%s2185_s1 + $0x1b8] sm:$0xff]  ;;  %vm1224_vm8 = vmor %vm1222_vm6, %vm1223_vm7 }
  0x1a   : > { %468 = vmatpush.bf16.msra.mxu1 %v1663_v13  ;;  %v335_v50 = vor.u32 %v334_v41, %v330_v40  ;;  %v1683_v53 = vld [vmem:[%s2185_s1 + $0xc0] sm:$0xff]  ;;  %v1722_v0 = vld [vmem:[%s2185_s1 + $0x1f8] sm:$0xff]  ;;  %v1697_v1 = vld [vmem:[%s2185_s1 + $0x130] sm:$0xff]  ;;  %v705_v41 = vshrl.u32 %v1964_v46, 16 }
  0x1b   : > { %560 = vmatpush.bf16.msra.mxu2 %v1679_v14  ;;  %v1975_v51 = vrot.slane %v337_v42, 1  ;;  %v506_v61 = vsel %vm503_vm1, %v504_v54, %v505_v55  ;;  %v611_v63 = vsel %vm608_vm2, %v609_v56, %v610_v57  ;;  %v1705_v2 = vld [vmem:[%s2185_s1 + $0x170] sm:$0xff]  ;;  %v1696_v5 = vld [vmem:[%s2185_s1 + $0x128] sm:$0xff]  ;;  %v1695_v10 = vld [vmem:[%s2185_s1 + $0x120] sm:$0xff]  ;;  %v708_v42 = vshll.u32 %v1964_v46, 16 }
  0x1c   : > { %665 = vmatpush.bf16.msra.mxu3 %v1687_v15  ;;  %v1713_v3 = vld [vmem:[%s2185_s1 + $0x1b0] sm:$0xff]  ;;  %v1704_v6 = vld [vmem:[%s2185_s1 + $0x168] sm:$0xff]  ;;  %v1703_v11 = vld [vmem:[%s2185_s1 + $0x160] sm:$0xff] }
  0x1d   : > { %398 = vmatpush.bf16.msra.mxu0 %v1670_v17  ;;  %v340_v60 = vsel %vm328_vm0, %v335_v50, %v1975_v51  ;;  %v1721_v4 = vld [vmem:[%s2185_s1 + $0x1f0] sm:$0xff]  ;;  %v1712_v7 = vld [vmem:[%s2185_s1 + $0x1a8] sm:$0xff]  ;;  %v881_v13 = vld [vmem:[%s1892_s28 + $0x4] sm:$0xc]  ;;  %v341_v17 = vshrl.u32 %v1934_v28, 16  ;;  %v710_v54 = vrot.slane %v708_v42, 4 }
  0x1e   : > { %469 = vmatpush.bf16.msra.mxu1 %v1662_v18  ;;  %v1720_v8 = vld [vmem:[%s2185_s1 + $0x1e8] sm:$0xff]  ;;  %v986_v15 = vld [vmem:[%s1892_s28 + $0x10] sm:$0x3]  ;;  %v905_v24 = vunpack.c.l.b16 %v881_v13  ;;  %v1710_v32 = vld [vmem:[%s2185_s1 + $0x198] sm:$0xff] }
  0x1f   : > { %561 = vmatpush.bf16.msra.mxu2 %v1678_v20  ;;  %v286_v9 = vld [vmem:[%s1892_s28 + $0x8] sm:$0x7]  ;;  %v683_v12 = vld [vmem:[%s1892_s28 + $0xc] sm:$0x7]  ;;  %v1711_v20 = vld [vmem:[%s2185_s1 + $0x1a0] sm:$0xff]  ;;  %v1004_v25 = vunpack.c.l.b16 %v986_v15  ;;  %v343_v29 = vor.u32 %v341_v17, %v1975_v51 }
  0x20   : > { %666 = vmatpush.bf16.msra.mxu3 %v1686_v21  ;;  %v2040_v14 = vld [vmem:[%s1892_s28 + $0x8] sm:$0xff]   ;;  %v413_v18 = vunpack.c.l.b16 %v286_v9  ;;  %v2044_v19 = vunpack.c.l.b16 %v683_v12  ;;  %v1719_v21 = vld [vmem:[%s2185_s1 + $0x1e0] sm:$0xff]  ;;  %v1718_v35 = vld [vmem:[%s2185_s1 + $0x1d8] sm:$0xff] }
  0x21   : > { %399 = vmatpush.bf16.msra.mxu0 %v1669_v26  ;;  %v1738_v23 = vunpack.c.h.b16 %v2040_v14  ;;  %v1694_v26 = vld [vmem:[%s2185_s1 + $0x118] sm:$0xff]  ;;  %v884_v36 = vld [vmem:[%s1892_s28 + $0x10] sm:$0x1]  ;;  %v1692_v51 = vld [vmem:[%s2185_s1 + $0x108] sm:$0xff] }
  0x22   : > { %470 = vmatpush.bf16.msra.mxu1 %v1661_v27  ;;  %v1702_v27 = vld [vmem:[%s2185_s1 + $0x158] sm:$0xff]  ;;  %v1701_v40 = vld [vmem:[%s2185_s1 + $0x150] sm:$0xff]  ;;  %v908_v45 = vunpack.c.l.b16 %v884_v36  ;;  %v1728_v16 = vld [vmem:[%s2185_s1 + $0x228] sm:$0xff] }
  0x23   : > { %562 = vmatpush.bf16.msra.mxu2 %v1677_v30  ;;  %v414_v30 = vpack.c.b16 %v413_v18, %v413_v18  ;;  %v1729_v17 = vld [vmem:[%s2185_s1 + $0x230] sm:$0xff]  ;;  %v809_v18 = vpack.c.b16 %v2044_v19, %v2044_v19 }
  0x24   : > { %667 = vmatpush.bf16.msra.mxu3 %v1685_v31  ;;  %v702_v31 = vpack.c.b16 %v2044_v19, %v1944_v34 }
  0x25   : > { %400 = vmatpush.bf16.msra.mxu0 %v1668_v38  ;;  %v2074_v38 = vpack.c.b16 %v1004_v25, %v1738_v23  ;;  %v1723_v25 = vld [vmem:[%s2185_s1 + $0x200] sm:$0xff] }
  0x26   : > { %471 = vmatpush.bf16.msra.mxu1 %v1660_v39  ;;  %v1693_v39 = vld [vmem:[%s2185_s1 + $0x110] sm:$0xff] }
  0x27   : > { %563 = vmatpush.bf16.msra.mxu2 %v1676_v43  ;;  %v713_v43 = vshrl.u32 %v702_v31, 16  ;;  %v1016_v50 = vshrl.u32 %v2074_v38, 16  ;;  %v1019_v46 = vshll.u32 %v2074_v38, 16 }
  0x28   : > { %668 = vmatpush.bf16.msra.mxu3 %v1684_v44  ;;  %v716_v44 = vshll.u32 %v702_v31, 16 }
  0x29   : > { %401 = vmatpush.bf16.msra.mxu0 %v1667_v48  ;;  %v1709_v48 = vld [vmem:[%s2185_s1 + $0x190] sm:$0xff] }
  0x2a   : > { %472 = vmatpush.bf16.msra.mxu1 %v1659_v49  ;;  %v1717_v49 = vld [vmem:[%s2185_s1 + $0x1d0] sm:$0xff]  ;;  %v718_v56 = vrot.slane %v716_v44, 4 }
  0x2b   : > { %564 = vmatpush.bf16.msra.mxu2 %v1675_v52  ;;  %v1700_v52 = vld [vmem:[%s2185_s1 + $0x148] sm:$0xff] }
  0x2c   : > { %669 = vmatpush.bf16.msra.mxu3 %v1683_v53  ;;  %402 = vmatmul.bf16.vlgmr.msra.gmra.mxu0 %v340_v60  ;;  %v707_v53 = vrot.slane %v705_v41, 3 }
  0x2d   : > { %771 = vmatpush.bf16.msrb.mxu0 %v1698_v58  ;;  %473 = vmatmul.bf16.vlgmr.msra.gmra.mxu1 %v1923_v22  ;;  %v1737_v22 = vunpack.c.l.b16 %v2040_v14  ;;  %v1708_v58 = vld [vmem:[%s2185_s1 + $0x188] sm:$0xff] }
  0x2e   : > { %860 = vmatpush.bf16.msrb.mxu1 %v1706_v59  ;;  %565 = vmatmul.bf16.vlgmr.msra.gmra.mxu2 %v506_v61  ;;  %v1716_v59 = vld [vmem:[%s2185_s1 + $0x1c8] sm:$0xff] }
  0x2f   : > { %670 = vmatmul.bf16.vlgmr.msra.gmra.mxu3 %v611_v63  ;;  %965 = vmatpush.bf16.msrb.mxu2 %v1714_v62  ;;  %v2072_v37 = vpack.c.b16 %v1737_v22, %v905_v24  ;;  %v1018_v62 = vrot.slane %v1016_v50, 2  ;;  %v1021_v63 = vrot.slane %v1019_v46, 3  ;;  %v1724_v24 = vld [vmem:[%s2185_s1 + $0x208] sm:$0xff] }
  0x30   : > { %1074 = vmatpush.bf16.msrb.mxu3 %v1722_v0  ;;  %v1691_v0 = vld [vmem:[%s2185_s1 + $0x100] sm:$0xff] }
  0x31   : > { %772 = vmatpush.bf16.msrb.mxu0 %v1697_v1  ;;  %v1008_v28 = vshrl.u32 %v2072_v37, 16  ;;  %v1011_v47 = vshll.u32 %v2072_v37, 16  ;;  %v1699_v1 = vld [vmem:[%s2185_s1 + $0x140] sm:$0xff] }
  0x32   : > { %861 = vmatpush.bf16.msrb.mxu1 %v1705_v2  ;;  %v1730_v2 = vld [vmem:[%s2185_s1 + $0x238] sm:$0xff] }
  0x33   : > { %966 = vmatpush.bf16.msrb.mxu2 %v1713_v3  ;;  %v1010_v60 = vrot.slane %v1008_v28, 2  ;;  %v1013_v61 = vrot.slane %v1011_v47, 3  ;;  %v711_v3 = vor.u32 %v710_v54, %v707_v53 }
  0x34   : > { %1075 = vmatpush.bf16.msrb.mxu3 %v1721_v4 }
  0x35   : > { %773 = vmatpush.bf16.msrb.mxu0 %v1696_v5  ;;  %v1707_v5 = vld [vmem:[%s2185_s1 + $0x180] sm:$0xff]  ;;  %v1014_v9 = vor.u32 %v1013_v61, %v1010_v60 }
  0x36   : > { %862 = vmatpush.bf16.msrb.mxu1 %v1704_v6  ;;  %v1715_v6 = vld [vmem:[%s2185_s1 + $0x1c0] sm:$0xff] }
  0x37   : > { %967 = vmatpush.bf16.msrb.mxu2 %v1712_v7  ;;  %v912_v7 = vrot.slane %v2072_v37, 2 }
  0x38   : > { %1076 = vmatpush.bf16.msrb.mxu3 %v1720_v8 }
  0x39   : > { %774 = vmatpush.bf16.msrb.mxu0 %v1695_v10  ;;  %v1022_v10 = vor.u32 %v1021_v63, %v1018_v62 }
  0x3a   : > { %863 = vmatpush.bf16.msrb.mxu1 %v1703_v11  ;;  %v808_v11 = vpack.c.b16 %v1944_v34, %v603_v33  ;;  %v1727_v33 = vld [vmem:[%s2185_s1 + $0x220] sm:$0xff]  ;;  %v1726_v34 = vld [vmem:[%s2185_s1 + $0x218] sm:$0xff] }
  0x3b   : > { %968 = vmatpush.bf16.msrb.mxu2 %v1711_v20  ;;  %v1023_v15 = vsel %vm1006_vm5, %v1014_v9, %v1022_v10  ;;  %v1725_v20 = vld [vmem:[%s2185_s1 + $0x210] sm:$0xff] }
  0x3c   : > { %1077 = vmatpush.bf16.msrb.mxu3 %v1719_v21  ;;  %407 = vmatmul.bf16.gmra.mxu0 %v343_v29  ;;  %v1095_v21 = vld [vmem:[%s1892_s28 + $0x4] sm:$0x8]  ;;  %s1657_s28 = sshll.u32 %s2195_s18, 3 }
  0x3d   : > { %775 = vmatpush.bf16.msrb.mxu0 %v1694_v26  ;;  %478 = vmatmul.bf16.gmra.mxu1 %v414_v30  ;;  %s272_s6 = scalar_lea.vmem %s2188_s4, %s1657_s28  ;;  %s282_s13 = scalar_lea.vmem %s2189_s5, %s1657_s28 }
  0x3e   : > { %864 = vmatpush.bf16.msrb.mxu1 %v1702_v27  ;;  %570 = vmatmul.bf16.gmra.mxu2 %v505_v55  ;;  %v715_v55 = vrot.slane %v713_v43, 3  ;;  %v1116_v27 = vrot.slane %v2074_v38, 3 }
  0x3f   : > { %675 = vmatmul.bf16.gmra.mxu3 %v610_v57  ;;  %969 = vmatpush.bf16.msrb.mxu2 %v1710_v32  ;;  %v910_v57 = vpack.c.b16 %v908_v45, %v1738_v23  ;;  %v1113_v23 = vunpack.c.l.b16 %v1095_v21 }
  0x40   : > { %1078 = vmatpush.bf16.msrb.mxu3 %v1718_v35  ;;  %v719_v4 = vor.u32 %v718_v56, %v715_v55 }
  0x41   : > { %776 = vmatpush.bf16.msrb.mxu0 %v1693_v39  ;;  %v913_v8 = vrot.slane %v910_v57, 2  ;;  %v1114_v19 = vpack.c.b16 %v1737_v22, %v1113_v23 }
  0x42   : > { %865 = vmatpush.bf16.msrb.mxu1 %v1701_v40  ;;  %v720_v12 = vsel %vm703_vm3, %v711_v3, %v719_v4 }
  0x43   : > { %970 = vmatpush.bf16.msrb.mxu2 %v1709_v48  ;;  %v914_v13 = vsel %vm911_vm4, %v912_v7, %v913_v8  ;;  %v1115_v26 = vrot.slane %v1114_v19, 3  ;;  %v1777_v19 = vld [vmem:[%s2187_s3] ss:$0 sm:$0xff] }
  0x44   : > { %1079 = vmatpush.bf16.msrb.mxu3 %v1717_v49 }
  0x45   : > { %777 = vmatpush.bf16.msrb.mxu0 %v1692_v51  ;;  %v1117_v29 = vsel %vm608_vm2, %v1115_v26, %v1116_v27 }
  0x46   : > { %866 = vmatpush.bf16.msrb.mxu1 %v1700_v52 }
  0x47   : > { %971 = vmatpush.bf16.msrb.mxu2 %v1708_v58 }
  0x48   : > { %1080 = vmatpush.bf16.msrb.mxu3 %v1716_v59 }
  0x49   : > { %778 = vmatpush.bf16.msrb.mxu0 %v1691_v0 }
  0x4a   : > { %867 = vmatpush.bf16.msrb.mxu1 %v1699_v1 }
  0x4b   : > { %972 = vmatpush.bf16.msrb.mxu2 %v1707_v5 }
  0x4c   : > { %1081 = vmatpush.bf16.msrb.mxu3 %v1715_v6  ;;  %779 = vmatmul.bf16.vlgmr.msrb.gmra.mxu0 %v720_v12  ;;  %v1209_v12 = vld [vmem:[%s272_s6] sm:$0xc] }
  0x4d   : > { %1168 = vmatpush.bf16.msra.mxu0 %v1730_v2  ;;  %868 = vmatmul.bf16.vlgmr.msrb.gmra.mxu1 %v808_v11 }
  0x4e   : > { %1743 = vmatpush.bf16.msra.mxu1 %v1730_v2  ;;  %973 = vmatmul.bf16.vlgmr.msrb.gmra.mxu2 %v914_v13 }
  0x4f   : > { %1082 = vmatmul.bf16.vlgmr.msrb.gmra.mxu3 %v1023_v15 }
  0x51   : > { %1169 = vmatpush.bf16.msra.mxu0 %v1729_v17 }
  0x52   : > { %1744 = vmatpush.bf16.msra.mxu1 %v1729_v17  ;;  %v1776_v17 = vld [vmem:[%s2186_s2] ss:$0 sm:$0xff] }
  0x55   : > { %1170 = vmatpush.bf16.msra.mxu0 %v1728_v16 }
  0x56   : > { %1745 = vmatpush.bf16.msra.mxu1 %v1728_v16  ;;  %v1203_v16 = vld [vmem:[%s272_s6] sm:$0x3] }
  0x59   : > { %1171 = vmatpush.bf16.msra.mxu0 %v1727_v33 }
  0x5a   : > { %1746 = vmatpush.bf16.msra.mxu1 %v1727_v33 }
  0x5c   : > { %784 = vmatmul.bf16.gmra.mxu0 %v719_v4 }
  0x5d   : > { %1172 = vmatpush.bf16.msra.mxu0 %v1726_v34  ;;  %873 = vmatmul.bf16.gmra.mxu1 %v809_v18 }
  0x5e   : > { %1747 = vmatpush.bf16.msra.mxu1 %v1726_v34  ;;  %978 = vmatmul.bf16.gmra.mxu2 %v913_v8 }
  0x5f   : > { %1087 = vmatmul.bf16.gmra.mxu3 %v1022_v10  ;;  %v1244_v10 = vld [vmem:[%s272_s6 + $0x4] sm:$0xc] }
  0x60   : > { %v1245_v33 = vunpack.c.l.bf16 %v1244_v10 }
  0x61   : > { %1173 = vmatpush.bf16.msra.mxu0 %v1725_v20 }
  0x62   : > { %1748 = vmatpush.bf16.msra.mxu1 %v1725_v20 }
  0x65   : > { %1174 = vmatpush.bf16.msra.mxu0 %v1724_v24 }
  0x66   : > { %1749 = vmatpush.bf16.msra.mxu1 %v1724_v24 }
  0x69   : > { %1175 = vmatpush.bf16.msra.mxu0 %v1723_v25 }
  0x6a   : > { %1750 = vmatpush.bf16.msra.mxu1 %v1723_v25  ;;  %v1210_v25 = vunpack.c.l.bf16 %v1209_v12 }
  0x6c   : > { %1176 = vmatmul.bf16.vlgmr.msra.gmra.mxu0 %v1117_v29 }
  0x6d   : > { %1181 = vmatmul.bf16.vlgmr.msra.gmra.mxu1 %v1116_v27  ;;  %v1204_v27 = vunpack.c.l.bf16 %v1203_v16 }
  0xa9   : > { %v403_v30 = vpop.f32.mrf.mxu0 }
  0xaa   : > { %v474_v31 = vpop.f32.mrf.mxu1 }
  0xab   : > { %v475_v51 = vadd.f32 %v474_v31, %v403_v30 }
  0xb1   : > { %v566_v32 = vpop.f32.mrf.mxu2  ;;  %v405_v22 = vpop.f32.mrf.mxu0 }
  0xb2   : > { %v671_v14 = vpop.f32.mrf.mxu3  ;;  %v476_v35 = vpop.f32.mrf.mxu1  ;;  %v575_v53 = vadd.f32 %v566_v32, %v475_v51  ;;  %v1247_v32 = vrot.slane %v1245_v33, 2 }
  0xb3   : > { %v477_v61 = vadd.f32 %v476_v35, %v405_v22  ;;  %v1212_v35 = vrot.slane %v1210_v25, 6 }
  0xb4   : > { %v680_v59 = vadd.f32 %v671_v14, %v575_v53  ;;  %v1231_v14 = vld [vmem:[%s272_s6 + $0x4] sm:$0x3] }
  0xb9   : > { %v568_v36 = vpop.f32.mrf.mxu2  ;;  %v408_v39 = vpop.f32.mrf.mxu0 }
  0xba   : > { %v673_v37 = vpop.f32.mrf.mxu3  ;;  %v479_v40 = vpop.f32.mrf.mxu1  ;;  %v576_v0 = vadd.f32 %v568_v36, %v477_v61 }
  0xbb   : > { %v480_v52 = vadd.f32 %v479_v40, %v408_v39 }
  0xbc   : > { %v681_v7 = vadd.f32 %v673_v37, %v576_v0 }
  0xc1   : > { %v571_v41 = vpop.f32.mrf.mxu2  ;;  %v410_v43 = vpop.f32.mrf.mxu0 }
  0xc2   : > { %v676_v42 = vpop.f32.mrf.mxu3  ;;  %v481_v38 = vpop.f32.mrf.mxu1  ;;  %v577_v54 = vadd.f32 %v571_v41, %v480_v52  ;;  %v1232_v41 = vunpack.c.l.bf16 %v1231_v14 }
  0xc4   : > { %v682_v60 = vadd.f32 %v676_v42, %v577_v54 }
  0xc9   : > { %v573_v44 = vpop.f32.mrf.mxu2  ;;  %v780_v48 = vpop.f32.mrf.mxu0 }
  0xca   : > { %v678_v45 = vpop.f32.mrf.mxu3  ;;  %v869_v49 = vpop.f32.mrf.mxu1  ;;  %v789_v62 = vadd.f32 %v780_v48, %v680_v59 }
  0xcc   : > { %v878_v5 = vadd.f32 %v869_v49, %v789_v62 }
  0xd1   : > { %v974_v28 = vpop.f32.mrf.mxu2  ;;  %v782_v50 = vpop.f32.mrf.mxu0 }
  0xd2   : > { %v1083_v47 = vpop.f32.mrf.mxu3  ;;  %v871_v46 = vpop.f32.mrf.mxu1  ;;  %v983_v8 = vadd.f32 %v974_v28, %v878_v5  ;;  %v790_v11 = vadd.f32 %v782_v50, %v681_v7  ;;  %v1234_v50 = vrot.slane %v1232_v41, 4 }
  0xd4   : > { %v1092_v13 = vadd.f32 %v1083_v47, %v983_v8  ;;  %v879_v23 = vadd.f32 %v871_v46, %v790_v11 }
  0xd9   : > { %v976_v55 = vpop.f32.mrf.mxu2  ;;  %v785_v57 = vpop.f32.mrf.mxu0 }
  0xda   : > { %v1085_v56 = vpop.f32.mrf.mxu3  ;;  %v874_v58 = vpop.f32.mrf.mxu1  ;;  %v791_v63 = vadd.f32 %v785_v57, %v682_v60  ;;  %v984_v29 = vadd.f32 %v976_v55, %v879_v23 }
  0xdc   : > { %v880_v6 = vadd.f32 %v874_v58, %v791_v63  ;;  %v1093_v37 = vadd.f32 %v1085_v56, %v984_v29 }
  0xe1   : > { %v979_v1 = vpop.f32.mrf.mxu2  ;;  %v787_v3 = vpop.f32.mrf.mxu0 }
  0xe2   : > { %v1088_v2 = vpop.f32.mrf.mxu3  ;;  %v876_v4 = vpop.f32.mrf.mxu1  ;;  %v985_v9 = vadd.f32 %v979_v1, %v880_v6 }
  0xe4   : > { %v1094_v15 = vadd.f32 %v1088_v2, %v985_v9 }
  0xe9   : > { %v981_v34 = vpop.f32.mrf.mxu2  ;;  %v1177_v20 = vpop.f32.mrf.mxu0 }
  0xea   : > { %v1090_v18 = vpop.f32.mrf.mxu3  ;;  %v1182_v21 = vpop.f32.mrf.mxu1  ;;  %v1186_v24 = vadd.f32 %v1177_v20, %v1092_v13 }
  0xeb   : > { %v1188_v26 = vadd.f32 %v1182_v21, %v1094_v15 }
  0xec   : > { %v1193_v30 = vmul.f32 %v1776_v17, %v1186_v24 }
  0xed   : > { %v1195_v31 = vmul.f32 %v1776_v17, %v1188_v26 }
  0xee   : > { %v1200_v22 = vadd.f32 %v1777_v19, %v1193_v30 }
  0xef   : > { %v1202_v36 = vadd.f32 %v1777_v19, %v1195_v31 }
  0xf0   : > { %v1205_v39 = vadd.f32 %v1204_v27, %v1200_v22  ;;  %v1214_v44 = vadd.f32 %v1212_v35, %v1200_v22 }
  0xf1   : > { %v1249_v40 = vadd.f32 %v1247_v32, %v1202_v36  ;;  %v1179_v42 = vpop.f32.mrf.mxu0 }
  0xf2   : > { %v1184_v43 = vpop.f32.mrf.mxu1  ;;  %v1206_v38 = vmax.f32 %v1205_v39, 0.0  ;;  %v1187_v48 = vadd.f32 %v1179_v42, %v1093_v37  ;;  %v1216_v46 = vmax.f32 %v1214_v44, 0.0 }
  0xf3   : > { %v1250_v45 = vmax.f32 %v1249_v40, 0.0 }
  0xf4   : > { %v1207_v49 = vpack.c.bf16 %v1206_v38, %v1206_v38  ;;  %v1194_v47 = vmul.f32 %v1776_v17, %v1187_v48  ;;  %v1218_v55 = vpack.c.bf16 %v1216_v46, %v1216_v46 }
  0xf5   : > { %v1251_v28 = vpack.c.bf16 %v1250_v45, %v1250_v45 }
  0xf6   : > { %1208 = vst [vmem:[%s282_s13] sm:$0x3] %v1207_v49  ;;  %v1201_v52 = vadd.f32 %v1777_v19, %v1194_v47  ;;  %v1653_v60 = vrot.slane %v1218_v55, 9 }
  0xf7   : > { %v1253_v51 = vrot.slane %v1251_v28, 7 }
  0xf8   : > { %v1215_v53 = vadd.f32 %v1212_v35, %v1201_v52  ;;  %v1236_v54 = vadd.f32 %v1234_v50, %v1201_v52 }
  0xf9   : > { %1255 = vst [vmem:[%s282_s13 + $0x4] sm:$0xc] %v1253_v51 }
  0xfa   : > { %v1217_v56 = vmax.f32 %v1215_v53, 0.0  ;;  %v1237_v57 = vmax.f32 %v1236_v54, 0.0 }
  0xfc   : > { %v1219_v58 = vpack.c.bf16 %v1217_v56, %v1217_v56  ;;  %v1238_v59 = vpack.c.bf16 %v1237_v57, %v1237_v57 }
  0xfe   : > { %v1227_v61 = vrot.slane %v1219_v58, 5  ;;  %v1654_v62 = vrot.slane %v1238_v59, 10 }
 0x100   : > { %v1228_v63 = vsel %vm1224_vm8, %v1653_v60, %v1227_v61  ;;  %1243 = vst [vmem:[%s282_s13 + $0x4] sm:$0x3] %v1654_v62 }
 0x101   : > { %1230 = vst [vmem:[%s282_s13] sm:$0xc] %v1228_v63 }
 0x102 PF: > { %s15_s20 = sadd.s32 1, %s1800_s20   ;;  %s2190_s18 = smov %s1796_s19 }
 0x103   : > { %p12_p5 = scmp.ge.s32.totalorder %s15_s20, 4   ;;  %s2191_s19 = smov %s2193_s21 }
 0x105   :  { %14 = sbr.rel (!%p12_p5) target bundleno = 2 (0x2), region = 73 }

// kernel: _lambda_.24
= control target key start
LH: loop header
LB: loop body
LE: loop exit
PB: predicated region body
PF: predicated region fallthrough
CT: control target
= control target key end

     0   :  { %s1541_s15 = smov 0   ;;  %s1543_s16 = smov 0   ;;  %s1810_s0 = inlined_call_operand.vmem [shape: bf16[2,64,128], index: 0, kind: input, shape index: {}]   ;;  %s1811_s1 = inlined_call_operand.vmem [shape: bf16[1152,128], index: 1, kind: input, shape index: {}]   ;;  %s1812_s2 = inlined_call_operand.vmem [shape: f32[1,128], index: 2, kind: input, shape index: {}]   ;;  %s1813_s3 = inlined_call_operand.vmem [shape: f32[1,128], index: 3, kind: input, shape index: {}]   ;;  %s1814_s4 = inlined_call_operand.vmem [shape: bf16[2,4,128], index: 4, kind: output, shape index: {}]  }
   0x1   :  { %s1545_s17 = smov 0  }
   0x2 LB: > { %s26_s18 = sadd.s32 1, %s1510_s16  ;;  %p1093_p0 = scmp.ge.s32.totalorder %s1514_s17, 1  ;;  %s1514_s17 = sphi %s1545_s17, %s14_s17   ;;  %s1510_s16 = sphi %s1543_s16, %s1816_s16   ;;  %s1506_s15 = sphi %s1541_s15, %s1815_s15  }
   0x3   : > { %p28_p1 = scmp.ge.s32.totalorder %s26_s18, 2  ;;  %p176_p2 = scmp.lt.s32.totalorder %s1514_s17, 3 }
   0x5   : > { %s1818_s18 = smov (%p28_p1, %s26_s18), 0  ;;  %p177_p3 = pnand %p1093_p0, %p176_p2 }
   0x6   : > { %p204_p4 = scmp.lt.s32.totalorder (!%p177_p3), %s1506_s15, 1 }
   0x7   : > { %180 = sbr.rel (%p177_p3) target bundleno = 255 (0xff), region = 36 }
   0xc   : > { %v1408_v0 = vld [vmem:[%s1811_s1 + $0x78] sm:$0xff]  ;;  %v1407_v4 = vld [vmem:[%s1811_s1 + $0x70] sm:$0xff]  ;;  %s1820_s15 = smov (!%p204_p4, %s1506_s15), 1  ;;  %v1406_v8 = vld [vmem:[%s1811_s1 + $0x68] sm:$0xff]  ;;  %vm1000_vm0 = vsmask.f32 1280 }
   0xd   : > { %v1416_v1 = vld [vmem:[%s1811_s1 + $0xb8] sm:$0xff]  ;;  %298 = vmatpush.bf16.msra.mxu0 %v1408_v0  ;;  %v1415_v5 = vld [vmem:[%s1811_s1 + $0xb0] sm:$0xff]  ;;  %v1414_v9 = vld [vmem:[%s1811_s1 + $0xa8] sm:$0xff]  ;;  %s1392_s21 = sshll.u32 %s1820_s15, 5  ;;  %vm1001_vm1 = vsmask.f32 3336 }
   0xe   : > { %v1424_v2 = vld [vmem:[%s1811_s1 + $0xf8] sm:$0xff]  ;;  %447 = vmatpush.bf16.msra.mxu2 %v1416_v1  ;;  %v1423_v6 = vld [vmem:[%s1811_s1 + $0xf0] sm:$0xff]  ;;  %v1422_v10 = vld [vmem:[%s1811_s1 + $0xe8] sm:$0xff]  ;;  %s1613_s6 = scalar_lea.vmem %s1810_s0, %s1392_s21  ;;  %s1096_s21 = sshll.u32 %s1820_s15, 1  ;;  %vm996_vm2 = vcmask 1043458   ;;  %vm992_vm5 = vcmask 1041408  }
   0xf   : > { %v1400_v3 = vld [vmem:[%s1811_s1 + $0x38] sm:$0xff]  ;;  %526 = vmatpush.bf16.msra.mxu3 %v1424_v2  ;;  %v1399_v7 = vld [vmem:[%s1811_s1 + $0x30] sm:$0xff]  ;;  %v1398_v11 = vld [vmem:[%s1811_s1 + $0x28] sm:$0xff]  ;;  %s215_s24 = scalar_lea.vmem %s1814_s4, %s1096_s21  ;;  %vm1003_vm4 = vsmask.f32 5392 }
  0x10   : > { %359 = vmatpush.bf16.msra.mxu1 %v1400_v3  ;;  %v1405_v12 = vld [vmem:[%s1811_s1 + $0x60] sm:$0xff]  ;;  %v1404_v16 = vld [vmem:[%s1811_s1 + $0x58] sm:$0xff]  ;;  %v1403_v22 = vld [vmem:[%s1811_s1 + $0x50] sm:$0xff]  ;;  %vm1005_vm7 = vsmask.f32 7448 }
  0x11   : > { %299 = vmatpush.bf16.msra.mxu0 %v1407_v4  ;;  %v1413_v13 = vld [vmem:[%s1811_s1 + $0xa0] sm:$0xff]  ;;  %v1412_v17 = vld [vmem:[%s1811_s1 + $0x98] sm:$0xff]  ;;  %v1411_v23 = vld [vmem:[%s1811_s1 + $0x90] sm:$0xff] }
  0x12   : > { %448 = vmatpush.bf16.msra.mxu2 %v1415_v5  ;;  %v1421_v14 = vld [vmem:[%s1811_s1 + $0xe0] sm:$0xff]  ;;  %v1420_v18 = vld [vmem:[%s1811_s1 + $0xd8] sm:$0xff]  ;;  %v1419_v24 = vld [vmem:[%s1811_s1 + $0xd0] sm:$0xff] }
  0x13   : > { %527 = vmatpush.bf16.msra.mxu3 %v1423_v6  ;;  %v1397_v15 = vld [vmem:[%s1811_s1 + $0x20] sm:$0xff]  ;;  %v1396_v19 = vld [vmem:[%s1811_s1 + $0x18] sm:$0xff]  ;;  %v1395_v26 = vld [vmem:[%s1811_s1 + $0x10] sm:$0xff] }
  0x14   : > { %360 = vmatpush.bf16.msra.mxu1 %v1399_v7  ;;  %v216_v20 = vld [vmem:[%s1613_s6] sm:$0x7]  ;;  %v1402_v27 = vld [vmem:[%s1811_s1 + $0x48] sm:$0xff]  ;;  %v1432_v36 = vld [vmem:[%s1811_s1 + $0x138] sm:$0xff] }
  0x15   : > { %300 = vmatpush.bf16.msra.mxu0 %v1406_v8  ;;  %v389_v21 = vunpack.c.l.b16 %v216_v20  ;;  %v1410_v28 = vld [vmem:[%s1811_s1 + $0x88] sm:$0xff]  ;;  %v1401_v32 = vld [vmem:[%s1811_s1 + $0x40] sm:$0xff]  ;;  %v1448_v37 = vld [vmem:[%s1811_s1 + $0x1b8] sm:$0xff] }
  0x16   : > { %449 = vmatpush.bf16.msra.mxu2 %v1414_v9  ;;  %v1418_v30 = vld [vmem:[%s1811_s1 + $0xc8] sm:$0xff]  ;;  %v1409_v33 = vld [vmem:[%s1811_s1 + $0x80] sm:$0xff]  ;;  %v1456_v40 = vld [vmem:[%s1811_s1 + $0x1f8] sm:$0xff] }
  0x17   : > { %528 = vmatpush.bf16.msra.mxu3 %v1422_v10  ;;  %v390_v25 = vpack.c.b16 %v389_v21, %v389_v21  ;;  %v1394_v31 = vld [vmem:[%s1811_s1 + $0x8] sm:$0xff]  ;;  %v1417_v38 = vld [vmem:[%s1811_s1 + $0xc0] sm:$0xff]  ;;  %v1440_v41 = vld [vmem:[%s1811_s1 + $0x178] sm:$0xff] }
  0x18   : > { %361 = vmatpush.bf16.msra.mxu1 %v1398_v11  ;;  %v1393_v39 = vld [vmem:[%s1811_s1] sm:$0xff]  ;;  %v1431_v43 = vld [vmem:[%s1811_s1 + $0x130] sm:$0xff]  ;;  %v233_v45 = vld [vmem:[%s1613_s6 + $0x8] sm:$0x7] }
  0x19   : > { %301 = vmatpush.bf16.msra.mxu0 %v1405_v12  ;;  %v394_v29 = vshll.u32 %v390_v25, 16  ;;  %v392_v34 = vshrl.u32 %v390_v25, 16  ;;  %v1447_v44 = vld [vmem:[%s1811_s1 + $0x1b0] sm:$0xff]  ;;  %v1430_v49 = vld [vmem:[%s1811_s1 + $0x128] sm:$0xff]  ;;  %v1429_v53 = vld [vmem:[%s1811_s1 + $0x120] sm:$0xff] }
  0x1a   : > { %450 = vmatpush.bf16.msra.mxu2 %v1413_v13  ;;  %v1455_v46 = vld [vmem:[%s1811_s1 + $0x1f0] sm:$0xff]  ;;  %v1446_v50 = vld [vmem:[%s1811_s1 + $0x1a8] sm:$0xff]  ;;  %v1445_v54 = vld [vmem:[%s1811_s1 + $0x1a0] sm:$0xff] }
  0x1b   : > { %529 = vmatpush.bf16.msra.mxu3 %v1421_v14  ;;  %v396_v35 = vrot.slane %v394_v29, 1  ;;  %v1439_v47 = vld [vmem:[%s1811_s1 + $0x170] sm:$0xff]  ;;  %v1454_v51 = vld [vmem:[%s1811_s1 + $0x1e8] sm:$0xff]  ;;  %v708_v55 = vld [vmem:[%s1613_s6] sm:$0xe] }
  0x1c   : > { %362 = vmatpush.bf16.msra.mxu1 %v1397_v15  ;;  %v461_v48 = vld [vmem:[%s1613_s6 + $0x10] sm:$0x7]  ;;  %v1438_v52 = vld [vmem:[%s1811_s1 + $0x168] sm:$0xff]  ;;  %v1453_v56 = vld [vmem:[%s1811_s1 + $0x1e0] sm:$0xff]  ;;  %v726_v59 = vunpack.c.l.b16 %v708_v55 }
  0x1d   : > { %302 = vmatpush.bf16.msra.mxu0 %v1404_v16  ;;  %v397_v42 = vor.u32 %v396_v35, %v392_v34  ;;  %v1437_v57 = vld [vmem:[%s1811_s1 + $0x160] sm:$0xff]  ;;  %v799_v58 = vld [vmem:[%s1613_s6 + $0x8] sm:$0xe]  ;;  %v1428_v60 = vld [vmem:[%s1811_s1 + $0x118] sm:$0xff]  ;;  %v636_v63 = vunpack.c.l.b16 %v461_v48 }
  0x1e   : > { %451 = vmatpush.bf16.msra.mxu2 %v1412_v17  ;;  %v1444_v61 = vld [vmem:[%s1811_s1 + $0x198] sm:$0xff]  ;;  %v817_v62 = vunpack.c.l.b16 %v799_v58  ;;  %v727_v2 = vpack.c.b16 %v726_v59, %v726_v59  ;;  %v1427_v3 = vld [vmem:[%s1811_s1 + $0x110] sm:$0xff]  ;;  %v1426_v11 = vld [vmem:[%s1811_s1 + $0x108] sm:$0xff] }
  0x1f   : > { %530 = vmatpush.bf16.msra.mxu3 %v1420_v18  ;;  %v1452_v0 = vld [vmem:[%s1811_s1 + $0x1d8] sm:$0xff]  ;;  %v1443_v4 = vld [vmem:[%s1811_s1 + $0x190] sm:$0xff]  ;;  %v637_v6 = vpack.c.b16 %v636_v63, %v636_v63  ;;  %v1442_v12 = vld [vmem:[%s1811_s1 + $0x188] sm:$0xff] }
  0x20   : > { %363 = vmatpush.bf16.msra.mxu1 %v1396_v19  ;;  %v1436_v1 = vld [vmem:[%s1811_s1 + $0x158] sm:$0xff]  ;;  %v818_v5 = vpack.c.b16 %v817_v62, %v817_v62  ;;  %v1451_v7 = vld [vmem:[%s1811_s1 + $0x1d0] sm:$0xff]  ;;  %v729_v9 = vshrl.u32 %v727_v2, 16  ;;  %v732_v10 = vshll.u32 %v727_v2, 16  ;;  %v1450_v16 = vld [vmem:[%s1811_s1 + $0x1c8] sm:$0xff] }
  0x21   : > { %303 = vmatpush.bf16.msra.mxu0 %v1403_v22  ;;  %v1435_v8 = vld [vmem:[%s1811_s1 + $0x150] sm:$0xff]  ;;  %v641_v15 = vshll.u32 %v637_v6, 16  ;;  %v1434_v17 = vld [vmem:[%s1811_s1 + $0x148] sm:$0xff]  ;;  %v1441_v21 = vld [vmem:[%s1811_s1 + $0x180] sm:$0xff]  ;;  %v639_v25 = vshrl.u32 %v637_v6, 16 }
  0x22   : > { %452 = vmatpush.bf16.msra.mxu2 %v1411_v23  ;;  %v820_v13 = vshrl.u32 %v818_v5, 16  ;;  %v823_v14 = vshll.u32 %v818_v5, 16  ;;  %v731_v18 = vrot.slane %v729_v9, 1  ;;  %v734_v19 = vrot.slane %v732_v10, 2  ;;  %v1465_v22 = vld [vmem:[%s1811_s1 + $0x238] sm:$0xff]  ;;  %v1463_v34 = vld [vmem:[%s1811_s1 + $0x228] sm:$0xff]  ;;  %vm1002_vm3 = vmor %vm1000_vm0, %vm1001_vm1 }
  0x23   : > { %531 = vmatpush.bf16.msra.mxu3 %v1419_v24  ;;  %v1462_v35 = vld [vmem:[%s1811_s1 + $0x220] sm:$0xff]  ;;  %vm1004_vm6 = vmor %vm1002_vm3, %vm1003_vm4 }
  0x24   : > { %364 = vmatpush.bf16.msra.mxu1 %v1395_v26  ;;  %v822_v23 = vrot.slane %v820_v13, 1  ;;  %v825_v24 = vrot.slane %v823_v14, 2  ;;  %v643_v26 = vrot.slane %v641_v15, 1  ;;  %v735_v29 = vor.u32 %v734_v19, %v731_v18  ;;  %v1491_v6 = vld [vmem:[%s1813_s3] ss:$0 sm:$0xff]  ;;  %vm1006_vm8 = vmor %vm1004_vm6, %vm1005_vm7 }
  0x25   : > { %304 = vmatpush.bf16.msra.mxu0 %v1402_v27  ;;  %v1449_v27 = vld [vmem:[%s1811_s1 + $0x1c0] sm:$0xff] }
  0x26   : > { %453 = vmatpush.bf16.msra.mxu2 %v1410_v28  ;;  %v1433_v28 = vld [vmem:[%s1811_s1 + $0x140] sm:$0xff] }
  0x27   : > { %532 = vmatpush.bf16.msra.mxu3 %v1418_v30  ;;  %v540_v30 = vld [vmem:[%s1613_s6 + $0x18] sm:$0x7] }
  0x28   : > { %365 = vmatpush.bf16.msra.mxu1 %v1394_v31  ;;  %v1464_v31 = vld [vmem:[%s1811_s1 + $0x230] sm:$0xff] }
  0x29   : > { %305 = vmatpush.bf16.msra.mxu0 %v1401_v32  ;;  %v826_v32 = vor.u32 %v825_v24, %v822_v23 }
  0x2a   : > { %454 = vmatpush.bf16.msra.mxu2 %v1409_v33  ;;  %v644_v33 = vor.u32 %v643_v26, %v639_v25 }
  0x2b   : > { %533 = vmatpush.bf16.msra.mxu3 %v1417_v38  ;;  %v1459_v38 = vld [vmem:[%s1811_s1 + $0x208] sm:$0xff] }
  0x2c   : > { %366 = vmatpush.bf16.msra.mxu1 %v1393_v39  ;;  %306 = vmatmul.bf16.vlgmr.msra.gmra.mxu0 %v233_v45  ;;  %v1355_v39 = vld [vmem:[%s1613_s6] sm:$0xc] }
  0x2d   : > { %605 = vmatpush.bf16.msrb.mxu0 %v1432_v36  ;;  %455 = vmatmul.bf16.vlgmr.msra.gmra.mxu2 %v397_v42  ;;  %v1461_v36 = vld [vmem:[%s1811_s1 + $0x218] sm:$0xff]  ;;  %v1458_v42 = vld [vmem:[%s1811_s1 + $0x200] sm:$0xff] }
  0x2e   : > { %785 = vmatpush.bf16.msrb.mxu2 %v1448_v37  ;;  %534 = vmatmul.bf16.vlgmr.msra.gmra.mxu3 %v461_v48  ;;  %v1460_v37 = vld [vmem:[%s1811_s1 + $0x210] sm:$0xff] }
  0x2f   : > { %876 = vmatpush.bf16.msrb.mxu3 %v1456_v40  ;;  %367 = vmatmul.bf16.vlgmr.msra.gmra.mxu1 %v216_v20  ;;  %v1425_v20 = vld [vmem:[%s1811_s1 + $0x100] sm:$0xff] }
  0x30   : > { %694 = vmatpush.bf16.msrb.mxu1 %v1440_v41  ;;  %v1457_v40 = vld [vmem:[%s1613_s6] sm:$0x10] }
  0x31   : > { %606 = vmatpush.bf16.msrb.mxu0 %v1431_v43  ;;  %v1356_v41 = vor.u32 %v1457_v40, %v1355_v39 }
  0x32   : > { %786 = vmatpush.bf16.msrb.mxu2 %v1447_v44 }
  0x33   : > { %877 = vmatpush.bf16.msrb.mxu3 %v1455_v46  ;;  %v913_v43 = vrot.slane %v1356_v41, 2 }
  0x34   : > { %695 = vmatpush.bf16.msrb.mxu1 %v1439_v47 }
  0x35   : > { %607 = vmatpush.bf16.msrb.mxu0 %v1430_v49 }
  0x36   : > { %787 = vmatpush.bf16.msrb.mxu2 %v1446_v50 }
  0x37   : > { %878 = vmatpush.bf16.msrb.mxu3 %v1454_v51 }
  0x38   : > { %696 = vmatpush.bf16.msrb.mxu1 %v1438_v52 }
  0x39   : > { %608 = vmatpush.bf16.msrb.mxu0 %v1429_v53 }
  0x3a   : > { %788 = vmatpush.bf16.msrb.mxu2 %v1445_v54 }
  0x3b   : > { %879 = vmatpush.bf16.msrb.mxu3 %v1453_v56 }
  0x3c   : > { %697 = vmatpush.bf16.msrb.mxu1 %v1437_v57 }
  0x3d   : > { %609 = vmatpush.bf16.msrb.mxu0 %v1428_v60 }
  0x3e   : > { %789 = vmatpush.bf16.msrb.mxu2 %v1444_v61 }
  0x3f   : > { %880 = vmatpush.bf16.msrb.mxu3 %v1452_v0 }
  0x40   : > { %698 = vmatpush.bf16.msrb.mxu1 %v1436_v1 }
  0x41   : > { %610 = vmatpush.bf16.msrb.mxu0 %v1427_v3  ;;  %v1490_v3 = vld [vmem:[%s1812_s2] ss:$0 sm:$0xff] }
  0x42   : > { %790 = vmatpush.bf16.msrb.mxu2 %v1443_v4 }
  0x43   : > { %881 = vmatpush.bf16.msrb.mxu3 %v1451_v7 }
  0x44   : > { %699 = vmatpush.bf16.msrb.mxu1 %v1435_v8 }
  0x45   : > { %611 = vmatpush.bf16.msrb.mxu0 %v1426_v11 }
  0x46   : > { %791 = vmatpush.bf16.msrb.mxu2 %v1442_v12 }
  0x47   : > { %882 = vmatpush.bf16.msrb.mxu3 %v1450_v16 }
  0x48   : > { %700 = vmatpush.bf16.msrb.mxu1 %v1434_v17 }
  0x49   : > { %612 = vmatpush.bf16.msrb.mxu0 %v1425_v20 }
  0x4a   : > { %792 = vmatpush.bf16.msrb.mxu2 %v1441_v21 }
  0x4b   : > { %883 = vmatpush.bf16.msrb.mxu3 %v1449_v27 }
  0x4c   : > { %701 = vmatpush.bf16.msrb.mxu1 %v1433_v28  ;;  %613 = vmatmul.bf16.vlgmr.msrb.gmra.mxu0 %v540_v30 }
  0x4d   : > { %963 = vmatpush.bf16.msra.mxu0 %v1465_v22  ;;  %793 = vmatmul.bf16.vlgmr.msrb.gmra.mxu2 %v735_v29 }
  0x4e   : > { %884 = vmatmul.bf16.vlgmr.msrb.gmra.mxu3 %v826_v32 }
  0x4f   : > { %702 = vmatmul.bf16.vlgmr.msrb.gmra.mxu1 %v644_v33 }
  0x51   : > { %964 = vmatpush.bf16.msra.mxu0 %v1464_v31 }
  0x55   : > { %965 = vmatpush.bf16.msra.mxu0 %v1463_v34 }
  0x59   : > { %966 = vmatpush.bf16.msra.mxu0 %v1462_v35 }
  0x5d   : > { %967 = vmatpush.bf16.msra.mxu0 %v1461_v36 }
  0x61   : > { %968 = vmatpush.bf16.msra.mxu0 %v1460_v37 }
  0x65   : > { %969 = vmatpush.bf16.msra.mxu0 %v1459_v38 }
  0x69   : > { %970 = vmatpush.bf16.msra.mxu0 %v1458_v42 }
  0x6c   : > { %971 = vmatmul.bf16.vlgmr.msra.gmra.mxu0 %v913_v43 }
  0xa9   : > { %v307_v44 = vpop.f32.mrf.mxu0 }
  0xac   : > { %v368_v45 = vpop.f32.mrf.mxu1 }
  0xad   : > { %v369_v54 = vadd.f32 %v368_v45, %v307_v44 }
  0xb0   : > { %v456_v46 = vpop.f32.mrf.mxu2 }
  0xb1   : > { %v535_v47 = vpop.f32.mrf.mxu3  ;;  %v309_v48 = vpop.f32.mrf.mxu0  ;;  %v460_v56 = vadd.f32 %v456_v46, %v369_v54 }
  0xb3   : > { %v539_v60 = vadd.f32 %v535_v47, %v460_v56 }
  0xb4   : > { %v370_v49 = vpop.f32.mrf.mxu1 }
  0xb8   : > { %v458_v50 = vpop.f32.mrf.mxu2 }
  0xb9   : > { %v537_v51 = vpop.f32.mrf.mxu3 }
  0xc9   : > { %v614_v52 = vpop.f32.mrf.mxu0 }
  0xca   : > { %v618_v62 = vadd.f32 %v614_v52, %v539_v60 }
  0xcc   : > { %v703_v53 = vpop.f32.mrf.mxu1 }
  0xcd   : > { %v707_v0 = vadd.f32 %v703_v53, %v618_v62 }
  0xd0   : > { %v794_v55 = vpop.f32.mrf.mxu2 }
  0xd1   : > { %v885_v57 = vpop.f32.mrf.mxu3  ;;  %v616_v58 = vpop.f32.mrf.mxu0  ;;  %v798_v1 = vadd.f32 %v794_v55, %v707_v0 }
  0xd3   : > { %v889_v2 = vadd.f32 %v885_v57, %v798_v1 }
  0xd4   : > { %v705_v59 = vpop.f32.mrf.mxu1 }
  0xd8   : > { %v796_v61 = vpop.f32.mrf.mxu2 }
  0xd9   : > { %v887_v63 = vpop.f32.mrf.mxu3 }
  0xe9   : > { %v972_v4 = vpop.f32.mrf.mxu0 }
  0xea   : > { %v976_v5 = vadd.f32 %v972_v4, %v889_v2 }
  0xec   : > { %v981_v7 = vmul.f32 %v1490_v3, %v976_v5 }
  0xee   : > { %v986_v8 = vadd.f32 %v1491_v6, %v981_v7 }
  0xf0   : > { %v987_v9 = vmax.f32 %v986_v8, 0.0 }
  0xf1   : > { %v974_v10 = vpop.f32.mrf.mxu0 }
  0xf2   : > { %v988_v11 = vpack.c.bf16 %v987_v9, %v987_v9 }
  0xf4   : > { %989 = vst [vmem:[%s215_s24] sm:$0x1] %v988_v11  ;;  %v991_v12 = vrot.slane %v988_v11, 2 }
  0xf6   : > { %v997_v13 = vsel %vm996_vm2, %v988_v11, %v991_v12  ;;  %v995_v15 = vsel %vm992_vm5, %v988_v11, %v991_v12 }
  0xf7   : > { %v999_v14 = vrot.slane %v997_v13, 2  ;;  %v1007_v17 = vshrl.u32 %v995_v15, 16 }
  0xf9   : > { %v1012_v16 = vshll.u32 %v999_v14, 16 }
  0xfb   : > { %v1014_v18 = vrot.slane %v1012_v16, 7 }
  0xfd   : > { %v1015_v19 = vsel %vm1006_vm8, %v1007_v17, %v1014_v18 }
  0xfe   : > { %1017 = vst [vmem:[%s215_s24] sm:$0x2] %v1015_v19 }
  0xff PF: > { %s14_s17 = sadd.s32 1, %s1514_s17   ;;  %s1815_s15 = smov %s1510_s16 }
 0x100   : > { %p11_p5 = scmp.ge.s32.totalorder %s14_s17, 4   ;;  %s1816_s16 = smov %s1818_s18 }
 0x102   :  { %13 = sbr.rel (!%p11_p5) target bundleno = 2 (0x2), region = 66 }

// kernel: _lambda_.26
= control target key start
LH: loop header
LB: loop body
LE: loop exit
PB: predicated region body
PF: predicated region fallthrough
CT: control target
= control target key end

     0   :  { %s1609_s18 = smov 0   ;;  %s1611_s19 = smov 0   ;;  %s1901_s0 = inlined_call_operand.vmem [shape: bf16[2,16,128], index: 0, kind: input, shape index: {}]   ;;  %s1902_s1 = inlined_call_operand.vmem [shape: bf16[1152,128], index: 1, kind: input, shape index: {}]   ;;  %s1903_s2 = inlined_call_operand.vmem [shape: f32[1,128], index: 2, kind: input, shape index: {}]   ;;  %s1904_s3 = inlined_call_operand.vmem [shape: f32[1,128], index: 3, kind: input, shape index: {}]   ;;  %s1905_s4 = inlined_call_operand.vmem [shape: bf16[2,4,128], index: 4, kind: input, shape index: {}]   ;;  %s1906_s5 = inlined_call_operand.vmem [shape: bf16[2,4,128], index: 5, kind: output, shape index: {}]  }
   0x1   :  { %s1613_s20 = smov 0  }
   0x2 LB: > { %s27_s21 = sadd.s32 1, %s1573_s19  ;;  %p1161_p0 = scmp.ge.s32.totalorder %s1577_s20, 1  ;;  %s1577_s20 = sphi %s1613_s20, %s15_s20   ;;  %s1573_s19 = sphi %s1611_s19, %s1908_s19   ;;  %s1569_s18 = sphi %s1609_s18, %s1907_s18  }
   0x3   : > { %p29_p1 = scmp.ge.s32.totalorder %s27_s21, 2  ;;  %p215_p2 = scmp.lt.s32.totalorder %s1577_s20, 3 }
   0x5   : > { %s1910_s21 = smov (%p29_p1, %s27_s21), 0  ;;  %p216_p3 = pnand %p1161_p0, %p215_p2 }
   0x6   : > { %p252_p4 = scmp.lt.s32.totalorder (!%p216_p3), %s1569_s18, 1 }
   0x7   : > { %219 = sbr.rel (%p216_p3) target bundleno = 258 (0x102), region = 40 }
   0xc   : > { %v1472_v0 = vld [vmem:[%s1902_s1 + $0x78] sm:$0xff]  ;;  %v1471_v4 = vld [vmem:[%s1902_s1 + $0x70] sm:$0xff]  ;;  %v1470_v8 = vld [vmem:[%s1902_s1 + $0x68] sm:$0xff]  ;;  %s1912_s18 = smov (!%p252_p4, %s1569_s18), 1 }
   0xd   : > { %v1480_v1 = vld [vmem:[%s1902_s1 + $0xb8] sm:$0xff]  ;;  %364 = vmatpush.bf16.msra.mxu0 %v1472_v0  ;;  %v1479_v5 = vld [vmem:[%s1902_s1 + $0xb0] sm:$0xff]  ;;  %v1478_v9 = vld [vmem:[%s1902_s1 + $0xa8] sm:$0xff]  ;;  %s1456_s8 = sshll.u32 %s1912_s18, 3 }
   0xe   : > { %v1488_v2 = vld [vmem:[%s1902_s1 + $0xf8] sm:$0xff]  ;;  %508 = vmatpush.bf16.msra.mxu2 %v1480_v1  ;;  %v1487_v6 = vld [vmem:[%s1902_s1 + $0xf0] sm:$0xff]  ;;  %v1486_v10 = vld [vmem:[%s1902_s1 + $0xe8] sm:$0xff]  ;;  %s1691_s15 = scalar_lea.vmem %s1901_s0, %s1456_s8 }
   0xf   : > { %v1464_v3 = vld [vmem:[%s1902_s1 + $0x38] sm:$0xff]  ;;  %595 = vmatpush.bf16.msra.mxu3 %v1488_v2  ;;  %v1463_v7 = vld [vmem:[%s1902_s1 + $0x30] sm:$0xff]  ;;  %v1462_v11 = vld [vmem:[%s1902_s1 + $0x28] sm:$0xff] }
  0x10   : > { %425 = vmatpush.bf16.msra.mxu1 %v1464_v3  ;;  %v1469_v12 = vld [vmem:[%s1902_s1 + $0x60] sm:$0xff]  ;;  %v1468_v16 = vld [vmem:[%s1902_s1 + $0x58] sm:$0xff]  ;;  %v1467_v21 = vld [vmem:[%s1902_s1 + $0x50] sm:$0xff] }
  0x11   : > { %365 = vmatpush.bf16.msra.mxu0 %v1471_v4  ;;  %v1477_v13 = vld [vmem:[%s1902_s1 + $0xa0] sm:$0xff]  ;;  %v1476_v17 = vld [vmem:[%s1902_s1 + $0x98] sm:$0xff]  ;;  %v1475_v22 = vld [vmem:[%s1902_s1 + $0x90] sm:$0xff] }
  0x12   : > { %509 = vmatpush.bf16.msra.mxu2 %v1479_v5  ;;  %v1485_v14 = vld [vmem:[%s1902_s1 + $0xe0] sm:$0xff]  ;;  %v1484_v18 = vld [vmem:[%s1902_s1 + $0xd8] sm:$0xff]  ;;  %v1483_v24 = vld [vmem:[%s1902_s1 + $0xd0] sm:$0xff] }
  0x13   : > { %596 = vmatpush.bf16.msra.mxu3 %v1487_v6  ;;  %v1461_v15 = vld [vmem:[%s1902_s1 + $0x20] sm:$0xff]  ;;  %v1460_v19 = vld [vmem:[%s1902_s1 + $0x18] sm:$0xff]  ;;  %v1459_v25 = vld [vmem:[%s1902_s1 + $0x10] sm:$0xff] }
  0x14   : > { %426 = vmatpush.bf16.msra.mxu1 %v1463_v7  ;;  %v1700_v20 = vld [vmem:[%s1691_s15] sm:$0xff]   ;;  %v1466_v30 = vld [vmem:[%s1902_s1 + $0x48] sm:$0xff]  ;;  %v1496_v43 = vld [vmem:[%s1902_s1 + $0x138] sm:$0xff] }
  0x15   : > { %366 = vmatpush.bf16.msra.mxu0 %v1470_v8  ;;  %v306_v23 = vunpack.c.l.b16 %v1700_v20  ;;  %v438_v26 = vld [vmem:[%s1691_s15] sm:$0xe]  ;;  %v523_v29 = vld [vmem:[%s1691_s15 + $0x4] sm:$0x1]  ;;  %v1474_v31 = vld [vmem:[%s1902_s1 + $0x88] sm:$0xff]  ;;  %v881_v6 = vunpack.c.h.b16 %v1700_v20 }
  0x16   : > { %510 = vmatpush.bf16.msra.mxu2 %v1478_v9  ;;  %v1717_v28 = vld [vmem:[%s1691_s15] sm:$0xc]  ;;  %v456_v32 = vunpack.c.l.b16 %v438_v26  ;;  %v1482_v34 = vld [vmem:[%s1902_s1 + $0xc8] sm:$0xff]  ;;  %v543_v37 = vunpack.c.l.b16 %v523_v29  ;;  %v1512_v44 = vld [vmem:[%s1902_s1 + $0x1b8] sm:$0xff] }
  0x17   : > { %597 = vmatpush.bf16.msra.mxu3 %v1486_v10  ;;  %v307_v27 = vpack.c.b16 %v306_v23, %v306_v23  ;;  %v1458_v35 = vld [vmem:[%s1902_s1 + $0x8] sm:$0xff]  ;;  %v542_v36 = vunpack.c.l.b16 %v1717_v28  ;;  %v1465_v38 = vld [vmem:[%s1902_s1 + $0x40] sm:$0xff]  ;;  %v1520_v48 = vld [vmem:[%s1902_s1 + $0x1f8] sm:$0xff] }
  0x18   : > { %427 = vmatpush.bf16.msra.mxu1 %v1462_v11  ;;  %v1473_v39 = vld [vmem:[%s1902_s1 + $0x80] sm:$0xff]  ;;  %v457_v40 = vpack.c.b16 %v456_v32, %v456_v32  ;;  %v1504_v49 = vld [vmem:[%s1902_s1 + $0x178] sm:$0xff]  ;;  %v1495_v52 = vld [vmem:[%s1902_s1 + $0x130] sm:$0xff] }
  0x19   : > { %367 = vmatpush.bf16.msra.mxu0 %v1469_v12  ;;  %v311_v33 = vshll.u32 %v307_v27, 16  ;;  %v309_v41 = vshrl.u32 %v307_v27, 16  ;;  %v1481_v45 = vld [vmem:[%s1902_s1 + $0xc0] sm:$0xff]  ;;  %v544_v47 = vpack.c.b16 %v543_v37, %v542_v36  ;;  %v1511_v53 = vld [vmem:[%s1902_s1 + $0x1b0] sm:$0xff]  ;;  %v1494_v58 = vld [vmem:[%s1902_s1 + $0x128] sm:$0xff]  ;;  %v882_v12 = vpack.c.b16 %v881_v6, %v881_v6 }
  0x1a   : > { %511 = vmatpush.bf16.msra.mxu2 %v1477_v13  ;;  %v1457_v46 = vld [vmem:[%s1902_s1] sm:$0xff]  ;;  %v458_v50 = vrot.slane %v457_v40, 1  ;;  %v1519_v55 = vld [vmem:[%s1902_s1 + $0x1f0] sm:$0xff]  ;;  %v1510_v59 = vld [vmem:[%s1902_s1 + $0x1a8] sm:$0xff] }
  0x1b   : > { %598 = vmatpush.bf16.msra.mxu3 %v1485_v14  ;;  %v313_v42 = vrot.slane %v311_v33, 1  ;;  %v545_v54 = vrot.slane %v544_v47, 2  ;;  %v1503_v56 = vld [vmem:[%s1902_s1 + $0x170] sm:$0xff]  ;;  %v271_v57 = vld [vmem:[%s1691_s15] sm:$0x7]  ;;  %v1518_v60 = vld [vmem:[%s1902_s1 + $0x1e8] sm:$0xff] }
  0x1c   : > { %428 = vmatpush.bf16.msra.mxu1 %v1461_v15  ;;  %v1502_v61 = vld [vmem:[%s1902_s1 + $0x168] sm:$0xff]  ;;  %v1493_v62 = vld [vmem:[%s1902_s1 + $0x120] sm:$0xff]  ;;  %v1492_v4 = vld [vmem:[%s1902_s1 + $0x118] sm:$0xff]  ;;  %v886_v20 = vshll.u32 %v882_v12, 16  ;;  %v884_v29 = vshrl.u32 %v882_v12, 16 }
  0x1d   : > { %368 = vmatpush.bf16.msra.mxu0 %v1468_v16  ;;  %v314_v51 = vor.u32 %v313_v42, %v309_v41  ;;  %v1509_v63 = vld [vmem:[%s1902_s1 + $0x1a0] sm:$0xff]  ;;  %v1508_v5 = vld [vmem:[%s1902_s1 + $0x198] sm:$0xff]  ;;  %v1491_v10 = vld [vmem:[%s1902_s1 + $0x110] sm:$0xff] }
  0x1e   : > { %512 = vmatpush.bf16.msra.mxu2 %v1476_v17  ;;  %v609_v0 = vld [vmem:[%s1691_s15 + $0x4] sm:$0x3]  ;;  %v1516_v7 = vld [vmem:[%s1902_s1 + $0x1d8] sm:$0xff]  ;;  %v1507_v11 = vld [vmem:[%s1902_s1 + $0x190] sm:$0xff] }
  0x1f   : > { %599 = vmatpush.bf16.msra.mxu3 %v1484_v18  ;;  %v1517_v1 = vld [vmem:[%s1902_s1 + $0x1e0] sm:$0xff]  ;;  %v627_v3 = vunpack.c.l.b16 %v609_v0  ;;  %v1500_v8 = vld [vmem:[%s1902_s1 + $0x158] sm:$0xff]  ;;  %v1515_v13 = vld [vmem:[%s1902_s1 + $0x1d0] sm:$0xff] }
  0x20   : > { %429 = vmatpush.bf16.msra.mxu1 %v1460_v19  ;;  %v1501_v2 = vld [vmem:[%s1902_s1 + $0x160] sm:$0xff]  ;;  %v1499_v14 = vld [vmem:[%s1902_s1 + $0x150] sm:$0xff]  ;;  %v1490_v18 = vld [vmem:[%s1902_s1 + $0x108] sm:$0xff] }
  0x21   : > { %369 = vmatpush.bf16.msra.mxu0 %v1467_v21  ;;  %v628_v9 = vpack.c.b16 %v627_v3, %v542_v36  ;;  %v700_v17 = vld [vmem:[%s1691_s15] sm:$0x8]  ;;  %v1506_v19 = vld [vmem:[%s1902_s1 + $0x188] sm:$0xff]  ;;  %v1528_v28 = vld [vmem:[%s1902_s1 + $0x238] sm:$0xff] }
  0x22   : > { %513 = vmatpush.bf16.msra.mxu2 %v1475_v22  ;;  %v1514_v21 = vld [vmem:[%s1902_s1 + $0x1c8] sm:$0xff]  ;;  %v718_v23 = vunpack.c.l.b16 %v700_v17  ;;  %v1489_v26 = vld [vmem:[%s1902_s1 + $0x100] sm:$0xff]  ;;  %v1527_v36 = vld [vmem:[%s1902_s1 + $0x230] sm:$0xff] }
  0x23   : > { %600 = vmatpush.bf16.msra.mxu3 %v1483_v24  ;;  %v630_v15 = vshrl.u32 %v628_v9, 16  ;;  %v633_v16 = vshll.u32 %v628_v9, 16  ;;  %v1498_v22 = vld [vmem:[%s1902_s1 + $0x148] sm:$0xff]  ;;  %v1505_v27 = vld [vmem:[%s1902_s1 + $0x180] sm:$0xff]  ;;  %v1524_v41 = vld [vmem:[%s1902_s1 + $0x218] sm:$0xff] }
  0x24   : > { %430 = vmatpush.bf16.msra.mxu1 %v1459_v25  ;;  %v1497_v32 = vld [vmem:[%s1902_s1 + $0x140] sm:$0xff]  ;;  %v719_v33 = vpack.c.b16 %v627_v3, %v718_v23  ;;  %v1523_v42 = vld [vmem:[%s1902_s1 + $0x210] sm:$0xff] }
  0x25   : > { %370 = vmatpush.bf16.msra.mxu0 %v1466_v30  ;;  %v632_v24 = vrot.slane %v630_v15, 2  ;;  %v635_v25 = vrot.slane %v633_v16, 3  ;;  %v888_v30 = vrot.slane %v886_v20, 1  ;;  %v1525_v40 = vld [vmem:[%s1902_s1 + $0x220] sm:$0xff] }
  0x26   : > { %514 = vmatpush.bf16.msra.mxu2 %v1474_v31  ;;  %v1513_v31 = vld [vmem:[%s1902_s1 + $0x1c0] sm:$0xff] }
  0x27   : > { %601 = vmatpush.bf16.msra.mxu3 %v1482_v34  ;;  %v636_v34 = vor.u32 %v635_v25, %v632_v24  ;;  %v889_v37 = vor.u32 %v888_v30, %v884_v29  ;;  %v1521_v47 = vld [vmem:[%s1902_s1 + $0x200] sm:$0xff] }
  0x28   : > { %431 = vmatpush.bf16.msra.mxu1 %v1458_v35  ;;  %v784_v35 = vld [vmem:[%s1691_s15 + $0x4] sm:$0x7]  ;;  %v1554_v15 = vld [vmem:[%s1904_s3] ss:$0 sm:$0xff] }
  0x29   : > { %371 = vmatpush.bf16.msra.mxu0 %v1465_v38  ;;  %v720_v38 = vrot.slane %v719_v33, 3 }
  0x2a   : > { %515 = vmatpush.bf16.msra.mxu2 %v1473_v39  ;;  %v1526_v39 = vld [vmem:[%s1902_s1 + $0x228] sm:$0xff] }
  0x2b   : > { %602 = vmatpush.bf16.msra.mxu3 %v1481_v45  ;;  %v1522_v45 = vld [vmem:[%s1902_s1 + $0x208] sm:$0xff] }
  0x2c   : > { %432 = vmatpush.bf16.msra.mxu1 %v1457_v46  ;;  %372 = vmatmul.bf16.vlgmr.msra.gmra.mxu0 %v314_v51 }
  0x2d   : > { %686 = vmatpush.bf16.msrb.mxu0 %v1496_v43  ;;  %516 = vmatmul.bf16.vlgmr.msra.gmra.mxu2 %v458_v50  ;;  %v953_v43 = vld [vmem:[%s1691_s15 + $0x4] sm:$0xe]  ;;  %s1164_s15 = sshll.u32 %s1912_s18, 1 }
  0x2e   : > { %849 = vmatpush.bf16.msrb.mxu2 %v1512_v44  ;;  %603 = vmatmul.bf16.vlgmr.msra.gmra.mxu3 %v545_v54  ;;  %v971_v44 = vunpack.c.l.b16 %v953_v43  ;;  %s263_s30 = scalar_lea.vmem %s1905_s4, %s1164_s15  ;;  %s270_s12 = scalar_lea.vmem %s1906_s5, %s1164_s15 }
  0x2f   : > { %939 = vmatpush.bf16.msrb.mxu3 %v1520_v48  ;;  %433 = vmatmul.bf16.vlgmr.msra.gmra.mxu1 %v271_v57  ;;  %v1053_v57 = vld [vmem:[%s263_s30] sm:$0x2]  ;;  %v1047_v12 = vld [vmem:[%s263_s30] sm:$0x1] }
  0x30   : > { %770 = vmatpush.bf16.msrb.mxu1 %v1504_v49  ;;  %v972_v46 = vpack.c.b16 %v971_v44, %v971_v44  ;;  %v1048_v17 = vunpack.c.l.bf16 %v1047_v12 }
  0x31   : > { %687 = vmatpush.bf16.msrb.mxu0 %v1495_v52 }
  0x32   : > { %850 = vmatpush.bf16.msrb.mxu2 %v1511_v53  ;;  %v973_v48 = vrot.slane %v972_v46, 1 }
  0x33   : > { %940 = vmatpush.bf16.msrb.mxu3 %v1519_v55 }
  0x34   : > { %771 = vmatpush.bf16.msrb.mxu1 %v1503_v56 }
  0x35   : > { %688 = vmatpush.bf16.msrb.mxu0 %v1494_v58  ;;  %v1054_v58 = vunpack.c.l.bf16 %v1053_v57 }
  0x36   : > { %851 = vmatpush.bf16.msrb.mxu2 %v1510_v59 }
  0x37   : > { %941 = vmatpush.bf16.msrb.mxu3 %v1518_v60  ;;  %1056 = vst [vmem:[#allocation1] ss:$2 sm:$0xff] %v1054_v58 }
  0x38   : > { %772 = vmatpush.bf16.msrb.mxu1 %v1502_v61 }
  0x39   : > { %689 = vmatpush.bf16.msrb.mxu0 %v1493_v62 }
  0x3a   : > { %852 = vmatpush.bf16.msrb.mxu2 %v1509_v63 }
  0x3b   : > { %942 = vmatpush.bf16.msrb.mxu3 %v1517_v1 }
  0x3c   : > { %773 = vmatpush.bf16.msrb.mxu1 %v1501_v2 }
  0x3d   : > { %690 = vmatpush.bf16.msrb.mxu0 %v1492_v4 }
  0x3e   : > { %853 = vmatpush.bf16.msrb.mxu2 %v1508_v5 }
  0x3f   : > { %943 = vmatpush.bf16.msrb.mxu3 %v1516_v7 }
  0x40   : > { %774 = vmatpush.bf16.msrb.mxu1 %v1500_v8 }
  0x41   : > { %691 = vmatpush.bf16.msrb.mxu0 %v1491_v10  ;;  %v1553_v10 = vld [vmem:[%s1903_s2] ss:$0 sm:$0xff] }
  0x42   : > { %854 = vmatpush.bf16.msrb.mxu2 %v1507_v11 }
  0x43   : > { %944 = vmatpush.bf16.msrb.mxu3 %v1515_v13  ;;  %v1057_v13 = vld.sshfl [vmem:[#allocation1] sm:$0xff pattern:$0x75316420] }
  0x44   : > { %775 = vmatpush.bf16.msrb.mxu1 %v1499_v14 }
  0x45   : > { %692 = vmatpush.bf16.msrb.mxu0 %v1490_v18  ;;  %v1058_v18 = vrot.slane %v1057_v13, 6 }
  0x46   : > { %855 = vmatpush.bf16.msrb.mxu2 %v1506_v19 }
  0x47   : > { %945 = vmatpush.bf16.msrb.mxu3 %v1514_v21 }
  0x48   : > { %776 = vmatpush.bf16.msrb.mxu1 %v1498_v22 }
  0x49   : > { %693 = vmatpush.bf16.msrb.mxu0 %v1489_v26 }
  0x4a   : > { %856 = vmatpush.bf16.msrb.mxu2 %v1505_v27 }
  0x4b   : > { %946 = vmatpush.bf16.msrb.mxu3 %v1513_v31 }
  0x4c   : > { %777 = vmatpush.bf16.msrb.mxu1 %v1497_v32  ;;  %694 = vmatmul.bf16.vlgmr.msrb.gmra.mxu0 %v636_v34 }
  0x4d   : > { %1023 = vmatpush.bf16.msra.mxu0 %v1528_v28  ;;  %857 = vmatmul.bf16.vlgmr.msrb.gmra.mxu2 %v784_v35 }
  0x4e   : > { %947 = vmatmul.bf16.vlgmr.msrb.gmra.mxu3 %v889_v37 }
  0x4f   : > { %778 = vmatmul.bf16.vlgmr.msrb.gmra.mxu1 %v720_v38 }
  0x51   : > { %1024 = vmatpush.bf16.msra.mxu0 %v1527_v36 }
  0x55   : > { %1025 = vmatpush.bf16.msra.mxu0 %v1526_v39 }
  0x59   : > { %1026 = vmatpush.bf16.msra.mxu0 %v1525_v40 }
  0x5d   : > { %1027 = vmatpush.bf16.msra.mxu0 %v1524_v41 }
  0x61   : > { %1028 = vmatpush.bf16.msra.mxu0 %v1523_v42 }
  0x65   : > { %1029 = vmatpush.bf16.msra.mxu0 %v1522_v45 }
  0x69   : > { %1030 = vmatpush.bf16.msra.mxu0 %v1521_v47 }
  0x6c   : > { %1031 = vmatmul.bf16.vlgmr.msra.gmra.mxu0 %v973_v48 }
  0xa9   : > { %v373_v49 = vpop.f32.mrf.mxu0 }
  0xac   : > { %v434_v50 = vpop.f32.mrf.mxu1 }
  0xad   : > { %v435_v61 = vadd.f32 %v434_v50, %v373_v49 }
  0xb0   : > { %v517_v51 = vpop.f32.mrf.mxu2 }
  0xb1   : > { %v604_v52 = vpop.f32.mrf.mxu3  ;;  %v375_v53 = vpop.f32.mrf.mxu0  ;;  %v521_v63 = vadd.f32 %v517_v51, %v435_v61 }
  0xb3   : > { %v608_v3 = vadd.f32 %v604_v52, %v521_v63 }
  0xb4   : > { %v436_v54 = vpop.f32.mrf.mxu1 }
  0xb8   : > { %v519_v55 = vpop.f32.mrf.mxu2 }
  0xb9   : > { %v606_v56 = vpop.f32.mrf.mxu3 }
  0xc9   : > { %v695_v59 = vpop.f32.mrf.mxu0 }
  0xca   : > { %v699_v5 = vadd.f32 %v695_v59, %v608_v3 }
  0xcc   : > { %v779_v60 = vpop.f32.mrf.mxu1 }
  0xcd   : > { %v783_v7 = vadd.f32 %v779_v60, %v699_v5 }
  0xd0   : > { %v858_v62 = vpop.f32.mrf.mxu2 }
  0xd1   : > { %v948_v0 = vpop.f32.mrf.mxu3  ;;  %v697_v1 = vpop.f32.mrf.mxu0  ;;  %v862_v8 = vadd.f32 %v858_v62, %v783_v7 }
  0xd3   : > { %v952_v9 = vadd.f32 %v948_v0, %v862_v8 }
  0xd4   : > { %v781_v2 = vpop.f32.mrf.mxu1 }
  0xd8   : > { %v860_v4 = vpop.f32.mrf.mxu2 }
  0xd9   : > { %v950_v6 = vpop.f32.mrf.mxu3 }
  0xe9   : > { %v1032_v11 = vpop.f32.mrf.mxu0 }
  0xea   : > { %v1036_v14 = vadd.f32 %v1032_v11, %v952_v9 }
  0xec   : > { %v1041_v16 = vmul.f32 %v1553_v10, %v1036_v14 }
  0xee   : > { %v1046_v19 = vadd.f32 %v1554_v15, %v1041_v16 }
  0xf0   : > { %v1049_v20 = vadd.f32 %v1048_v17, %v1046_v19  ;;  %v1060_v21 = vadd.f32 %v1058_v18, %v1046_v19 }
  0xf1   : > { %v1034_v22 = vpop.f32.mrf.mxu0 }
  0xf2   : > { %v1050_v23 = vmax.f32 %v1049_v20, 0.0  ;;  %v1061_v24 = vmax.f32 %v1060_v21, 0.0 }
  0xf4   : > { %v1051_v25 = vpack.c.bf16 %v1050_v23, %v1050_v23  ;;  %v1062_v26 = vpack.c.bf16 %v1061_v24, %v1061_v24 }
  0xf6   : > { %1052 = vst [vmem:[%s270_s12] sm:$0x1] %v1051_v25 }
  0xf7   : > { %1064 = vst.sshfl [vmem:[#allocation1] sm:$0xff pattern:$0x75643120] %v1062_v26 }
  0xfe   : > { %v1066_v27 = vld [vmem:[#allocation1 + $0x1] ss:$2 sm:$0xff] }
  0xff   : > { %v1068_v28 = vrot.slane %v1066_v27, 7 }
 0x101   : > { %1070 = vst [vmem:[%s270_s12] sm:$0x2] %v1068_v28 }
 0x102 PF: > { %s15_s20 = sadd.s32 1, %s1577_s20   ;;  %s1907_s18 = smov %s1573_s19 }
 0x103   : > { %p12_p5 = scmp.ge.s32.totalorder %s15_s20, 4   ;;  %s1908_s19 = smov %s1910_s21 }
 0x105   :  { %14 = sbr.rel (!%p12_p5) target bundleno = 2 (0x2), region = 74 }

// kernel: _lambda_.27
= control target key start
LH: loop header
LB: loop body
LE: loop exit
PB: predicated region body
PF: predicated region fallthrough
CT: control target
= control target key end

     0   :  { %s1469_s15 = smov 0   ;;  %s1471_s16 = smov 0   ;;  %s1740_s0 = inlined_call_operand.vmem [shape: bf16[2,32,128], index: 0, kind: input, shape index: {}]   ;;  %s1741_s1 = inlined_call_operand.vmem [shape: bf16[1152,128], index: 1, kind: input, shape index: {}]   ;;  %s1742_s2 = inlined_call_operand.vmem [shape: f32[1,128], index: 2, kind: input, shape index: {}]   ;;  %s1743_s3 = inlined_call_operand.vmem [shape: f32[1,128], index: 3, kind: input, shape index: {}]   ;;  %s1744_s4 = inlined_call_operand.vmem [shape: bf16[2,1,128], index: 4, kind: output, shape index: {}]  }
   0x1   :  { %s1473_s17 = smov 0  }
   0x2 LB: > { %s26_s18 = sadd.s32 1, %s1438_s16  ;;  %p1030_p0 = scmp.ge.s32.totalorder %s1442_s17, 1  ;;  %s1442_s17 = sphi %s1473_s17, %s14_s17   ;;  %s1438_s16 = sphi %s1471_s16, %s1746_s16   ;;  %s1434_s15 = sphi %s1469_s15, %s1745_s15  }
   0x3   : > { %p28_p1 = scmp.ge.s32.totalorder %s26_s18, 2  ;;  %p176_p2 = scmp.lt.s32.totalorder %s1442_s17, 3 }
   0x5   : > { %s1748_s18 = smov (%p28_p1, %s26_s18), 0  ;;  %p177_p3 = pnand %p1030_p0, %p176_p2 }
   0x6   : > { %p203_p4 = scmp.lt.s32.totalorder (!%p177_p3), %s1434_s15, 1 }
   0x7   : > { %180 = sbr.rel (%p177_p3) target bundleno = 246 (0xf6), region = 36 }
   0xc   : > { %v1339_v0 = vld [vmem:[%s1741_s1 + $0x78] sm:$0xff]  ;;  %v1338_v4 = vld [vmem:[%s1741_s1 + $0x70] sm:$0xff]  ;;  %v1337_v8 = vld [vmem:[%s1741_s1 + $0x68] sm:$0xff]  ;;  %s1750_s15 = smov (!%p203_p4, %s1434_s15), 1  ;;  %vm955_vm0 = vcmask 1040384  }
   0xd   : > { %v1347_v1 = vld [vmem:[%s1741_s1 + $0xb8] sm:$0xff]  ;;  %296 = vmatpush.bf16.msra.mxu0 %v1339_v0  ;;  %v1346_v5 = vld [vmem:[%s1741_s1 + $0xb0] sm:$0xff]  ;;  %v1345_v9 = vld [vmem:[%s1741_s1 + $0xa8] sm:$0xff]  ;;  %s1323_s29 = sshll.u32 %s1750_s15, 4  ;;  %s213_s23 = scalar_lea.vmem %s1744_s4, %s1750_s15  ;;  %vm956_vm1 = vsmask.f32 256 }
   0xe   : > { %v1355_v2 = vld [vmem:[%s1741_s1 + $0xf8] sm:$0xff]  ;;  %441 = vmatpush.bf16.msra.mxu2 %v1347_v1  ;;  %v1354_v6 = vld [vmem:[%s1741_s1 + $0xf0] sm:$0xff]  ;;  %v1353_v10 = vld [vmem:[%s1741_s1 + $0xe8] sm:$0xff]  ;;  %s1557_s14 = scalar_lea.vmem %s1740_s0, %s1323_s29 }
   0xf   : > { %v1331_v3 = vld [vmem:[%s1741_s1 + $0x38] sm:$0xff]  ;;  %520 = vmatpush.bf16.msra.mxu3 %v1355_v2  ;;  %v1330_v7 = vld [vmem:[%s1741_s1 + $0x30] sm:$0xff]  ;;  %v1329_v11 = vld [vmem:[%s1741_s1 + $0x28] sm:$0xff] }
  0x10   : > { %357 = vmatpush.bf16.msra.mxu1 %v1331_v3  ;;  %v1336_v12 = vld [vmem:[%s1741_s1 + $0x60] sm:$0xff]  ;;  %v1335_v16 = vld [vmem:[%s1741_s1 + $0x58] sm:$0xff]  ;;  %v1334_v20 = vld [vmem:[%s1741_s1 + $0x50] sm:$0xff] }
  0x11   : > { %297 = vmatpush.bf16.msra.mxu0 %v1338_v4  ;;  %v1344_v13 = vld [vmem:[%s1741_s1 + $0xa0] sm:$0xff]  ;;  %v1343_v17 = vld [vmem:[%s1741_s1 + $0x98] sm:$0xff]  ;;  %v1342_v21 = vld [vmem:[%s1741_s1 + $0x90] sm:$0xff] }
  0x12   : > { %442 = vmatpush.bf16.msra.mxu2 %v1346_v5  ;;  %v1352_v14 = vld [vmem:[%s1741_s1 + $0xe0] sm:$0xff]  ;;  %v1351_v18 = vld [vmem:[%s1741_s1 + $0xd8] sm:$0xff]  ;;  %v1350_v22 = vld [vmem:[%s1741_s1 + $0xd0] sm:$0xff] }
  0x13   : > { %521 = vmatpush.bf16.msra.mxu3 %v1354_v6  ;;  %v1328_v15 = vld [vmem:[%s1741_s1 + $0x20] sm:$0xff]  ;;  %v1327_v19 = vld [vmem:[%s1741_s1 + $0x18] sm:$0xff]  ;;  %v1326_v23 = vld [vmem:[%s1741_s1 + $0x10] sm:$0xff] }
  0x14   : > { %358 = vmatpush.bf16.msra.mxu1 %v1330_v7  ;;  %v214_v24 = vld [vmem:[%s1557_s14] sm:$0x1]  ;;  %v1333_v25 = vld [vmem:[%s1741_s1 + $0x48] sm:$0xff]  ;;  %v1363_v33 = vld [vmem:[%s1741_s1 + $0x138] sm:$0xff] }
  0x15   : > { %298 = vmatpush.bf16.msra.mxu0 %v1337_v8  ;;  %v1341_v26 = vld [vmem:[%s1741_s1 + $0x88] sm:$0xff]  ;;  %v387_v27 = vunpack.c.l.b16 %v214_v24  ;;  %v1332_v30 = vld [vmem:[%s1741_s1 + $0x40] sm:$0xff]  ;;  %v1379_v34 = vld [vmem:[%s1741_s1 + $0x1b8] sm:$0xff] }
  0x16   : > { %443 = vmatpush.bf16.msra.mxu2 %v1345_v9  ;;  %v1349_v28 = vld [vmem:[%s1741_s1 + $0xc8] sm:$0xff]  ;;  %v1340_v31 = vld [vmem:[%s1741_s1 + $0x80] sm:$0xff]  ;;  %v1387_v37 = vld [vmem:[%s1741_s1 + $0x1f8] sm:$0xff] }
  0x17   : > { %522 = vmatpush.bf16.msra.mxu3 %v1353_v10  ;;  %v1325_v29 = vld [vmem:[%s1741_s1 + $0x8] sm:$0xff]  ;;  %v388_v32 = vpack.c.b16 %v387_v27, %v387_v27  ;;  %v1348_v35 = vld [vmem:[%s1741_s1 + $0xc0] sm:$0xff]  ;;  %v1371_v38 = vld [vmem:[%s1741_s1 + $0x178] sm:$0xff] }
  0x18   : > { %359 = vmatpush.bf16.msra.mxu1 %v1329_v11  ;;  %v1324_v36 = vld [vmem:[%s1741_s1] sm:$0xff]  ;;  %v1362_v40 = vld [vmem:[%s1741_s1 + $0x130] sm:$0xff]  ;;  %v455_v45 = vld [vmem:[%s1557_s14 + $0x8] sm:$0x1] }
  0x19   : > { %299 = vmatpush.bf16.msra.mxu0 %v1336_v12  ;;  %v390_v39 = vshrl.u32 %v388_v32, 16  ;;  %v1378_v41 = vld [vmem:[%s1741_s1 + $0x1b0] sm:$0xff]  ;;  %v231_v42 = vld [vmem:[%s1557_s14 + $0x4] sm:$0x1]  ;;  %v1361_v46 = vld [vmem:[%s1741_s1 + $0x128] sm:$0xff]  ;;  %v630_v4 = vunpack.c.l.b16 %v455_v45 }
  0x1a   : > { %444 = vmatpush.bf16.msra.mxu2 %v1344_v13  ;;  %v1386_v43 = vld [vmem:[%s1741_s1 + $0x1f0] sm:$0xff]  ;;  %v1377_v47 = vld [vmem:[%s1741_s1 + $0x1a8] sm:$0xff]  ;;  %v1360_v50 = vld [vmem:[%s1741_s1 + $0x120] sm:$0xff] }
  0x1b   : > { %523 = vmatpush.bf16.msra.mxu3 %v1352_v14  ;;  %v1370_v44 = vld [vmem:[%s1741_s1 + $0x170] sm:$0xff]  ;;  %v1385_v48 = vld [vmem:[%s1741_s1 + $0x1e8] sm:$0xff]  ;;  %v1376_v51 = vld [vmem:[%s1741_s1 + $0x1a0] sm:$0xff]  ;;  %v631_v12 = vpack.c.b16 %v630_v4, %v630_v4 }
  0x1c   : > { %360 = vmatpush.bf16.msra.mxu1 %v1328_v15  ;;  %v1369_v49 = vld [vmem:[%s1741_s1 + $0x168] sm:$0xff]  ;;  %v1384_v52 = vld [vmem:[%s1741_s1 + $0x1e0] sm:$0xff]  ;;  %v1359_v54 = vld [vmem:[%s1741_s1 + $0x118] sm:$0xff] }
  0x1d   : > { %300 = vmatpush.bf16.msra.mxu0 %v1335_v16  ;;  %v1368_v53 = vld [vmem:[%s1741_s1 + $0x160] sm:$0xff]  ;;  %v1375_v55 = vld [vmem:[%s1741_s1 + $0x198] sm:$0xff]  ;;  %v1358_v58 = vld [vmem:[%s1741_s1 + $0x110] sm:$0xff] }
  0x1e   : > { %445 = vmatpush.bf16.msra.mxu2 %v1343_v17  ;;  %v1383_v56 = vld [vmem:[%s1741_s1 + $0x1d8] sm:$0xff]  ;;  %v1374_v59 = vld [vmem:[%s1741_s1 + $0x190] sm:$0xff]  ;;  %v698_v60 = vld [vmem:[%s1557_s14] sm:$0x2] }
  0x1f   : > { %524 = vmatpush.bf16.msra.mxu3 %v1351_v18  ;;  %v1367_v57 = vld [vmem:[%s1741_s1 + $0x158] sm:$0xff]  ;;  %v1382_v61 = vld [vmem:[%s1741_s1 + $0x1d0] sm:$0xff]  ;;  %v782_v63 = vld [vmem:[%s1557_s14 + $0x4] sm:$0x2]  ;;  %v716_v0 = vunpack.c.l.b16 %v698_v60 }
  0x20   : > { %361 = vmatpush.bf16.msra.mxu1 %v1327_v19  ;;  %v1366_v62 = vld [vmem:[%s1741_s1 + $0x150] sm:$0xff]  ;;  %v1357_v1 = vld [vmem:[%s1741_s1 + $0x108] sm:$0xff]  ;;  %v800_v3 = vunpack.c.l.b16 %v782_v63  ;;  %v1356_v8 = vld [vmem:[%s1741_s1 + $0x100] sm:$0xff]  ;;  %v633_v19 = vshrl.u32 %v631_v12, 16 }
  0x21   : > { %301 = vmatpush.bf16.msra.mxu0 %v1334_v20  ;;  %v1373_v2 = vld [vmem:[%s1741_s1 + $0x188] sm:$0xff]  ;;  %v717_v7 = vpack.c.b16 %v716_v0, %v716_v0  ;;  %v1372_v9 = vld [vmem:[%s1741_s1 + $0x180] sm:$0xff]  ;;  %v1395_v10 = vld [vmem:[%s1741_s1 + $0x238] sm:$0xff] }
  0x22   : > { %446 = vmatpush.bf16.msra.mxu2 %v1342_v21  ;;  %v1381_v5 = vld [vmem:[%s1741_s1 + $0x1c8] sm:$0xff]  ;;  %v801_v11 = vpack.c.b16 %v800_v3, %v800_v3  ;;  %v1380_v13 = vld [vmem:[%s1741_s1 + $0x1c0] sm:$0xff]  ;;  %v1394_v17 = vld [vmem:[%s1741_s1 + $0x230] sm:$0xff] }
  0x23   : > { %525 = vmatpush.bf16.msra.mxu3 %v1350_v22  ;;  %v1365_v6 = vld [vmem:[%s1741_s1 + $0x148] sm:$0xff]  ;;  %v1364_v14 = vld [vmem:[%s1741_s1 + $0x140] sm:$0xff]  ;;  %v718_v15 = vrot.slane %v717_v7, 1  ;;  %v1391_v22 = vld [vmem:[%s1741_s1 + $0x218] sm:$0xff] }
  0x24   : > { %362 = vmatpush.bf16.msra.mxu1 %v1326_v23  ;;  %v534_v16 = vld [vmem:[%s1557_s14 + $0xc] sm:$0x1]  ;;  %v802_v18 = vrot.slane %v801_v11, 1  ;;  %v1392_v21 = vld [vmem:[%s1741_s1 + $0x220] sm:$0xff]  ;;  %v1390_v23 = vld [vmem:[%s1741_s1 + $0x210] sm:$0xff] }
  0x25   : > { %302 = vmatpush.bf16.msra.mxu0 %v1333_v25  ;;  %v1393_v20 = vld [vmem:[%s1741_s1 + $0x228] sm:$0xff]  ;;  %v883_v25 = vshrl.u32 %v717_v7, 16  ;;  %vm957_vm2 = vmand %vm955_vm0, %vm956_vm1 }
  0x26   : > { %447 = vmatpush.bf16.msra.mxu2 %v1341_v26  ;;  %v1388_v26 = vld [vmem:[%s1741_s1 + $0x200] sm:$0xff] }
  0x27   : > { %526 = vmatpush.bf16.msra.mxu3 %v1349_v28  ;;  %v885_v27 = vrot.slane %v883_v25, 1 }
  0x28   : > { %363 = vmatpush.bf16.msra.mxu1 %v1325_v29 }
  0x29   : > { %303 = vmatpush.bf16.msra.mxu0 %v1332_v30 }
  0x2a   : > { %448 = vmatpush.bf16.msra.mxu2 %v1340_v31 }
  0x2b   : > { %527 = vmatpush.bf16.msra.mxu3 %v1348_v35 }
  0x2c   : > { %364 = vmatpush.bf16.msra.mxu1 %v1324_v36  ;;  %304 = vmatmul.bf16.vlgmr.msra.gmra.mxu0 %v231_v42 }
  0x2d   : > { %599 = vmatpush.bf16.msrb.mxu0 %v1363_v33  ;;  %449 = vmatmul.bf16.vlgmr.msra.gmra.mxu2 %v390_v39 }
  0x2e   : > { %768 = vmatpush.bf16.msrb.mxu2 %v1379_v34  ;;  %528 = vmatmul.bf16.vlgmr.msra.gmra.mxu3 %v455_v45 }
  0x2f   : > { %852 = vmatpush.bf16.msrb.mxu3 %v1387_v37  ;;  %365 = vmatmul.bf16.vlgmr.msra.gmra.mxu1 %v214_v24  ;;  %v1389_v24 = vld [vmem:[%s1741_s1 + $0x208] sm:$0xff] }
  0x30   : > { %684 = vmatpush.bf16.msrb.mxu1 %v1371_v38 }
  0x31   : > { %600 = vmatpush.bf16.msrb.mxu0 %v1362_v40 }
  0x32   : > { %769 = vmatpush.bf16.msrb.mxu2 %v1378_v41 }
  0x33   : > { %853 = vmatpush.bf16.msrb.mxu3 %v1386_v43 }
  0x34   : > { %685 = vmatpush.bf16.msrb.mxu1 %v1370_v44 }
  0x35   : > { %601 = vmatpush.bf16.msrb.mxu0 %v1361_v46 }
  0x36   : > { %770 = vmatpush.bf16.msrb.mxu2 %v1377_v47 }
  0x37   : > { %854 = vmatpush.bf16.msrb.mxu3 %v1385_v48 }
  0x38   : > { %686 = vmatpush.bf16.msrb.mxu1 %v1369_v49 }
  0x39   : > { %602 = vmatpush.bf16.msrb.mxu0 %v1360_v50 }
  0x3a   : > { %771 = vmatpush.bf16.msrb.mxu2 %v1376_v51 }
  0x3b   : > { %855 = vmatpush.bf16.msrb.mxu3 %v1384_v52  ;;  %v949_v52 = vld [vmem:[%s1742_s2] sm:$0x1] }
  0x3c   : > { %687 = vmatpush.bf16.msrb.mxu1 %v1368_v53 }
  0x3d   : > { %603 = vmatpush.bf16.msrb.mxu0 %v1359_v54  ;;  %v951_v54 = vld [vmem:[%s1743_s3] sm:$0x1] }
  0x3e   : > { %772 = vmatpush.bf16.msrb.mxu2 %v1375_v55 }
  0x3f   : > { %856 = vmatpush.bf16.msrb.mxu3 %v1383_v56 }
  0x40   : > { %688 = vmatpush.bf16.msrb.mxu1 %v1367_v57 }
  0x41   : > { %604 = vmatpush.bf16.msrb.mxu0 %v1358_v58  ;;  %v958_v58 = vld [vmem:[%s213_s23] sm:$0x1] }
  0x42   : > { %773 = vmatpush.bf16.msrb.mxu2 %v1374_v59 }
  0x43   : > { %857 = vmatpush.bf16.msrb.mxu3 %v1382_v61 }
  0x44   : > { %689 = vmatpush.bf16.msrb.mxu1 %v1366_v62 }
  0x45   : > { %605 = vmatpush.bf16.msrb.mxu0 %v1357_v1 }
  0x46   : > { %774 = vmatpush.bf16.msrb.mxu2 %v1373_v2 }
  0x47   : > { %858 = vmatpush.bf16.msrb.mxu3 %v1381_v5 }
  0x48   : > { %690 = vmatpush.bf16.msrb.mxu1 %v1365_v6 }
  0x49   : > { %606 = vmatpush.bf16.msrb.mxu0 %v1356_v8 }
  0x4a   : > { %775 = vmatpush.bf16.msrb.mxu2 %v1372_v9 }
  0x4b   : > { %859 = vmatpush.bf16.msrb.mxu3 %v1380_v13 }
  0x4c   : > { %691 = vmatpush.bf16.msrb.mxu1 %v1364_v14  ;;  %607 = vmatmul.bf16.vlgmr.msrb.gmra.mxu0 %v534_v16 }
  0x4d   : > { %935 = vmatpush.bf16.msra.mxu0 %v1395_v10  ;;  %776 = vmatmul.bf16.vlgmr.msrb.gmra.mxu2 %v718_v15 }
  0x4e   : > { %860 = vmatmul.bf16.vlgmr.msrb.gmra.mxu3 %v802_v18 }
  0x4f   : > { %692 = vmatmul.bf16.vlgmr.msrb.gmra.mxu1 %v633_v19 }
  0x51   : > { %936 = vmatpush.bf16.msra.mxu0 %v1394_v17 }
  0x55   : > { %937 = vmatpush.bf16.msra.mxu0 %v1393_v20 }
  0x59   : > { %938 = vmatpush.bf16.msra.mxu0 %v1392_v21 }
  0x5d   : > { %939 = vmatpush.bf16.msra.mxu0 %v1391_v22 }
  0x61   : > { %940 = vmatpush.bf16.msra.mxu0 %v1390_v23 }
  0x65   : > { %941 = vmatpush.bf16.msra.mxu0 %v1389_v24 }
  0x69   : > { %942 = vmatpush.bf16.msra.mxu0 %v1388_v26 }
  0x6c   : > { %943 = vmatmul.bf16.vlgmr.msra.gmra.mxu0 %v885_v27 }
  0xa9   : > { %v305_v28 = vpop.f32.mrf.mxu0 }
  0xac   : > { %v366_v29 = vpop.f32.mrf.mxu1 }
  0xad   : > { %v367_v38 = vadd.f32 %v366_v29, %v305_v28 }
  0xb0   : > { %v450_v30 = vpop.f32.mrf.mxu2 }
  0xb1   : > { %v529_v31 = vpop.f32.mrf.mxu3  ;;  %v307_v32 = vpop.f32.mrf.mxu0  ;;  %v454_v40 = vadd.f32 %v450_v30, %v367_v38 }
  0xb3   : > { %v533_v44 = vadd.f32 %v529_v31, %v454_v40 }
  0xb4   : > { %v368_v33 = vpop.f32.mrf.mxu1 }
  0xb8   : > { %v452_v34 = vpop.f32.mrf.mxu2 }
  0xb9   : > { %v531_v35 = vpop.f32.mrf.mxu3 }
  0xc9   : > { %v608_v36 = vpop.f32.mrf.mxu0 }
  0xca   : > { %v612_v46 = vadd.f32 %v608_v36, %v533_v44 }
  0xcc   : > { %v693_v37 = vpop.f32.mrf.mxu1 }
  0xcd   : > { %v697_v48 = vadd.f32 %v693_v37, %v612_v46 }
  0xd0   : > { %v777_v39 = vpop.f32.mrf.mxu2 }
  0xd1   : > { %v861_v41 = vpop.f32.mrf.mxu3  ;;  %v610_v42 = vpop.f32.mrf.mxu0  ;;  %v781_v49 = vadd.f32 %v777_v39, %v697_v48 }
  0xd3   : > { %v865_v50 = vadd.f32 %v861_v41, %v781_v49 }
  0xd4   : > { %v695_v43 = vpop.f32.mrf.mxu1 }
  0xd8   : > { %v779_v45 = vpop.f32.mrf.mxu2 }
  0xd9   : > { %v863_v47 = vpop.f32.mrf.mxu3 }
  0xe9   : > { %v944_v51 = vpop.f32.mrf.mxu0 }
  0xea   : > { %v948_v53 = vadd.f32 %v944_v51, %v865_v50 }
  0xec   : > { %v950_v55 = vmul.f32 %v949_v52, %v948_v53 }
  0xee   : > { %v952_v56 = vadd.f32 %v951_v54, %v950_v55 }
  0xf0   : > { %v953_v57 = vmax.f32 %v952_v56, 0.0 }
  0xf1   : > { %v946_v59 = vpop.f32.mrf.mxu0 }
  0xf2   : > { %v954_v60 = vpack.c.bf16 %v953_v57, %v953_v57 }
  0xf4   : > { %v959_v61 = vsel %vm957_vm2, %v954_v60, %v958_v58 }
  0xf5   : > { %960 = vst [vmem:[%s213_s23] sm:$0x1] %v959_v61 }
  0xf6 PF: > { %s14_s17 = sadd.s32 1, %s1442_s17   ;;  %s1745_s15 = smov %s1438_s16 }
  0xf7   : > { %p11_p5 = scmp.ge.s32.totalorder %s14_s17, 4   ;;  %s1746_s16 = smov %s1748_s18 }
  0xf9   :  { %13 = sbr.rel (!%p11_p5) target bundleno = 2 (0x2), region = 66 }

// kernel: _lambda_.28
= control target key start
LH: loop header
LB: loop body
LE: loop exit
PB: predicated region body
PF: predicated region fallthrough
CT: control target
= control target key end

     0   :  { %s491_s15 = smov 0   ;;  %s493_s16 = smov 0   ;;  %s554_s0 = inlined_call_operand.vmem [shape: bf16[2,32,128], index: 0, kind: input, shape index: {}]   ;;  %s555_s1 = inlined_call_operand.vmem [shape: bf16[128,128], index: 1, kind: input, shape index: {}]   ;;  %s556_s2 = inlined_call_operand.vmem [shape: f32[1,128], index: 2, kind: input, shape index: {}]   ;;  %s557_s3 = inlined_call_operand.vmem [shape: f32[1,128], index: 3, kind: input, shape index: {}]   ;;  %s558_s4 = inlined_call_operand.vmem [shape: bf16[2,1,128], index: 4, kind: output, shape index: {}]  }
   0x1   :  { %s495_s17 = smov 0  }
   0x2 LB: > { %s26_s18 = sadd.s32 1, %s460_s16  ;;  %p372_p0 = scmp.ge.s32.totalorder %s464_s17, 1  ;;  %s464_s17 = sphi %s495_s17, %s14_s17   ;;  %s460_s16 = sphi %s493_s16, %s560_s16   ;;  %s456_s15 = sphi %s491_s15, %s559_s15  }
   0x3   : > { %p28_p1 = scmp.ge.s32.totalorder %s26_s18, 2  ;;  %p176_p2 = scmp.lt.s32.totalorder %s464_s17, 3 }
   0x5   : > { %s562_s18 = smov (%p28_p1, %s26_s18), 0  ;;  %p177_p3 = pnand %p372_p0, %p176_p2 }
   0x6   : > { %p203_p4 = scmp.lt.s32.totalorder (!%p177_p3), %s456_s15, 1 }
   0x7   : > { %180 = sbr.rel (%p177_p3) target bundleno = 178 (0xb2), region = 36 }
   0xc   : > { %v417_v0 = vld [vmem:[%s555_s1 + $0x38] sm:$0xff]  ;;  %v416_v1 = vld [vmem:[%s555_s1 + $0x30] sm:$0xff]  ;;  %v415_v2 = vld [vmem:[%s555_s1 + $0x28] sm:$0xff]  ;;  %s564_s15 = smov (!%p203_p4, %s456_s15), 1  ;;  %vm297_vm0 = vcmask 1040384  }
   0xd   : > { %279 = vmatpush.bf16.msra.mxu0 %v417_v0  ;;  %v414_v3 = vld [vmem:[%s555_s1 + $0x20] sm:$0xff]  ;;  %v413_v4 = vld [vmem:[%s555_s1 + $0x18] sm:$0xff]  ;;  %v412_v5 = vld [vmem:[%s555_s1 + $0x10] sm:$0xff]  ;;  %s409_s7 = sshll.u32 %s564_s15, 4  ;;  %s213_s23 = scalar_lea.vmem %s558_s4, %s564_s15  ;;  %vm298_vm1 = vsmask.f32 256 }
   0xe   : > { %v411_v6 = vld [vmem:[%s555_s1 + $0x8] sm:$0xff]  ;;  %v410_v7 = vld [vmem:[%s555_s1] sm:$0xff]  ;;  %s207_s12 = scalar_lea.vmem %s554_s0, %s409_s7  ;;  %vm299_vm2 = vmand %vm297_vm0, %vm298_vm1 }
   0xf   : > { %v214_v8 = vld [vmem:[%s207_s12] sm:$0x1] }
  0x10   : > { %v292_v9 = vld [vmem:[%s556_s2] sm:$0x1] }
  0x11   : > { %280 = vmatpush.bf16.msra.mxu0 %v416_v1  ;;  %v294_v11 = vld [vmem:[%s557_s3] sm:$0x1] }
  0x12   : > { %v300_v14 = vld [vmem:[%s213_s23] sm:$0x1] }
  0x15   : > { %281 = vmatpush.bf16.msra.mxu0 %v415_v2 }
  0x19   : > { %282 = vmatpush.bf16.msra.mxu0 %v414_v3 }
  0x1d   : > { %283 = vmatpush.bf16.msra.mxu0 %v413_v4 }
  0x21   : > { %284 = vmatpush.bf16.msra.mxu0 %v412_v5 }
  0x25   : > { %285 = vmatpush.bf16.msra.mxu0 %v411_v6 }
  0x29   : > { %286 = vmatpush.bf16.msra.mxu0 %v410_v7 }
  0x2c   : > { %287 = vmatmul.bf16.vlgmr.msra.gmra.mxu0 %v214_v8 }
  0xa9   : > { %v288_v10 = vpop.f32.mrf.mxu0 }
  0xaa   : > { %v293_v12 = vmul.f32 %v292_v9, %v288_v10 }
  0xac   : > { %v295_v13 = vadd.f32 %v294_v11, %v293_v12 }
  0xae   : > { %v296_v15 = vpack.c.bf16 %v295_v13, %v295_v13 }
  0xb0   : > { %v301_v16 = vsel %vm299_vm2, %v296_v15, %v300_v14 }
  0xb1   : > { %302 = vst [vmem:[%s213_s23] sm:$0x1] %v301_v16  ;;  %v290_v17 = vpop.f32.mrf.mxu0 }
  0xb2 PF: > { %s14_s17 = sadd.s32 1, %s464_s17   ;;  %s559_s15 = smov %s460_s16 }
  0xb3   : > { %p11_p5 = scmp.ge.s32.totalorder %s14_s17, 4   ;;  %s560_s16 = smov %s562_s18 }
  0xb5   :  { %13 = sbr.rel (!%p11_p5) target bundleno = 2 (0x2), region = 66 }

// kernel: _lambda_.30
= control target key start
LH: loop header
LB: loop body
LE: loop exit
PB: predicated region body
PF: predicated region fallthrough
CT: control target
= control target key end

     0   :  { %s493_s15 = smov 0   ;;  %s495_s16 = smov 0   ;;  %s556_s0 = inlined_call_operand.vmem [shape: bf16[2,1,128], index: 0, kind: input, shape index: {}]   ;;  %s557_s1 = inlined_call_operand.vmem [shape: bf16[128,128], index: 1, kind: input, shape index: {}]   ;;  %s558_s2 = inlined_call_operand.vmem [shape: f32[1,128], index: 2, kind: input, shape index: {}]   ;;  %s559_s3 = inlined_call_operand.vmem [shape: f32[1,128], index: 3, kind: input, shape index: {}]   ;;  %s560_s4 = inlined_call_operand.vmem [shape: bf16[2,1,128], index: 4, kind: output, shape index: {}]  }
   0x1   :  { %s497_s17 = smov 0  }
   0x2 LB: > { %s26_s18 = sadd.s32 1, %s462_s16  ;;  %p377_p0 = scmp.ge.s32.totalorder %s466_s17, 1  ;;  %s466_s17 = sphi %s497_s17, %s14_s17   ;;  %s462_s16 = sphi %s495_s16, %s562_s16   ;;  %s458_s15 = sphi %s493_s15, %s561_s15  }
   0x3   : > { %p28_p1 = scmp.ge.s32.totalorder %s26_s18, 2  ;;  %p179_p2 = scmp.lt.s32.totalorder %s466_s17, 3 }
   0x5   : > { %s564_s18 = smov (%p28_p1, %s26_s18), 0  ;;  %p180_p3 = pnand %p377_p0, %p179_p2 }
   0x6   : > { %p207_p4 = scmp.lt.s32.totalorder (!%p180_p3), %s458_s15, 1 }
   0x7   : > { %183 = sbr.rel (%p180_p3) target bundleno = 178 (0xb2), region = 36 }
   0xc   : > { %v419_v0 = vld [vmem:[%s557_s1 + $0x38] sm:$0xff]  ;;  %v418_v1 = vld [vmem:[%s557_s1 + $0x30] sm:$0xff]  ;;  %v417_v2 = vld [vmem:[%s557_s1 + $0x28] sm:$0xff]  ;;  %s566_s15 = smov (!%p207_p4, %s458_s15), 1  ;;  %vm302_vm0 = vcmask 1040384  }
   0xd   : > { %284 = vmatpush.bf16.msra.mxu0 %v419_v0  ;;  %v416_v3 = vld [vmem:[%s557_s1 + $0x20] sm:$0xff]  ;;  %v415_v4 = vld [vmem:[%s557_s1 + $0x18] sm:$0xff]  ;;  %v414_v5 = vld [vmem:[%s557_s1 + $0x10] sm:$0xff]  ;;  %s212_s11 = scalar_lea.vmem %s556_s0, %s566_s15  ;;  %s218_s22 = scalar_lea.vmem %s560_s4, %s566_s15  ;;  %vm303_vm1 = vsmask.f32 256 }
   0xe   : > { %v413_v6 = vld [vmem:[%s557_s1 + $0x8] sm:$0xff]  ;;  %v412_v7 = vld [vmem:[%s557_s1] sm:$0xff]  ;;  %vm304_vm2 = vmand %vm302_vm0, %vm303_vm1 }
   0xf   : > { %v219_v8 = vld [vmem:[%s212_s11] sm:$0x1] }
  0x10   : > { %v297_v9 = vld [vmem:[%s558_s2] sm:$0x1] }
  0x11   : > { %285 = vmatpush.bf16.msra.mxu0 %v418_v1  ;;  %v299_v11 = vld [vmem:[%s559_s3] sm:$0x1] }
  0x12   : > { %v305_v14 = vld [vmem:[%s218_s22] sm:$0x1] }
  0x15   : > { %286 = vmatpush.bf16.msra.mxu0 %v417_v2 }
  0x19   : > { %287 = vmatpush.bf16.msra.mxu0 %v416_v3 }
  0x1d   : > { %288 = vmatpush.bf16.msra.mxu0 %v415_v4 }
  0x21   : > { %289 = vmatpush.bf16.msra.mxu0 %v414_v5 }
  0x25   : > { %290 = vmatpush.bf16.msra.mxu0 %v413_v6 }
  0x29   : > { %291 = vmatpush.bf16.msra.mxu0 %v412_v7 }
  0x2c   : > { %292 = vmatmul.bf16.vlgmr.msra.gmra.mxu0 %v219_v8 }
  0xa9   : > { %v293_v10 = vpop.f32.mrf.mxu0 }
  0xaa   : > { %v298_v12 = vmul.f32 %v297_v9, %v293_v10 }
  0xac   : > { %v300_v13 = vadd.f32 %v299_v11, %v298_v12 }
  0xae   : > { %v301_v15 = vpack.c.bf16 %v300_v13, %v300_v13 }
  0xb0   : > { %v306_v16 = vsel %vm304_vm2, %v301_v15, %v305_v14 }
  0xb1   : > { %307 = vst [vmem:[%s218_s22] sm:$0x1] %v306_v16  ;;  %v295_v17 = vpop.f32.mrf.mxu0 }
  0xb2 PF: > { %s14_s17 = sadd.s32 1, %s466_s17   ;;  %s561_s15 = smov %s462_s16 }
  0xb3   : > { %p11_p5 = scmp.ge.s32.totalorder %s14_s17, 4   ;;  %s562_s16 = smov %s564_s18 }
  0xb5   :  { %13 = sbr.rel (!%p11_p5) target bundleno = 2 (0x2), region = 66 }

// kernel: _lambda_.31
= control target key start
LH: loop header
LB: loop body
LE: loop exit
PB: predicated region body
PF: predicated region fallthrough
CT: control target
= control target key end

     0   :  { %s591_s18 = smov 0   ;;  %s593_s19 = smov 0   ;;  %s657_s0 = inlined_call_operand.vmem [shape: bf16[2,4,128], index: 0, kind: input, shape index: {}]   ;;  %s658_s1 = inlined_call_operand.vmem [shape: bf16[128,128], index: 1, kind: input, shape index: {}]   ;;  %s659_s2 = inlined_call_operand.vmem [shape: f32[1,128], index: 2, kind: input, shape index: {}]   ;;  %s660_s3 = inlined_call_operand.vmem [shape: f32[1,128], index: 3, kind: input, shape index: {}]   ;;  %s661_s4 = inlined_call_operand.vmem [shape: bf16[2,4,128], index: 4, kind: input, shape index: {}]   ;;  %s662_s5 = inlined_call_operand.vmem [shape: bf16[2,4,128], index: 5, kind: output, shape index: {}]  }
   0x1   :  { %s595_s20 = smov 0  }
   0x2 LB: > { %s27_s21 = sadd.s32 1, %s555_s19  ;;  %p465_p0 = scmp.ge.s32.totalorder %s559_s20, 1  ;;  %s559_s20 = sphi %s595_s20, %s15_s20   ;;  %s555_s19 = sphi %s593_s19, %s664_s19   ;;  %s551_s18 = sphi %s591_s18, %s663_s18  }
   0x3   : > { %p29_p1 = scmp.ge.s32.totalorder %s27_s21, 2  ;;  %p219_p2 = scmp.lt.s32.totalorder %s559_s20, 3 }
   0x5   : > { %s666_s21 = smov (%p29_p1, %s27_s21), 0  ;;  %p220_p3 = pnand %p465_p0, %p219_p2 }
   0x6   : > { %p258_p4 = scmp.lt.s32.totalorder (!%p220_p3), %s551_s18, 1 }
   0x7   : > { %223 = sbr.rel (%p220_p3) target bundleno = 179 (0xb3), region = 40 }
   0xc   : > { %v510_v0 = vld [vmem:[%s658_s1 + $0x38] sm:$0xff]  ;;  %v509_v1 = vld [vmem:[%s658_s1 + $0x30] sm:$0xff]  ;;  %v508_v2 = vld [vmem:[%s658_s1 + $0x28] sm:$0xff]  ;;  %s668_s18 = smov (!%p258_p4, %s551_s18), 1 }
   0xd   : > { %344 = vmatpush.bf16.msra.mxu0 %v510_v0  ;;  %v507_v3 = vld [vmem:[%s658_s1 + $0x20] sm:$0xff]  ;;  %v506_v4 = vld [vmem:[%s658_s1 + $0x18] sm:$0xff]  ;;  %v505_v5 = vld [vmem:[%s658_s1 + $0x10] sm:$0xff]  ;;  %s466_s11 = sshll.u32 %s668_s18, 1 }
   0xe   : > { %v504_v6 = vld [vmem:[%s658_s1 + $0x8] sm:$0xff]  ;;  %v503_v7 = vld [vmem:[%s658_s1] sm:$0xff]  ;;  %s264_s16 = scalar_lea.vmem %s657_s0, %s466_s11  ;;  %s271_s23 = scalar_lea.vmem %s661_s4, %s466_s11 }
   0xf   : > { %v279_v8 = vld [vmem:[%s264_s16] sm:$0x3]  ;;  %s278_s29 = scalar_lea.vmem %s662_s5, %s466_s11 }
  0x10   : > { %v535_v9 = vld [vmem:[%s659_s2] ss:$0 sm:$0xff] }
  0x11   : > { %345 = vmatpush.bf16.msra.mxu0 %v509_v1  ;;  %v367_v10 = vld [vmem:[%s271_s23] sm:$0x3] }
  0x12   : > { %v536_v11 = vld [vmem:[%s660_s3] ss:$0 sm:$0xff]  ;;  %v368_v13 = vunpack.c.l.bf16 %v367_v10 }
  0x15   : > { %346 = vmatpush.bf16.msra.mxu0 %v508_v2 }
  0x19   : > { %347 = vmatpush.bf16.msra.mxu0 %v507_v3 }
  0x1d   : > { %348 = vmatpush.bf16.msra.mxu0 %v506_v4 }
  0x21   : > { %349 = vmatpush.bf16.msra.mxu0 %v505_v5 }
  0x25   : > { %350 = vmatpush.bf16.msra.mxu0 %v504_v6 }
  0x29   : > { %351 = vmatpush.bf16.msra.mxu0 %v503_v7 }
  0x2c   : > { %352 = vmatmul.bf16.vlgmr.msra.gmra.mxu0 %v279_v8 }
  0xa9   : > { %v353_v12 = vpop.f32.mrf.mxu0 }
  0xaa   : > { %v361_v14 = vmul.f32 %v535_v9, %v353_v12 }
  0xac   : > { %v366_v15 = vadd.f32 %v536_v11, %v361_v14 }
  0xae   : > { %v369_v16 = vadd.f32 %v368_v13, %v366_v15 }
  0xb0   : > { %v370_v17 = vpack.c.bf16 %v369_v16, %v369_v16 }
  0xb1   : > { %v355_v18 = vpop.f32.mrf.mxu0 }
  0xb2   : > { %371 = vst [vmem:[%s278_s29] sm:$0x3] %v370_v17 }
  0xb3 PF: > { %s15_s20 = sadd.s32 1, %s559_s20   ;;  %s663_s18 = smov %s555_s19 }
  0xb4   : > { %p12_p5 = scmp.ge.s32.totalorder %s15_s20, 4   ;;  %s664_s19 = smov %s666_s21 }
  0xb6   :  { %14 = sbr.rel (!%p12_p5) target bundleno = 2 (0x2), region = 73 }

// kernel: _lambda_.32
= control target key start
LH: loop header
LB: loop body
LE: loop exit
PB: predicated region body
PF: predicated region fallthrough
CT: control target
= control target key end

     0   :  { %s663_s18 = smov 0   ;;  %s665_s19 = smov 0   ;;  %s729_s0 = inlined_call_operand.vmem [shape: bf16[2,16,128], index: 0, kind: input, shape index: {}]   ;;  %s730_s1 = inlined_call_operand.vmem [shape: bf16[128,128], index: 1, kind: input, shape index: {}]   ;;  %s731_s2 = inlined_call_operand.vmem [shape: f32[1,128], index: 2, kind: input, shape index: {}]   ;;  %s732_s3 = inlined_call_operand.vmem [shape: f32[1,128], index: 3, kind: input, shape index: {}]   ;;  %s733_s4 = inlined_call_operand.vmem [shape: bf16[2,16,128], index: 4, kind: input, shape index: {}]   ;;  %s734_s5 = inlined_call_operand.vmem [shape: bf16[2,16,128], index: 5, kind: output, shape index: {}]  }
   0x1   :  { %s667_s20 = smov 0  }
   0x2 LB: > { %s27_s21 = sadd.s32 1, %s627_s19  ;;  %p517_p0 = scmp.ge.s32.totalorder %s631_s20, 1  ;;  %s631_s20 = sphi %s667_s20, %s15_s20   ;;  %s627_s19 = sphi %s665_s19, %s736_s19   ;;  %s623_s18 = sphi %s663_s18, %s735_s18  }
   0x3   : > { %p29_p1 = scmp.ge.s32.totalorder %s27_s21, 2  ;;  %p225_p2 = scmp.lt.s32.totalorder %s631_s20, 3 }
   0x5   : > { %s738_s21 = smov (%p29_p1, %s27_s21), 0  ;;  %p226_p3 = pnand %p517_p0, %p225_p2 }
   0x6   : > { %p271_p4 = scmp.lt.s32.totalorder (!%p226_p3), %s623_s18, 1 }
   0x7   : > { %229 = sbr.rel (%p226_p3) target bundleno = 187 (0xbb), region = 40 }
   0xc   : > { %v573_v0 = vld [vmem:[%s730_s1 + $0x38] sm:$0xff]  ;;  %v572_v1 = vld [vmem:[%s730_s1 + $0x30] sm:$0xff]  ;;  %v571_v2 = vld [vmem:[%s730_s1 + $0x28] sm:$0xff]  ;;  %s740_s18 = smov (!%p271_p4, %s623_s18), 1 }
   0xd   : > { %372 = vmatpush.bf16.msra.mxu0 %v573_v0  ;;  %v570_v3 = vld [vmem:[%s730_s1 + $0x20] sm:$0xff]  ;;  %v569_v4 = vld [vmem:[%s730_s1 + $0x18] sm:$0xff]  ;;  %v568_v5 = vld [vmem:[%s730_s1 + $0x10] sm:$0xff]  ;;  %s562_s11 = sshll.u32 %s740_s18, 3 }
   0xe   : > { %v567_v6 = vld [vmem:[%s730_s1 + $0x8] sm:$0xff]  ;;  %v566_v7 = vld [vmem:[%s730_s1] sm:$0xff]  ;;  %s278_s16 = scalar_lea.vmem %s729_s0, %s562_s11  ;;  %s288_s18 = scalar_lea.vmem %s733_s4, %s562_s11 }
   0xf   : > { %v565_v8 = vld [vmem:[%s278_s16] sm:$0xff]  ;;  %s298_s29 = scalar_lea.vmem %s734_s5, %s562_s11 }
  0x10   : > { %v607_v10 = vld [vmem:[%s731_s2] ss:$0 sm:$0xff] }
  0x11   : > { %373 = vmatpush.bf16.msra.mxu0 %v572_v1  ;;  %v608_v12 = vld [vmem:[%s732_s3] ss:$0 sm:$0xff] }
  0x12   : > { %v575_v13 = vld [vmem:[%s288_s18] sm:$0xff]  }
  0x13   : > { %v576_v16 = vunpack.c.l.bf16 %v575_v13  ;;  %v577_v18 = vunpack.c.h.bf16 %v575_v13 }
  0x15   : > { %374 = vmatpush.bf16.msra.mxu0 %v571_v2 }
  0x19   : > { %375 = vmatpush.bf16.msra.mxu0 %v570_v3 }
  0x1d   : > { %376 = vmatpush.bf16.msra.mxu0 %v569_v4 }
  0x21   : > { %377 = vmatpush.bf16.msra.mxu0 %v568_v5 }
  0x25   : > { %378 = vmatpush.bf16.msra.mxu0 %v567_v6 }
  0x29   : > { %379 = vmatpush.bf16.msra.mxu0 %v566_v7 }
  0x2c   : > { %380 = vmatmul.bf16.vlgmr.msra.gmra.mxu0 %v565_v8 }
  0xa9   : > { %v381_v9 = vpop.f32.mrf.mxu0 }
  0xaa   : > { %v390_v11 = vmul.f32 %v607_v10, %v381_v9 }
  0xac   : > { %v396_v15 = vadd.f32 %v608_v12, %v390_v11 }
  0xae   : > { %v402_v20 = vadd.f32 %v576_v16, %v396_v15 }
  0xb1   : > { %v383_v14 = vpop.f32.mrf.mxu0 }
  0xb2   : > { %v391_v17 = vmul.f32 %v607_v10, %v383_v14 }
  0xb4   : > { %v397_v19 = vadd.f32 %v608_v12, %v391_v17 }
  0xb6   : > { %v403_v21 = vadd.f32 %v577_v18, %v397_v19 }
  0xb8   : > { %v581_v22 = vpack.c.bf16 %v403_v21, %v402_v20 }
  0xba   : > { %582 = vst [vmem:[%s298_s29] sm:$0xff] %v581_v22  }
  0xbb PF: > { %s15_s20 = sadd.s32 1, %s631_s20   ;;  %s735_s18 = smov %s627_s19 }
  0xbc   : > { %p12_p5 = scmp.ge.s32.totalorder %s15_s20, 4   ;;  %s736_s19 = smov %s738_s21 }
  0xbe   :  { %14 = sbr.rel (!%p12_p5) target bundleno = 2 (0x2), region = 73 }

// kernel: _lambda_.29
= control target key start
LH: loop header
LB: loop body
LE: loop exit
PB: predicated region body
PF: predicated region fallthrough
CT: control target
= control target key end

     0   :  { %s1548_s18 = smov 0   ;;  %s1550_s19 = smov 0   ;;  %s1822_s0 = inlined_call_operand.vmem [shape: bf16[2,16,128], index: 0, kind: input, shape index: {}]   ;;  %s1823_s1 = inlined_call_operand.vmem [shape: bf16[1152,128], index: 1, kind: input, shape index: {}]   ;;  %s1824_s2 = inlined_call_operand.vmem [shape: f32[1,128], index: 2, kind: input, shape index: {}]   ;;  %s1825_s3 = inlined_call_operand.vmem [shape: f32[1,128], index: 3, kind: input, shape index: {}]   ;;  %s1826_s4 = inlined_call_operand.vmem [shape: bf16[2,1,128], index: 4, kind: input, shape index: {}]   ;;  %s1827_s5 = inlined_call_operand.vmem [shape: bf16[2,1,128], index: 5, kind: output, shape index: {}]  }
   0x1   :  { %s1552_s20 = smov 0  }
   0x2 LB: > { %s27_s21 = sadd.s32 1, %s1512_s19  ;;  %p1104_p0 = scmp.ge.s32.totalorder %s1516_s20, 1  ;;  %s1516_s20 = sphi %s1552_s20, %s15_s20   ;;  %s1512_s19 = sphi %s1550_s19, %s1829_s19   ;;  %s1508_s18 = sphi %s1548_s18, %s1828_s18  }
   0x3   : > { %p29_p1 = scmp.ge.s32.totalorder %s27_s21, 2  ;;  %p214_p2 = scmp.lt.s32.totalorder %s1516_s20, 3 }
   0x5   : > { %s1831_s21 = smov (%p29_p1, %s27_s21), 0  ;;  %p215_p3 = pnand %p1104_p0, %p214_p2 }
   0x6   : > { %p249_p4 = scmp.lt.s32.totalorder (!%p215_p3), %s1508_s18, 1 }
   0x7   : > { %218 = sbr.rel (%p215_p3) target bundleno = 248 (0xf8), region = 40 }
   0xc   : > { %v1413_v0 = vld [vmem:[%s1823_s1 + $0x78] sm:$0xff]  ;;  %v1412_v4 = vld [vmem:[%s1823_s1 + $0x70] sm:$0xff]  ;;  %v1411_v8 = vld [vmem:[%s1823_s1 + $0x68] sm:$0xff]  ;;  %s1833_s18 = smov (!%p249_p4, %s1508_s18), 1  ;;  %vm1017_vm0 = vcmask 1040384  }
   0xd   : > { %v1421_v1 = vld [vmem:[%s1823_s1 + $0xb8] sm:$0xff]  ;;  %354 = vmatpush.bf16.msra.mxu0 %v1413_v0  ;;  %v1420_v5 = vld [vmem:[%s1823_s1 + $0xb0] sm:$0xff]  ;;  %v1419_v9 = vld [vmem:[%s1823_s1 + $0xa8] sm:$0xff]  ;;  %s1397_s8 = sshll.u32 %s1833_s18, 3  ;;  %s259_s29 = scalar_lea.vmem %s1826_s4, %s1833_s18  ;;  %vm1018_vm1 = vsmask.f32 256 }
   0xe   : > { %v1429_v2 = vld [vmem:[%s1823_s1 + $0xf8] sm:$0xff]  ;;  %498 = vmatpush.bf16.msra.mxu2 %v1421_v1  ;;  %v1428_v6 = vld [vmem:[%s1823_s1 + $0xf0] sm:$0xff]  ;;  %v1427_v10 = vld [vmem:[%s1823_s1 + $0xe8] sm:$0xff]  ;;  %s1630_s15 = scalar_lea.vmem %s1822_s0, %s1397_s8  ;;  %s265_s11 = scalar_lea.vmem %s1827_s5, %s1833_s18 }
   0xf   : > { %v1405_v3 = vld [vmem:[%s1823_s1 + $0x38] sm:$0xff]  ;;  %581 = vmatpush.bf16.msra.mxu3 %v1429_v2  ;;  %v1404_v7 = vld [vmem:[%s1823_s1 + $0x30] sm:$0xff]  ;;  %v1403_v11 = vld [vmem:[%s1823_s1 + $0x28] sm:$0xff] }
  0x10   : > { %415 = vmatpush.bf16.msra.mxu1 %v1405_v3  ;;  %v1410_v12 = vld [vmem:[%s1823_s1 + $0x60] sm:$0xff]  ;;  %v1409_v16 = vld [vmem:[%s1823_s1 + $0x58] sm:$0xff]  ;;  %v1408_v21 = vld [vmem:[%s1823_s1 + $0x50] sm:$0xff] }
  0x11   : > { %355 = vmatpush.bf16.msra.mxu0 %v1412_v4  ;;  %v1418_v13 = vld [vmem:[%s1823_s1 + $0xa0] sm:$0xff]  ;;  %v1417_v17 = vld [vmem:[%s1823_s1 + $0x98] sm:$0xff]  ;;  %v1416_v22 = vld [vmem:[%s1823_s1 + $0x90] sm:$0xff] }
  0x12   : > { %499 = vmatpush.bf16.msra.mxu2 %v1420_v5  ;;  %v1426_v14 = vld [vmem:[%s1823_s1 + $0xe0] sm:$0xff]  ;;  %v1425_v18 = vld [vmem:[%s1823_s1 + $0xd8] sm:$0xff]  ;;  %v1424_v23 = vld [vmem:[%s1823_s1 + $0xd0] sm:$0xff] }
  0x13   : > { %582 = vmatpush.bf16.msra.mxu3 %v1428_v6  ;;  %v1402_v15 = vld [vmem:[%s1823_s1 + $0x20] sm:$0xff]  ;;  %v1401_v19 = vld [vmem:[%s1823_s1 + $0x18] sm:$0xff]  ;;  %v1400_v24 = vld [vmem:[%s1823_s1 + $0x10] sm:$0xff] }
  0x14   : > { %416 = vmatpush.bf16.msra.mxu1 %v1404_v7  ;;  %v428_v20 = vld [vmem:[%s1630_s15] sm:$0x2]  ;;  %v266_v25 = vld [vmem:[%s1630_s15] sm:$0x1]  ;;  %v1407_v27 = vld [vmem:[%s1823_s1 + $0x48] sm:$0xff] }
  0x15   : > { %356 = vmatpush.bf16.msra.mxu0 %v1411_v8  ;;  %v446_v26 = vunpack.c.l.b16 %v428_v20  ;;  %v1415_v28 = vld [vmem:[%s1823_s1 + $0x88] sm:$0xff]  ;;  %v300_v29 = vunpack.c.l.b16 %v266_v25  ;;  %v1406_v33 = vld [vmem:[%s1823_s1 + $0x40] sm:$0xff]  ;;  %v1437_v36 = vld [vmem:[%s1823_s1 + $0x138] sm:$0xff] }
  0x16   : > { %500 = vmatpush.bf16.msra.mxu2 %v1419_v9  ;;  %v1423_v30 = vld [vmem:[%s1823_s1 + $0xc8] sm:$0xff]  ;;  %v1414_v34 = vld [vmem:[%s1823_s1 + $0x80] sm:$0xff]  ;;  %v1453_v37 = vld [vmem:[%s1823_s1 + $0x1b8] sm:$0xff] }
  0x17   : > { %583 = vmatpush.bf16.msra.mxu3 %v1427_v10  ;;  %v1399_v31 = vld [vmem:[%s1823_s1 + $0x8] sm:$0xff]  ;;  %v447_v32 = vpack.c.b16 %v446_v26, %v446_v26  ;;  %v301_v35 = vpack.c.b16 %v300_v29, %v300_v29  ;;  %v1422_v38 = vld [vmem:[%s1823_s1 + $0xc0] sm:$0xff]  ;;  %v1461_v41 = vld [vmem:[%s1823_s1 + $0x1f8] sm:$0xff] }
  0x18   : > { %417 = vmatpush.bf16.msra.mxu1 %v1403_v11  ;;  %v1398_v39 = vld [vmem:[%s1823_s1] sm:$0xff]  ;;  %v1445_v42 = vld [vmem:[%s1823_s1 + $0x178] sm:$0xff]  ;;  %v1436_v45 = vld [vmem:[%s1823_s1 + $0x130] sm:$0xff] }
  0x19   : > { %357 = vmatpush.bf16.msra.mxu0 %v1410_v12  ;;  %v529_v40 = vshrl.u32 %v447_v32, 16  ;;  %v448_v43 = vrot.slane %v447_v32, 1  ;;  %v303_v44 = vshrl.u32 %v301_v35, 16  ;;  %v1452_v46 = vld [vmem:[%s1823_s1 + $0x1b0] sm:$0xff]  ;;  %v1435_v50 = vld [vmem:[%s1823_s1 + $0x128] sm:$0xff]  ;;  %v1434_v54 = vld [vmem:[%s1823_s1 + $0x120] sm:$0xff] }
  0x1a   : > { %501 = vmatpush.bf16.msra.mxu2 %v1418_v13  ;;  %v1460_v48 = vld [vmem:[%s1823_s1 + $0x1f0] sm:$0xff]  ;;  %v1451_v51 = vld [vmem:[%s1823_s1 + $0x1a8] sm:$0xff]  ;;  %v1450_v55 = vld [vmem:[%s1823_s1 + $0x1a0] sm:$0xff] }
  0x1b   : > { %584 = vmatpush.bf16.msra.mxu3 %v1426_v14  ;;  %v531_v47 = vrot.slane %v529_v40, 1  ;;  %v1444_v49 = vld [vmem:[%s1823_s1 + $0x170] sm:$0xff]  ;;  %v1459_v52 = vld [vmem:[%s1823_s1 + $0x1e8] sm:$0xff]  ;;  %v1458_v56 = vld [vmem:[%s1823_s1 + $0x1e0] sm:$0xff] }
  0x1c   : > { %418 = vmatpush.bf16.msra.mxu1 %v1402_v15  ;;  %v1443_v53 = vld [vmem:[%s1823_s1 + $0x168] sm:$0xff]  ;;  %v1442_v57 = vld [vmem:[%s1823_s1 + $0x160] sm:$0xff]  ;;  %v1433_v58 = vld [vmem:[%s1823_s1 + $0x118] sm:$0xff] }
  0x1d   : > { %358 = vmatpush.bf16.msra.mxu0 %v1409_v16  ;;  %v1449_v59 = vld [vmem:[%s1823_s1 + $0x198] sm:$0xff]  ;;  %v762_v62 = vld [vmem:[%s1630_s15] sm:$0x8]  ;;  %v595_v63 = vld [vmem:[%s1630_s15] sm:$0x4] }
  0x1e   : > { %502 = vmatpush.bf16.msra.mxu2 %v1417_v17  ;;  %v1457_v60 = vld [vmem:[%s1823_s1 + $0x1d8] sm:$0xff]  ;;  %v1432_v0 = vld [vmem:[%s1823_s1 + $0x110] sm:$0xff]  ;;  %v780_v2 = vunpack.c.l.b16 %v762_v62  ;;  %v613_v5 = vunpack.c.l.b16 %v595_v63  ;;  %v1431_v6 = vld [vmem:[%s1823_s1 + $0x108] sm:$0xff] }
  0x1f   : > { %585 = vmatpush.bf16.msra.mxu3 %v1425_v18  ;;  %v1441_v61 = vld [vmem:[%s1823_s1 + $0x158] sm:$0xff]  ;;  %v1448_v1 = vld [vmem:[%s1823_s1 + $0x190] sm:$0xff]  ;;  %v1447_v7 = vld [vmem:[%s1823_s1 + $0x188] sm:$0xff] }
  0x20   : > { %419 = vmatpush.bf16.msra.mxu1 %v1401_v19  ;;  %v1456_v3 = vld [vmem:[%s1823_s1 + $0x1d0] sm:$0xff]  ;;  %v781_v8 = vpack.c.b16 %v780_v2, %v780_v2  ;;  %v1455_v9 = vld [vmem:[%s1823_s1 + $0x1c8] sm:$0xff]  ;;  %v614_v11 = vpack.c.b16 %v613_v5, %v613_v5  ;;  %v1430_v12 = vld [vmem:[%s1823_s1 + $0x100] sm:$0xff] }
  0x21   : > { %359 = vmatpush.bf16.msra.mxu0 %v1408_v21  ;;  %v1440_v4 = vld [vmem:[%s1823_s1 + $0x150] sm:$0xff]  ;;  %v1439_v10 = vld [vmem:[%s1823_s1 + $0x148] sm:$0xff]  ;;  %v1446_v13 = vld [vmem:[%s1823_s1 + $0x180] sm:$0xff] }
  0x22   : > { %503 = vmatpush.bf16.msra.mxu2 %v1416_v22  ;;  %v1469_v14 = vld [vmem:[%s1823_s1 + $0x238] sm:$0xff]  ;;  %v863_v15 = vshrl.u32 %v781_v8, 16  ;;  %v1454_v16 = vld [vmem:[%s1823_s1 + $0x1c0] sm:$0xff]  ;;  %v696_v18 = vshrl.u32 %v614_v11, 16  ;;  %v782_v19 = vrot.slane %v781_v8, 3  ;;  %v615_v20 = vrot.slane %v614_v11, 2  ;;  %vm1019_vm2 = vmand %vm1017_vm0, %vm1018_vm1 }
  0x23   : > { %586 = vmatpush.bf16.msra.mxu3 %v1424_v23  ;;  %v1438_v17 = vld [vmem:[%s1823_s1 + $0x140] sm:$0xff]  ;;  %v1468_v21 = vld [vmem:[%s1823_s1 + $0x230] sm:$0xff]  ;;  %v1465_v26 = vld [vmem:[%s1823_s1 + $0x218] sm:$0xff] }
  0x24   : > { %420 = vmatpush.bf16.msra.mxu1 %v1400_v24  ;;  %v865_v22 = vrot.slane %v863_v15, 3  ;;  %v698_v23 = vrot.slane %v696_v18, 2  ;;  %v1467_v24 = vld [vmem:[%s1823_s1 + $0x228] sm:$0xff]  ;;  %v1462_v29 = vld [vmem:[%s1823_s1 + $0x200] sm:$0xff] }
  0x25   : > { %360 = vmatpush.bf16.msra.mxu0 %v1407_v27  ;;  %v1464_v27 = vld [vmem:[%s1823_s1 + $0x210] sm:$0xff] }
  0x26   : > { %504 = vmatpush.bf16.msra.mxu2 %v1415_v28  ;;  %v1463_v28 = vld [vmem:[%s1823_s1 + $0x208] sm:$0xff] }
  0x27   : > { %587 = vmatpush.bf16.msra.mxu3 %v1423_v30  ;;  %v929_v30 = vld [vmem:[%s1630_s15 + $0x4] sm:$0x1] }
  0x28   : > { %421 = vmatpush.bf16.msra.mxu1 %v1399_v31 }
  0x29   : > { %361 = vmatpush.bf16.msra.mxu0 %v1406_v33 }
  0x2a   : > { %505 = vmatpush.bf16.msra.mxu2 %v1414_v34 }
  0x2b   : > { %588 = vmatpush.bf16.msra.mxu3 %v1422_v38 }
  0x2c   : > { %422 = vmatpush.bf16.msra.mxu1 %v1398_v39  ;;  %362 = vmatmul.bf16.vlgmr.msra.gmra.mxu0 %v303_v44 }
  0x2d   : > { %665 = vmatpush.bf16.msrb.mxu0 %v1437_v36  ;;  %506 = vmatmul.bf16.vlgmr.msra.gmra.mxu2 %v448_v43 }
  0x2e   : > { %832 = vmatpush.bf16.msrb.mxu2 %v1453_v37  ;;  %589 = vmatmul.bf16.vlgmr.msra.gmra.mxu3 %v531_v47 }
  0x2f   : > { %915 = vmatpush.bf16.msrb.mxu3 %v1461_v41  ;;  %423 = vmatmul.bf16.vlgmr.msra.gmra.mxu1 %v266_v25  ;;  %v1466_v25 = vld [vmem:[%s1823_s1 + $0x220] sm:$0xff] }
  0x30   : > { %748 = vmatpush.bf16.msrb.mxu1 %v1445_v42 }
  0x31   : > { %666 = vmatpush.bf16.msrb.mxu0 %v1436_v45 }
  0x32   : > { %833 = vmatpush.bf16.msrb.mxu2 %v1452_v46 }
  0x33   : > { %916 = vmatpush.bf16.msrb.mxu3 %v1460_v48 }
  0x34   : > { %749 = vmatpush.bf16.msrb.mxu1 %v1444_v49 }
  0x35   : > { %667 = vmatpush.bf16.msrb.mxu0 %v1435_v50 }
  0x36   : > { %834 = vmatpush.bf16.msrb.mxu2 %v1451_v51 }
  0x37   : > { %917 = vmatpush.bf16.msrb.mxu3 %v1459_v52 }
  0x38   : > { %750 = vmatpush.bf16.msrb.mxu1 %v1443_v53 }
  0x39   : > { %668 = vmatpush.bf16.msrb.mxu0 %v1434_v54 }
  0x3a   : > { %835 = vmatpush.bf16.msrb.mxu2 %v1450_v55  ;;  %v1008_v55 = vld [vmem:[%s1824_s2] sm:$0x1] }
  0x3b   : > { %918 = vmatpush.bf16.msrb.mxu3 %v1458_v56  ;;  %v1012_v56 = vld [vmem:[%s259_s29] sm:$0x1] }
  0x3c   : > { %751 = vmatpush.bf16.msrb.mxu1 %v1442_v57 }
  0x3d   : > { %669 = vmatpush.bf16.msrb.mxu0 %v1433_v58  ;;  %v1010_v58 = vld [vmem:[%s1825_s3] sm:$0x1] }
  0x3e   : > { %836 = vmatpush.bf16.msrb.mxu2 %v1449_v59 }
  0x3f   : > { %919 = vmatpush.bf16.msrb.mxu3 %v1457_v60  ;;  %v1013_v60 = vunpack.c.l.bf16 %v1012_v56 }
  0x40   : > { %752 = vmatpush.bf16.msrb.mxu1 %v1441_v61 }
  0x41   : > { %670 = vmatpush.bf16.msrb.mxu0 %v1432_v0 }
  0x42   : > { %837 = vmatpush.bf16.msrb.mxu2 %v1448_v1  ;;  %v1020_v1 = vld [vmem:[%s265_s11] sm:$0x1] }
  0x43   : > { %920 = vmatpush.bf16.msrb.mxu3 %v1456_v3 }
  0x44   : > { %753 = vmatpush.bf16.msrb.mxu1 %v1440_v4 }
  0x45   : > { %671 = vmatpush.bf16.msrb.mxu0 %v1431_v6 }
  0x46   : > { %838 = vmatpush.bf16.msrb.mxu2 %v1447_v7 }
  0x47   : > { %921 = vmatpush.bf16.msrb.mxu3 %v1455_v9 }
  0x48   : > { %754 = vmatpush.bf16.msrb.mxu1 %v1439_v10 }
  0x49   : > { %672 = vmatpush.bf16.msrb.mxu0 %v1430_v12 }
  0x4a   : > { %839 = vmatpush.bf16.msrb.mxu2 %v1446_v13 }
  0x4b   : > { %922 = vmatpush.bf16.msrb.mxu3 %v1454_v16 }
  0x4c   : > { %755 = vmatpush.bf16.msrb.mxu1 %v1438_v17  ;;  %673 = vmatmul.bf16.vlgmr.msrb.gmra.mxu0 %v615_v20 }
  0x4d   : > { %994 = vmatpush.bf16.msra.mxu0 %v1469_v14  ;;  %840 = vmatmul.bf16.vlgmr.msrb.gmra.mxu2 %v782_v19 }
  0x4e   : > { %923 = vmatmul.bf16.vlgmr.msrb.gmra.mxu3 %v865_v22 }
  0x4f   : > { %756 = vmatmul.bf16.vlgmr.msrb.gmra.mxu1 %v698_v23 }
  0x51   : > { %995 = vmatpush.bf16.msra.mxu0 %v1468_v21 }
  0x55   : > { %996 = vmatpush.bf16.msra.mxu0 %v1467_v24 }
  0x59   : > { %997 = vmatpush.bf16.msra.mxu0 %v1466_v25 }
  0x5d   : > { %998 = vmatpush.bf16.msra.mxu0 %v1465_v26 }
  0x61   : > { %999 = vmatpush.bf16.msra.mxu0 %v1464_v27 }
  0x65   : > { %1000 = vmatpush.bf16.msra.mxu0 %v1463_v28 }
  0x69   : > { %1001 = vmatpush.bf16.msra.mxu0 %v1462_v29 }
  0x6c   : > { %1002 = vmatmul.bf16.vlgmr.msra.gmra.mxu0 %v929_v30 }
  0xa9   : > { %v363_v31 = vpop.f32.mrf.mxu0 }
  0xac   : > { %v424_v32 = vpop.f32.mrf.mxu1 }
  0xad   : > { %v425_v41 = vadd.f32 %v424_v32, %v363_v31 }
  0xb0   : > { %v507_v33 = vpop.f32.mrf.mxu2 }
  0xb1   : > { %v590_v34 = vpop.f32.mrf.mxu3  ;;  %v365_v35 = vpop.f32.mrf.mxu0  ;;  %v511_v43 = vadd.f32 %v507_v33, %v425_v41 }
  0xb3   : > { %v594_v47 = vadd.f32 %v590_v34, %v511_v43 }
  0xb4   : > { %v426_v36 = vpop.f32.mrf.mxu1 }
  0xb8   : > { %v509_v37 = vpop.f32.mrf.mxu2 }
  0xb9   : > { %v592_v38 = vpop.f32.mrf.mxu3 }
  0xc9   : > { %v674_v39 = vpop.f32.mrf.mxu0 }
  0xca   : > { %v678_v49 = vadd.f32 %v674_v39, %v594_v47 }
  0xcc   : > { %v757_v40 = vpop.f32.mrf.mxu1 }
  0xcd   : > { %v761_v51 = vadd.f32 %v757_v40, %v678_v49 }
  0xd0   : > { %v841_v42 = vpop.f32.mrf.mxu2 }
  0xd1   : > { %v924_v44 = vpop.f32.mrf.mxu3  ;;  %v676_v45 = vpop.f32.mrf.mxu0  ;;  %v845_v52 = vadd.f32 %v841_v42, %v761_v51 }
  0xd3   : > { %v928_v53 = vadd.f32 %v924_v44, %v845_v52 }
  0xd4   : > { %v759_v46 = vpop.f32.mrf.mxu1 }
  0xd8   : > { %v843_v48 = vpop.f32.mrf.mxu2 }
  0xd9   : > { %v926_v50 = vpop.f32.mrf.mxu3 }
  0xe9   : > { %v1003_v54 = vpop.f32.mrf.mxu0 }
  0xea   : > { %v1007_v57 = vadd.f32 %v1003_v54, %v928_v53 }
  0xec   : > { %v1009_v59 = vmul.f32 %v1008_v55, %v1007_v57 }
  0xee   : > { %v1011_v61 = vadd.f32 %v1010_v58, %v1009_v59 }
  0xf0   : > { %v1014_v62 = vadd.f32 %v1013_v60, %v1011_v61 }
  0xf1   : > { %v1005_v63 = vpop.f32.mrf.mxu0 }
  0xf2   : > { %v1015_v0 = vmax.f32 %v1014_v62, 0.0 }
  0xf4   : > { %v1016_v2 = vpack.c.bf16 %v1015_v0, %v1015_v0 }
  0xf6   : > { %v1021_v3 = vsel %vm1019_vm2, %v1016_v2, %v1020_v1 }
  0xf7   : > { %1022 = vst [vmem:[%s265_s11] sm:$0x1] %v1021_v3 }
  0xf8 PF: > { %s15_s20 = sadd.s32 1, %s1516_s20   ;;  %s1828_s18 = smov %s1512_s19 }
  0xf9   : > { %p12_p5 = scmp.ge.s32.totalorder %s15_s20, 4   ;;  %s1829_s19 = smov %s1831_s21 }
  0xfb   :  { %14 = sbr.rel (!%p12_p5) target bundleno = 2 (0x2), region = 73 }

// kernel: _lambda_.33
= control target key start
LH: loop header
LB: loop body
LE: loop exit
PB: predicated region body
PF: predicated region fallthrough
CT: control target
= control target key end

     0   :  { %s1713_s15 = smov 0   ;;  %s1715_s16 = smov 0   ;;  %s2058_s0 = inlined_call_operand.vmem [shape: bf16[2,40,128], index: 0, kind: input, shape index: {}]   ;;  %s2059_s1 = inlined_call_operand.vmem [shape: bf16[1152,128], index: 1, kind: input, shape index: {}]   ;;  %s2060_s2 = inlined_call_operand.vmem [shape: f32[1,128], index: 2, kind: input, shape index: {}]   ;;  %s2061_s3 = inlined_call_operand.vmem [shape: f32[1,128], index: 3, kind: input, shape index: {}]   ;;  %s2062_s4 = inlined_call_operand.vmem [shape: bf16[2,16,128], index: 4, kind: output, shape index: {}]  }
   0x1   :  { %s1717_s17 = smov 0  }
   0x2 LB: > { %s26_s18 = sadd.s32 1, %s1682_s16  ;;  %p1248_p0 = scmp.ge.s32.totalorder %s1686_s17, 1  ;;  %s1686_s17 = sphi %s1717_s17, %s14_s17   ;;  %s1682_s16 = sphi %s1715_s16, %s2064_s16   ;;  %s1678_s15 = sphi %s1713_s15, %s2063_s15  }
   0x3   : > { %p28_p1 = scmp.ge.s32.totalorder %s26_s18, 2  ;;  %p176_p2 = scmp.lt.s32.totalorder %s1686_s17, 3 }
   0x5   : > { %s2066_s18 = smov (%p28_p1, %s26_s18), 0  ;;  %p177_p3 = pnand %p1248_p0, %p176_p2 }
   0x6   : > { %p206_p4 = scmp.lt.s32.totalorder (!%p177_p3), %s1678_s15, 1 }
   0x7   : > { %180 = sbr.rel (%p177_p3) target bundleno = 254 (0xfe), region = 36 }
   0xc   : > { %v1560_v0 = vld [vmem:[%s2059_s1 + $0x78] sm:$0xff]  ;;  %v1559_v4 = vld [vmem:[%s2059_s1 + $0x70] sm:$0xff]  ;;  %s2068_s15 = smov (!%p206_p4, %s1678_s15), 1  ;;  %v1558_v8 = vld [vmem:[%s2059_s1 + $0x68] sm:$0xff]  ;;  %vm265_vm0 = vsmask.f32 7424 }
   0xd   : > { %v1552_v1 = vld [vmem:[%s2059_s1 + $0x38] sm:$0xff]  ;;  %331 = vmatpush.bf16.msra.mxu0 %v1560_v0  ;;  %v1551_v5 = vld [vmem:[%s2059_s1 + $0x30] sm:$0xff]  ;;  %s1637_s9 = smul.u32 20, %s2068_s15  ;;  %v1550_v9 = vld [vmem:[%s2059_s1 + $0x28] sm:$0xff]  ;;  %vm440_vm1 = vcmask 1046528   ;;  %vm545_vm2 = vcmask 1044480  }
   0xe   : > { %v1568_v2 = vld [vmem:[%s2059_s1 + $0xb8] sm:$0xff]  ;;  %402 = vmatpush.bf16.msra.mxu1 %v1552_v1  ;;  %v1567_v6 = vld [vmem:[%s2059_s1 + $0xb0] sm:$0xff]  ;;  %v1566_v10 = vld [vmem:[%s2059_s1 + $0xa8] sm:$0xff]  ;;  %vm640_vm3 = vsmask.f32 4352  ;;  %vm848_vm4 = vcmask 1045504  }
   0xf   : > { %v1576_v3 = vld [vmem:[%s2059_s1 + $0xf8] sm:$0xff]  ;;  %494 = vmatpush.bf16.msra.mxu2 %v1568_v2  ;;  %v1575_v7 = vld [vmem:[%s2059_s1 + $0xf0] sm:$0xff]  ;;  %v1574_v11 = vld [vmem:[%s2059_s1 + $0xe8] sm:$0xff]  ;;  %s1773_s24 = scalar_lea.vmem %s2058_s0, %s1637_s9  ;;  %vm943_vm5 = vsmask.f32 5376  ;;  %s1544_s21 = sshll.u32 %s2068_s15, 3 }
  0x10   : > { %599 = vmatpush.bf16.msra.mxu3 %v1576_v3  ;;  %v1557_v12 = vld [vmem:[%s2059_s1 + $0x60] sm:$0xff]  ;;  %v1556_v17 = vld [vmem:[%s2059_s1 + $0x58] sm:$0xff]  ;;  %v517_v24 = vld [vmem:[%s1773_s24 + $0x8] sm:$0xf]  ;;  %s219_s25 = scalar_lea.vmem %s2062_s4, %s1544_s21  ;;  %vm1145_vm6 = vcmask 1042432   ;;  %vm1146_vm7 = vcmask 1046532  }
  0x11   : > { %332 = vmatpush.bf16.msra.mxu0 %v1559_v4  ;;  %v1549_v13 = vld [vmem:[%s2059_s1 + $0x20] sm:$0xff]  ;;  %v1548_v18 = vld [vmem:[%s2059_s1 + $0x18] sm:$0xff]  ;;  %v518_v25 = vld [vmem:[%s1773_s24 + $0xc] sm:$0x3]  ;;  %v1825_v34 = vunpack.c.l.b16 %v517_v24 }
  0x12   : > { %403 = vmatpush.bf16.msra.mxu1 %v1551_v5  ;;  %v1565_v14 = vld [vmem:[%s2059_s1 + $0xa0] sm:$0xff]  ;;  %v1564_v20 = vld [vmem:[%s2059_s1 + $0x98] sm:$0xff]  ;;  %v1555_v26 = vld [vmem:[%s2059_s1 + $0x50] sm:$0xff]  ;;  %v542_v35 = vunpack.c.l.b16 %v518_v25 }
  0x13   : > { %495 = vmatpush.bf16.msra.mxu2 %v1567_v6  ;;  %v1573_v15 = vld [vmem:[%s2059_s1 + $0xe0] sm:$0xff]  ;;  %v1572_v21 = vld [vmem:[%s2059_s1 + $0xd8] sm:$0xff]  ;;  %v1547_v27 = vld [vmem:[%s2059_s1 + $0x10] sm:$0xff] }
  0x14   : > { %600 = vmatpush.bf16.msra.mxu3 %v1575_v7  ;;  %v1788_v16 = vld [vmem:[%s1773_s24 + $0x4] sm:$0xff]   ;;  %v515_v23 = vld [vmem:[%s1773_s24] sm:$0x8]  ;;  %v1563_v30 = vld [vmem:[%s2059_s1 + $0x90] sm:$0xff]  ;;  %v1848_v47 = vpack.c.b16 %v542_v35, %v1825_v34 }
  0x15   : > { %333 = vmatpush.bf16.msra.mxu0 %v1558_v8  ;;  %v262_v19 = vunpack.c.h.b16 %v1788_v16  ;;  %v1804_v22 = vld [vmem:[%s1773_s24] sm:$0xff]   ;;  %v1571_v31 = vld [vmem:[%s2059_s1 + $0xd0] sm:$0xff]  ;;  %v539_v32 = vunpack.c.l.b16 %v515_v23  ;;  %v540_v33 = vunpack.c.l.b16 %v1788_v16  ;;  %v1554_v38 = vld [vmem:[%s2059_s1 + $0x48] sm:$0xff] }
  0x16   : > { %404 = vmatpush.bf16.msra.mxu1 %v1550_v9  ;;  %v269_v29 = vshll.u32 %v1804_v22, 16  ;;  %v1625_v36 = vld [vmem:[%s1773_s24] sm:$0xf0]  ;;  %v1626_v37 = vld [vmem:[%s1773_s24] sm:$0xe]  ;;  %v1546_v39 = vld [vmem:[%s2059_s1 + $0x8] sm:$0xff] }
  0x17   : > { %496 = vmatpush.bf16.msra.mxu2 %v1566_v10  ;;  %v1815_v28 = vpack.c.b16 %v262_v19, %v262_v19  ;;  %v267_v40 = vshrl.u32 %v1804_v22, 16  ;;  %v1562_v43 = vld [vmem:[%s2059_s1 + $0x88] sm:$0xff]  ;;  %v1627_v45 = vor.u32 %v1626_v37, %v1625_v36  ;;  %v1845_v46 = vpack.c.b16 %v540_v33, %v539_v32  ;;  %v1553_v48 = vld [vmem:[%s2059_s1 + $0x40] sm:$0xff]  ;;  %v1584_v58 = vld [vmem:[%s2059_s1 + $0x138] sm:$0xff] }
  0x18   : > { %601 = vmatpush.bf16.msra.mxu3 %v1574_v11  ;;  %v271_v41 = vrot.slane %v269_v29, 1  ;;  %v1570_v44 = vld [vmem:[%s2059_s1 + $0xc8] sm:$0xff]  ;;  %v1545_v49 = vld [vmem:[%s2059_s1] sm:$0xff]  ;;  %v547_v57 = vrot.slane %v1848_v47, 3  ;;  %v1592_v59 = vld [vmem:[%s2059_s1 + $0x178] sm:$0xff] }
  0x19   : > { %334 = vmatpush.bf16.msra.mxu0 %v1557_v12  ;;  %v274_v42 = vshll.u32 %v1815_v28, 16  ;;  %v1561_v52 = vld [vmem:[%s2059_s1 + $0x80] sm:$0xff]  ;;  %v441_v54 = vrot.slane %v1627_v45, 1  ;;  %v442_v55 = vrot.slane %v1815_v28, 1  ;;  %v546_v56 = vrot.slane %v1845_v46, 3  ;;  %v1600_v62 = vld [vmem:[%s2059_s1 + $0x1b8] sm:$0xff]  ;;  %vm1147_vm8 = vmor %vm1145_vm6, %vm1146_vm7 }
  0x1a   : > { %405 = vmatpush.bf16.msra.mxu1 %v1549_v13  ;;  %v272_v50 = vor.u32 %v271_v41, %v267_v40  ;;  %v1569_v53 = vld [vmem:[%s2059_s1 + $0xc0] sm:$0xff]  ;;  %v1608_v0 = vld [vmem:[%s2059_s1 + $0x1f8] sm:$0xff]  ;;  %v1583_v1 = vld [vmem:[%s2059_s1 + $0x130] sm:$0xff]  ;;  %v642_v41 = vshrl.u32 %v1845_v46, 16 }
  0x1b   : > { %497 = vmatpush.bf16.msra.mxu2 %v1565_v14  ;;  %v1856_v51 = vrot.slane %v274_v42, 1  ;;  %v443_v61 = vsel %vm440_vm1, %v441_v54, %v442_v55  ;;  %v548_v63 = vsel %vm545_vm2, %v546_v56, %v547_v57  ;;  %v1591_v2 = vld [vmem:[%s2059_s1 + $0x170] sm:$0xff]  ;;  %v1582_v5 = vld [vmem:[%s2059_s1 + $0x128] sm:$0xff]  ;;  %v1581_v10 = vld [vmem:[%s2059_s1 + $0x120] sm:$0xff]  ;;  %v645_v42 = vshll.u32 %v1845_v46, 16 }
  0x1c   : > { %602 = vmatpush.bf16.msra.mxu3 %v1573_v15  ;;  %v1599_v3 = vld [vmem:[%s2059_s1 + $0x1b0] sm:$0xff]  ;;  %v1590_v6 = vld [vmem:[%s2059_s1 + $0x168] sm:$0xff]  ;;  %v1589_v11 = vld [vmem:[%s2059_s1 + $0x160] sm:$0xff] }
  0x1d   : > { %335 = vmatpush.bf16.msra.mxu0 %v1556_v17  ;;  %v277_v60 = vsel %vm265_vm0, %v272_v50, %v1856_v51  ;;  %v1607_v4 = vld [vmem:[%s2059_s1 + $0x1f0] sm:$0xff]  ;;  %v1598_v7 = vld [vmem:[%s2059_s1 + $0x1a8] sm:$0xff]  ;;  %v818_v13 = vld [vmem:[%s1773_s24 + $0x4] sm:$0xc]  ;;  %v278_v17 = vshrl.u32 %v1815_v28, 16  ;;  %v647_v54 = vrot.slane %v645_v42, 4 }
  0x1e   : > { %406 = vmatpush.bf16.msra.mxu1 %v1548_v18  ;;  %v1606_v8 = vld [vmem:[%s2059_s1 + $0x1e8] sm:$0xff]  ;;  %v923_v15 = vld [vmem:[%s1773_s24 + $0x10] sm:$0x3]  ;;  %v842_v24 = vunpack.c.l.b16 %v818_v13  ;;  %v1596_v32 = vld [vmem:[%s2059_s1 + $0x198] sm:$0xff] }
  0x1f   : > { %498 = vmatpush.bf16.msra.mxu2 %v1564_v20  ;;  %v223_v9 = vld [vmem:[%s1773_s24 + $0x8] sm:$0x7]  ;;  %v620_v12 = vld [vmem:[%s1773_s24 + $0xc] sm:$0x7]  ;;  %v1597_v20 = vld [vmem:[%s2059_s1 + $0x1a0] sm:$0xff]  ;;  %v941_v25 = vunpack.c.l.b16 %v923_v15  ;;  %v280_v29 = vor.u32 %v278_v17, %v1856_v51 }
  0x20   : > { %603 = vmatpush.bf16.msra.mxu3 %v1572_v21  ;;  %v1921_v14 = vld [vmem:[%s1773_s24 + $0x8] sm:$0xff]   ;;  %v350_v18 = vunpack.c.l.b16 %v223_v9  ;;  %v1925_v19 = vunpack.c.l.b16 %v620_v12  ;;  %v1605_v21 = vld [vmem:[%s2059_s1 + $0x1e0] sm:$0xff]  ;;  %v1604_v35 = vld [vmem:[%s2059_s1 + $0x1d8] sm:$0xff] }
  0x21   : > { %336 = vmatpush.bf16.msra.mxu0 %v1555_v26  ;;  %v1624_v23 = vunpack.c.h.b16 %v1921_v14  ;;  %v1580_v26 = vld [vmem:[%s2059_s1 + $0x118] sm:$0xff]  ;;  %v821_v36 = vld [vmem:[%s1773_s24 + $0x10] sm:$0x1]  ;;  %v1578_v51 = vld [vmem:[%s2059_s1 + $0x108] sm:$0xff] }
  0x22   : > { %407 = vmatpush.bf16.msra.mxu1 %v1547_v27  ;;  %v1588_v27 = vld [vmem:[%s2059_s1 + $0x158] sm:$0xff]  ;;  %v1587_v40 = vld [vmem:[%s2059_s1 + $0x150] sm:$0xff]  ;;  %v845_v45 = vunpack.c.l.b16 %v821_v36  ;;  %v1614_v16 = vld [vmem:[%s2059_s1 + $0x228] sm:$0xff] }
  0x23   : > { %499 = vmatpush.bf16.msra.mxu2 %v1563_v30  ;;  %v351_v30 = vpack.c.b16 %v350_v18, %v350_v18  ;;  %v1615_v17 = vld [vmem:[%s2059_s1 + $0x230] sm:$0xff]  ;;  %v746_v18 = vpack.c.b16 %v1925_v19, %v1925_v19 }
  0x24   : > { %604 = vmatpush.bf16.msra.mxu3 %v1571_v31  ;;  %v639_v31 = vpack.c.b16 %v1925_v19, %v1825_v34 }
  0x25   : > { %337 = vmatpush.bf16.msra.mxu0 %v1554_v38  ;;  %v1955_v38 = vpack.c.b16 %v941_v25, %v1624_v23  ;;  %v1609_v25 = vld [vmem:[%s2059_s1 + $0x200] sm:$0xff] }
  0x26   : > { %408 = vmatpush.bf16.msra.mxu1 %v1546_v39  ;;  %v1579_v39 = vld [vmem:[%s2059_s1 + $0x110] sm:$0xff] }
  0x27   : > { %500 = vmatpush.bf16.msra.mxu2 %v1562_v43  ;;  %v650_v43 = vshrl.u32 %v639_v31, 16  ;;  %v953_v50 = vshrl.u32 %v1955_v38, 16  ;;  %v956_v46 = vshll.u32 %v1955_v38, 16 }
  0x28   : > { %605 = vmatpush.bf16.msra.mxu3 %v1570_v44  ;;  %v653_v44 = vshll.u32 %v639_v31, 16 }
  0x29   : > { %338 = vmatpush.bf16.msra.mxu0 %v1553_v48  ;;  %v1595_v48 = vld [vmem:[%s2059_s1 + $0x190] sm:$0xff] }
  0x2a   : > { %409 = vmatpush.bf16.msra.mxu1 %v1545_v49  ;;  %v1603_v49 = vld [vmem:[%s2059_s1 + $0x1d0] sm:$0xff]  ;;  %v655_v56 = vrot.slane %v653_v44, 4 }
  0x2b   : > { %501 = vmatpush.bf16.msra.mxu2 %v1561_v52  ;;  %v1586_v52 = vld [vmem:[%s2059_s1 + $0x148] sm:$0xff] }
  0x2c   : > { %606 = vmatpush.bf16.msra.mxu3 %v1569_v53  ;;  %339 = vmatmul.bf16.vlgmr.msra.gmra.mxu0 %v277_v60  ;;  %v644_v53 = vrot.slane %v642_v41, 3 }
  0x2d   : > { %708 = vmatpush.bf16.msrb.mxu0 %v1584_v58  ;;  %410 = vmatmul.bf16.vlgmr.msra.gmra.mxu1 %v1804_v22  ;;  %v1623_v22 = vunpack.c.l.b16 %v1921_v14  ;;  %v1594_v58 = vld [vmem:[%s2059_s1 + $0x188] sm:$0xff] }
  0x2e   : > { %797 = vmatpush.bf16.msrb.mxu1 %v1592_v59  ;;  %502 = vmatmul.bf16.vlgmr.msra.gmra.mxu2 %v443_v61  ;;  %v1602_v59 = vld [vmem:[%s2059_s1 + $0x1c8] sm:$0xff] }
  0x2f   : > { %607 = vmatmul.bf16.vlgmr.msra.gmra.mxu3 %v548_v63  ;;  %902 = vmatpush.bf16.msrb.mxu2 %v1600_v62  ;;  %v1953_v37 = vpack.c.b16 %v1623_v22, %v842_v24  ;;  %v955_v62 = vrot.slane %v953_v50, 2  ;;  %v958_v63 = vrot.slane %v956_v46, 3  ;;  %v1610_v24 = vld [vmem:[%s2059_s1 + $0x208] sm:$0xff] }
  0x30   : > { %1011 = vmatpush.bf16.msrb.mxu3 %v1608_v0  ;;  %v1577_v0 = vld [vmem:[%s2059_s1 + $0x100] sm:$0xff] }
  0x31   : > { %709 = vmatpush.bf16.msrb.mxu0 %v1583_v1  ;;  %v945_v28 = vshrl.u32 %v1953_v37, 16  ;;  %v948_v47 = vshll.u32 %v1953_v37, 16  ;;  %v1585_v1 = vld [vmem:[%s2059_s1 + $0x140] sm:$0xff] }
  0x32   : > { %798 = vmatpush.bf16.msrb.mxu1 %v1591_v2  ;;  %v1616_v2 = vld [vmem:[%s2059_s1 + $0x238] sm:$0xff] }
  0x33   : > { %903 = vmatpush.bf16.msrb.mxu2 %v1599_v3  ;;  %v947_v60 = vrot.slane %v945_v28, 2  ;;  %v950_v61 = vrot.slane %v948_v47, 3  ;;  %v648_v3 = vor.u32 %v647_v54, %v644_v53 }
  0x34   : > { %1012 = vmatpush.bf16.msrb.mxu3 %v1607_v4 }
  0x35   : > { %710 = vmatpush.bf16.msrb.mxu0 %v1582_v5  ;;  %v1593_v5 = vld [vmem:[%s2059_s1 + $0x180] sm:$0xff]  ;;  %v951_v9 = vor.u32 %v950_v61, %v947_v60 }
  0x36   : > { %799 = vmatpush.bf16.msrb.mxu1 %v1590_v6  ;;  %v1601_v6 = vld [vmem:[%s2059_s1 + $0x1c0] sm:$0xff] }
  0x37   : > { %904 = vmatpush.bf16.msrb.mxu2 %v1598_v7  ;;  %v849_v7 = vrot.slane %v1953_v37, 2 }
  0x38   : > { %1013 = vmatpush.bf16.msrb.mxu3 %v1606_v8 }
  0x39   : > { %711 = vmatpush.bf16.msrb.mxu0 %v1581_v10  ;;  %v959_v10 = vor.u32 %v958_v63, %v955_v62 }
  0x3a   : > { %800 = vmatpush.bf16.msrb.mxu1 %v1589_v11  ;;  %v745_v11 = vpack.c.b16 %v1825_v34, %v540_v33  ;;  %v1613_v33 = vld [vmem:[%s2059_s1 + $0x220] sm:$0xff]  ;;  %v1612_v34 = vld [vmem:[%s2059_s1 + $0x218] sm:$0xff] }
  0x3b   : > { %905 = vmatpush.bf16.msrb.mxu2 %v1597_v20  ;;  %v960_v15 = vsel %vm943_vm5, %v951_v9, %v959_v10  ;;  %v1611_v20 = vld [vmem:[%s2059_s1 + $0x210] sm:$0xff] }
  0x3c   : > { %1014 = vmatpush.bf16.msrb.mxu3 %v1605_v21  ;;  %344 = vmatmul.bf16.gmra.mxu0 %v280_v29  ;;  %v1032_v21 = vld [vmem:[%s1773_s24 + $0x4] sm:$0x8] }
  0x3d   : > { %712 = vmatpush.bf16.msrb.mxu0 %v1580_v26  ;;  %415 = vmatmul.bf16.gmra.mxu1 %v351_v30 }
  0x3e   : > { %801 = vmatpush.bf16.msrb.mxu1 %v1588_v27  ;;  %507 = vmatmul.bf16.gmra.mxu2 %v442_v55  ;;  %v652_v55 = vrot.slane %v650_v43, 3  ;;  %v1053_v27 = vrot.slane %v1955_v38, 3 }
  0x3f   : > { %612 = vmatmul.bf16.gmra.mxu3 %v547_v57  ;;  %906 = vmatpush.bf16.msrb.mxu2 %v1596_v32  ;;  %v847_v57 = vpack.c.b16 %v845_v45, %v1624_v23  ;;  %v1050_v23 = vunpack.c.l.b16 %v1032_v21 }
  0x40   : > { %1015 = vmatpush.bf16.msrb.mxu3 %v1604_v35  ;;  %v656_v4 = vor.u32 %v655_v56, %v652_v55 }
  0x41   : > { %713 = vmatpush.bf16.msrb.mxu0 %v1579_v39  ;;  %v850_v8 = vrot.slane %v847_v57, 2  ;;  %v1051_v19 = vpack.c.b16 %v1623_v22, %v1050_v23 }
  0x42   : > { %802 = vmatpush.bf16.msrb.mxu1 %v1587_v40  ;;  %v657_v12 = vsel %vm640_vm3, %v648_v3, %v656_v4 }
  0x43   : > { %907 = vmatpush.bf16.msrb.mxu2 %v1595_v48  ;;  %v851_v13 = vsel %vm848_vm4, %v849_v7, %v850_v8  ;;  %v1052_v26 = vrot.slane %v1051_v19, 3 }
  0x44   : > { %1016 = vmatpush.bf16.msrb.mxu3 %v1603_v49 }
  0x45   : > { %714 = vmatpush.bf16.msrb.mxu0 %v1578_v51  ;;  %v1054_v29 = vsel %vm545_vm2, %v1052_v26, %v1053_v27 }
  0x46   : > { %803 = vmatpush.bf16.msrb.mxu1 %v1586_v52 }
  0x47   : > { %908 = vmatpush.bf16.msrb.mxu2 %v1594_v58 }
  0x48   : > { %1017 = vmatpush.bf16.msrb.mxu3 %v1602_v59 }
  0x49   : > { %715 = vmatpush.bf16.msrb.mxu0 %v1577_v0 }
  0x4a   : > { %804 = vmatpush.bf16.msrb.mxu1 %v1585_v1 }
  0x4b   : > { %909 = vmatpush.bf16.msrb.mxu2 %v1593_v5 }
  0x4c   : > { %1018 = vmatpush.bf16.msrb.mxu3 %v1601_v6  ;;  %716 = vmatmul.bf16.vlgmr.msrb.gmra.mxu0 %v657_v12 }
  0x4d   : > { %1105 = vmatpush.bf16.msra.mxu0 %v1616_v2  ;;  %805 = vmatmul.bf16.vlgmr.msrb.gmra.mxu1 %v745_v11 }
  0x4e   : > { %1629 = vmatpush.bf16.msra.mxu1 %v1616_v2  ;;  %910 = vmatmul.bf16.vlgmr.msrb.gmra.mxu2 %v851_v13  ;;  %v1662_v13 = vld [vmem:[%s2060_s2] ss:$0 sm:$0xff] }
  0x4f   : > { %1019 = vmatmul.bf16.vlgmr.msrb.gmra.mxu3 %v960_v15 }
  0x51   : > { %1106 = vmatpush.bf16.msra.mxu0 %v1615_v17 }
  0x52   : > { %1630 = vmatpush.bf16.msra.mxu1 %v1615_v17 }
  0x55   : > { %1107 = vmatpush.bf16.msra.mxu0 %v1614_v16 }
  0x56   : > { %1631 = vmatpush.bf16.msra.mxu1 %v1614_v16 }
  0x59   : > { %1108 = vmatpush.bf16.msra.mxu0 %v1613_v33 }
  0x5a   : > { %1632 = vmatpush.bf16.msra.mxu1 %v1613_v33 }
  0x5c   : > { %721 = vmatmul.bf16.gmra.mxu0 %v656_v4 }
  0x5d   : > { %1109 = vmatpush.bf16.msra.mxu0 %v1612_v34  ;;  %810 = vmatmul.bf16.gmra.mxu1 %v746_v18 }
  0x5e   : > { %1633 = vmatpush.bf16.msra.mxu1 %v1612_v34  ;;  %915 = vmatmul.bf16.gmra.mxu2 %v850_v8 }
  0x5f   : > { %1024 = vmatmul.bf16.gmra.mxu3 %v959_v10 }
  0x61   : > { %1110 = vmatpush.bf16.msra.mxu0 %v1611_v20 }
  0x62   : > { %1634 = vmatpush.bf16.msra.mxu1 %v1611_v20  ;;  %v1663_v20 = vld [vmem:[%s2061_s3] ss:$0 sm:$0xff] }
  0x65   : > { %1111 = vmatpush.bf16.msra.mxu0 %v1610_v24 }
  0x66   : > { %1635 = vmatpush.bf16.msra.mxu1 %v1610_v24 }
  0x69   : > { %1112 = vmatpush.bf16.msra.mxu0 %v1609_v25 }
  0x6a   : > { %1636 = vmatpush.bf16.msra.mxu1 %v1609_v25 }
  0x6c   : > { %1113 = vmatmul.bf16.vlgmr.msra.gmra.mxu0 %v1054_v29 }
  0x6d   : > { %1118 = vmatmul.bf16.vlgmr.msra.gmra.mxu1 %v1053_v27 }
  0xa9   : > { %v340_v30 = vpop.f32.mrf.mxu0 }
  0xaa   : > { %v411_v31 = vpop.f32.mrf.mxu1 }
  0xab   : > { %v412_v51 = vadd.f32 %v411_v31, %v340_v30 }
  0xb1   : > { %v503_v32 = vpop.f32.mrf.mxu2  ;;  %v342_v22 = vpop.f32.mrf.mxu0 }
  0xb2   : > { %v608_v14 = vpop.f32.mrf.mxu3  ;;  %v413_v35 = vpop.f32.mrf.mxu1  ;;  %v512_v53 = vadd.f32 %v503_v32, %v412_v51 }
  0xb3   : > { %v414_v61 = vadd.f32 %v413_v35, %v342_v22 }
  0xb4   : > { %v617_v59 = vadd.f32 %v608_v14, %v512_v53 }
  0xb9   : > { %v505_v36 = vpop.f32.mrf.mxu2  ;;  %v345_v39 = vpop.f32.mrf.mxu0 }
  0xba   : > { %v610_v37 = vpop.f32.mrf.mxu3  ;;  %v416_v40 = vpop.f32.mrf.mxu1  ;;  %v513_v0 = vadd.f32 %v505_v36, %v414_v61 }
  0xbb   : > { %v417_v52 = vadd.f32 %v416_v40, %v345_v39 }
  0xbc   : > { %v618_v7 = vadd.f32 %v610_v37, %v513_v0 }
  0xc1   : > { %v508_v41 = vpop.f32.mrf.mxu2  ;;  %v347_v43 = vpop.f32.mrf.mxu0 }
  0xc2   : > { %v613_v42 = vpop.f32.mrf.mxu3  ;;  %v418_v38 = vpop.f32.mrf.mxu1  ;;  %v514_v54 = vadd.f32 %v508_v41, %v417_v52 }
  0xc4   : > { %v619_v60 = vadd.f32 %v613_v42, %v514_v54 }
  0xc9   : > { %v510_v44 = vpop.f32.mrf.mxu2  ;;  %v717_v48 = vpop.f32.mrf.mxu0 }
  0xca   : > { %v615_v45 = vpop.f32.mrf.mxu3  ;;  %v806_v49 = vpop.f32.mrf.mxu1  ;;  %v726_v62 = vadd.f32 %v717_v48, %v617_v59 }
  0xcc   : > { %v815_v5 = vadd.f32 %v806_v49, %v726_v62 }
  0xd1   : > { %v911_v28 = vpop.f32.mrf.mxu2  ;;  %v719_v50 = vpop.f32.mrf.mxu0 }
  0xd2   : > { %v1020_v47 = vpop.f32.mrf.mxu3  ;;  %v808_v46 = vpop.f32.mrf.mxu1  ;;  %v920_v8 = vadd.f32 %v911_v28, %v815_v5  ;;  %v727_v10 = vadd.f32 %v719_v50, %v618_v7 }
  0xd4   : > { %v1029_v11 = vadd.f32 %v1020_v47, %v920_v8  ;;  %v816_v34 = vadd.f32 %v808_v46, %v727_v10 }
  0xd9   : > { %v913_v55 = vpop.f32.mrf.mxu2  ;;  %v722_v57 = vpop.f32.mrf.mxu0 }
  0xda   : > { %v1022_v56 = vpop.f32.mrf.mxu3  ;;  %v811_v58 = vpop.f32.mrf.mxu1  ;;  %v728_v63 = vadd.f32 %v722_v57, %v619_v60  ;;  %v921_v23 = vadd.f32 %v913_v55, %v816_v34 }
  0xdc   : > { %v817_v6 = vadd.f32 %v811_v58, %v728_v63  ;;  %v1030_v27 = vadd.f32 %v1022_v56, %v921_v23 }
  0xe1   : > { %v916_v1 = vpop.f32.mrf.mxu2  ;;  %v724_v3 = vpop.f32.mrf.mxu0 }
  0xe2   : > { %v1025_v2 = vpop.f32.mrf.mxu3  ;;  %v813_v4 = vpop.f32.mrf.mxu1  ;;  %v922_v9 = vadd.f32 %v916_v1, %v817_v6 }
  0xe4   : > { %v1031_v12 = vadd.f32 %v1025_v2, %v922_v9 }
  0xe9   : > { %v918_v15 = vpop.f32.mrf.mxu2  ;;  %v1114_v16 = vpop.f32.mrf.mxu0 }
  0xea   : > { %v1027_v17 = vpop.f32.mrf.mxu3  ;;  %v1119_v33 = vpop.f32.mrf.mxu1  ;;  %v1123_v18 = vadd.f32 %v1114_v16, %v1029_v11 }
  0xeb   : > { %v1125_v21 = vadd.f32 %v1119_v33, %v1031_v12 }
  0xec   : > { %v1130_v24 = vmul.f32 %v1662_v13, %v1123_v18 }
  0xed   : > { %v1132_v19 = vmul.f32 %v1662_v13, %v1125_v21 }
  0xee   : > { %v1137_v25 = vadd.f32 %v1663_v20, %v1130_v24 }
  0xef   : > { %v1139_v26 = vadd.f32 %v1663_v20, %v1132_v19 }
  0xf0   : > { %v1140_v29 = vpack.c.bf16 %v1137_v25, %v1137_v25 }
  0xf1   : > { %v1158_v30 = vpack.c.bf16 %v1139_v26, %v1139_v26  ;;  %v1116_v31 = vpop.f32.mrf.mxu0 }
  0xf2   : > { %v1121_v32 = vpop.f32.mrf.mxu1  ;;  %1141 = vst [vmem:[%s219_s25] sm:$0x3] %v1140_v29  ;;  %v1124_v22 = vadd.f32 %v1116_v31, %v1030_v27  ;;  %v1540_v39 = vrot.slane %v1140_v29, 9 }
  0xf3   : > { %v1160_v14 = vrot.slane %v1158_v30, 7 }
  0xf4   : > { %v1131_v35 = vmul.f32 %v1662_v13, %v1124_v22 }
  0xf5   : > { %1162 = vst [vmem:[%s219_s25 + $0x4] sm:$0xc] %v1160_v14 }
  0xf6   : > { %v1138_v36 = vadd.f32 %v1663_v20, %v1131_v35 }
  0xf8   : > { %v1142_v37 = vpack.c.bf16 %v1138_v36, %v1138_v36 }
  0xfa   : > { %v1150_v40 = vrot.slane %v1142_v37, 5  ;;  %v1541_v41 = vrot.slane %v1142_v37, 10 }
  0xfc   : > { %v1151_v42 = vsel %vm1147_vm8, %v1540_v39, %v1150_v40  ;;  %1157 = vst [vmem:[%s219_s25 + $0x4] sm:$0x3] %v1541_v41 }
  0xfd   : > { %1153 = vst [vmem:[%s219_s25] sm:$0xc] %v1151_v42 }
  0xfe PF: > { %s14_s17 = sadd.s32 1, %s1686_s17   ;;  %s2063_s15 = smov %s1682_s16 }
  0xff   : > { %p11_p5 = scmp.ge.s32.totalorder %s14_s17, 4   ;;  %s2064_s16 = smov %s2066_s18 }
 0x101   :  { %13 = sbr.rel (!%p11_p5) target bundleno = 2 (0x2), region = 66 }

</bundles_post_ra>
